<compile_context>
chip_gen: v6e
topology: v6e:2x2x1
jax: 0.10.0
libtpu: 0.0.40
codegen_flags: <defaults>
</compile_context>

<pallas_src>
import functools

import jax
import jax.numpy as jnp
from jax.experimental import pallas as pl
from jax.experimental.pallas import tpu as pltpu

N_LAYERS = 2  # stacked-LSTM depth hard-wired into the kernel body


# ----------------------------------------------------------------------------
# Fused kernel: (stage, time-block) grid, everything resident in VMEM.
# ----------------------------------------------------------------------------
def fused_kernel(u_ref, h0_ref, c0_ref, w0_ref, w1_ref, wh_ref,
                 out_ref, reg_ref, hT_ref, cT_ref,
                 x0_scr, regblk_scr,
                 *, hidden_dim, t_block, nt, nx, dt_dx, has_tail):
    stage = pl.program_id(0)
    blk = pl.program_id(1)
    H = hidden_dim

    # one-time init: recurrent state into the resident output refs; constant
    # pad rows of the layer-0 input slab (row 5 == 1.0 is the folded-bias lane).
    @pl.when((stage == 0) & (blk == 0))
    def _init():
        hT_ref[...] = h0_ref[...]
        cT_ref[...] = c0_ref[...]
        x0_scr[:, 5:6, :] = jnp.ones((t_block, 1, nx), jnp.float32)
        x0_scr[:, 6:8, :] = jnp.zeros((t_block, 2, nx), jnp.float32)

    # SSP-RK3 combination coefficients for the current stage.
    sa = jnp.where(stage == 0, 1.0, jnp.where(stage == 1, 0.75, 1.0 / 3.0))
    sb = jnp.where(stage == 0, 0.0, jnp.where(stage == 1, 0.25, 2.0 / 3.0))
    sg = jnp.where(stage == 0, 1.0, jnp.where(stage == 1, 0.25, 2.0 / 3.0))

    # Stage field for this block: stage 0 uses the original u, stages 1/2 read
    # the field the previous stage left resident in out_ref (select, no copy).
    u_stage = jnp.where(stage == 0, u_ref[...], out_ref[blk])   # (T, Nx)

    # Periodic 5-point stencil taps for the whole block (whole-block XLU rolls),
    # staged through VMEM so they are not held in vregs across the unrolled loop.
    for k in range(5):
        shift = (2 - k) % nx
        rolled = u_stage if shift == 0 else pltpu.roll(u_stage, shift=shift, axis=1)
        x0_scr[:, k, :] = rolled

    # Recurrent state, transposed (H, Nx) layout, resident across the whole grid.
    h0l = hT_ref[0]
    h1l = hT_ref[1]
    c0l = cT_ref[0]
    c1l = cT_ref[1]

    for j in range(t_block):                         # static unroll over the block
        taps8 = x0_scr[j]                            # (8, Nx): 5 taps, 1.0, 0, 0

        # -- LSTM layer 0: stencil input, hidden path and bias in ONE MXU matmul
        x0 = jnp.concatenate([taps8, h0l], axis=0)   # (8 + H, Nx)
        g0 = jnp.dot(w0_ref[...], x0, preferred_element_type=jnp.float32)
        i0 = jax.nn.sigmoid(g0[0:H, :])
        f0 = jax.nn.sigmoid(g0[H:2 * H, :])
        z0 = jnp.tanh(g0[2 * H:3 * H, :])
        o0 = jax.nn.sigmoid(g0[3 * H:4 * H, :])
        c0n = f0 * c0l + i0 * z0
        h0n = o0 * jnp.tanh(c0n)
        if has_tail:
            valid = (blk * t_block + j) < nt
            c0l = jnp.where(valid, c0n, c0l)
            h0l = jnp.where(valid, h0n, h0l)
        else:
            c0l, h0l = c0n, h0n

        # -- LSTM layer 1 (bias folded via the constant row-5 of taps8)
        x1 = jnp.concatenate([h0l, h1l, taps8], axis=0)      # (2H + 8, Nx)
        g1 = jnp.dot(w1_ref[...], x1, preferred_element_type=jnp.float32)
        i1 = jax.nn.sigmoid(g1[0:H, :])
        f1 = jax.nn.sigmoid(g1[H:2 * H, :])
        z1 = jnp.tanh(g1[2 * H:3 * H, :])
        o1 = jax.nn.sigmoid(g1[3 * H:4 * H, :])
        c1n = f1 * c1l + i1 * z1
        h1n = o1 * jnp.tanh(c1n)
        if has_tail:
            c1l = jnp.where(valid, c1n, c1l)
            h1l = jnp.where(valid, h1n, h1l)
        else:
            c1l, h1l = c1n, h1n

        # -- output head: fc2 and the frozen trf / WENO constants folded in
        xh = jnp.concatenate([h1l, taps8], axis=0)           # (H + 8, Nx)
        head = jnp.dot(wh_ref[...], xh, preferred_element_type=jnp.float32)
        fiT = head[0:5, :]                           # fc2(h): regularizer term
        fT = head[8:13, :]                           # trf(fc2(h)+c_weno): flux weights
        regblk_scr[:, j, :] = fiT * fiT

        # -- dui[t, :] = sum_k f[:, k] * stencil_k  and the SSP-RK3 flux update
        dui = fT[0:1, :] * taps8[0:1, :]
        for k in range(1, 5):
            dui = dui + fT[k:k + 1, :] * taps8[k:k + 1, :]   # (1, Nx)
        duiL = pltpu.roll(dui, shift=1, axis=1)              # dui[x-1] (periodic)
        dflux = (0.5 * dt_dx) * (dui * dui - duiL * duiL)
        u_new = sa * u_ref[j:j + 1, :] + sb * taps8[2:3, :] - sg * dflux
        out_ref[blk, j] = u_new[0]                   # next stage's field / final out

    # write the recurrent state back once per block (resident output refs)
    hT_ref[0] = h0l
    hT_ref[1] = h1l
    cT_ref[0] = c0l
    cT_ref[1] = c1l

    # accumulate the fi^2 regularizer for this block across the three RK stages
    prev = jnp.where(stage == 0, 0.0, reg_ref[blk])
    reg_ref[blk] = prev + regblk_scr[...]


# ----------------------------------------------------------------------------
# Wrapper: PyTorch conventions in/out, single pallas_call.
# ----------------------------------------------------------------------------
def model_forward(ui, dt, dx, hidden, params, *, t_block=8):
    """ui: (1, Nt, Nx) (PyTorch convention); neural (test == 1) branch only."""
    u = ui[0].astype(jnp.float32)                            # (Nt, Nx)
    Nt, Nx = u.shape
    h0, c0 = hidden                                          # (L, Nx, H)
    L, _, H = h0.shape
    assert L == N_LAYERS, "kernel body hard-wires a 2-layer stacked LSTM"
    w0cat, w1cat, whead = params
    assert w0cat.shape == (4 * H, 8 + H)

    t_block = max(8, int(t_block))
    assert t_block % 8 == 0
    Nt_pad = ((Nt + t_block - 1) // t_block) * t_block
    n_blocks = Nt_pad // t_block
    has_tail = Nt_pad != Nt
    if has_tail:
        u = jnp.concatenate([u, jnp.zeros((Nt_pad - Nt, Nx), jnp.float32)], axis=0)
    dt_dx = float(dt) / float(dx)

    # lane-friendly layout: Nx (LSTM batch) on lanes, features on sublanes.
    # (Nx a multiple of 128 gives full lane occupancy.)
    h0T = jnp.transpose(h0, (0, 2, 1)).astype(jnp.float32)   # (L, H, Nx)
    c0T = jnp.transpose(c0, (0, 2, 1)).astype(jnp.float32)

    kernel = functools.partial(fused_kernel, hidden_dim=H, t_block=t_block,
                               nt=Nt, nx=Nx, dt_dx=dt_dx, has_tail=has_tail)

    def _resident(shape):
        zeros = (0,) * len(shape)
        return pl.BlockSpec(shape, lambda s, b, _z=zeros: _z)

    # VMEM budget (resident outputs + weights + streamed u block + scratches)
    est_words = (n_blocks * t_block * Nx * 6                  # out + reg (resident)
                 + 4 * L * H * Nx                             # h0, c0, hT, cT
                 + 4 * H * (8 + H) + 4 * H * (2 * H + 8) + 16 * (H + 8)
                 + 2 * t_block * Nx                           # u, double-buffered
                 + t_block * 8 * Nx + 5 * t_block * Nx)       # scratches
    vmem_limit = int(min(max(2 * 4 * est_words + (4 << 20), 32 << 20), 128 << 20))

    out, reg, hT, cT = pl.pallas_call(
        kernel,
        out_shape=(
            jax.ShapeDtypeStruct((n_blocks, t_block, Nx), jnp.float32),    # field
            jax.ShapeDtypeStruct((n_blocks, 5, t_block, Nx), jnp.float32),  # reg
            jax.ShapeDtypeStruct((L, H, Nx), jnp.float32),                 # h_N
            jax.ShapeDtypeStruct((L, H, Nx), jnp.float32)),                # c_N
        grid=(3, n_blocks),
        in_specs=[
            pl.BlockSpec((t_block, Nx), lambda s, b: (b, 0)),  # u, streamed per block
            _resident(h0T.shape), _resident(c0T.shape),
            _resident(w0cat.shape), _resident(w1cat.shape), _resident(whead.shape),
        ],
        out_specs=(
            _resident((n_blocks, t_block, Nx)),      # resident: one writeback total
            _resident((n_blocks, 5, t_block, Nx)),   # resident accumulator
            _resident((L, H, Nx)),
            _resident((L, H, Nx)),
        ),
        scratch_shapes=[
            pltpu.VMEM((t_block, 8, Nx), jnp.float32),   # stencil taps + bias lane
            pltpu.VMEM((5, t_block, Nx), jnp.float32),   # per-block fi^2
        ],
        compiler_params=pltpu.CompilerParams(
            dimension_semantics=("arbitrary", "arbitrary"),   # sequential recurrence
            vmem_limit_bytes=vmem_limit),
    )(u, h0T, c0T, w0cat, w1cat, whead)

    out_full = out.reshape(Nt_pad, Nx)[:Nt]
    reg_out = jnp.transpose(reg, (3, 0, 2, 1)).reshape(Nx, Nt_pad, 5)[:, :Nt, :]
    hN = jnp.transpose(hT, (0, 2, 1))                        # (L, Nx, H)
    cN = jnp.transpose(cT, (0, 2, 1))
    return out_full[None], (hN, cN), reg_out


# ----------------------------------------------------------------------------
# Parameters: raw (PyTorch-orientation) + folded kernel layout.
# ----------------------------------------------------------------------------
def init_raw_params(key, H, input_size=5):
    ks = jax.random.split(key, 10)
    s = 1.0 / float(H) ** 0.5
    rnd = lambda k, shape: jax.random.uniform(k, shape, jnp.float32, -s, s)
    return dict(
        wih0=rnd(ks[0], (4 * H, input_size)),
        whh0=rnd(ks[1], (4 * H, H)),
        b0=rnd(ks[2], (4 * H,)) + rnd(ks[3], (4 * H,)),
        wih1=rnd(ks[4], (4 * H, H)),
        whh1=rnd(ks[5], (4 * H, H)),
        b1=rnd(ks[6], (4 * H,)) + rnd(ks[7], (4 * H,)),
        wfc2=rnd(ks[8], (5, H)),
        bfc2=rnd(ks[9], (5,)),
        wtrf=jnp.array([[0.4, -0.4, -0.2, 0.0, 0.2],
                        [-0.4, 0.7, -0.2, -0.1, 0.0],
                        [-0.2, -0.2, 0.8, -0.2, -0.2],
                        [0.0, -0.1, -0.2, 0.7, -0.4],
                        [0.2, 0.0, -0.2, -0.4, 0.4]], jnp.float32),
        btrf=jnp.array([0.1, 0.15, 0.2, 0.25, 0.3], jnp.float32),
        cweno=jnp.array([2.0 / 60.0, -13.0 / 60.0, 47.0 / 60.0,
                         27.0 / 60.0, -3.0 / 60.0], jnp.float32),
    )


def fold_params(raw, H):
    # layer 0: [W_ih0 | b0 | 0 0 | W_hh0]   acts on [taps(5); 1; 0; 0; h0]
    w0 = jnp.zeros((4 * H, 8 + H), jnp.float32)
    w0 = (w0.at[:, 0:5].set(raw['wih0'])
            .at[:, 5].set(raw['b0'])
            .at[:, 8:8 + H].set(raw['whh0']))
    # layer 1: [W_ih1 | W_hh1 | 0...b1...0]  acts on [h0; h1; taps8]
    w1 = jnp.zeros((4 * H, 2 * H + 8), jnp.float32)
    w1 = (w1.at[:, 0:H].set(raw['wih1'])
            .at[:, H:2 * H].set(raw['whh1'])
            .at[:, 2 * H + 5].set(raw['b1']))
    # head: rows 0:5 -> fi (fc2), rows 8:13 -> f = trf(fc2(.) + c_weno)
    wf = raw['wtrf'] @ raw['wfc2']
    bf = raw['wtrf'] @ (raw['bfc2'] + raw['cweno']) + raw['btrf']
    wh = jnp.zeros((16, H + 8), jnp.float32)
    wh = (wh.at[0:5, 0:H].set(raw['wfc2']).at[0:5, H + 5].set(raw['bfc2'])
            .at[8:13, 0:H].set(wf).at[8:13, H + 5].set(bf))
    return (w0, w1, wh)


# ----------------------------------------------------------------------------
# Pure-JAX reference (float32) used to validate the kernel.
# ----------------------------------------------------------------------------
def reference_forward(ui, dt, dx, hidden, raw):
    hp = jax.lax.Precision.HIGHEST
    u0 = ui[0].astype(jnp.float32)
    Nt, Nx = u0.shape
    H = raw['whh0'].shape[1]
    h = [jnp.transpose(hidden[0][l]).astype(jnp.float32) for l in range(2)]
    c = [jnp.transpose(hidden[1][l]).astype(jnp.float32) for l in range(2)]
    dt_dx = float(dt) / float(dx)
    reg = jnp.zeros((Nt, 5, Nx), jnp.float32)
    u_stage = u0
    for sa, sb, sg in [(1.0, 0.0, 1.0), (0.75, 0.25, 0.25),
                       (1.0 / 3.0, 2.0 / 3.0, 2.0 / 3.0)]:
        dui_rows, fi_sq = [], []
        for t in range(Nt):
            taps = jnp.stack([jnp.roll(u_stage[t], 2 - k) for k in range(5)], axis=0)
            g0 = (jnp.dot(raw['wih0'], taps, precision=hp)
                  + jnp.dot(raw['whh0'], h[0], precision=hp) + raw['b0'][:, None])
            i0, f0 = jax.nn.sigmoid(g0[0:H]), jax.nn.sigmoid(g0[H:2 * H])
            z0, o0 = jnp.tanh(g0[2 * H:3 * H]), jax.nn.sigmoid(g0[3 * H:4 * H])
            c[0] = f0 * c[0] + i0 * z0
            h[0] = o0 * jnp.tanh(c[0])
            g1 = (jnp.dot(raw['wih1'], h[0], precision=hp)
                  + jnp.dot(raw['whh1'], h[1], precision=hp) + raw['b1'][:, None])
            i1, f1 = jax.nn.sigmoid(g1[0:H]), jax.nn.sigmoid(g1[H:2 * H])
            z1, o1 = jnp.tanh(g1[2 * H:3 * H]), jax.nn.sigmoid(g1[3 * H:4 * H])
            c[1] = f1 * c[1] + i1 * z1
            h[1] = o1 * jnp.tanh(c[1])
            fi = jnp.dot(raw['wfc2'], h[1], precision=hp) + raw['bfc2'][:, None]
            f = (jnp.dot(raw['wtrf'], fi + raw['cweno'][:, None], precision=hp)
                 + raw['btrf'][:, None])
            dui_rows.append(jnp.sum(f * taps, axis=0))
            fi_sq.append(fi * fi)
        dui = jnp.stack(dui_rows, axis=0)
        reg = reg + jnp.stack(fi_sq, axis=0)
        duiL = jnp.roll(dui, 1, axis=1)
        u_stage = sa * u0 + sb * u_stage - sg * 0.5 * dt_dx * (dui * dui - duiL * duiL)
    hN = jnp.stack([jnp.transpose(h[0]), jnp.transpose(h[1])], axis=0)
    cN = jnp.stack([jnp.transpose(c[0]), jnp.transpose(c[1])], axis=0)
    return u_stage[None], (hN, cN), jnp.transpose(reg, (2, 0, 1))


if __name__ == "__main__":
    Nt, Nx, H = 16, 128, 32          # Nx multiple of 128 -> full lane occupancy
    dx = 0.01
    dt = 0.25 * dx                   # cfl * dx

    key = jax.random.PRNGKey(0)
    k_u, k_p, k_h, k_c = jax.random.split(key, 4)

    xgrid = jnp.linspace(0.0, 1.0, Nx, endpoint=False)
    ui = (jnp.sin(2.0 * jnp.pi * xgrid)[None, None, :]
          + 0.05 * jax.random.normal(k_u, (1, Nt, Nx), jnp.float32)
          ).astype(jnp.float32)

    raw = init_raw_params(k_p, H)
    params = fold_params(raw, H)
    hidden = (0.1 * jax.random.normal(k_h, (N_LAYERS, Nx, H), jnp.float32),
              0.1 * jax.random.normal(k_c, (N_LAYERS, Nx, H), jnp.float32))

    out, (hN, cN), reg = model_forward(ui, dt, dx, hidden, params)
    jax.block_until_ready((out, hN, cN, reg))

    assert out.shape == (1, Nt, Nx), out.shape
    assert hN.shape == (N_LAYERS, Nx, H) and cN.shape == (N_LAYERS, Nx, H)
    assert reg.shape == (Nx, Nt, 5), reg.shape
    assert bool(jnp.all(jnp.isfinite(out)))
    assert bool(jnp.all(jnp.isfinite(reg)))

    # validate against the pure-JAX float32 reference
    r_out, (r_h, r_c), r_reg = reference_forward(ui, dt, dx, hidden, raw)
    jax.block_until_ready((r_out, r_h, r_c, r_reg))
    tol = dict(rtol=5e-3, atol=5e-3)
    assert bool(jnp.allclose(out, r_out, **tol)), float(jnp.max(jnp.abs(out - r_out)))
    assert bool(jnp.allclose(hN, r_h, **tol)), float(jnp.max(jnp.abs(hN - r_h)))
    assert bool(jnp.allclose(cN, r_c, **tol)), float(jnp.max(jnp.abs(cN - r_c)))
    assert bool(jnp.allclose(reg, r_reg, **tol)), float(jnp.max(jnp.abs(reg - r_reg)))

    print("KERNEL_OK")
</pallas_src>

<mosaic_0001>
module attributes {stable_mosaic.version = 11 : i64} {
  func.func @fused_kernel(%arg0: i32, %arg1: i32, %arg2: memref<8x128xf32, #tpu.memory_space<vmem>>, %arg3: memref<2x32x128xf32, #tpu.memory_space<vmem>>, %arg4: memref<2x32x128xf32, #tpu.memory_space<vmem>>, %arg5: memref<128x40xf32, #tpu.memory_space<vmem>>, %arg6: memref<128x72xf32, #tpu.memory_space<vmem>>, %arg7: memref<16x40xf32, #tpu.memory_space<vmem>>, %arg8: memref<2x8x128xf32, #tpu.memory_space<vmem>>, %arg9: memref<2x5x8x128xf32, #tpu.memory_space<vmem>>, %arg10: memref<2x32x128xf32, #tpu.memory_space<vmem>>, %arg11: memref<2x32x128xf32, #tpu.memory_space<vmem>>, %arg12: memref<8x8x128xf32, #tpu.memory_space<vmem>>, %arg13: memref<5x8x128xf32, #tpu.memory_space<vmem>>) attributes {dimension_semantics = [#tpu.dimension_semantics<arbitrary>, #tpu.dimension_semantics<arbitrary>], iteration_bounds = array<i64: 3, 2>, scalar_prefetch = 0 : i64, scratch_operands = 2 : i64, tpu.core_type = #tpu.core_type<tc>, window_params = [{transform_indices = @transform_0, window_bounds = array<i64: 8, 128>}, {pipeline_mode = #tpu.pipeline_mode<synchronous>, transform_indices = @transform_1, window_bounds = array<i64: 2, 32, 128>}, {pipeline_mode = #tpu.pipeline_mode<synchronous>, transform_indices = @transform_2, window_bounds = array<i64: 2, 32, 128>}, {pipeline_mode = #tpu.pipeline_mode<synchronous>, transform_indices = @transform_3, window_bounds = array<i64: 128, 40>}, {pipeline_mode = #tpu.pipeline_mode<synchronous>, transform_indices = @transform_4, window_bounds = array<i64: 128, 72>}, {pipeline_mode = #tpu.pipeline_mode<synchronous>, transform_indices = @transform_5, window_bounds = array<i64: 16, 40>}, {pipeline_mode = #tpu.pipeline_mode<synchronous>, transform_indices = @transform_6, window_bounds = array<i64: 2, 8, 128>}, {pipeline_mode = #tpu.pipeline_mode<synchronous>, transform_indices = @transform_7, window_bounds = array<i64: 2, 5, 8, 128>}, {pipeline_mode = #tpu.pipeline_mode<synchronous>, transform_indices = @transform_8, window_bounds = array<i64: 2, 32, 128>}, {pipeline_mode = #tpu.pipeline_mode<synchronous>, transform_indices = @transform_9, window_bounds = array<i64: 2, 32, 128>}]} {
    %c0_i32 = arith.constant 0 : i32
    %0 = arith.cmpi eq, %arg0, %c0_i32 : i32
    %c0_i32_0 = arith.constant 0 : i32
    %1 = arith.cmpi eq, %arg1, %c0_i32_0 : i32
    %2 = arith.andi %0, %1 : i1
    %3 = arith.extui %2 : i1 to i32
    %c0_i32_1 = arith.constant 0 : i32
    %4 = arith.cmpi ne, %3, %c0_i32_1 : i32
    scf.if %4 {
      %c0_279 = arith.constant 0 : index
      %c0_280 = arith.constant 0 : index
      %c0_281 = arith.constant 0 : index
      %930 = vector.load %arg3[%c0_279, %c0_280, %c0_281] : memref<2x32x128xf32, #tpu.memory_space<vmem>>, vector<2x32x128xf32>
      %c0_282 = arith.constant 0 : index
      %c0_283 = arith.constant 0 : index
      %c0_284 = arith.constant 0 : index
      %931 = vector.load %arg10[%c0_282, %c0_283, %c0_284] : memref<2x32x128xf32, #tpu.memory_space<vmem>>, vector<2x32x128xf32>
      tpu.vector_store %arg10[%c0_282, %c0_283, %c0_284], %930 {strides = array<i32>} : memref<2x32x128xf32, #tpu.memory_space<vmem>>, vector<2x32x128xf32>,
      %c0_285 = arith.constant 0 : index
      %c0_286 = arith.constant 0 : index
      %c0_287 = arith.constant 0 : index
      %932 = vector.load %arg4[%c0_285, %c0_286, %c0_287] : memref<2x32x128xf32, #tpu.memory_space<vmem>>, vector<2x32x128xf32>
      %c0_288 = arith.constant 0 : index
      %c0_289 = arith.constant 0 : index
      %c0_290 = arith.constant 0 : index
      %933 = vector.load %arg11[%c0_288, %c0_289, %c0_290] : memref<2x32x128xf32, #tpu.memory_space<vmem>>, vector<2x32x128xf32>
      tpu.vector_store %arg11[%c0_288, %c0_289, %c0_290], %932 {strides = array<i32>} : memref<2x32x128xf32, #tpu.memory_space<vmem>>, vector<2x32x128xf32>,
      %cst_291 = arith.constant 1.000000e+00 : f32
      %934 = vector.broadcast %cst_291 : f32 to vector<8x1x128xf32>
      %c0_292 = arith.constant 0 : index
      %c5_293 = arith.constant 5 : index
      %c0_294 = arith.constant 0 : index
      %935 = vector.load %arg12[%c0_292, %c5_293, %c0_294] : memref<8x8x128xf32, #tpu.memory_space<vmem>>, vector<8x1x128xf32>
      tpu.vector_store %arg12[%c0_292, %c5_293, %c0_294], %934 {strides = array<i32>} : memref<8x8x128xf32, #tpu.memory_space<vmem>>, vector<8x1x128xf32>,
      %cst_295 = arith.constant 0.000000e+00 : f32
      %936 = vector.broadcast %cst_295 : f32 to vector<8x2x128xf32>
      %c0_296 = arith.constant 0 : index
      %c6_297 = arith.constant 6 : index
      %c0_298 = arith.constant 0 : index
      %937 = vector.load %arg12[%c0_296, %c6_297, %c0_298] : memref<8x8x128xf32, #tpu.memory_space<vmem>>, vector<8x2x128xf32>
      tpu.vector_store %arg12[%c0_296, %c6_297, %c0_298], %936 {strides = array<i32>} : memref<8x8x128xf32, #tpu.memory_space<vmem>>, vector<8x2x128xf32>,
    } else {
    }
    %c0_i32_2 = arith.constant 0 : i32
    %5 = arith.cmpi eq, %arg0, %c0_i32_2 : i32
    %c1_i32 = arith.constant 1 : i32
    %6 = arith.cmpi eq, %arg0, %c1_i32 : i32
    %cst = arith.constant 7.500000e-01 : f32
    %cst_3 = arith.constant 0.333333343 : f32
    %7 = arith.select %6, %cst, %cst_3 : f32
    %cst_4 = arith.constant 1.000000e+00 : f32
    %8 = arith.select %5, %cst_4, %7 : f32
    %c0_i32_5 = arith.constant 0 : i32
    %9 = arith.cmpi eq, %arg0, %c0_i32_5 : i32
    %c1_i32_6 = arith.constant 1 : i32
    %10 = arith.cmpi eq, %arg0, %c1_i32_6 : i32
    %cst_7 = arith.constant 2.500000e-01 : f32
    %cst_8 = arith.constant 0.666666686 : f32
    %11 = arith.select %10, %cst_7, %cst_8 : f32
    %cst_9 = arith.constant 0.000000e+00 : f32
    %12 = arith.select %9, %cst_9, %11 : f32
    %c0_i32_10 = arith.constant 0 : i32
    %13 = arith.cmpi eq, %arg0, %c0_i32_10 : i32
    %c1_i32_11 = arith.constant 1 : i32
    %14 = arith.cmpi eq, %arg0, %c1_i32_11 : i32
    %cst_12 = arith.constant 2.500000e-01 : f32
    %cst_13 = arith.constant 0.666666686 : f32
    %15 = arith.select %14, %cst_12, %cst_13 : f32
    %cst_14 = arith.constant 1.000000e+00 : f32
    %16 = arith.select %13, %cst_14, %15 : f32
    %c0_i32_15 = arith.constant 0 : i32
    %17 = arith.cmpi eq, %arg0, %c0_i32_15 : i32
    %c0 = arith.constant 0 : index
    %c0_16 = arith.constant 0 : index
    %18 = vector.load %arg2[%c0, %c0_16] : memref<8x128xf32, #tpu.memory_space<vmem>>, vector<8x128xf32>
    %19 = arith.index_cast %arg1 : i32 to index
    %c0_17 = arith.constant 0 : index
    %c0_18 = arith.constant 0 : index
    %20 = vector.load %arg8[%19, %c0_17, %c0_18] : memref<2x8x128xf32, #tpu.memory_space<vmem>>, vector<1x8x128xf32>
    %21 = vector.shape_cast %20 : vector<1x8x128xf32> to vector<8x128xf32>
    %22 = arith.select %17, %18, %21 : vector<8x128xf32>
    %c2_i32 = arith.constant 2 : i32
    %23 = tpu.dynamic_rotate %22 by %c2_i32 dim 1 : vector<8x128xf32>, i32 -> vector<8x128xf32>
    %c0_19 = arith.constant 0 : index
    %c0_20 = arith.constant 0 : index
    %c0_21 = arith.constant 0 : index
    %24 = vector.load %arg12[%c0_19, %c0_20, %c0_21] : memref<8x8x128xf32, #tpu.memory_space<vmem>>, vector<8x1x128xf32>
    %25 = vector.shape_cast %24 : vector<8x1x128xf32> to vector<8x128xf32>
    %26 = vector.shape_cast %23 : vector<8x128xf32> to vector<8x1x128xf32>
    tpu.vector_store %arg12[%c0_19, %c0_20, %c0_21], %26 {strides = array<i32>} : memref<8x8x128xf32, #tpu.memory_space<vmem>>, vector<8x1x128xf32>,
    %c1_i32_22 = arith.constant 1 : i32
    %27 = tpu.dynamic_rotate %22 by %c1_i32_22 dim 1 : vector<8x128xf32>, i32 -> vector<8x128xf32>
    %c0_23 = arith.constant 0 : index
    %c1 = arith.constant 1 : index
    %c0_24 = arith.constant 0 : index
    %28 = vector.load %arg12[%c0_23, %c1, %c0_24] : memref<8x8x128xf32, #tpu.memory_space<vmem>>, vector<8x1x128xf32>
    %29 = vector.shape_cast %28 : vector<8x1x128xf32> to vector<8x128xf32>
    %30 = vector.shape_cast %27 : vector<8x128xf32> to vector<8x1x128xf32>
    tpu.vector_store %arg12[%c0_23, %c1, %c0_24], %30 {strides = array<i32>} : memref<8x8x128xf32, #tpu.memory_space<vmem>>, vector<8x1x128xf32>,
    %c0_25 = arith.constant 0 : index
    %c2 = arith.constant 2 : index
    %c0_26 = arith.constant 0 : index
    %31 = vector.load %arg12[%c0_25, %c2, %c0_26] : memref<8x8x128xf32, #tpu.memory_space<vmem>>, vector<8x1x128xf32>
    %32 = vector.shape_cast %31 : vector<8x1x128xf32> to vector<8x128xf32>
    %33 = vector.shape_cast %22 : vector<8x128xf32> to vector<8x1x128xf32>
    tpu.vector_store %arg12[%c0_25, %c2, %c0_26], %33 {strides = array<i32>} : memref<8x8x128xf32, #tpu.memory_space<vmem>>, vector<8x1x128xf32>,
    %c127_i32 = arith.constant 127 : i32
    %34 = tpu.dynamic_rotate %22 by %c127_i32 dim 1 : vector<8x128xf32>, i32 -> vector<8x128xf32>
    %c0_27 = arith.constant 0 : index
    %c3 = arith.constant 3 : index
    %c0_28 = arith.constant 0 : index
    %35 = vector.load %arg12[%c0_27, %c3, %c0_28] : memref<8x8x128xf32, #tpu.memory_space<vmem>>, vector<8x1x128xf32>
    %36 = vector.shape_cast %35 : vector<8x1x128xf32> to vector<8x128xf32>
    %37 = vector.shape_cast %34 : vector<8x128xf32> to vector<8x1x128xf32>
    tpu.vector_store %arg12[%c0_27, %c3, %c0_28], %37 {strides = array<i32>} : memref<8x8x128xf32, #tpu.memory_space<vmem>>, vector<8x1x128xf32>,
    %c126_i32 = arith.constant 126 : i32
    %38 = tpu.dynamic_rotate %22 by %c126_i32 dim 1 : vector<8x128xf32>, i32 -> vector<8x128xf32>
    %c0_29 = arith.constant 0 : index
    %c4 = arith.constant 4 : index
    %c0_30 = arith.constant 0 : index
    %39 = vector.load %arg12[%c0_29, %c4, %c0_30] : memref<8x8x128xf32, #tpu.memory_space<vmem>>, vector<8x1x128xf32>
    %40 = vector.shape_cast %39 : vector<8x1x128xf32> to vector<8x128xf32>
    %41 = vector.shape_cast %38 : vector<8x128xf32> to vector<8x1x128xf32>
    tpu.vector_store %arg12[%c0_29, %c4, %c0_30], %41 {strides = array<i32>} : memref<8x8x128xf32, #tpu.memory_space<vmem>>, vector<8x1x128xf32>,
    %c0_31 = arith.constant 0 : index
    %c0_32 = arith.constant 0 : index
    %c0_33 = arith.constant 0 : index
    %42 = vector.load %arg10[%c0_31, %c0_32, %c0_33] : memref<2x32x128xf32, #tpu.memory_space<vmem>>, vector<1x32x128xf32>
    %43 = vector.shape_cast %42 : vector<1x32x128xf32> to vector<32x128xf32>
    %c1_34 = arith.constant 1 : index
    %c0_35 = arith.constant 0 : index
    %c0_36 = arith.constant 0 : index
    %44 = vector.load %arg10[%c1_34, %c0_35, %c0_36] : memref<2x32x128xf32, #tpu.memory_space<vmem>>, vector<1x32x128xf32>
    %45 = vector.shape_cast %44 : vector<1x32x128xf32> to vector<32x128xf32>
    %c0_37 = arith.constant 0 : index
    %c0_38 = arith.constant 0 : index
    %c0_39 = arith.constant 0 : index
    %46 = vector.load %arg11[%c0_37, %c0_38, %c0_39] : memref<2x32x128xf32, #tpu.memory_space<vmem>>, vector<1x32x128xf32>
    %47 = vector.shape_cast %46 : vector<1x32x128xf32> to vector<32x128xf32>
    %c1_40 = arith.constant 1 : index
    %c0_41 = arith.constant 0 : index
    %c0_42 = arith.constant 0 : index
    %48 = vector.load %arg11[%c1_40, %c0_41, %c0_42] : memref<2x32x128xf32, #tpu.memory_space<vmem>>, vector<1x32x128xf32>
    %49 = vector.shape_cast %48 : vector<1x32x128xf32> to vector<32x128xf32>
    %c0_43 = arith.constant 0 : index
    %c0_44 = arith.constant 0 : index
    %c0_45 = arith.constant 0 : index
    %50 = vector.load %arg12[%c0_43, %c0_44, %c0_45] : memref<8x8x128xf32, #tpu.memory_space<vmem>>, vector<1x8x128xf32>
    %51 = vector.shape_cast %50 : vector<1x8x128xf32> to vector<8x128xf32>
    %52 = tpu.concatenate %51, %43 in 0 : vector<8x128xf32>, vector<32x128xf32> -> vector<40x128xf32>
    %c0_46 = arith.constant 0 : index
    %c0_47 = arith.constant 0 : index
    %53 = vector.load %arg5[%c0_46, %c0_47] : memref<128x40xf32, #tpu.memory_space<vmem>>, vector<128x40xf32>
    %cst_48 = arith.constant dense<0.000000e+00> : vector<128x128xf32>
    %54 = tpu.matmul %53, %52, %cst_48 {dimension_numbers = #tpu.dot_dimension_numbers<[1], [0], [0], [1], [0, 0, 1, 1], [], []>} : vector<128x40xf32>, vector<40x128xf32>, vector<128x128xf32> -> vector<128x128xf32>
    %55 = vector.extract_strided_slice %54 {offsets = [0, 0], sizes = [32, 128], strides = [1, 1]} : vector<128x128xf32> to vector<32x128xf32>
    %56 = arith.negf %55 : vector<32x128xf32>
    %57 = math.exp %56 : vector<32x128xf32>
    %cst_49 = arith.constant 1.000000e+00 : f32
    %58 = vector.broadcast %cst_49 : f32 to vector<32x128xf32>
    %59 = arith.addf %58, %57 : vector<32x128xf32>
    %60 = arith.divf %58, %59 : vector<32x128xf32>
    %61 = vector.extract_strided_slice %54 {offsets = [32, 0], sizes = [32, 128], strides = [1, 1]} : vector<128x128xf32> to vector<32x128xf32>
    %62 = arith.negf %61 : vector<32x128xf32>
    %63 = math.exp %62 : vector<32x128xf32>
    %cst_50 = arith.constant 1.000000e+00 : f32
    %64 = vector.broadcast %cst_50 : f32 to vector<32x128xf32>
    %65 = arith.addf %64, %63 : vector<32x128xf32>
    %66 = arith.divf %64, %65 : vector<32x128xf32>
    %67 = vector.extract_strided_slice %54 {offsets = [64, 0], sizes = [32, 128], strides = [1, 1]} : vector<128x128xf32> to vector<32x128xf32>
    %68 = math.tanh %67 : vector<32x128xf32>
    %69 = vector.extract_strided_slice %54 {offsets = [96, 0], sizes = [32, 128], strides = [1, 1]} : vector<128x128xf32> to vector<32x128xf32>
    %70 = arith.negf %69 : vector<32x128xf32>
    %71 = math.exp %70 : vector<32x128xf32>
    %cst_51 = arith.constant 1.000000e+00 : f32
    %72 = vector.broadcast %cst_51 : f32 to vector<32x128xf32>
    %73 = arith.addf %72, %71 : vector<32x128xf32>
    %74 = arith.divf %72, %73 : vector<32x128xf32>
    %75 = arith.mulf %66, %47 : vector<32x128xf32>
    %76 = arith.mulf %60, %68 : vector<32x128xf32>
    %77 = arith.addf %75, %76 : vector<32x128xf32>
    %78 = math.tanh %77 : vector<32x128xf32>
    %79 = arith.mulf %74, %78 : vector<32x128xf32>
    %80 = tpu.concatenate %79, %45, %51 in 0 : vector<32x128xf32>, vector<32x128xf32>, vector<8x128xf32> -> vector<72x128xf32>
    %c0_52 = arith.constant 0 : index
    %c0_53 = arith.constant 0 : index
    %81 = vector.load %arg6[%c0_52, %c0_53] : memref<128x72xf32, #tpu.memory_space<vmem>>, vector<128x72xf32>
    %cst_54 = arith.constant dense<0.000000e+00> : vector<128x128xf32>
    %82 = tpu.matmul %81, %80, %cst_54 {dimension_numbers = #tpu.dot_dimension_numbers<[1], [0], [0], [1], [0, 0, 1, 1], [], []>} : vector<128x72xf32>, vector<72x128xf32>, vector<128x128xf32> -> vector<128x128xf32>
    %83 = vector.extract_strided_slice %82 {offsets = [0, 0], sizes = [32, 128], strides = [1, 1]} : vector<128x128xf32> to vector<32x128xf32>
    %84 = arith.negf %83 : vector<32x128xf32>
    %85 = math.exp %84 : vector<32x128xf32>
    %cst_55 = arith.constant 1.000000e+00 : f32
    %86 = vector.broadcast %cst_55 : f32 to vector<32x128xf32>
    %87 = arith.addf %86, %85 : vector<32x128xf32>
    %88 = arith.divf %86, %87 : vector<32x128xf32>
    %89 = vector.extract_strided_slice %82 {offsets = [32, 0], sizes = [32, 128], strides = [1, 1]} : vector<128x128xf32> to vector<32x128xf32>
    %90 = arith.negf %89 : vector<32x128xf32>
    %91 = math.exp %90 : vector<32x128xf32>
    %cst_56 = arith.constant 1.000000e+00 : f32
    %92 = vector.broadcast %cst_56 : f32 to vector<32x128xf32>
    %93 = arith.addf %92, %91 : vector<32x128xf32>
    %94 = arith.divf %92, %93 : vector<32x128xf32>
    %95 = vector.extract_strided_slice %82 {offsets = [64, 0], sizes = [32, 128], strides = [1, 1]} : vector<128x128xf32> to vector<32x128xf32>
    %96 = math.tanh %95 : vector<32x128xf32>
    %97 = vector.extract_strided_slice %82 {offsets = [96, 0], sizes = [32, 128], strides = [1, 1]} : vector<128x128xf32> to vector<32x128xf32>
    %98 = arith.negf %97 : vector<32x128xf32>
    %99 = math.exp %98 : vector<32x128xf32>
    %cst_57 = arith.constant 1.000000e+00 : f32
    %100 = vector.broadcast %cst_57 : f32 to vector<32x128xf32>
    %101 = arith.addf %100, %99 : vector<32x128xf32>
    %102 = arith.divf %100, %101 : vector<32x128xf32>
    %103 = arith.mulf %94, %49 : vector<32x128xf32>
    %104 = arith.mulf %88, %96 : vector<32x128xf32>
    %105 = arith.addf %103, %104 : vector<32x128xf32>
    %106 = math.tanh %105 : vector<32x128xf32>
    %107 = arith.mulf %102, %106 : vector<32x128xf32>
    %108 = tpu.concatenate %107, %51 in 0 : vector<32x128xf32>, vector<8x128xf32> -> vector<40x128xf32>
    %c0_58 = arith.constant 0 : index
    %c0_59 = arith.constant 0 : index
    %109 = vector.load %arg7[%c0_58, %c0_59] : memref<16x40xf32, #tpu.memory_space<vmem>>, vector<16x40xf32>
    %cst_60 = arith.constant dense<0.000000e+00> : vector<16x128xf32>
    %110 = tpu.matmul %109, %108, %cst_60 {dimension_numbers = #tpu.dot_dimension_numbers<[1], [0], [0], [1], [0, 0, 1, 1], [], []>} : vector<16x40xf32>, vector<40x128xf32>, vector<16x128xf32> -> vector<16x128xf32>
    %111 = vector.extract_strided_slice %110 {offsets = [0, 0], sizes = [5, 128], strides = [1, 1]} : vector<16x128xf32> to vector<5x128xf32>
    %112 = vector.extract_strided_slice %110 {offsets = [8, 0], sizes = [5, 128], strides = [1, 1]} : vector<16x128xf32> to vector<5x128xf32>
    %113 = arith.mulf %111, %111 : vector<5x128xf32>
    %c0_61 = arith.constant 0 : index
    %c0_62 = arith.constant 0 : index
    %c0_63 = arith.constant 0 : index
    %114 = vector.load %arg13[%c0_61, %c0_62, %c0_63] : memref<5x8x128xf32, #tpu.memory_space<vmem>>, vector<5x1x128xf32>
    %115 = vector.shape_cast %114 : vector<5x1x128xf32> to vector<5x128xf32>
    %116 = vector.shape_cast %113 : vector<5x128xf32> to vector<5x1x128xf32>
    tpu.vector_store %arg13[%c0_61, %c0_62, %c0_63], %116 {strides = array<i32>} : memref<5x8x128xf32, #tpu.memory_space<vmem>>, vector<5x1x128xf32>,
    %117 = vector.extract_strided_slice %112 {offsets = [0, 0], sizes = [1, 128], strides = [1, 1]} : vector<5x128xf32> to vector<1x128xf32>
    %118 = vector.extract_strided_slice %51 {offsets = [0, 0], sizes = [1, 128], strides = [1, 1]} : vector<8x128xf32> to vector<1x128xf32>
    %119 = arith.mulf %117, %118 : vector<1x128xf32>
    %120 = vector.extract_strided_slice %112 {offsets = [1, 0], sizes = [1, 128], strides = [1, 1]} : vector<5x128xf32> to vector<1x128xf32>
    %121 = vector.extract_strided_slice %51 {offsets = [1, 0], sizes = [1, 128], strides = [1, 1]} : vector<8x128xf32> to vector<1x128xf32>
    %122 = arith.mulf %120, %121 : vector<1x128xf32>
    %123 = arith.addf %119, %122 : vector<1x128xf32>
    %124 = vector.extract_strided_slice %112 {offsets = [2, 0], sizes = [1, 128], strides = [1, 1]} : vector<5x128xf32> to vector<1x128xf32>
    %125 = vector.extract_strided_slice %51 {offsets = [2, 0], sizes = [1, 128], strides = [1, 1]} : vector<8x128xf32> to vector<1x128xf32>
    %126 = arith.mulf %124, %125 : vector<1x128xf32>
    %127 = arith.addf %123, %126 : vector<1x128xf32>
    %128 = vector.extract_strided_slice %112 {offsets = [3, 0], sizes = [1, 128], strides = [1, 1]} : vector<5x128xf32> to vector<1x128xf32>
    %129 = vector.extract_strided_slice %51 {offsets = [3, 0], sizes = [1, 128], strides = [1, 1]} : vector<8x128xf32> to vector<1x128xf32>
    %130 = arith.mulf %128, %129 : vector<1x128xf32>
    %131 = arith.addf %127, %130 : vector<1x128xf32>
    %132 = vector.extract_strided_slice %112 {offsets = [4, 0], sizes = [1, 128], strides = [1, 1]} : vector<5x128xf32> to vector<1x128xf32>
    %133 = vector.extract_strided_slice %51 {offsets = [4, 0], sizes = [1, 128], strides = [1, 1]} : vector<8x128xf32> to vector<1x128xf32>
    %134 = arith.mulf %132, %133 : vector<1x128xf32>
    %135 = arith.addf %131, %134 : vector<1x128xf32>
    %c1_i32_64 = arith.constant 1 : i32
    %136 = tpu.dynamic_rotate %135 by %c1_i32_64 dim 1 : vector<1x128xf32>, i32 -> vector<1x128xf32>
    %137 = arith.mulf %135, %135 : vector<1x128xf32>
    %138 = arith.mulf %136, %136 : vector<1x128xf32>
    %139 = arith.subf %137, %138 : vector<1x128xf32>
    %cst_65 = arith.constant 1.250000e-01 : f32
    %140 = vector.broadcast %cst_65 : f32 to vector<1x128xf32>
    %141 = arith.mulf %140, %139 : vector<1x128xf32>
    %c0_66 = arith.constant 0 : index
    %c0_67 = arith.constant 0 : index
    %142 = vector.load %arg2[%c0_66, %c0_67] : memref<8x128xf32, #tpu.memory_space<vmem>>, vector<1x128xf32>
    %143 = vector.broadcast %8 : f32 to vector<1x128xf32>
    %144 = arith.mulf %143, %142 : vector<1x128xf32>
    %145 = vector.extract_strided_slice %51 {offsets = [2, 0], sizes = [1, 128], strides = [1, 1]} : vector<8x128xf32> to vector<1x128xf32>
    %146 = vector.broadcast %12 : f32 to vector<1x128xf32>
    %147 = arith.mulf %146, %145 : vector<1x128xf32>
    %148 = arith.addf %144, %147 : vector<1x128xf32>
    %149 = vector.broadcast %16 : f32 to vector<1x128xf32>
    %150 = arith.mulf %149, %141 : vector<1x128xf32>
    %151 = arith.subf %148, %150 : vector<1x128xf32>
    %152 = vector.shape_cast %151 : vector<1x128xf32> to vector<128xf32>
    %153 = arith.index_cast %arg1 : i32 to index
    %c0_68 = arith.constant 0 : index
    %c0_69 = arith.constant 0 : index
    %154 = vector.load %arg8[%153, %c0_68, %c0_69] : memref<2x8x128xf32, #tpu.memory_space<vmem>>, vector<1x1x128xf32>
    %155 = vector.shape_cast %154 : vector<1x1x128xf32> to vector<128xf32>
    %156 = vector.shape_cast %152 : vector<128xf32> to vector<1x1x128xf32>
    tpu.vector_store %arg8[%153, %c0_68, %c0_69], %156 {strides = array<i32>} : memref<2x8x128xf32, #tpu.memory_space<vmem>>, vector<1x1x128xf32>,
    %c1_70 = arith.constant 1 : index
    %c0_71 = arith.constant 0 : index
    %c0_72 = arith.constant 0 : index
    %157 = vector.load %arg12[%c1_70, %c0_71, %c0_72] : memref<8x8x128xf32, #tpu.memory_space<vmem>>, vector<1x8x128xf32>
    %158 = vector.shape_cast %157 : vector<1x8x128xf32> to vector<8x128xf32>
    %159 = tpu.concatenate %158, %79 in 0 : vector<8x128xf32>, vector<32x128xf32> -> vector<40x128xf32>
    %c0_73 = arith.constant 0 : index
    %c0_74 = arith.constant 0 : index
    %160 = vector.load %arg5[%c0_73, %c0_74] : memref<128x40xf32, #tpu.memory_space<vmem>>, vector<128x40xf32>
    %cst_75 = arith.constant dense<0.000000e+00> : vector<128x128xf32>
    %161 = tpu.matmul %160, %159, %cst_75 {dimension_numbers = #tpu.dot_dimension_numbers<[1], [0], [0], [1], [0, 0, 1, 1], [], []>} : vector<128x40xf32>, vector<40x128xf32>, vector<128x128xf32> -> vector<128x128xf32>
    %162 = vector.extract_strided_slice %161 {offsets = [0, 0], sizes = [32, 128], strides = [1, 1]} : vector<128x128xf32> to vector<32x128xf32>
    %163 = arith.negf %162 : vector<32x128xf32>
    %164 = math.exp %163 : vector<32x128xf32>
    %cst_76 = arith.constant 1.000000e+00 : f32
    %165 = vector.broadcast %cst_76 : f32 to vector<32x128xf32>
    %166 = arith.addf %165, %164 : vector<32x128xf32>
    %167 = arith.divf %165, %166 : vector<32x128xf32>
    %168 = vector.extract_strided_slice %161 {offsets = [32, 0], sizes = [32, 128], strides = [1, 1]} : vector<128x128xf32> to vector<32x128xf32>
    %169 = arith.negf %168 : vector<32x128xf32>
    %170 = math.exp %169 : vector<32x128xf32>
    %cst_77 = arith.constant 1.000000e+00 : f32
    %171 = vector.broadcast %cst_77 : f32 to vector<32x128xf32>
    %172 = arith.addf %171, %170 : vector<32x128xf32>
    %173 = arith.divf %171, %172 : vector<32x128xf32>
    %174 = vector.extract_strided_slice %161 {offsets = [64, 0], sizes = [32, 128], strides = [1, 1]} : vector<128x128xf32> to vector<32x128xf32>
    %175 = math.tanh %174 : vector<32x128xf32>
    %176 = vector.extract_strided_slice %161 {offsets = [96, 0], sizes = [32, 128], strides = [1, 1]} : vector<128x128xf32> to vector<32x128xf32>
    %177 = arith.negf %176 : vector<32x128xf32>
    %178 = math.exp %177 : vector<32x128xf32>
    %cst_78 = arith.constant 1.000000e+00 : f32
    %179 = vector.broadcast %cst_78 : f32 to vector<32x128xf32>
    %180 = arith.addf %179, %178 : vector<32x128xf32>
    %181 = arith.divf %179, %180 : vector<32x128xf32>
    %182 = arith.mulf %173, %77 : vector<32x128xf32>
    %183 = arith.mulf %167, %175 : vector<32x128xf32>
    %184 = arith.addf %182, %183 : vector<32x128xf32>
    %185 = math.tanh %184 : vector<32x128xf32>
    %186 = arith.mulf %181, %185 : vector<32x128xf32>
    %187 = tpu.concatenate %186, %107, %158 in 0 : vector<32x128xf32>, vector<32x128xf32>, vector<8x128xf32> -> vector<72x128xf32>
    %c0_79 = arith.constant 0 : index
    %c0_80 = arith.constant 0 : index
    %188 = vector.load %arg6[%c0_79, %c0_80] : memref<128x72xf32, #tpu.memory_space<vmem>>, vector<128x72xf32>
    %cst_81 = arith.constant dense<0.000000e+00> : vector<128x128xf32>
    %189 = tpu.matmul %188, %187, %cst_81 {dimension_numbers = #tpu.dot_dimension_numbers<[1], [0], [0], [1], [0, 0, 1, 1], [], []>} : vector<128x72xf32>, vector<72x128xf32>, vector<128x128xf32> -> vector<128x128xf32>
    %190 = vector.extract_strided_slice %189 {offsets = [0, 0], sizes = [32, 128], strides = [1, 1]} : vector<128x128xf32> to vector<32x128xf32>
    %191 = arith.negf %190 : vector<32x128xf32>
    %192 = math.exp %191 : vector<32x128xf32>
    %cst_82 = arith.constant 1.000000e+00 : f32
    %193 = vector.broadcast %cst_82 : f32 to vector<32x128xf32>
    %194 = arith.addf %193, %192 : vector<32x128xf32>
    %195 = arith.divf %193, %194 : vector<32x128xf32>
    %196 = vector.extract_strided_slice %189 {offsets = [32, 0], sizes = [32, 128], strides = [1, 1]} : vector<128x128xf32> to vector<32x128xf32>
    %197 = arith.negf %196 : vector<32x128xf32>
    %198 = math.exp %197 : vector<32x128xf32>
    %cst_83 = arith.constant 1.000000e+00 : f32
    %199 = vector.broadcast %cst_83 : f32 to vector<32x128xf32>
    %200 = arith.addf %199, %198 : vector<32x128xf32>
    %201 = arith.divf %199, %200 : vector<32x128xf32>
    %202 = vector.extract_strided_slice %189 {offsets = [64, 0], sizes = [32, 128], strides = [1, 1]} : vector<128x128xf32> to vector<32x128xf32>
    %203 = math.tanh %202 : vector<32x128xf32>
    %204 = vector.extract_strided_slice %189 {offsets = [96, 0], sizes = [32, 128], strides = [1, 1]} : vector<128x128xf32> to vector<32x128xf32>
    %205 = arith.negf %204 : vector<32x128xf32>
    %206 = math.exp %205 : vector<32x128xf32>
    %cst_84 = arith.constant 1.000000e+00 : f32
    %207 = vector.broadcast %cst_84 : f32 to vector<32x128xf32>
    %208 = arith.addf %207, %206 : vector<32x128xf32>
    %209 = arith.divf %207, %208 : vector<32x128xf32>
    %210 = arith.mulf %201, %105 : vector<32x128xf32>
    %211 = arith.mulf %195, %203 : vector<32x128xf32>
    %212 = arith.addf %210, %211 : vector<32x128xf32>
    %213 = math.tanh %212 : vector<32x128xf32>
    %214 = arith.mulf %209, %213 : vector<32x128xf32>
    %215 = tpu.concatenate %214, %158 in 0 : vector<32x128xf32>, vector<8x128xf32> -> vector<40x128xf32>
    %c0_85 = arith.constant 0 : index
    %c0_86 = arith.constant 0 : index
    %216 = vector.load %arg7[%c0_85, %c0_86] : memref<16x40xf32, #tpu.memory_space<vmem>>, vector<16x40xf32>
    %cst_87 = arith.constant dense<0.000000e+00> : vector<16x128xf32>
    %217 = tpu.matmul %216, %215, %cst_87 {dimension_numbers = #tpu.dot_dimension_numbers<[1], [0], [0], [1], [0, 0, 1, 1], [], []>} : vector<16x40xf32>, vector<40x128xf32>, vector<16x128xf32> -> vector<16x128xf32>
    %218 = vector.extract_strided_slice %217 {offsets = [0, 0], sizes = [5, 128], strides = [1, 1]} : vector<16x128xf32> to vector<5x128xf32>
    %219 = vector.extract_strided_slice %217 {offsets = [8, 0], sizes = [5, 128], strides = [1, 1]} : vector<16x128xf32> to vector<5x128xf32>
    %220 = arith.mulf %218, %218 : vector<5x128xf32>
    %c0_88 = arith.constant 0 : index
    %c1_89 = arith.constant 1 : index
    %c0_90 = arith.constant 0 : index
    %221 = vector.load %arg13[%c0_88, %c1_89, %c0_90] : memref<5x8x128xf32, #tpu.memory_space<vmem>>, vector<5x1x128xf32>
    %222 = vector.shape_cast %221 : vector<5x1x128xf32> to vector<5x128xf32>
    %223 = vector.shape_cast %220 : vector<5x128xf32> to vector<5x1x128xf32>
    tpu.vector_store %arg13[%c0_88, %c1_89, %c0_90], %223 {strides = array<i32>} : memref<5x8x128xf32, #tpu.memory_space<vmem>>, vector<5x1x128xf32>,
    %224 = vector.extract_strided_slice %219 {offsets = [0, 0], sizes = [1, 128], strides = [1, 1]} : vector<5x128xf32> to vector<1x128xf32>
    %225 = vector.extract_strided_slice %158 {offsets = [0, 0], sizes = [1, 128], strides = [1, 1]} : vector<8x128xf32> to vector<1x128xf32>
    %226 = arith.mulf %224, %225 : vector<1x128xf32>
    %227 = vector.extract_strided_slice %219 {offsets = [1, 0], sizes = [1, 128], strides = [1, 1]} : vector<5x128xf32> to vector<1x128xf32>
    %228 = vector.extract_strided_slice %158 {offsets = [1, 0], sizes = [1, 128], strides = [1, 1]} : vector<8x128xf32> to vector<1x128xf32>
    %229 = arith.mulf %227, %228 : vector<1x128xf32>
    %230 = arith.addf %226, %229 : vector<1x128xf32>
    %231 = vector.extract_strided_slice %219 {offsets = [2, 0], sizes = [1, 128], strides = [1, 1]} : vector<5x128xf32> to vector<1x128xf32>
    %232 = vector.extract_strided_slice %158 {offsets = [2, 0], sizes = [1, 128], strides = [1, 1]} : vector<8x128xf32> to vector<1x128xf32>
    %233 = arith.mulf %231, %232 : vector<1x128xf32>
    %234 = arith.addf %230, %233 : vector<1x128xf32>
    %235 = vector.extract_strided_slice %219 {offsets = [3, 0], sizes = [1, 128], strides = [1, 1]} : vector<5x128xf32> to vector<1x128xf32>
    %236 = vector.extract_strided_slice %158 {offsets = [3, 0], sizes = [1, 128], strides = [1, 1]} : vector<8x128xf32> to vector<1x128xf32>
    %237 = arith.mulf %235, %236 : vector<1x128xf32>
    %238 = arith.addf %234, %237 : vector<1x128xf32>
    %239 = vector.extract_strided_slice %219 {offsets = [4, 0], sizes = [1, 128], strides = [1, 1]} : vector<5x128xf32> to vector<1x128xf32>
    %240 = vector.extract_strided_slice %158 {offsets = [4, 0], sizes = [1, 128], strides = [1, 1]} : vector<8x128xf32> to vector<1x128xf32>
    %241 = arith.mulf %239, %240 : vector<1x128xf32>
    %242 = arith.addf %238, %241 : vector<1x128xf32>
    %c1_i32_91 = arith.constant 1 : i32
    %243 = tpu.dynamic_rotate %242 by %c1_i32_91 dim 1 : vector<1x128xf32>, i32 -> vector<1x128xf32>
    %244 = arith.mulf %242, %242 : vector<1x128xf32>
    %245 = arith.mulf %243, %243 : vector<1x128xf32>
    %246 = arith.subf %244, %245 : vector<1x128xf32>
    %cst_92 = arith.constant 1.250000e-01 : f32
    %247 = vector.broadcast %cst_92 : f32 to vector<1x128xf32>
    %248 = arith.mulf %247, %246 : vector<1x128xf32>
    %c1_93 = arith.constant 1 : index
    %c0_94 = arith.constant 0 : index
    %249 = vector.load %arg2[%c1_93, %c0_94] : memref<8x128xf32, #tpu.memory_space<vmem>>, vector<1x128xf32>
    %250 = vector.broadcast %8 : f32 to vector<1x128xf32>
    %251 = arith.mulf %250, %249 : vector<1x128xf32>
    %252 = vector.extract_strided_slice %158 {offsets = [2, 0], sizes = [1, 128], strides = [1, 1]} : vector<8x128xf32> to vector<1x128xf32>
    %253 = vector.broadcast %12 : f32 to vector<1x128xf32>
    %254 = arith.mulf %253, %252 : vector<1x128xf32>
    %255 = arith.addf %251, %254 : vector<1x128xf32>
    %256 = vector.broadcast %16 : f32 to vector<1x128xf32>
    %257 = arith.mulf %256, %248 : vector<1x128xf32>
    %258 = arith.subf %255, %257 : vector<1x128xf32>
    %259 = vector.shape_cast %258 : vector<1x128xf32> to vector<128xf32>
    %260 = arith.index_cast %arg1 : i32 to index
    %c1_95 = arith.constant 1 : index
    %c0_96 = arith.constant 0 : index
    %261 = vector.load %arg8[%260, %c1_95, %c0_96] : memref<2x8x128xf32, #tpu.memory_space<vmem>>, vector<1x1x128xf32>
    %262 = vector.shape_cast %261 : vector<1x1x128xf32> to vector<128xf32>
    %263 = vector.shape_cast %259 : vector<128xf32> to vector<1x1x128xf32>
    tpu.vector_store %arg8[%260, %c1_95, %c0_96], %263 {strides = array<i32>} : memref<2x8x128xf32, #tpu.memory_space<vmem>>, vector<1x1x128xf32>,
    %c2_97 = arith.constant 2 : index
    %c0_98 = arith.constant 0 : index
    %c0_99 = arith.constant 0 : index
    %264 = vector.load %arg12[%c2_97, %c0_98, %c0_99] : memref<8x8x128xf32, #tpu.memory_space<vmem>>, vector<1x8x128xf32>
    %265 = vector.shape_cast %264 : vector<1x8x128xf32> to vector<8x128xf32>
    %266 = tpu.concatenate %265, %186 in 0 : vector<8x128xf32>, vector<32x128xf32> -> vector<40x128xf32>
    %c0_100 = arith.constant 0 : index
    %c0_101 = arith.constant 0 : index
    %267 = vector.load %arg5[%c0_100, %c0_101] : memref<128x40xf32, #tpu.memory_space<vmem>>, vector<128x40xf32>
    %cst_102 = arith.constant dense<0.000000e+00> : vector<128x128xf32>
    %268 = tpu.matmul %267, %266, %cst_102 {dimension_numbers = #tpu.dot_dimension_numbers<[1], [0], [0], [1], [0, 0, 1, 1], [], []>} : vector<128x40xf32>, vector<40x128xf32>, vector<128x128xf32> -> vector<128x128xf32>
    %269 = vector.extract_strided_slice %268 {offsets = [0, 0], sizes = [32, 128], strides = [1, 1]} : vector<128x128xf32> to vector<32x128xf32>
    %270 = arith.negf %269 : vector<32x128xf32>
    %271 = math.exp %270 : vector<32x128xf32>
    %cst_103 = arith.constant 1.000000e+00 : f32
    %272 = vector.broadcast %cst_103 : f32 to vector<32x128xf32>
    %273 = arith.addf %272, %271 : vector<32x128xf32>
    %274 = arith.divf %272, %273 : vector<32x128xf32>
    %275 = vector.extract_strided_slice %268 {offsets = [32, 0], sizes = [32, 128], strides = [1, 1]} : vector<128x128xf32> to vector<32x128xf32>
    %276 = arith.negf %275 : vector<32x128xf32>
    %277 = math.exp %276 : vector<32x128xf32>
    %cst_104 = arith.constant 1.000000e+00 : f32
    %278 = vector.broadcast %cst_104 : f32 to vector<32x128xf32>
    %279 = arith.addf %278, %277 : vector<32x128xf32>
    %280 = arith.divf %278, %279 : vector<32x128xf32>
    %281 = vector.extract_strided_slice %268 {offsets = [64, 0], sizes = [32, 128], strides = [1, 1]} : vector<128x128xf32> to vector<32x128xf32>
    %282 = math.tanh %281 : vector<32x128xf32>
    %283 = vector.extract_strided_slice %268 {offsets = [96, 0], sizes = [32, 128], strides = [1, 1]} : vector<128x128xf32> to vector<32x128xf32>
    %284 = arith.negf %283 : vector<32x128xf32>
    %285 = math.exp %284 : vector<32x128xf32>
    %cst_105 = arith.constant 1.000000e+00 : f32
    %286 = vector.broadcast %cst_105 : f32 to vector<32x128xf32>
    %287 = arith.addf %286, %285 : vector<32x128xf32>
    %288 = arith.divf %286, %287 : vector<32x128xf32>
    %289 = arith.mulf %280, %184 : vector<32x128xf32>
    %290 = arith.mulf %274, %282 : vector<32x128xf32>
    %291 = arith.addf %289, %290 : vector<32x128xf32>
    %292 = math.tanh %291 : vector<32x128xf32>
    %293 = arith.mulf %288, %292 : vector<32x128xf32>
    %294 = tpu.concatenate %293, %214, %265 in 0 : vector<32x128xf32>, vector<32x128xf32>, vector<8x128xf32> -> vector<72x128xf32>
    %c0_106 = arith.constant 0 : index
    %c0_107 = arith.constant 0 : index
    %295 = vector.load %arg6[%c0_106, %c0_107] : memref<128x72xf32, #tpu.memory_space<vmem>>, vector<128x72xf32>
    %cst_108 = arith.constant dense<0.000000e+00> : vector<128x128xf32>
    %296 = tpu.matmul %295, %294, %cst_108 {dimension_numbers = #tpu.dot_dimension_numbers<[1], [0], [0], [1], [0, 0, 1, 1], [], []>} : vector<128x72xf32>, vector<72x128xf32>, vector<128x128xf32> -> vector<128x128xf32>
    %297 = vector.extract_strided_slice %296 {offsets = [0, 0], sizes = [32, 128], strides = [1, 1]} : vector<128x128xf32> to vector<32x128xf32>
    %298 = arith.negf %297 : vector<32x128xf32>
    %299 = math.exp %298 : vector<32x128xf32>
    %cst_109 = arith.constant 1.000000e+00 : f32
    %300 = vector.broadcast %cst_109 : f32 to vector<32x128xf32>
    %301 = arith.addf %300, %299 : vector<32x128xf32>
    %302 = arith.divf %300, %301 : vector<32x128xf32>
    %303 = vector.extract_strided_slice %296 {offsets = [32, 0], sizes = [32, 128], strides = [1, 1]} : vector<128x128xf32> to vector<32x128xf32>
    %304 = arith.negf %303 : vector<32x128xf32>
    %305 = math.exp %304 : vector<32x128xf32>
    %cst_110 = arith.constant 1.000000e+00 : f32
    %306 = vector.broadcast %cst_110 : f32 to vector<32x128xf32>
    %307 = arith.addf %306, %305 : vector<32x128xf32>
    %308 = arith.divf %306, %307 : vector<32x128xf32>
    %309 = vector.extract_strided_slice %296 {offsets = [64, 0], sizes = [32, 128], strides = [1, 1]} : vector<128x128xf32> to vector<32x128xf32>
    %310 = math.tanh %309 : vector<32x128xf32>
    %311 = vector.extract_strided_slice %296 {offsets = [96, 0], sizes = [32, 128], strides = [1, 1]} : vector<128x128xf32> to vector<32x128xf32>
    %312 = arith.negf %311 : vector<32x128xf32>
    %313 = math.exp %312 : vector<32x128xf32>
    %cst_111 = arith.constant 1.000000e+00 : f32
    %314 = vector.broadcast %cst_111 : f32 to vector<32x128xf32>
    %315 = arith.addf %314, %313 : vector<32x128xf32>
    %316 = arith.divf %314, %315 : vector<32x128xf32>
    %317 = arith.mulf %308, %212 : vector<32x128xf32>
    %318 = arith.mulf %302, %310 : vector<32x128xf32>
    %319 = arith.addf %317, %318 : vector<32x128xf32>
    %320 = math.tanh %319 : vector<32x128xf32>
    %321 = arith.mulf %316, %320 : vector<32x128xf32>
    %322 = tpu.concatenate %321, %265 in 0 : vector<32x128xf32>, vector<8x128xf32> -> vector<40x128xf32>
    %c0_112 = arith.constant 0 : index
    %c0_113 = arith.constant 0 : index
    %323 = vector.load %arg7[%c0_112, %c0_113] : memref<16x40xf32, #tpu.memory_space<vmem>>, vector<16x40xf32>
    %cst_114 = arith.constant dense<0.000000e+00> : vector<16x128xf32>
    %324 = tpu.matmul %323, %322, %cst_114 {dimension_numbers = #tpu.dot_dimension_numbers<[1], [0], [0], [1], [0, 0, 1, 1], [], []>} : vector<16x40xf32>, vector<40x128xf32>, vector<16x128xf32> -> vector<16x128xf32>
    %325 = vector.extract_strided_slice %324 {offsets = [0, 0], sizes = [5, 128], strides = [1, 1]} : vector<16x128xf32> to vector<5x128xf32>
    %326 = vector.extract_strided_slice %324 {offsets = [8, 0], sizes = [5, 128], strides = [1, 1]} : vector<16x128xf32> to vector<5x128xf32>
    %327 = arith.mulf %325, %325 : vector<5x128xf32>
    %c0_115 = arith.constant 0 : index
    %c2_116 = arith.constant 2 : index
    %c0_117 = arith.constant 0 : index
    %328 = vector.load %arg13[%c0_115, %c2_116, %c0_117] : memref<5x8x128xf32, #tpu.memory_space<vmem>>, vector<5x1x128xf32>
    %329 = vector.shape_cast %328 : vector<5x1x128xf32> to vector<5x128xf32>
    %330 = vector.shape_cast %327 : vector<5x128xf32> to vector<5x1x128xf32>
    tpu.vector_store %arg13[%c0_115, %c2_116, %c0_117], %330 {strides = array<i32>} : memref<5x8x128xf32, #tpu.memory_space<vmem>>, vector<5x1x128xf32>,
    %331 = vector.extract_strided_slice %326 {offsets = [0, 0], sizes = [1, 128], strides = [1, 1]} : vector<5x128xf32> to vector<1x128xf32>
    %332 = vector.extract_strided_slice %265 {offsets = [0, 0], sizes = [1, 128], strides = [1, 1]} : vector<8x128xf32> to vector<1x128xf32>
    %333 = arith.mulf %331, %332 : vector<1x128xf32>
    %334 = vector.extract_strided_slice %326 {offsets = [1, 0], sizes = [1, 128], strides = [1, 1]} : vector<5x128xf32> to vector<1x128xf32>
    %335 = vector.extract_strided_slice %265 {offsets = [1, 0], sizes = [1, 128], strides = [1, 1]} : vector<8x128xf32> to vector<1x128xf32>
    %336 = arith.mulf %334, %335 : vector<1x128xf32>
    %337 = arith.addf %333, %336 : vector<1x128xf32>
    %338 = vector.extract_strided_slice %326 {offsets = [2, 0], sizes = [1, 128], strides = [1, 1]} : vector<5x128xf32> to vector<1x128xf32>
    %339 = vector.extract_strided_slice %265 {offsets = [2, 0], sizes = [1, 128], strides = [1, 1]} : vector<8x128xf32> to vector<1x128xf32>
    %340 = arith.mulf %338, %339 : vector<1x128xf32>
    %341 = arith.addf %337, %340 : vector<1x128xf32>
    %342 = vector.extract_strided_slice %326 {offsets = [3, 0], sizes = [1, 128], strides = [1, 1]} : vector<5x128xf32> to vector<1x128xf32>
    %343 = vector.extract_strided_slice %265 {offsets = [3, 0], sizes = [1, 128], strides = [1, 1]} : vector<8x128xf32> to vector<1x128xf32>
    %344 = arith.mulf %342, %343 : vector<1x128xf32>
    %345 = arith.addf %341, %344 : vector<1x128xf32>
    %346 = vector.extract_strided_slice %326 {offsets = [4, 0], sizes = [1, 128], strides = [1, 1]} : vector<5x128xf32> to vector<1x128xf32>
    %347 = vector.extract_strided_slice %265 {offsets = [4, 0], sizes = [1, 128], strides = [1, 1]} : vector<8x128xf32> to vector<1x128xf32>
    %348 = arith.mulf %346, %347 : vector<1x128xf32>
    %349 = arith.addf %345, %348 : vector<1x128xf32>
    %c1_i32_118 = arith.constant 1 : i32
    %350 = tpu.dynamic_rotate %349 by %c1_i32_118 dim 1 : vector<1x128xf32>, i32 -> vector<1x128xf32>
    %351 = arith.mulf %349, %349 : vector<1x128xf32>
    %352 = arith.mulf %350, %350 : vector<1x128xf32>
    %353 = arith.subf %351, %352 : vector<1x128xf32>
    %cst_119 = arith.constant 1.250000e-01 : f32
    %354 = vector.broadcast %cst_119 : f32 to vector<1x128xf32>
    %355 = arith.mulf %354, %353 : vector<1x128xf32>
    %c2_120 = arith.constant 2 : index
    %c0_121 = arith.constant 0 : index
    %356 = vector.load %arg2[%c2_120, %c0_121] : memref<8x128xf32, #tpu.memory_space<vmem>>, vector<1x128xf32>
    %357 = vector.broadcast %8 : f32 to vector<1x128xf32>
    %358 = arith.mulf %357, %356 : vector<1x128xf32>
    %359 = vector.extract_strided_slice %265 {offsets = [2, 0], sizes = [1, 128], strides = [1, 1]} : vector<8x128xf32> to vector<1x128xf32>
    %360 = vector.broadcast %12 : f32 to vector<1x128xf32>
    %361 = arith.mulf %360, %359 : vector<1x128xf32>
    %362 = arith.addf %358, %361 : vector<1x128xf32>
    %363 = vector.broadcast %16 : f32 to vector<1x128xf32>
    %364 = arith.mulf %363, %355 : vector<1x128xf32>
    %365 = arith.subf %362, %364 : vector<1x128xf32>
    %366 = vector.shape_cast %365 : vector<1x128xf32> to vector<128xf32>
    %367 = arith.index_cast %arg1 : i32 to index
    %c2_122 = arith.constant 2 : index
    %c0_123 = arith.constant 0 : index
    %368 = vector.load %arg8[%367, %c2_122, %c0_123] : memref<2x8x128xf32, #tpu.memory_space<vmem>>, vector<1x1x128xf32>
    %369 = vector.shape_cast %368 : vector<1x1x128xf32> to vector<128xf32>
    %370 = vector.shape_cast %366 : vector<128xf32> to vector<1x1x128xf32>
    tpu.vector_store %arg8[%367, %c2_122, %c0_123], %370 {strides = array<i32>} : memref<2x8x128xf32, #tpu.memory_space<vmem>>, vector<1x1x128xf32>,
    %c3_124 = arith.constant 3 : index
    %c0_125 = arith.constant 0 : index
    %c0_126 = arith.constant 0 : index
    %371 = vector.load %arg12[%c3_124, %c0_125, %c0_126] : memref<8x8x128xf32, #tpu.memory_space<vmem>>, vector<1x8x128xf32>
    %372 = vector.shape_cast %371 : vector<1x8x128xf32> to vector<8x128xf32>
    %373 = tpu.concatenate %372, %293 in 0 : vector<8x128xf32>, vector<32x128xf32> -> vector<40x128xf32>
    %c0_127 = arith.constant 0 : index
    %c0_128 = arith.constant 0 : index
    %374 = vector.load %arg5[%c0_127, %c0_128] : memref<128x40xf32, #tpu.memory_space<vmem>>, vector<128x40xf32>
    %cst_129 = arith.constant dense<0.000000e+00> : vector<128x128xf32>
    %375 = tpu.matmul %374, %373, %cst_129 {dimension_numbers = #tpu.dot_dimension_numbers<[1], [0], [0], [1], [0, 0, 1, 1], [], []>} : vector<128x40xf32>, vector<40x128xf32>, vector<128x128xf32> -> vector<128x128xf32>
    %376 = vector.extract_strided_slice %375 {offsets = [0, 0], sizes = [32, 128], strides = [1, 1]} : vector<128x128xf32> to vector<32x128xf32>
    %377 = arith.negf %376 : vector<32x128xf32>
    %378 = math.exp %377 : vector<32x128xf32>
    %cst_130 = arith.constant 1.000000e+00 : f32
    %379 = vector.broadcast %cst_130 : f32 to vector<32x128xf32>
    %380 = arith.addf %379, %378 : vector<32x128xf32>
    %381 = arith.divf %379, %380 : vector<32x128xf32>
    %382 = vector.extract_strided_slice %375 {offsets = [32, 0], sizes = [32, 128], strides = [1, 1]} : vector<128x128xf32> to vector<32x128xf32>
    %383 = arith.negf %382 : vector<32x128xf32>
    %384 = math.exp %383 : vector<32x128xf32>
    %cst_131 = arith.constant 1.000000e+00 : f32
    %385 = vector.broadcast %cst_131 : f32 to vector<32x128xf32>
    %386 = arith.addf %385, %384 : vector<32x128xf32>
    %387 = arith.divf %385, %386 : vector<32x128xf32>
    %388 = vector.extract_strided_slice %375 {offsets = [64, 0], sizes = [32, 128], strides = [1, 1]} : vector<128x128xf32> to vector<32x128xf32>
    %389 = math.tanh %388 : vector<32x128xf32>
    %390 = vector.extract_strided_slice %375 {offsets = [96, 0], sizes = [32, 128], strides = [1, 1]} : vector<128x128xf32> to vector<32x128xf32>
    %391 = arith.negf %390 : vector<32x128xf32>
    %392 = math.exp %391 : vector<32x128xf32>
    %cst_132 = arith.constant 1.000000e+00 : f32
    %393 = vector.broadcast %cst_132 : f32 to vector<32x128xf32>
    %394 = arith.addf %393, %392 : vector<32x128xf32>
    %395 = arith.divf %393, %394 : vector<32x128xf32>
    %396 = arith.mulf %387, %291 : vector<32x128xf32>
    %397 = arith.mulf %381, %389 : vector<32x128xf32>
    %398 = arith.addf %396, %397 : vector<32x128xf32>
    %399 = math.tanh %398 : vector<32x128xf32>
    %400 = arith.mulf %395, %399 : vector<32x128xf32>
    %401 = tpu.concatenate %400, %321, %372 in 0 : vector<32x128xf32>, vector<32x128xf32>, vector<8x128xf32> -> vector<72x128xf32>
    %c0_133 = arith.constant 0 : index
    %c0_134 = arith.constant 0 : index
    %402 = vector.load %arg6[%c0_133, %c0_134] : memref<128x72xf32, #tpu.memory_space<vmem>>, vector<128x72xf32>
    %cst_135 = arith.constant dense<0.000000e+00> : vector<128x128xf32>
    %403 = tpu.matmul %402, %401, %cst_135 {dimension_numbers = #tpu.dot_dimension_numbers<[1], [0], [0], [1], [0, 0, 1, 1], [], []>} : vector<128x72xf32>, vector<72x128xf32>, vector<128x128xf32> -> vector<128x128xf32>
    %404 = vector.extract_strided_slice %403 {offsets = [0, 0], sizes = [32, 128], strides = [1, 1]} : vector<128x128xf32> to vector<32x128xf32>
    %405 = arith.negf %404 : vector<32x128xf32>
    %406 = math.exp %405 : vector<32x128xf32>
    %cst_136 = arith.constant 1.000000e+00 : f32
    %407 = vector.broadcast %cst_136 : f32 to vector<32x128xf32>
    %408 = arith.addf %407, %406 : vector<32x128xf32>
    %409 = arith.divf %407, %408 : vector<32x128xf32>
    %410 = vector.extract_strided_slice %403 {offsets = [32, 0], sizes = [32, 128], strides = [1, 1]} : vector<128x128xf32> to vector<32x128xf32>
    %411 = arith.negf %410 : vector<32x128xf32>
    %412 = math.exp %411 : vector<32x128xf32>
    %cst_137 = arith.constant 1.000000e+00 : f32
    %413 = vector.broadcast %cst_137 : f32 to vector<32x128xf32>
    %414 = arith.addf %413, %412 : vector<32x128xf32>
    %415 = arith.divf %413, %414 : vector<32x128xf32>
    %416 = vector.extract_strided_slice %403 {offsets = [64, 0], sizes = [32, 128], strides = [1, 1]} : vector<128x128xf32> to vector<32x128xf32>
    %417 = math.tanh %416 : vector<32x128xf32>
    %418 = vector.extract_strided_slice %403 {offsets = [96, 0], sizes = [32, 128], strides = [1, 1]} : vector<128x128xf32> to vector<32x128xf32>
    %419 = arith.negf %418 : vector<32x128xf32>
    %420 = math.exp %419 : vector<32x128xf32>
    %cst_138 = arith.constant 1.000000e+00 : f32
    %421 = vector.broadcast %cst_138 : f32 to vector<32x128xf32>
    %422 = arith.addf %421, %420 : vector<32x128xf32>
    %423 = arith.divf %421, %422 : vector<32x128xf32>
    %424 = arith.mulf %415, %319 : vector<32x128xf32>
    %425 = arith.mulf %409, %417 : vector<32x128xf32>
    %426 = arith.addf %424, %425 : vector<32x128xf32>
    %427 = math.tanh %426 : vector<32x128xf32>
    %428 = arith.mulf %423, %427 : vector<32x128xf32>
    %429 = tpu.concatenate %428, %372 in 0 : vector<32x128xf32>, vector<8x128xf32> -> vector<40x128xf32>
    %c0_139 = arith.constant 0 : index
    %c0_140 = arith.constant 0 : index
    %430 = vector.load %arg7[%c0_139, %c0_140] : memref<16x40xf32, #tpu.memory_space<vmem>>, vector<16x40xf32>
    %cst_141 = arith.constant dense<0.000000e+00> : vector<16x128xf32>
    %431 = tpu.matmul %430, %429, %cst_141 {dimension_numbers = #tpu.dot_dimension_numbers<[1], [0], [0], [1], [0, 0, 1, 1], [], []>} : vector<16x40xf32>, vector<40x128xf32>, vector<16x128xf32> -> vector<16x128xf32>
    %432 = vector.extract_strided_slice %431 {offsets = [0, 0], sizes = [5, 128], strides = [1, 1]} : vector<16x128xf32> to vector<5x128xf32>
    %433 = vector.extract_strided_slice %431 {offsets = [8, 0], sizes = [5, 128], strides = [1, 1]} : vector<16x128xf32> to vector<5x128xf32>
    %434 = arith.mulf %432, %432 : vector<5x128xf32>
    %c0_142 = arith.constant 0 : index
    %c3_143 = arith.constant 3 : index
    %c0_144 = arith.constant 0 : index
    %435 = vector.load %arg13[%c0_142, %c3_143, %c0_144] : memref<5x8x128xf32, #tpu.memory_space<vmem>>, vector<5x1x128xf32>
    %436 = vector.shape_cast %435 : vector<5x1x128xf32> to vector<5x128xf32>
    %437 = vector.shape_cast %434 : vector<5x128xf32> to vector<5x1x128xf32>
    tpu.vector_store %arg13[%c0_142, %c3_143, %c0_144], %437 {strides = array<i32>} : memref<5x8x128xf32, #tpu.memory_space<vmem>>, vector<5x1x128xf32>,
    %438 = vector.extract_strided_slice %433 {offsets = [0, 0], sizes = [1, 128], strides = [1, 1]} : vector<5x128xf32> to vector<1x128xf32>
    %439 = vector.extract_strided_slice %372 {offsets = [0, 0], sizes = [1, 128], strides = [1, 1]} : vector<8x128xf32> to vector<1x128xf32>
    %440 = arith.mulf %438, %439 : vector<1x128xf32>
    %441 = vector.extract_strided_slice %433 {offsets = [1, 0], sizes = [1, 128], strides = [1, 1]} : vector<5x128xf32> to vector<1x128xf32>
    %442 = vector.extract_strided_slice %372 {offsets = [1, 0], sizes = [1, 128], strides = [1, 1]} : vector<8x128xf32> to vector<1x128xf32>
    %443 = arith.mulf %441, %442 : vector<1x128xf32>
    %444 = arith.addf %440, %443 : vector<1x128xf32>
    %445 = vector.extract_strided_slice %433 {offsets = [2, 0], sizes = [1, 128], strides = [1, 1]} : vector<5x128xf32> to vector<1x128xf32>
    %446 = vector.extract_strided_slice %372 {offsets = [2, 0], sizes = [1, 128], strides = [1, 1]} : vector<8x128xf32> to vector<1x128xf32>
    %447 = arith.mulf %445, %446 : vector<1x128xf32>
    %448 = arith.addf %444, %447 : vector<1x128xf32>
    %449 = vector.extract_strided_slice %433 {offsets = [3, 0], sizes = [1, 128], strides = [1, 1]} : vector<5x128xf32> to vector<1x128xf32>
    %450 = vector.extract_strided_slice %372 {offsets = [3, 0], sizes = [1, 128], strides = [1, 1]} : vector<8x128xf32> to vector<1x128xf32>
    %451 = arith.mulf %449, %450 : vector<1x128xf32>
    %452 = arith.addf %448, %451 : vector<1x128xf32>
    %453 = vector.extract_strided_slice %433 {offsets = [4, 0], sizes = [1, 128], strides = [1, 1]} : vector<5x128xf32> to vector<1x128xf32>
    %454 = vector.extract_strided_slice %372 {offsets = [4, 0], sizes = [1, 128], strides = [1, 1]} : vector<8x128xf32> to vector<1x128xf32>
    %455 = arith.mulf %453, %454 : vector<1x128xf32>
    %456 = arith.addf %452, %455 : vector<1x128xf32>
    %c1_i32_145 = arith.constant 1 : i32
    %457 = tpu.dynamic_rotate %456 by %c1_i32_145 dim 1 : vector<1x128xf32>, i32 -> vector<1x128xf32>
    %458 = arith.mulf %456, %456 : vector<1x128xf32>
    %459 = arith.mulf %457, %457 : vector<1x128xf32>
    %460 = arith.subf %458, %459 : vector<1x128xf32>
    %cst_146 = arith.constant 1.250000e-01 : f32
    %461 = vector.broadcast %cst_146 : f32 to vector<1x128xf32>
    %462 = arith.mulf %461, %460 : vector<1x128xf32>
    %c3_147 = arith.constant 3 : index
    %c0_148 = arith.constant 0 : index
    %463 = vector.load %arg2[%c3_147, %c0_148] : memref<8x128xf32, #tpu.memory_space<vmem>>, vector<1x128xf32>
    %464 = vector.broadcast %8 : f32 to vector<1x128xf32>
    %465 = arith.mulf %464, %463 : vector<1x128xf32>
    %466 = vector.extract_strided_slice %372 {offsets = [2, 0], sizes = [1, 128], strides = [1, 1]} : vector<8x128xf32> to vector<1x128xf32>
    %467 = vector.broadcast %12 : f32 to vector<1x128xf32>
    %468 = arith.mulf %467, %466 : vector<1x128xf32>
    %469 = arith.addf %465, %468 : vector<1x128xf32>
    %470 = vector.broadcast %16 : f32 to vector<1x128xf32>
    %471 = arith.mulf %470, %462 : vector<1x128xf32>
    %472 = arith.subf %469, %471 : vector<1x128xf32>
    %473 = vector.shape_cast %472 : vector<1x128xf32> to vector<128xf32>
    %474 = arith.index_cast %arg1 : i32 to index
    %c3_149 = arith.constant 3 : index
    %c0_150 = arith.constant 0 : index
    %475 = vector.load %arg8[%474, %c3_149, %c0_150] : memref<2x8x128xf32, #tpu.memory_space<vmem>>, vector<1x1x128xf32>
    %476 = vector.shape_cast %475 : vector<1x1x128xf32> to vector<128xf32>
    %477 = vector.shape_cast %473 : vector<128xf32> to vector<1x1x128xf32>
    tpu.vector_store %arg8[%474, %c3_149, %c0_150], %477 {strides = array<i32>} : memref<2x8x128xf32, #tpu.memory_space<vmem>>, vector<1x1x128xf32>,
    %c4_151 = arith.constant 4 : index
    %c0_152 = arith.constant 0 : index
    %c0_153 = arith.constant 0 : index
    %478 = vector.load %arg12[%c4_151, %c0_152, %c0_153] : memref<8x8x128xf32, #tpu.memory_space<vmem>>, vector<1x8x128xf32>
    %479 = vector.shape_cast %478 : vector<1x8x128xf32> to vector<8x128xf32>
    %480 = tpu.concatenate %479, %400 in 0 : vector<8x128xf32>, vector<32x128xf32> -> vector<40x128xf32>
    %c0_154 = arith.constant 0 : index
    %c0_155 = arith.constant 0 : index
    %481 = vector.load %arg5[%c0_154, %c0_155] : memref<128x40xf32, #tpu.memory_space<vmem>>, vector<128x40xf32>
    %cst_156 = arith.constant dense<0.000000e+00> : vector<128x128xf32>
    %482 = tpu.matmul %481, %480, %cst_156 {dimension_numbers = #tpu.dot_dimension_numbers<[1], [0], [0], [1], [0, 0, 1, 1], [], []>} : vector<128x40xf32>, vector<40x128xf32>, vector<128x128xf32> -> vector<128x128xf32>
    %483 = vector.extract_strided_slice %482 {offsets = [0, 0], sizes = [32, 128], strides = [1, 1]} : vector<128x128xf32> to vector<32x128xf32>
    %484 = arith.negf %483 : vector<32x128xf32>
    %485 = math.exp %484 : vector<32x128xf32>
    %cst_157 = arith.constant 1.000000e+00 : f32
    %486 = vector.broadcast %cst_157 : f32 to vector<32x128xf32>
    %487 = arith.addf %486, %485 : vector<32x128xf32>
    %488 = arith.divf %486, %487 : vector<32x128xf32>
    %489 = vector.extract_strided_slice %482 {offsets = [32, 0], sizes = [32, 128], strides = [1, 1]} : vector<128x128xf32> to vector<32x128xf32>
    %490 = arith.negf %489 : vector<32x128xf32>
    %491 = math.exp %490 : vector<32x128xf32>
    %cst_158 = arith.constant 1.000000e+00 : f32
    %492 = vector.broadcast %cst_158 : f32 to vector<32x128xf32>
    %493 = arith.addf %492, %491 : vector<32x128xf32>
    %494 = arith.divf %492, %493 : vector<32x128xf32>
    %495 = vector.extract_strided_slice %482 {offsets = [64, 0], sizes = [32, 128], strides = [1, 1]} : vector<128x128xf32> to vector<32x128xf32>
    %496 = math.tanh %495 : vector<32x128xf32>
    %497 = vector.extract_strided_slice %482 {offsets = [96, 0], sizes = [32, 128], strides = [1, 1]} : vector<128x128xf32> to vector<32x128xf32>
    %498 = arith.negf %497 : vector<32x128xf32>
    %499 = math.exp %498 : vector<32x128xf32>
    %cst_159 = arith.constant 1.000000e+00 : f32
    %500 = vector.broadcast %cst_159 : f32 to vector<32x128xf32>
    %501 = arith.addf %500, %499 : vector<32x128xf32>
    %502 = arith.divf %500, %501 : vector<32x128xf32>
    %503 = arith.mulf %494, %398 : vector<32x128xf32>
    %504 = arith.mulf %488, %496 : vector<32x128xf32>
    %505 = arith.addf %503, %504 : vector<32x128xf32>
    %506 = math.tanh %505 : vector<32x128xf32>
    %507 = arith.mulf %502, %506 : vector<32x128xf32>
    %508 = tpu.concatenate %507, %428, %479 in 0 : vector<32x128xf32>, vector<32x128xf32>, vector<8x128xf32> -> vector<72x128xf32>
    %c0_160 = arith.constant 0 : index
    %c0_161 = arith.constant 0 : index
    %509 = vector.load %arg6[%c0_160, %c0_161] : memref<128x72xf32, #tpu.memory_space<vmem>>, vector<128x72xf32>
    %cst_162 = arith.constant dense<0.000000e+00> : vector<128x128xf32>
    %510 = tpu.matmul %509, %508, %cst_162 {dimension_numbers = #tpu.dot_dimension_numbers<[1], [0], [0], [1], [0, 0, 1, 1], [], []>} : vector<128x72xf32>, vector<72x128xf32>, vector<128x128xf32> -> vector<128x128xf32>
    %511 = vector.extract_strided_slice %510 {offsets = [0, 0], sizes = [32, 128], strides = [1, 1]} : vector<128x128xf32> to vector<32x128xf32>
    %512 = arith.negf %511 : vector<32x128xf32>
    %513 = math.exp %512 : vector<32x128xf32>
    %cst_163 = arith.constant 1.000000e+00 : f32
    %514 = vector.broadcast %cst_163 : f32 to vector<32x128xf32>
    %515 = arith.addf %514, %513 : vector<32x128xf32>
    %516 = arith.divf %514, %515 : vector<32x128xf32>
    %517 = vector.extract_strided_slice %510 {offsets = [32, 0], sizes = [32, 128], strides = [1, 1]} : vector<128x128xf32> to vector<32x128xf32>
    %518 = arith.negf %517 : vector<32x128xf32>
    %519 = math.exp %518 : vector<32x128xf32>
    %cst_164 = arith.constant 1.000000e+00 : f32
    %520 = vector.broadcast %cst_164 : f32 to vector<32x128xf32>
    %521 = arith.addf %520, %519 : vector<32x128xf32>
    %522 = arith.divf %520, %521 : vector<32x128xf32>
    %523 = vector.extract_strided_slice %510 {offsets = [64, 0], sizes = [32, 128], strides = [1, 1]} : vector<128x128xf32> to vector<32x128xf32>
    %524 = math.tanh %523 : vector<32x128xf32>
    %525 = vector.extract_strided_slice %510 {offsets = [96, 0], sizes = [32, 128], strides = [1, 1]} : vector<128x128xf32> to vector<32x128xf32>
    %526 = arith.negf %525 : vector<32x128xf32>
    %527 = math.exp %526 : vector<32x128xf32>
    %cst_165 = arith.constant 1.000000e+00 : f32
    %528 = vector.broadcast %cst_165 : f32 to vector<32x128xf32>
    %529 = arith.addf %528, %527 : vector<32x128xf32>
    %530 = arith.divf %528, %529 : vector<32x128xf32>
    %531 = arith.mulf %522, %426 : vector<32x128xf32>
    %532 = arith.mulf %516, %524 : vector<32x128xf32>
    %533 = arith.addf %531, %532 : vector<32x128xf32>
    %534 = math.tanh %533 : vector<32x128xf32>
    %535 = arith.mulf %530, %534 : vector<32x128xf32>
    %536 = tpu.concatenate %535, %479 in 0 : vector<32x128xf32>, vector<8x128xf32> -> vector<40x128xf32>
    %c0_166 = arith.constant 0 : index
    %c0_167 = arith.constant 0 : index
    %537 = vector.load %arg7[%c0_166, %c0_167] : memref<16x40xf32, #tpu.memory_space<vmem>>, vector<16x40xf32>
    %cst_168 = arith.constant dense<0.000000e+00> : vector<16x128xf32>
    %538 = tpu.matmul %537, %536, %cst_168 {dimension_numbers = #tpu.dot_dimension_numbers<[1], [0], [0], [1], [0, 0, 1, 1], [], []>} : vector<16x40xf32>, vector<40x128xf32>, vector<16x128xf32> -> vector<16x128xf32>
    %539 = vector.extract_strided_slice %538 {offsets = [0, 0], sizes = [5, 128], strides = [1, 1]} : vector<16x128xf32> to vector<5x128xf32>
    %540 = vector.extract_strided_slice %538 {offsets = [8, 0], sizes = [5, 128], strides = [1, 1]} : vector<16x128xf32> to vector<5x128xf32>
    %541 = arith.mulf %539, %539 : vector<5x128xf32>
    %c0_169 = arith.constant 0 : index
    %c4_170 = arith.constant 4 : index
    %c0_171 = arith.constant 0 : index
    %542 = vector.load %arg13[%c0_169, %c4_170, %c0_171] : memref<5x8x128xf32, #tpu.memory_space<vmem>>, vector<5x1x128xf32>
    %543 = vector.shape_cast %542 : vector<5x1x128xf32> to vector<5x128xf32>
    %544 = vector.shape_cast %541 : vector<5x128xf32> to vector<5x1x128xf32>
    tpu.vector_store %arg13[%c0_169, %c4_170, %c0_171], %544 {strides = array<i32>} : memref<5x8x128xf32, #tpu.memory_space<vmem>>, vector<5x1x128xf32>,
    %545 = vector.extract_strided_slice %540 {offsets = [0, 0], sizes = [1, 128], strides = [1, 1]} : vector<5x128xf32> to vector<1x128xf32>
    %546 = vector.extract_strided_slice %479 {offsets = [0, 0], sizes = [1, 128], strides = [1, 1]} : vector<8x128xf32> to vector<1x128xf32>
    %547 = arith.mulf %545, %546 : vector<1x128xf32>
    %548 = vector.extract_strided_slice %540 {offsets = [1, 0], sizes = [1, 128], strides = [1, 1]} : vector<5x128xf32> to vector<1x128xf32>
    %549 = vector.extract_strided_slice %479 {offsets = [1, 0], sizes = [1, 128], strides = [1, 1]} : vector<8x128xf32> to vector<1x128xf32>
    %550 = arith.mulf %548, %549 : vector<1x128xf32>
    %551 = arith.addf %547, %550 : vector<1x128xf32>
    %552 = vector.extract_strided_slice %540 {offsets = [2, 0], sizes = [1, 128], strides = [1, 1]} : vector<5x128xf32> to vector<1x128xf32>
    %553 = vector.extract_strided_slice %479 {offsets = [2, 0], sizes = [1, 128], strides = [1, 1]} : vector<8x128xf32> to vector<1x128xf32>
    %554 = arith.mulf %552, %553 : vector<1x128xf32>
    %555 = arith.addf %551, %554 : vector<1x128xf32>
    %556 = vector.extract_strided_slice %540 {offsets = [3, 0], sizes = [1, 128], strides = [1, 1]} : vector<5x128xf32> to vector<1x128xf32>
    %557 = vector.extract_strided_slice %479 {offsets = [3, 0], sizes = [1, 128], strides = [1, 1]} : vector<8x128xf32> to vector<1x128xf32>
    %558 = arith.mulf %556, %557 : vector<1x128xf32>
    %559 = arith.addf %555, %558 : vector<1x128xf32>
    %560 = vector.extract_strided_slice %540 {offsets = [4, 0], sizes = [1, 128], strides = [1, 1]} : vector<5x128xf32> to vector<1x128xf32>
    %561 = vector.extract_strided_slice %479 {offsets = [4, 0], sizes = [1, 128], strides = [1, 1]} : vector<8x128xf32> to vector<1x128xf32>
    %562 = arith.mulf %560, %561 : vector<1x128xf32>
    %563 = arith.addf %559, %562 : vector<1x128xf32>
    %c1_i32_172 = arith.constant 1 : i32
    %564 = tpu.dynamic_rotate %563 by %c1_i32_172 dim 1 : vector<1x128xf32>, i32 -> vector<1x128xf32>
    %565 = arith.mulf %563, %563 : vector<1x128xf32>
    %566 = arith.mulf %564, %564 : vector<1x128xf32>
    %567 = arith.subf %565, %566 : vector<1x128xf32>
    %cst_173 = arith.constant 1.250000e-01 : f32
    %568 = vector.broadcast %cst_173 : f32 to vector<1x128xf32>
    %569 = arith.mulf %568, %567 : vector<1x128xf32>
    %c4_174 = arith.constant 4 : index
    %c0_175 = arith.constant 0 : index
    %570 = vector.load %arg2[%c4_174, %c0_175] : memref<8x128xf32, #tpu.memory_space<vmem>>, vector<1x128xf32>
    %571 = vector.broadcast %8 : f32 to vector<1x128xf32>
    %572 = arith.mulf %571, %570 : vector<1x128xf32>
    %573 = vector.extract_strided_slice %479 {offsets = [2, 0], sizes = [1, 128], strides = [1, 1]} : vector<8x128xf32> to vector<1x128xf32>
    %574 = vector.broadcast %12 : f32 to vector<1x128xf32>
    %575 = arith.mulf %574, %573 : vector<1x128xf32>
    %576 = arith.addf %572, %575 : vector<1x128xf32>
    %577 = vector.broadcast %16 : f32 to vector<1x128xf32>
    %578 = arith.mulf %577, %569 : vector<1x128xf32>
    %579 = arith.subf %576, %578 : vector<1x128xf32>
    %580 = vector.shape_cast %579 : vector<1x128xf32> to vector<128xf32>
    %581 = arith.index_cast %arg1 : i32 to index
    %c4_176 = arith.constant 4 : index
    %c0_177 = arith.constant 0 : index
    %582 = vector.load %arg8[%581, %c4_176, %c0_177] : memref<2x8x128xf32, #tpu.memory_space<vmem>>, vector<1x1x128xf32>
    %583 = vector.shape_cast %582 : vector<1x1x128xf32> to vector<128xf32>
    %584 = vector.shape_cast %580 : vector<128xf32> to vector<1x1x128xf32>
    tpu.vector_store %arg8[%581, %c4_176, %c0_177], %584 {strides = array<i32>} : memref<2x8x128xf32, #tpu.memory_space<vmem>>, vector<1x1x128xf32>,
    %c5 = arith.constant 5 : index
    %c0_178 = arith.constant 0 : index
    %c0_179 = arith.constant 0 : index
    %585 = vector.load %arg12[%c5, %c0_178, %c0_179] : memref<8x8x128xf32, #tpu.memory_space<vmem>>, vector<1x8x128xf32>
    %586 = vector.shape_cast %585 : vector<1x8x128xf32> to vector<8x128xf32>
    %587 = tpu.concatenate %586, %507 in 0 : vector<8x128xf32>, vector<32x128xf32> -> vector<40x128xf32>
    %c0_180 = arith.constant 0 : index
    %c0_181 = arith.constant 0 : index
    %588 = vector.load %arg5[%c0_180, %c0_181] : memref<128x40xf32, #tpu.memory_space<vmem>>, vector<128x40xf32>
    %cst_182 = arith.constant dense<0.000000e+00> : vector<128x128xf32>
    %589 = tpu.matmul %588, %587, %cst_182 {dimension_numbers = #tpu.dot_dimension_numbers<[1], [0], [0], [1], [0, 0, 1, 1], [], []>} : vector<128x40xf32>, vector<40x128xf32>, vector<128x128xf32> -> vector<128x128xf32>
    %590 = vector.extract_strided_slice %589 {offsets = [0, 0], sizes = [32, 128], strides = [1, 1]} : vector<128x128xf32> to vector<32x128xf32>
    %591 = arith.negf %590 : vector<32x128xf32>
    %592 = math.exp %591 : vector<32x128xf32>
    %cst_183 = arith.constant 1.000000e+00 : f32
    %593 = vector.broadcast %cst_183 : f32 to vector<32x128xf32>
    %594 = arith.addf %593, %592 : vector<32x128xf32>
    %595 = arith.divf %593, %594 : vector<32x128xf32>
    %596 = vector.extract_strided_slice %589 {offsets = [32, 0], sizes = [32, 128], strides = [1, 1]} : vector<128x128xf32> to vector<32x128xf32>
    %597 = arith.negf %596 : vector<32x128xf32>
    %598 = math.exp %597 : vector<32x128xf32>
    %cst_184 = arith.constant 1.000000e+00 : f32
    %599 = vector.broadcast %cst_184 : f32 to vector<32x128xf32>
    %600 = arith.addf %599, %598 : vector<32x128xf32>
    %601 = arith.divf %599, %600 : vector<32x128xf32>
    %602 = vector.extract_strided_slice %589 {offsets = [64, 0], sizes = [32, 128], strides = [1, 1]} : vector<128x128xf32> to vector<32x128xf32>
    %603 = math.tanh %602 : vector<32x128xf32>
    %604 = vector.extract_strided_slice %589 {offsets = [96, 0], sizes = [32, 128], strides = [1, 1]} : vector<128x128xf32> to vector<32x128xf32>
    %605 = arith.negf %604 : vector<32x128xf32>
    %606 = math.exp %605 : vector<32x128xf32>
    %cst_185 = arith.constant 1.000000e+00 : f32
    %607 = vector.broadcast %cst_185 : f32 to vector<32x128xf32>
    %608 = arith.addf %607, %606 : vector<32x128xf32>
    %609 = arith.divf %607, %608 : vector<32x128xf32>
    %610 = arith.mulf %601, %505 : vector<32x128xf32>
    %611 = arith.mulf %595, %603 : vector<32x128xf32>
    %612 = arith.addf %610, %611 : vector<32x128xf32>
    %613 = math.tanh %612 : vector<32x128xf32>
    %614 = arith.mulf %609, %613 : vector<32x128xf32>
    %615 = tpu.concatenate %614, %535, %586 in 0 : vector<32x128xf32>, vector<32x128xf32>, vector<8x128xf32> -> vector<72x128xf32>
    %c0_186 = arith.constant 0 : index
    %c0_187 = arith.constant 0 : index
    %616 = vector.load %arg6[%c0_186, %c0_187] : memref<128x72xf32, #tpu.memory_space<vmem>>, vector<128x72xf32>
    %cst_188 = arith.constant dense<0.000000e+00> : vector<128x128xf32>
    %617 = tpu.matmul %616, %615, %cst_188 {dimension_numbers = #tpu.dot_dimension_numbers<[1], [0], [0], [1], [0, 0, 1, 1], [], []>} : vector<128x72xf32>, vector<72x128xf32>, vector<128x128xf32> -> vector<128x128xf32>
    %618 = vector.extract_strided_slice %617 {offsets = [0, 0], sizes = [32, 128], strides = [1, 1]} : vector<128x128xf32> to vector<32x128xf32>
    %619 = arith.negf %618 : vector<32x128xf32>
    %620 = math.exp %619 : vector<32x128xf32>
    %cst_189 = arith.constant 1.000000e+00 : f32
    %621 = vector.broadcast %cst_189 : f32 to vector<32x128xf32>
    %622 = arith.addf %621, %620 : vector<32x128xf32>
    %623 = arith.divf %621, %622 : vector<32x128xf32>
    %624 = vector.extract_strided_slice %617 {offsets = [32, 0], sizes = [32, 128], strides = [1, 1]} : vector<128x128xf32> to vector<32x128xf32>
    %625 = arith.negf %624 : vector<32x128xf32>
    %626 = math.exp %625 : vector<32x128xf32>
    %cst_190 = arith.constant 1.000000e+00 : f32
    %627 = vector.broadcast %cst_190 : f32 to vector<32x128xf32>
    %628 = arith.addf %627, %626 : vector<32x128xf32>
    %629 = arith.divf %627, %628 : vector<32x128xf32>
    %630 = vector.extract_strided_slice %617 {offsets = [64, 0], sizes = [32, 128], strides = [1, 1]} : vector<128x128xf32> to vector<32x128xf32>
    %631 = math.tanh %630 : vector<32x128xf32>
    %632 = vector.extract_strided_slice %617 {offsets = [96, 0], sizes = [32, 128], strides = [1, 1]} : vector<128x128xf32> to vector<32x128xf32>
    %633 = arith.negf %632 : vector<32x128xf32>
    %634 = math.exp %633 : vector<32x128xf32>
    %cst_191 = arith.constant 1.000000e+00 : f32
    %635 = vector.broadcast %cst_191 : f32 to vector<32x128xf32>
    %636 = arith.addf %635, %634 : vector<32x128xf32>
    %637 = arith.divf %635, %636 : vector<32x128xf32>
    %638 = arith.mulf %629, %533 : vector<32x128xf32>
    %639 = arith.mulf %623, %631 : vector<32x128xf32>
    %640 = arith.addf %638, %639 : vector<32x128xf32>
    %641 = math.tanh %640 : vector<32x128xf32>
    %642 = arith.mulf %637, %641 : vector<32x128xf32>
    %643 = tpu.concatenate %642, %586 in 0 : vector<32x128xf32>, vector<8x128xf32> -> vector<40x128xf32>
    %c0_192 = arith.constant 0 : index
    %c0_193 = arith.constant 0 : index
    %644 = vector.load %arg7[%c0_192, %c0_193] : memref<16x40xf32, #tpu.memory_space<vmem>>, vector<16x40xf32>
    %cst_194 = arith.constant dense<0.000000e+00> : vector<16x128xf32>
    %645 = tpu.matmul %644, %643, %cst_194 {dimension_numbers = #tpu.dot_dimension_numbers<[1], [0], [0], [1], [0, 0, 1, 1], [], []>} : vector<16x40xf32>, vector<40x128xf32>, vector<16x128xf32> -> vector<16x128xf32>
    %646 = vector.extract_strided_slice %645 {offsets = [0, 0], sizes = [5, 128], strides = [1, 1]} : vector<16x128xf32> to vector<5x128xf32>
    %647 = vector.extract_strided_slice %645 {offsets = [8, 0], sizes = [5, 128], strides = [1, 1]} : vector<16x128xf32> to vector<5x128xf32>
    %648 = arith.mulf %646, %646 : vector<5x128xf32>
    %c0_195 = arith.constant 0 : index
    %c5_196 = arith.constant 5 : index
    %c0_197 = arith.constant 0 : index
    %649 = vector.load %arg13[%c0_195, %c5_196, %c0_197] : memref<5x8x128xf32, #tpu.memory_space<vmem>>, vector<5x1x128xf32>
    %650 = vector.shape_cast %649 : vector<5x1x128xf32> to vector<5x128xf32>
    %651 = vector.shape_cast %648 : vector<5x128xf32> to vector<5x1x128xf32>
    tpu.vector_store %arg13[%c0_195, %c5_196, %c0_197], %651 {strides = array<i32>} : memref<5x8x128xf32, #tpu.memory_space<vmem>>, vector<5x1x128xf32>,
    %652 = vector.extract_strided_slice %647 {offsets = [0, 0], sizes = [1, 128], strides = [1, 1]} : vector<5x128xf32> to vector<1x128xf32>
    %653 = vector.extract_strided_slice %586 {offsets = [0, 0], sizes = [1, 128], strides = [1, 1]} : vector<8x128xf32> to vector<1x128xf32>
    %654 = arith.mulf %652, %653 : vector<1x128xf32>
    %655 = vector.extract_strided_slice %647 {offsets = [1, 0], sizes = [1, 128], strides = [1, 1]} : vector<5x128xf32> to vector<1x128xf32>
    %656 = vector.extract_strided_slice %586 {offsets = [1, 0], sizes = [1, 128], strides = [1, 1]} : vector<8x128xf32> to vector<1x128xf32>
    %657 = arith.mulf %655, %656 : vector<1x128xf32>
    %658 = arith.addf %654, %657 : vector<1x128xf32>
    %659 = vector.extract_strided_slice %647 {offsets = [2, 0], sizes = [1, 128], strides = [1, 1]} : vector<5x128xf32> to vector<1x128xf32>
    %660 = vector.extract_strided_slice %586 {offsets = [2, 0], sizes = [1, 128], strides = [1, 1]} : vector<8x128xf32> to vector<1x128xf32>
    %661 = arith.mulf %659, %660 : vector<1x128xf32>
    %662 = arith.addf %658, %661 : vector<1x128xf32>
    %663 = vector.extract_strided_slice %647 {offsets = [3, 0], sizes = [1, 128], strides = [1, 1]} : vector<5x128xf32> to vector<1x128xf32>
    %664 = vector.extract_strided_slice %586 {offsets = [3, 0], sizes = [1, 128], strides = [1, 1]} : vector<8x128xf32> to vector<1x128xf32>
    %665 = arith.mulf %663, %664 : vector<1x128xf32>
    %666 = arith.addf %662, %665 : vector<1x128xf32>
    %667 = vector.extract_strided_slice %647 {offsets = [4, 0], sizes = [1, 128], strides = [1, 1]} : vector<5x128xf32> to vector<1x128xf32>
    %668 = vector.extract_strided_slice %586 {offsets = [4, 0], sizes = [1, 128], strides = [1, 1]} : vector<8x128xf32> to vector<1x128xf32>
    %669 = arith.mulf %667, %668 : vector<1x128xf32>
    %670 = arith.addf %666, %669 : vector<1x128xf32>
    %c1_i32_198 = arith.constant 1 : i32
    %671 = tpu.dynamic_rotate %670 by %c1_i32_198 dim 1 : vector<1x128xf32>, i32 -> vector<1x128xf32>
    %672 = arith.mulf %670, %670 : vector<1x128xf32>
    %673 = arith.mulf %671, %671 : vector<1x128xf32>
    %674 = arith.subf %672, %673 : vector<1x128xf32>
    %cst_199 = arith.constant 1.250000e-01 : f32
    %675 = vector.broadcast %cst_199 : f32 to vector<1x128xf32>
    %676 = arith.mulf %675, %674 : vector<1x128xf32>
    %c5_200 = arith.constant 5 : index
    %c0_201 = arith.constant 0 : index
    %677 = vector.load %arg2[%c5_200, %c0_201] : memref<8x128xf32, #tpu.memory_space<vmem>>, vector<1x128xf32>
    %678 = vector.broadcast %8 : f32 to vector<1x128xf32>
    %679 = arith.mulf %678, %677 : vector<1x128xf32>
    %680 = vector.extract_strided_slice %586 {offsets = [2, 0], sizes = [1, 128], strides = [1, 1]} : vector<8x128xf32> to vector<1x128xf32>
    %681 = vector.broadcast %12 : f32 to vector<1x128xf32>
    %682 = arith.mulf %681, %680 : vector<1x128xf32>
    %683 = arith.addf %679, %682 : vector<1x128xf32>
    %684 = vector.broadcast %16 : f32 to vector<1x128xf32>
    %685 = arith.mulf %684, %676 : vector<1x128xf32>
    %686 = arith.subf %683, %685 : vector<1x128xf32>
    %687 = vector.shape_cast %686 : vector<1x128xf32> to vector<128xf32>
    %688 = arith.index_cast %arg1 : i32 to index
    %c5_202 = arith.constant 5 : index
    %c0_203 = arith.constant 0 : index
    %689 = vector.load %arg8[%688, %c5_202, %c0_203] : memref<2x8x128xf32, #tpu.memory_space<vmem>>, vector<1x1x128xf32>
    %690 = vector.shape_cast %689 : vector<1x1x128xf32> to vector<128xf32>
    %691 = vector.shape_cast %687 : vector<128xf32> to vector<1x1x128xf32>
    tpu.vector_store %arg8[%688, %c5_202, %c0_203], %691 {strides = array<i32>} : memref<2x8x128xf32, #tpu.memory_space<vmem>>, vector<1x1x128xf32>,
    %c6 = arith.constant 6 : index
    %c0_204 = arith.constant 0 : index
    %c0_205 = arith.constant 0 : index
    %692 = vector.load %arg12[%c6, %c0_204, %c0_205] : memref<8x8x128xf32, #tpu.memory_space<vmem>>, vector<1x8x128xf32>
    %693 = vector.shape_cast %692 : vector<1x8x128xf32> to vector<8x128xf32>
    %694 = tpu.concatenate %693, %614 in 0 : vector<8x128xf32>, vector<32x128xf32> -> vector<40x128xf32>
    %c0_206 = arith.constant 0 : index
    %c0_207 = arith.constant 0 : index
    %695 = vector.load %arg5[%c0_206, %c0_207] : memref<128x40xf32, #tpu.memory_space<vmem>>, vector<128x40xf32>
    %cst_208 = arith.constant dense<0.000000e+00> : vector<128x128xf32>
    %696 = tpu.matmul %695, %694, %cst_208 {dimension_numbers = #tpu.dot_dimension_numbers<[1], [0], [0], [1], [0, 0, 1, 1], [], []>} : vector<128x40xf32>, vector<40x128xf32>, vector<128x128xf32> -> vector<128x128xf32>
    %697 = vector.extract_strided_slice %696 {offsets = [0, 0], sizes = [32, 128], strides = [1, 1]} : vector<128x128xf32> to vector<32x128xf32>
    %698 = arith.negf %697 : vector<32x128xf32>
    %699 = math.exp %698 : vector<32x128xf32>
    %cst_209 = arith.constant 1.000000e+00 : f32
    %700 = vector.broadcast %cst_209 : f32 to vector<32x128xf32>
    %701 = arith.addf %700, %699 : vector<32x128xf32>
    %702 = arith.divf %700, %701 : vector<32x128xf32>
    %703 = vector.extract_strided_slice %696 {offsets = [32, 0], sizes = [32, 128], strides = [1, 1]} : vector<128x128xf32> to vector<32x128xf32>
    %704 = arith.negf %703 : vector<32x128xf32>
    %705 = math.exp %704 : vector<32x128xf32>
    %cst_210 = arith.constant 1.000000e+00 : f32
    %706 = vector.broadcast %cst_210 : f32 to vector<32x128xf32>
    %707 = arith.addf %706, %705 : vector<32x128xf32>
    %708 = arith.divf %706, %707 : vector<32x128xf32>
    %709 = vector.extract_strided_slice %696 {offsets = [64, 0], sizes = [32, 128], strides = [1, 1]} : vector<128x128xf32> to vector<32x128xf32>
    %710 = math.tanh %709 : vector<32x128xf32>
    %711 = vector.extract_strided_slice %696 {offsets = [96, 0], sizes = [32, 128], strides = [1, 1]} : vector<128x128xf32> to vector<32x128xf32>
    %712 = arith.negf %711 : vector<32x128xf32>
    %713 = math.exp %712 : vector<32x128xf32>
    %cst_211 = arith.constant 1.000000e+00 : f32
    %714 = vector.broadcast %cst_211 : f32 to vector<32x128xf32>
    %715 = arith.addf %714, %713 : vector<32x128xf32>
    %716 = arith.divf %714, %715 : vector<32x128xf32>
    %717 = arith.mulf %708, %612 : vector<32x128xf32>
    %718 = arith.mulf %702, %710 : vector<32x128xf32>
    %719 = arith.addf %717, %718 : vector<32x128xf32>
    %720 = math.tanh %719 : vector<32x128xf32>
    %721 = arith.mulf %716, %720 : vector<32x128xf32>
    %722 = tpu.concatenate %721, %642, %693 in 0 : vector<32x128xf32>, vector<32x128xf32>, vector<8x128xf32> -> vector<72x128xf32>
    %c0_212 = arith.constant 0 : index
    %c0_213 = arith.constant 0 : index
    %723 = vector.load %arg6[%c0_212, %c0_213] : memref<128x72xf32, #tpu.memory_space<vmem>>, vector<128x72xf32>
    %cst_214 = arith.constant dense<0.000000e+00> : vector<128x128xf32>
    %724 = tpu.matmul %723, %722, %cst_214 {dimension_numbers = #tpu.dot_dimension_numbers<[1], [0], [0], [1], [0, 0, 1, 1], [], []>} : vector<128x72xf32>, vector<72x128xf32>, vector<128x128xf32> -> vector<128x128xf32>
    %725 = vector.extract_strided_slice %724 {offsets = [0, 0], sizes = [32, 128], strides = [1, 1]} : vector<128x128xf32> to vector<32x128xf32>
    %726 = arith.negf %725 : vector<32x128xf32>
    %727 = math.exp %726 : vector<32x128xf32>
    %cst_215 = arith.constant 1.000000e+00 : f32
    %728 = vector.broadcast %cst_215 : f32 to vector<32x128xf32>
    %729 = arith.addf %728, %727 : vector<32x128xf32>
    %730 = arith.divf %728, %729 : vector<32x128xf32>
    %731 = vector.extract_strided_slice %724 {offsets = [32, 0], sizes = [32, 128], strides = [1, 1]} : vector<128x128xf32> to vector<32x128xf32>
    %732 = arith.negf %731 : vector<32x128xf32>
    %733 = math.exp %732 : vector<32x128xf32>
    %cst_216 = arith.constant 1.000000e+00 : f32
    %734 = vector.broadcast %cst_216 : f32 to vector<32x128xf32>
    %735 = arith.addf %734, %733 : vector<32x128xf32>
    %736 = arith.divf %734, %735 : vector<32x128xf32>
    %737 = vector.extract_strided_slice %724 {offsets = [64, 0], sizes = [32, 128], strides = [1, 1]} : vector<128x128xf32> to vector<32x128xf32>
    %738 = math.tanh %737 : vector<32x128xf32>
    %739 = vector.extract_strided_slice %724 {offsets = [96, 0], sizes = [32, 128], strides = [1, 1]} : vector<128x128xf32> to vector<32x128xf32>
    %740 = arith.negf %739 : vector<32x128xf32>
    %741 = math.exp %740 : vector<32x128xf32>
    %cst_217 = arith.constant 1.000000e+00 : f32
    %742 = vector.broadcast %cst_217 : f32 to vector<32x128xf32>
    %743 = arith.addf %742, %741 : vector<32x128xf32>
    %744 = arith.divf %742, %743 : vector<32x128xf32>
    %745 = arith.mulf %736, %640 : vector<32x128xf32>
    %746 = arith.mulf %730, %738 : vector<32x128xf32>
    %747 = arith.addf %745, %746 : vector<32x128xf32>
    %748 = math.tanh %747 : vector<32x128xf32>
    %749 = arith.mulf %744, %748 : vector<32x128xf32>
    %750 = tpu.concatenate %749, %693 in 0 : vector<32x128xf32>, vector<8x128xf32> -> vector<40x128xf32>
    %c0_218 = arith.constant 0 : index
    %c0_219 = arith.constant 0 : index
    %751 = vector.load %arg7[%c0_218, %c0_219] : memref<16x40xf32, #tpu.memory_space<vmem>>, vector<16x40xf32>
    %cst_220 = arith.constant dense<0.000000e+00> : vector<16x128xf32>
    %752 = tpu.matmul %751, %750, %cst_220 {dimension_numbers = #tpu.dot_dimension_numbers<[1], [0], [0], [1], [0, 0, 1, 1], [], []>} : vector<16x40xf32>, vector<40x128xf32>, vector<16x128xf32> -> vector<16x128xf32>
    %753 = vector.extract_strided_slice %752 {offsets = [0, 0], sizes = [5, 128], strides = [1, 1]} : vector<16x128xf32> to vector<5x128xf32>
    %754 = vector.extract_strided_slice %752 {offsets = [8, 0], sizes = [5, 128], strides = [1, 1]} : vector<16x128xf32> to vector<5x128xf32>
    %755 = arith.mulf %753, %753 : vector<5x128xf32>
    %c0_221 = arith.constant 0 : index
    %c6_222 = arith.constant 6 : index
    %c0_223 = arith.constant 0 : index
    %756 = vector.load %arg13[%c0_221, %c6_222, %c0_223] : memref<5x8x128xf32, #tpu.memory_space<vmem>>, vector<5x1x128xf32>
    %757 = vector.shape_cast %756 : vector<5x1x128xf32> to vector<5x128xf32>
    %758 = vector.shape_cast %755 : vector<5x128xf32> to vector<5x1x128xf32>
    tpu.vector_store %arg13[%c0_221, %c6_222, %c0_223], %758 {strides = array<i32>} : memref<5x8x128xf32, #tpu.memory_space<vmem>>, vector<5x1x128xf32>,
    %759 = vector.extract_strided_slice %754 {offsets = [0, 0], sizes = [1, 128], strides = [1, 1]} : vector<5x128xf32> to vector<1x128xf32>
    %760 = vector.extract_strided_slice %693 {offsets = [0, 0], sizes = [1, 128], strides = [1, 1]} : vector<8x128xf32> to vector<1x128xf32>
    %761 = arith.mulf %759, %760 : vector<1x128xf32>
    %762 = vector.extract_strided_slice %754 {offsets = [1, 0], sizes = [1, 128], strides = [1, 1]} : vector<5x128xf32> to vector<1x128xf32>
    %763 = vector.extract_strided_slice %693 {offsets = [1, 0], sizes = [1, 128], strides = [1, 1]} : vector<8x128xf32> to vector<1x128xf32>
    %764 = arith.mulf %762, %763 : vector<1x128xf32>
    %765 = arith.addf %761, %764 : vector<1x128xf32>
    %766 = vector.extract_strided_slice %754 {offsets = [2, 0], sizes = [1, 128], strides = [1, 1]} : vector<5x128xf32> to vector<1x128xf32>
    %767 = vector.extract_strided_slice %693 {offsets = [2, 0], sizes = [1, 128], strides = [1, 1]} : vector<8x128xf32> to vector<1x128xf32>
    %768 = arith.mulf %766, %767 : vector<1x128xf32>
    %769 = arith.addf %765, %768 : vector<1x128xf32>
    %770 = vector.extract_strided_slice %754 {offsets = [3, 0], sizes = [1, 128], strides = [1, 1]} : vector<5x128xf32> to vector<1x128xf32>
    %771 = vector.extract_strided_slice %693 {offsets = [3, 0], sizes = [1, 128], strides = [1, 1]} : vector<8x128xf32> to vector<1x128xf32>
    %772 = arith.mulf %770, %771 : vector<1x128xf32>
    %773 = arith.addf %769, %772 : vector<1x128xf32>
    %774 = vector.extract_strided_slice %754 {offsets = [4, 0], sizes = [1, 128], strides = [1, 1]} : vector<5x128xf32> to vector<1x128xf32>
    %775 = vector.extract_strided_slice %693 {offsets = [4, 0], sizes = [1, 128], strides = [1, 1]} : vector<8x128xf32> to vector<1x128xf32>
    %776 = arith.mulf %774, %775 : vector<1x128xf32>
    %777 = arith.addf %773, %776 : vector<1x128xf32>
    %c1_i32_224 = arith.constant 1 : i32
    %778 = tpu.dynamic_rotate %777 by %c1_i32_224 dim 1 : vector<1x128xf32>, i32 -> vector<1x128xf32>
    %779 = arith.mulf %777, %777 : vector<1x128xf32>
    %780 = arith.mulf %778, %778 : vector<1x128xf32>
    %781 = arith.subf %779, %780 : vector<1x128xf32>
    %cst_225 = arith.constant 1.250000e-01 : f32
    %782 = vector.broadcast %cst_225 : f32 to vector<1x128xf32>
    %783 = arith.mulf %782, %781 : vector<1x128xf32>
    %c6_226 = arith.constant 6 : index
    %c0_227 = arith.constant 0 : index
    %784 = vector.load %arg2[%c6_226, %c0_227] : memref<8x128xf32, #tpu.memory_space<vmem>>, vector<1x128xf32>
    %785 = vector.broadcast %8 : f32 to vector<1x128xf32>
    %786 = arith.mulf %785, %784 : vector<1x128xf32>
    %787 = vector.extract_strided_slice %693 {offsets = [2, 0], sizes = [1, 128], strides = [1, 1]} : vector<8x128xf32> to vector<1x128xf32>
    %788 = vector.broadcast %12 : f32 to vector<1x128xf32>
    %789 = arith.mulf %788, %787 : vector<1x128xf32>
    %790 = arith.addf %786, %789 : vector<1x128xf32>
    %791 = vector.broadcast %16 : f32 to vector<1x128xf32>
    %792 = arith.mulf %791, %783 : vector<1x128xf32>
    %793 = arith.subf %790, %792 : vector<1x128xf32>
    %794 = vector.shape_cast %793 : vector<1x128xf32> to vector<128xf32>
    %795 = arith.index_cast %arg1 : i32 to index
    %c6_228 = arith.constant 6 : index
    %c0_229 = arith.constant 0 : index
    %796 = vector.load %arg8[%795, %c6_228, %c0_229] : memref<2x8x128xf32, #tpu.memory_space<vmem>>, vector<1x1x128xf32>
    %797 = vector.shape_cast %796 : vector<1x1x128xf32> to vector<128xf32>
    %798 = vector.shape_cast %794 : vector<128xf32> to vector<1x1x128xf32>
    tpu.vector_store %arg8[%795, %c6_228, %c0_229], %798 {strides = array<i32>} : memref<2x8x128xf32, #tpu.memory_space<vmem>>, vector<1x1x128xf32>,
    %c7 = arith.constant 7 : index
    %c0_230 = arith.constant 0 : index
    %c0_231 = arith.constant 0 : index
    %799 = vector.load %arg12[%c7, %c0_230, %c0_231] : memref<8x8x128xf32, #tpu.memory_space<vmem>>, vector<1x8x128xf32>
    %800 = vector.shape_cast %799 : vector<1x8x128xf32> to vector<8x128xf32>
    %801 = tpu.concatenate %800, %721 in 0 : vector<8x128xf32>, vector<32x128xf32> -> vector<40x128xf32>
    %c0_232 = arith.constant 0 : index
    %c0_233 = arith.constant 0 : index
    %802 = vector.load %arg5[%c0_232, %c0_233] : memref<128x40xf32, #tpu.memory_space<vmem>>, vector<128x40xf32>
    %cst_234 = arith.constant dense<0.000000e+00> : vector<128x128xf32>
    %803 = tpu.matmul %802, %801, %cst_234 {dimension_numbers = #tpu.dot_dimension_numbers<[1], [0], [0], [1], [0, 0, 1, 1], [], []>} : vector<128x40xf32>, vector<40x128xf32>, vector<128x128xf32> -> vector<128x128xf32>
    %804 = vector.extract_strided_slice %803 {offsets = [0, 0], sizes = [32, 128], strides = [1, 1]} : vector<128x128xf32> to vector<32x128xf32>
    %805 = arith.negf %804 : vector<32x128xf32>
    %806 = math.exp %805 : vector<32x128xf32>
    %cst_235 = arith.constant 1.000000e+00 : f32
    %807 = vector.broadcast %cst_235 : f32 to vector<32x128xf32>
    %808 = arith.addf %807, %806 : vector<32x128xf32>
    %809 = arith.divf %807, %808 : vector<32x128xf32>
    %810 = vector.extract_strided_slice %803 {offsets = [32, 0], sizes = [32, 128], strides = [1, 1]} : vector<128x128xf32> to vector<32x128xf32>
    %811 = arith.negf %810 : vector<32x128xf32>
    %812 = math.exp %811 : vector<32x128xf32>
    %cst_236 = arith.constant 1.000000e+00 : f32
    %813 = vector.broadcast %cst_236 : f32 to vector<32x128xf32>
    %814 = arith.addf %813, %812 : vector<32x128xf32>
    %815 = arith.divf %813, %814 : vector<32x128xf32>
    %816 = vector.extract_strided_slice %803 {offsets = [64, 0], sizes = [32, 128], strides = [1, 1]} : vector<128x128xf32> to vector<32x128xf32>
    %817 = math.tanh %816 : vector<32x128xf32>
    %818 = vector.extract_strided_slice %803 {offsets = [96, 0], sizes = [32, 128], strides = [1, 1]} : vector<128x128xf32> to vector<32x128xf32>
    %819 = arith.negf %818 : vector<32x128xf32>
    %820 = math.exp %819 : vector<32x128xf32>
    %cst_237 = arith.constant 1.000000e+00 : f32
    %821 = vector.broadcast %cst_237 : f32 to vector<32x128xf32>
    %822 = arith.addf %821, %820 : vector<32x128xf32>
    %823 = arith.divf %821, %822 : vector<32x128xf32>
    %824 = arith.mulf %815, %719 : vector<32x128xf32>
    %825 = arith.mulf %809, %817 : vector<32x128xf32>
    %826 = arith.addf %824, %825 : vector<32x128xf32>
    %827 = math.tanh %826 : vector<32x128xf32>
    %828 = arith.mulf %823, %827 : vector<32x128xf32>
    %829 = tpu.concatenate %828, %749, %800 in 0 : vector<32x128xf32>, vector<32x128xf32>, vector<8x128xf32> -> vector<72x128xf32>
    %c0_238 = arith.constant 0 : index
    %c0_239 = arith.constant 0 : index
    %830 = vector.load %arg6[%c0_238, %c0_239] : memref<128x72xf32, #tpu.memory_space<vmem>>, vector<128x72xf32>
    %cst_240 = arith.constant dense<0.000000e+00> : vector<128x128xf32>
    %831 = tpu.matmul %830, %829, %cst_240 {dimension_numbers = #tpu.dot_dimension_numbers<[1], [0], [0], [1], [0, 0, 1, 1], [], []>} : vector<128x72xf32>, vector<72x128xf32>, vector<128x128xf32> -> vector<128x128xf32>
    %832 = vector.extract_strided_slice %831 {offsets = [0, 0], sizes = [32, 128], strides = [1, 1]} : vector<128x128xf32> to vector<32x128xf32>
    %833 = arith.negf %832 : vector<32x128xf32>
    %834 = math.exp %833 : vector<32x128xf32>
    %cst_241 = arith.constant 1.000000e+00 : f32
    %835 = vector.broadcast %cst_241 : f32 to vector<32x128xf32>
    %836 = arith.addf %835, %834 : vector<32x128xf32>
    %837 = arith.divf %835, %836 : vector<32x128xf32>
    %838 = vector.extract_strided_slice %831 {offsets = [32, 0], sizes = [32, 128], strides = [1, 1]} : vector<128x128xf32> to vector<32x128xf32>
    %839 = arith.negf %838 : vector<32x128xf32>
    %840 = math.exp %839 : vector<32x128xf32>
    %cst_242 = arith.constant 1.000000e+00 : f32
    %841 = vector.broadcast %cst_242 : f32 to vector<32x128xf32>
    %842 = arith.addf %841, %840 : vector<32x128xf32>
    %843 = arith.divf %841, %842 : vector<32x128xf32>
    %844 = vector.extract_strided_slice %831 {offsets = [64, 0], sizes = [32, 128], strides = [1, 1]} : vector<128x128xf32> to vector<32x128xf32>
    %845 = math.tanh %844 : vector<32x128xf32>
    %846 = vector.extract_strided_slice %831 {offsets = [96, 0], sizes = [32, 128], strides = [1, 1]} : vector<128x128xf32> to vector<32x128xf32>
    %847 = arith.negf %846 : vector<32x128xf32>
    %848 = math.exp %847 : vector<32x128xf32>
    %cst_243 = arith.constant 1.000000e+00 : f32
    %849 = vector.broadcast %cst_243 : f32 to vector<32x128xf32>
    %850 = arith.addf %849, %848 : vector<32x128xf32>
    %851 = arith.divf %849, %850 : vector<32x128xf32>
    %852 = arith.mulf %843, %747 : vector<32x128xf32>
    %853 = arith.mulf %837, %845 : vector<32x128xf32>
    %854 = arith.addf %852, %853 : vector<32x128xf32>
    %855 = math.tanh %854 : vector<32x128xf32>
    %856 = arith.mulf %851, %855 : vector<32x128xf32>
    %857 = tpu.concatenate %856, %800 in 0 : vector<32x128xf32>, vector<8x128xf32> -> vector<40x128xf32>
    %c0_244 = arith.constant 0 : index
    %c0_245 = arith.constant 0 : index
    %858 = vector.load %arg7[%c0_244, %c0_245] : memref<16x40xf32, #tpu.memory_space<vmem>>, vector<16x40xf32>
    %cst_246 = arith.constant dense<0.000000e+00> : vector<16x128xf32>
    %859 = tpu.matmul %858, %857, %cst_246 {dimension_numbers = #tpu.dot_dimension_numbers<[1], [0], [0], [1], [0, 0, 1, 1], [], []>} : vector<16x40xf32>, vector<40x128xf32>, vector<16x128xf32> -> vector<16x128xf32>
    %860 = vector.extract_strided_slice %859 {offsets = [0, 0], sizes = [5, 128], strides = [1, 1]} : vector<16x128xf32> to vector<5x128xf32>
    %861 = vector.extract_strided_slice %859 {offsets = [8, 0], sizes = [5, 128], strides = [1, 1]} : vector<16x128xf32> to vector<5x128xf32>
    %862 = arith.mulf %860, %860 : vector<5x128xf32>
    %c0_247 = arith.constant 0 : index
    %c7_248 = arith.constant 7 : index
    %c0_249 = arith.constant 0 : index
    %863 = vector.load %arg13[%c0_247, %c7_248, %c0_249] : memref<5x8x128xf32, #tpu.memory_space<vmem>>, vector<5x1x128xf32>
    %864 = vector.shape_cast %863 : vector<5x1x128xf32> to vector<5x128xf32>
    %865 = vector.shape_cast %862 : vector<5x128xf32> to vector<5x1x128xf32>
    tpu.vector_store %arg13[%c0_247, %c7_248, %c0_249], %865 {strides = array<i32>} : memref<5x8x128xf32, #tpu.memory_space<vmem>>, vector<5x1x128xf32>,
    %866 = vector.extract_strided_slice %861 {offsets = [0, 0], sizes = [1, 128], strides = [1, 1]} : vector<5x128xf32> to vector<1x128xf32>
    %867 = vector.extract_strided_slice %800 {offsets = [0, 0], sizes = [1, 128], strides = [1, 1]} : vector<8x128xf32> to vector<1x128xf32>
    %868 = arith.mulf %866, %867 : vector<1x128xf32>
    %869 = vector.extract_strided_slice %861 {offsets = [1, 0], sizes = [1, 128], strides = [1, 1]} : vector<5x128xf32> to vector<1x128xf32>
    %870 = vector.extract_strided_slice %800 {offsets = [1, 0], sizes = [1, 128], strides = [1, 1]} : vector<8x128xf32> to vector<1x128xf32>
    %871 = arith.mulf %869, %870 : vector<1x128xf32>
    %872 = arith.addf %868, %871 : vector<1x128xf32>
    %873 = vector.extract_strided_slice %861 {offsets = [2, 0], sizes = [1, 128], strides = [1, 1]} : vector<5x128xf32> to vector<1x128xf32>
    %874 = vector.extract_strided_slice %800 {offsets = [2, 0], sizes = [1, 128], strides = [1, 1]} : vector<8x128xf32> to vector<1x128xf32>
    %875 = arith.mulf %873, %874 : vector<1x128xf32>
    %876 = arith.addf %872, %875 : vector<1x128xf32>
    %877 = vector.extract_strided_slice %861 {offsets = [3, 0], sizes = [1, 128], strides = [1, 1]} : vector<5x128xf32> to vector<1x128xf32>
    %878 = vector.extract_strided_slice %800 {offsets = [3, 0], sizes = [1, 128], strides = [1, 1]} : vector<8x128xf32> to vector<1x128xf32>
    %879 = arith.mulf %877, %878 : vector<1x128xf32>
    %880 = arith.addf %876, %879 : vector<1x128xf32>
    %881 = vector.extract_strided_slice %861 {offsets = [4, 0], sizes = [1, 128], strides = [1, 1]} : vector<5x128xf32> to vector<1x128xf32>
    %882 = vector.extract_strided_slice %800 {offsets = [4, 0], sizes = [1, 128], strides = [1, 1]} : vector<8x128xf32> to vector<1x128xf32>
    %883 = arith.mulf %881, %882 : vector<1x128xf32>
    %884 = arith.addf %880, %883 : vector<1x128xf32>
    %c1_i32_250 = arith.constant 1 : i32
    %885 = tpu.dynamic_rotate %884 by %c1_i32_250 dim 1 : vector<1x128xf32>, i32 -> vector<1x128xf32>
    %886 = arith.mulf %884, %884 : vector<1x128xf32>
    %887 = arith.mulf %885, %885 : vector<1x128xf32>
    %888 = arith.subf %886, %887 : vector<1x128xf32>
    %cst_251 = arith.constant 1.250000e-01 : f32
    %889 = vector.broadcast %cst_251 : f32 to vector<1x128xf32>
    %890 = arith.mulf %889, %888 : vector<1x128xf32>
    %c7_252 = arith.constant 7 : index
    %c0_253 = arith.constant 0 : index
    %891 = vector.load %arg2[%c7_252, %c0_253] : memref<8x128xf32, #tpu.memory_space<vmem>>, vector<1x128xf32>
    %892 = vector.broadcast %8 : f32 to vector<1x128xf32>
    %893 = arith.mulf %892, %891 : vector<1x128xf32>
    %894 = vector.extract_strided_slice %800 {offsets = [2, 0], sizes = [1, 128], strides = [1, 1]} : vector<8x128xf32> to vector<1x128xf32>
    %895 = vector.broadcast %12 : f32 to vector<1x128xf32>
    %896 = arith.mulf %895, %894 : vector<1x128xf32>
    %897 = arith.addf %893, %896 : vector<1x128xf32>
    %898 = vector.broadcast %16 : f32 to vector<1x128xf32>
    %899 = arith.mulf %898, %890 : vector<1x128xf32>
    %900 = arith.subf %897, %899 : vector<1x128xf32>
    %901 = vector.shape_cast %900 : vector<1x128xf32> to vector<128xf32>
    %902 = arith.index_cast %arg1 : i32 to index
    %c7_254 = arith.constant 7 : index
    %c0_255 = arith.constant 0 : index
    %903 = vector.load %arg8[%902, %c7_254, %c0_255] : memref<2x8x128xf32, #tpu.memory_space<vmem>>, vector<1x1x128xf32>
    %904 = vector.shape_cast %903 : vector<1x1x128xf32> to vector<128xf32>
    %905 = vector.shape_cast %901 : vector<128xf32> to vector<1x1x128xf32>
    tpu.vector_store %arg8[%902, %c7_254, %c0_255], %905 {strides = array<i32>} : memref<2x8x128xf32, #tpu.memory_space<vmem>>, vector<1x1x128xf32>,
    %c0_256 = arith.constant 0 : index
    %c0_257 = arith.constant 0 : index
    %c0_258 = arith.constant 0 : index
    %906 = vector.load %arg10[%c0_256, %c0_257, %c0_258] : memref<2x32x128xf32, #tpu.memory_space<vmem>>, vector<1x32x128xf32>
    %907 = vector.shape_cast %906 : vector<1x32x128xf32> to vector<32x128xf32>
    %908 = vector.shape_cast %828 : vector<32x128xf32> to vector<1x32x128xf32>
    tpu.vector_store %arg10[%c0_256, %c0_257, %c0_258], %908 {strides = array<i32>} : memref<2x32x128xf32, #tpu.memory_space<vmem>>, vector<1x32x128xf32>,
    %c1_259 = arith.constant 1 : index
    %c0_260 = arith.constant 0 : index
    %c0_261 = arith.constant 0 : index
    %909 = vector.load %arg10[%c1_259, %c0_260, %c0_261] : memref<2x32x128xf32, #tpu.memory_space<vmem>>, vector<1x32x128xf32>
    %910 = vector.shape_cast %909 : vector<1x32x128xf32> to vector<32x128xf32>
    %911 = vector.shape_cast %856 : vector<32x128xf32> to vector<1x32x128xf32>
    tpu.vector_store %arg10[%c1_259, %c0_260, %c0_261], %911 {strides = array<i32>} : memref<2x32x128xf32, #tpu.memory_space<vmem>>, vector<1x32x128xf32>,
    %c0_262 = arith.constant 0 : index
    %c0_263 = arith.constant 0 : index
    %c0_264 = arith.constant 0 : index
    %912 = vector.load %arg11[%c0_262, %c0_263, %c0_264] : memref<2x32x128xf32, #tpu.memory_space<vmem>>, vector<1x32x128xf32>
    %913 = vector.shape_cast %912 : vector<1x32x128xf32> to vector<32x128xf32>
    %914 = vector.shape_cast %826 : vector<32x128xf32> to vector<1x32x128xf32>
    tpu.vector_store %arg11[%c0_262, %c0_263, %c0_264], %914 {strides = array<i32>} : memref<2x32x128xf32, #tpu.memory_space<vmem>>, vector<1x32x128xf32>,
    %c1_265 = arith.constant 1 : index
    %c0_266 = arith.constant 0 : index
    %c0_267 = arith.constant 0 : index
    %915 = vector.load %arg11[%c1_265, %c0_266, %c0_267] : memref<2x32x128xf32, #tpu.memory_space<vmem>>, vector<1x32x128xf32>
    %916 = vector.shape_cast %915 : vector<1x32x128xf32> to vector<32x128xf32>
    %917 = vector.shape_cast %854 : vector<32x128xf32> to vector<1x32x128xf32>
    tpu.vector_store %arg11[%c1_265, %c0_266, %c0_267], %917 {strides = array<i32>} : memref<2x32x128xf32, #tpu.memory_space<vmem>>, vector<1x32x128xf32>,
    %c0_i32_268 = arith.constant 0 : i32
    %918 = arith.cmpi eq, %arg0, %c0_i32_268 : i32
    %919 = arith.index_cast %arg1 : i32 to index
    %c0_269 = arith.constant 0 : index
    %c0_270 = arith.constant 0 : index
    %c0_271 = arith.constant 0 : index
    %920 = vector.load %arg9[%919, %c0_269, %c0_270, %c0_271] : memref<2x5x8x128xf32, #tpu.memory_space<vmem>>, vector<1x5x8x128xf32>
    %921 = vector.shape_cast %920 : vector<1x5x8x128xf32> to vector<5x8x128xf32>
    %cst_272 = arith.constant 0.000000e+00 : f32
    %922 = vector.broadcast %cst_272 : f32 to vector<5x8x128xf32>
    %923 = arith.select %918, %922, %921 : vector<5x8x128xf32>
    %c0_273 = arith.constant 0 : index
    %c0_274 = arith.constant 0 : index
    %c0_275 = arith.constant 0 : index
    %924 = vector.load %arg13[%c0_273, %c0_274, %c0_275] : memref<5x8x128xf32, #tpu.memory_space<vmem>>, vector<5x8x128xf32>
    %925 = arith.addf %923, %924 : vector<5x8x128xf32>
    %926 = arith.index_cast %arg1 : i32 to index
    %c0_276 = arith.constant 0 : index
    %c0_277 = arith.constant 0 : index
    %c0_278 = arith.constant 0 : index
    %927 = vector.load %arg9[%926, %c0_276, %c0_277, %c0_278] : memref<2x5x8x128xf32, #tpu.memory_space<vmem>>, vector<1x5x8x128xf32>
    %928 = vector.shape_cast %927 : vector<1x5x8x128xf32> to vector<5x8x128xf32>
    %929 = vector.shape_cast %925 : vector<5x8x128xf32> to vector<1x5x8x128xf32>
    tpu.vector_store %arg9[%926, %c0_276, %c0_277, %c0_278], %929 {strides = array<i32>} : memref<2x5x8x128xf32, #tpu.memory_space<vmem>>, vector<1x5x8x128xf32>,
    return
  }
  func.func @transform_0(%arg0: i32, %arg1: i32) -> (i32, i32) {
    %c0_i32 = arith.constant 0 : i32
    %c0_i32_0 = arith.constant 0 : i32
    return %arg1, %c0_i32 : i32, i32
  }
  func.func @transform_1(%arg0: i32, %arg1: i32) -> (i32, i32, i32) {
    %c0_i32 = arith.constant 0 : i32
    %c0_i32_0 = arith.constant 0 : i32
    %c0_i32_1 = arith.constant 0 : i32
    %c0_i32_2 = arith.constant 0 : i32
    return %c0_i32, %c0_i32_0, %c0_i32_1 : i32, i32, i32
  }
  func.func @transform_2(%arg0: i32, %arg1: i32) -> (i32, i32, i32) {
    %c0_i32 = arith.constant 0 : i32
    %c0_i32_0 = arith.constant 0 : i32
    %c0_i32_1 = arith.constant 0 : i32
    %c0_i32_2 = arith.constant 0 : i32
    return %c0_i32, %c0_i32_0, %c0_i32_1 : i32, i32, i32
  }
  func.func @transform_3(%arg0: i32, %arg1: i32) -> (i32, i32) {
    %c0_i32 = arith.constant 0 : i32
    %c0_i32_0 = arith.constant 0 : i32
    %c0_i32_1 = arith.constant 0 : i32
    return %c0_i32, %c0_i32_0 : i32, i32
  }
  func.func @transform_4(%arg0: i32, %arg1: i32) -> (i32, i32) {
    %c0_i32 = arith.constant 0 : i32
    %c0_i32_0 = arith.constant 0 : i32
    %c0_i32_1 = arith.constant 0 : i32
    return %c0_i32, %c0_i32_0 : i32, i32
  }
  func.func @transform_5(%arg0: i32, %arg1: i32) -> (i32, i32) {
    %c0_i32 = arith.constant 0 : i32
    %c0_i32_0 = arith.constant 0 : i32
    %c0_i32_1 = arith.constant 0 : i32
    return %c0_i32, %c0_i32_0 : i32, i32
  }
  func.func @transform_6(%arg0: i32, %arg1: i32) -> (i32, i32, i32) {
    %c0_i32 = arith.constant 0 : i32
    %c0_i32_0 = arith.constant 0 : i32
    %c0_i32_1 = arith.constant 0 : i32
    %c0_i32_2 = arith.constant 0 : i32
    return %c0_i32, %c0_i32_0, %c0_i32_1 : i32, i32, i32
  }
  func.func @transform_7(%arg0: i32, %arg1: i32) -> (i32, i32, i32, i32) {
    %c0_i32 = arith.constant 0 : i32
    %c0_i32_0 = arith.constant 0 : i32
    %c0_i32_1 = arith.constant 0 : i32
    %c0_i32_2 = arith.constant 0 : i32
    %c0_i32_3 = arith.constant 0 : i32
    return %c0_i32, %c0_i32_0, %c0_i32_1, %c0_i32_2 : i32, i32, i32, i32
  }
  func.func @transform_8(%arg0: i32, %arg1: i32) -> (i32, i32, i32) {
    %c0_i32 = arith.constant 0 : i32
    %c0_i32_0 = arith.constant 0 : i32
    %c0_i32_1 = arith.constant 0 : i32
    %c0_i32_2 = arith.constant 0 : i32
    return %c0_i32, %c0_i32_0, %c0_i32_1 : i32, i32, i32
  }
  func.func @transform_9(%arg0: i32, %arg1: i32) -> (i32, i32, i32) {
    %c0_i32 = arith.constant 0 : i32
    %c0_i32_0 = arith.constant 0 : i32
    %c0_i32_1 = arith.constant 0 : i32
    %c0_i32_2 = arith.constant 0 : i32
    return %c0_i32, %c0_i32_0, %c0_i32_1 : i32, i32, i32
  }
}

</mosaic_0001>

<bundles_post_ra>
// kernel: tpu_custom_call.1
= control target key start
LH: loop header
LB: loop body
LE: loop exit
PB: predicated region body
PF: predicated region fallthrough
CT: control target
= control target key end

     0   :  { %15 = vsyncpa [#allocation5], 0  ;;  %s12024_s0 = inlined_call_operand.vmem [shape: f32[16,128], index: 0, kind: input, shape index: {}]   ;;  %s12025_s1 = inlined_call_operand.vmem [shape: f32[2,32,128], index: 1, kind: input, shape index: {}]   ;;  %s12026_s2 = inlined_call_operand.vmem [shape: f32[2,32,128], index: 2, kind: input, shape index: {}]   ;;  %s12027_s3 = inlined_call_operand.vmem [shape: f32[128,40], index: 3, kind: input, shape index: {}]   ;;  %s12028_s4 = inlined_call_operand.vmem [shape: f32[128,72], index: 4, kind: input, shape index: {}]   ;;  %s12029_s5 = inlined_call_operand.vmem [shape: f32[16,40], index: 5, kind: input, shape index: {}]   ;;  %s12030_s6 = inlined_call_operand.hbm [shape: f32[2,8,128], index: 6, kind: output, shape index: {0}]   ;;  %s12031_s7 = inlined_call_operand.hbm [shape: f32[2,5,8,128], index: 7, kind: output, shape index: {1}]   ;;  %s12032_s8 = inlined_call_operand.hbm [shape: f32[2,32,128], index: 8, kind: output, shape index: {2}]   ;;  %s12033_s9 = inlined_call_operand.hbm [shape: f32[2,32,128], index: 9, kind: output, shape index: {3}]  }
   0x1   :  { %16 = vsyncpa [#allocation7], 0 }
   0x2   :  { %17 = vsyncpa [#allocation10], 0  ;;  %s10153_s30 = smov 0   ;;  %s10155_s10 = smov 0  }
   0x3   :  { %s10157_s11 = smov 0   ;;  %s10159_s12 = smov 0  }
   0x4   :  { %s10161_s13 = smov 0  }
   0x5 LB: > { %s7136_s14 = sadd.s32 4294967295, %s10088_s13   ;;  %s32_s15 = sadd.s32 1, %s10080_s11  ;;  %s10088_s13 = sphi %s10161_s13, %s23_s13   ;;  %s10084_s12 = sphi %s10159_s12, %s12089_s12   ;;  %s10080_s11 = sphi %s10157_s11, %s12088_s11   ;;  %s10076_s10 = sphi %s10155_s10, %s12087_s10   ;;  %s10072_s30 = sphi %s10153_s30, %s12086_s30  }
   0x6   : > { %p33_p0 = scmp.ge.s32.totalorder %s32_s15, 2  ;;  %s35_s16 = sadd.s32 1, %s10084_s12 }
   0x7   : > { %p7139_p1 = scmp.ge.s32.totalorder %s10088_s13, 1  ;;  %p288_p2 = scmp.lt.s32.totalorder %s10088_s13, 7 }
   0x8   : > { %s12091_s15 = smov (%p33_p0, %s32_s15), 0  ;;  %s12093_s16 = smov (!%p33_p0, %s35_s16), %s10084_s12 }
   0x9   : > { %p289_p3 = pnand %p7139_p1, %p288_p2  ;;  %p37_p4 = scmp.ge.s32.totalorder %s12093_s16, 3 }
   0xb   : > { %s12095_s16 = smov (%p37_p4, %s12093_s16), 0  ;;  %292 = sbr.rel (%p289_p3) target bundleno = 3198 (0xc7e), region = 44 }
  0x10   : > { %p318_p5 = scmp.lt.s32.totalorder %s10072_s30, 1  ;;  %p322_p6 = scmp.eq.s32.totalorder %s10076_s10, 0 }
  0x11   : > { %p323_p7 = scmp.eq.s32.totalorder %s10072_s30, 0 }
  0x12   : > { %s319_s17 = scalar_select %p318_p5, %s10072_s30, 1 }
  0x13   : > { %p324_p8 = pnand %p323_p7, %p322_p6 }
  0x14   : > { %s7140_s18 = sshll.u32 %s319_s17, 3 }
  0x15   : > { %s10197_s21 = scalar_lea.vmem %s12024_s0, %s7140_s18  ;;  %327 = sbr.rel (%p324_p8) target bundleno = 43 (0x2b), region = 48 }
  0x1a   : > { %v328_v0 = vld [vmem:[%s12025_s1] sm:$0xff]  ;;  %v329_v1 = vld [vmem:[%s12025_s1 + $0x8] sm:$0xff]  ;;  %v330_v2 = vld [vmem:[%s12025_s1 + $0x10] sm:$0xff]  ;;  %v10090_v6 = vmov 1.0   ;;  %v10091_v7 = vmov 0.0  }
  0x1b   : > { %336 = vst [vmem:[#allocation8] sm:$0xff] %v328_v0  ;;  %337 = vst [vmem:[#allocation8 + $0x8] sm:$0xff] %v329_v1  ;;  %v331_v3 = vld [vmem:[%s12025_s1 + $0x18] sm:$0xff]  ;;  %v332_v4 = vld [vmem:[%s12025_s1 + $0x20] sm:$0xff] }
  0x1c   : > { %338 = vst [vmem:[#allocation8 + $0x10] sm:$0xff] %v330_v2  ;;  %v333_v5 = vld [vmem:[%s12025_s1 + $0x28] sm:$0xff]  ;;  %360 = vst [vmem:[#allocation2 + $0x5] sm:$0x1] %v10090_v6  ;;  %v334_v8 = vld [vmem:[%s12025_s1 + $0x30] sm:$0xff] }
  0x1d   : > { %361 = vst [vmem:[#allocation2 + $0xd] sm:$0x1] %v10090_v6  ;;  %362 = vst [vmem:[#allocation2 + $0x15] sm:$0x1] %v10090_v6  ;;  %v335_v9 = vld [vmem:[%s12025_s1 + $0x38] sm:$0xff]  ;;  %v344_v10 = vld [vmem:[%s12026_s2] sm:$0xff] }
  0x1e   : > { %363 = vst [vmem:[#allocation2 + $0x1d] sm:$0x1] %v10090_v6  ;;  %364 = vst [vmem:[#allocation2 + $0x25] sm:$0x1] %v10090_v6  ;;  %v345_v11 = vld [vmem:[%s12026_s2 + $0x8] sm:$0xff]  ;;  %v346_v12 = vld [vmem:[%s12026_s2 + $0x10] sm:$0xff] }
  0x1f   : > { %365 = vst [vmem:[#allocation2 + $0x2d] sm:$0x1] %v10090_v6  ;;  %366 = vst [vmem:[#allocation2 + $0x35] sm:$0x1] %v10090_v6  ;;  %v347_v13 = vld [vmem:[%s12026_s2 + $0x18] sm:$0xff]  ;;  %v348_v14 = vld [vmem:[%s12026_s2 + $0x20] sm:$0xff] }
  0x20   : > { %367 = vst [vmem:[#allocation2 + $0x3d] sm:$0x1] %v10090_v6  ;;  %368 = vst [vmem:[#allocation2 + $0x6] sm:$0x3] %v10091_v7  ;;  %v349_v15 = vld [vmem:[%s12026_s2 + $0x28] sm:$0xff]  ;;  %v350_v16 = vld [vmem:[%s12026_s2 + $0x30] sm:$0xff] }
  0x21   : > { %369 = vst [vmem:[#allocation2 + $0xe] sm:$0x3] %v10091_v7  ;;  %370 = vst [vmem:[#allocation2 + $0x16] sm:$0x3] %v10091_v7  ;;  %v351_v17 = vld [vmem:[%s12026_s2 + $0x38] sm:$0xff] }
  0x22   : > { %371 = vst [vmem:[#allocation2 + $0x1e] sm:$0x3] %v10091_v7  ;;  %372 = vst [vmem:[#allocation2 + $0x26] sm:$0x3] %v10091_v7 }
  0x23   : > { %373 = vst [vmem:[#allocation2 + $0x2e] sm:$0x3] %v10091_v7  ;;  %374 = vst [vmem:[#allocation2 + $0x36] sm:$0x3] %v10091_v7 }
  0x24   : > { %375 = vst [vmem:[#allocation2 + $0x3e] sm:$0x3] %v10091_v7  ;;  %339 = vst [vmem:[#allocation8 + $0x18] sm:$0xff] %v331_v3 }
  0x25   : > { %340 = vst [vmem:[#allocation8 + $0x20] sm:$0xff] %v332_v4  ;;  %341 = vst [vmem:[#allocation8 + $0x28] sm:$0xff] %v333_v5 }
  0x26   : > { %342 = vst [vmem:[#allocation8 + $0x30] sm:$0xff] %v334_v8  ;;  %343 = vst [vmem:[#allocation8 + $0x38] sm:$0xff] %v335_v9 }
  0x27   : > { %352 = vst [vmem:[#allocation9] sm:$0xff] %v344_v10  ;;  %353 = vst [vmem:[#allocation9 + $0x8] sm:$0xff] %v345_v11 }
  0x28   : > { %354 = vst [vmem:[#allocation9 + $0x10] sm:$0xff] %v346_v12  ;;  %355 = vst [vmem:[#allocation9 + $0x18] sm:$0xff] %v347_v13 }
  0x29   : > { %356 = vst [vmem:[#allocation9 + $0x20] sm:$0xff] %v348_v14  ;;  %357 = vst [vmem:[#allocation9 + $0x28] sm:$0xff] %v349_v15 }
  0x2a   : > { %358 = vst [vmem:[#allocation9 + $0x30] sm:$0xff] %v350_v16  ;;  %359 = vst [vmem:[#allocation9 + $0x38] sm:$0xff] %v351_v17 }
  0x2b PF: > { %s7141_s17 = sshll.u32 %s10072_s30, 3  ;;  %v397_v18 = vlaneseq  ;;  %v10092_v19 = vmov 1966171168   ;;  %v382_v22 = vld [vmem:[%s10197_s21] sm:$0xff]  ;;  %v730_v29 = vld [vmem:[#allocation8 + $0x10] sm:$0xff]  ;;  %s10093_s20 = smov 127  }
  0x2c   : > { %v395_v20 = vunpack.c.l.s4 %v10092_v19  ;;  %s386_s18 = scalar_select %p322_p6, 1, 0  ;;  %v731_v26 = vld [vmem:[#allocation8 + $0x18] sm:$0xff]  ;;  %v729_v32 = vld [vmem:[#allocation8 + $0x8] sm:$0xff]  ;;  %v728_v36 = vld [vmem:[#allocation8] sm:$0xff]  ;;  %vm763_vm1 = vcmask 326656  }
  0x2d   : > { %v398_v21 = vshrl.u32 %v397_v18, 7  ;;  %s10251_s19 = scalar_lea.vmem [#allocation4], %s7141_s17  ;;  %8084 = vmatprep.subr.mxu0 %v731_v26  ;;  %s10094_s22 = smov 2   ;;  %v10266_v44 = vld [vmem:[%s12027_s3] sm:$0xff]  ;;  %vm1069_vm2 = vcmask 588800  }
  0x2e   : > { %v385_v23 = vld [vmem:[%s10251_s19] sm:$0xff]  ;;  %v396_v24 = vunpack.c.0.s8 %v395_v20  ;;  %v387_v25 = vstv %s386_s18  ;;  %8085 = vmatpush3.msra.mxu0 %v731_v26  ;;  %s10095_s23 = smov 126   ;;  %s10096_s24 = smov 1   ;;  %8094 = vmatprep.mubr.msk.f32.mxu0 %vm763_vm1, %v10266_v44 }
  0x2f   : > { %vm388_vm0 = vcmp.eq.s32.totalorder %v387_v25, 1  ;;  %8086 = vmatprep.subr.mxu0 %v730_v29  ;;  %p376_p9 = scmp.eq.s32.totalorder %s10076_s10, 1  ;;  %p11935_p10 = scmp.eq.s32.totalorder %s7136_s14, 5 }
  0x30   : > { %v10254_v27 = vsub.s32 %v396_v24, %v398_v21  ;;  %v389_v28 = vsel %vm388_vm0, %v382_v22, %v385_v23  ;;  %8087 = vmatpush3.msra.mxu0 %v730_v29  ;;  %s10097_s25 = smov [#allocation9]  }
  0x31   : > { %592 = vrot.lane.b32.xlu1 %v389_v28, %s10093_s20  ;;  %v527_v30 = vcombine.high %v389_v28, %v389_v28  ;;  %390 = vrot.lane.b32.xlu0 %v389_v28, %s10094_s22  ;;  %s377_s27 = scalar_select %p376_p9, 0.75, 0.33333334 }
  0x32   : > { %12048 = vst [vmem:[#allocation14_spill] sm:$0xff] %v10254_v27  ;;  %v534_v31 = vrot.slane %v389_v28, %v10254_v27  ;;  %8088 = vmatprep.subr.mxu0 %v729_v32  ;;  %s10295_s28 = scalar_select %p376_p9, 0.25, 0.6666667 }
  0x33   : > { %v541_v33 = vrot.slane %v527_v30, %v10254_v27  ;;  %8089 = vmatpush3.msra.mxu0 %v729_v32  ;;  %s12097_s27 = smov (%p322_p6, %s377_s27), 1.0  ;;  %s6974_s22 = smul.u32 40, %s10072_s30 }
  0x34   : > { %v542_v34 = vcombine.high %v534_v31, %v534_v31  ;;  %v550_v35 = vrot.slane %v534_v31, %v10254_v27  ;;  %7150 = vst.sshfl [vmem:[#allocation2 + $0x2] sm:$0x1 pattern:$0x73625140] %v534_v31  ;;  %8090 = vmatprep.subr.mxu0 %v728_v36  ;;  %s380_s29 = scalar_select %p322_p6, 0.0, %s10295_s28 }
  0x35   : > { %v543_v37 = vcombine.high %v541_v33, %v541_v33  ;;  %v557_v38 = vrot.slane %v541_v33, %v10254_v27  ;;  %7152 = vst.sshfl [vmem:[#allocation2 + $0x22] sm:$0x1 pattern:$0x73625140] %v541_v33  ;;  %660 = vrot.lane.b32.xlu1 %v389_v28, %s10095_s23  ;;  %458 = vrot.lane.b32.xlu0 %v389_v28, %s10096_s24  ;;  %s12099_s28 = smov (%p322_p6, %s10295_s28), 1.0  ;;  %s11927_s30 = scalar_lea.vmem [#allocation6], %s6974_s22 }
  0x36   : > { %v564_v39 = vrot.slane %v542_v34, %v10254_v27  ;;  %v572_v40 = vcombine.high %v550_v35, %v550_v35  ;;  %7151 = vst.sshfl [vmem:[#allocation2 + $0xa] sm:$0x1 pattern:$0x73625140] %v542_v34  ;;  %8091 = vmatpush3.msra.mxu0 %v728_v36  ;;  %s11919_s23 = scalar_select %p322_p6, 0, 255 }
  0x37   : > { %v571_v41 = vrot.slane %v543_v37, %v10254_v27  ;;  %v573_v42 = vcombine.high %v557_v38, %v557_v38  ;;  %7153 = vst.sshfl [vmem:[#allocation2 + $0x2a] sm:$0x1 pattern:$0x73625140] %v543_v37  ;;  %s7046_s26 = sshll.u32 %s10097_s25, 4  ;;  %s7047_s26 = int_to_ptr.vmem [resolvable:$true] %s7046_s26 }
  0x38   : > { %v574_v43 = vcombine.high %v564_v39, %v564_v39  ;;  %586 = vst [vmem:[#allocation2 + $0x12] sm:$0x1] %v572_v40  ;;  %v2292_v39 = vld [vmem:[%s10197_s21 + $0x1] sm:$0x1]  ;;  %p9949_p0 = scmp.lt.s32.totalorder %s7047_s26, %s7047_s26 }
  0x39   : > { %v575_v45 = vcombine.high %v571_v41, %v571_v41  ;;  %590 = vst [vmem:[#allocation2 + $0x32] sm:$0x1] %v573_v42  ;;  %v10310_v41 = vld [vmem:[%s12027_s3 + $0x8] sm:$0xff]  ;;  %v4620_v42 = vld [vmem:[%s10197_s21 + $0x4] sm:$0x1] }
  0x3a   : > { %587 = vst [vmem:[#allocation2 + $0x1a] sm:$0x1] %v574_v43  ;;  %v10316_v43 = vld [vmem:[%s12027_s3 + $0x10] sm:$0xff] }
  0x3b   : > { %591 = vst [vmem:[#allocation2 + $0x3a] sm:$0x1] %v575_v45  ;;  %v10318_v45 = vstv %s12097_s27 }
  0xa3   : > { %v593_v46 = vpop.permute.xlu1 %592  ;;  %v391_v47 = vpop.permute.xlu0 %390 }
  0xa4   : > { %v595_v48 = vcombine.high %v593_v46, %v593_v46  ;;  %v602_v49 = vrot.slane %v593_v46, %v10254_v27  ;;  %v393_v50 = vcombine.high %v391_v47, %v391_v47  ;;  %v400_v51 = vrot.slane %v391_v47, %v10254_v27 }
  0xa5   : > { %v10322_v47 = vstv %s380_s29 }
  0xa6   : > { %v609_v52 = vrot.slane %v595_v48, %v10254_v27  ;;  %v610_v53 = vcombine.high %v602_v49, %v602_v49  ;;  %v618_v54 = vrot.slane %v602_v49, %v10254_v27  ;;  %7154 = vst.sshfl [vmem:[#allocation2 + $0x3] sm:$0x1 pattern:$0x73625140] %v602_v49  ;;  %v407_v55 = vrot.slane %v393_v50, %v10254_v27  ;;  %v5396_v50 = vld [vmem:[%s10197_s21 + $0x5] sm:$0x1] }
  0xa7   : > { %7142 = vst.sshfl [vmem:[#allocation2] sm:$0x1 pattern:$0x73625140] %v400_v51  ;;  %v408_v56 = vcombine.high %v400_v51, %v400_v51  ;;  %v416_v57 = vrot.slane %v400_v51, %v10254_v27  ;;  %v661_v58 = vpop.permute.xlu1 %660  ;;  %v459_v3 = vpop.permute.xlu0 %458  ;;  %v2293_v48 = vmul.f32 %v2292_v39, %v10318_v45  ;;  %v734_v39 = vld [vmem:[#allocation8 + $0x28] sm:$0xff] }
  0xa8   : > { %v611_v59 = vcombine.high %v609_v52, %v609_v52  ;;  %v625_v60 = vrot.slane %v609_v52, %v10254_v27  ;;  %v632_v61 = vrot.slane %v610_v53, %v10254_v27  ;;  %v640_v62 = vcombine.high %v618_v54, %v618_v54  ;;  %7155 = vst.sshfl [vmem:[#allocation2 + $0xb] sm:$0x1 pattern:$0x73625140] %v610_v53 }
  0xa9   : > { %7156 = vst.sshfl [vmem:[#allocation2 + $0x23] sm:$0x1 pattern:$0x73625140] %v609_v52  ;;  %v409_v63 = vcombine.high %v407_v55, %v407_v55  ;;  %v423_v0 = vrot.slane %v407_v55, %v10254_v27  ;;  %v430_v1 = vrot.slane %v408_v56, %v10254_v27  ;;  %v438_v2 = vcombine.high %v416_v57, %v416_v57  ;;  %v3068_v52 = vld [vmem:[%s10197_s21 + $0x2] sm:$0x1] }
  0xaa   : > { %7144 = vst.sshfl [vmem:[#allocation2 + $0x20] sm:$0x1 pattern:$0x73625140] %v407_v55  ;;  %v639_v4 = vrot.slane %v611_v59, %v10254_v27  ;;  %v641_v5 = vcombine.high %v625_v60, %v625_v60  ;;  %v642_v6 = vcombine.high %v632_v61, %v632_v61  ;;  %654 = vst [vmem:[#allocation2 + $0x13] sm:$0x1] %v640_v62 }
  0xab   : > { %7143 = vst.sshfl [vmem:[#allocation2 + $0x8] sm:$0x1 pattern:$0x73625140] %v408_v56  ;;  %v663_v7 = vcombine.high %v661_v58, %v661_v58  ;;  %v437_v8 = vrot.slane %v409_v63, %v10254_v27  ;;  %v439_v9 = vcombine.high %v423_v0, %v423_v0  ;;  %v440_v10 = vcombine.high %v430_v1, %v430_v1  ;;  %v6172_v55 = vld [vmem:[%s10197_s21 + $0x6] sm:$0x1] }
  0xac   : > { %7157 = vst.sshfl [vmem:[#allocation2 + $0x2b] sm:$0x1 pattern:$0x73625140] %v611_v59  ;;  %452 = vst [vmem:[#allocation2 + $0x10] sm:$0x1] %v438_v2  ;;  %v670_v11 = vrot.slane %v661_v58, %v10254_v27  ;;  %v643_v12 = vcombine.high %v639_v4, %v639_v4  ;;  %v461_v14 = vcombine.high %v459_v3, %v459_v3 }
  0xad   : > { %7145 = vst.sshfl [vmem:[#allocation2 + $0x28] sm:$0x1 pattern:$0x73625140] %v409_v63  ;;  %655 = vst [vmem:[#allocation2 + $0x1b] sm:$0x1] %v642_v6  ;;  %v677_v13 = vrot.slane %v663_v7, %v10254_v27  ;;  %v468_v15 = vrot.slane %v459_v3, %v10254_v27  ;;  %v441_v16 = vcombine.high %v437_v8, %v437_v8 }
  0xae   : > { %658 = vst [vmem:[#allocation2 + $0x33] sm:$0x1] %v641_v5  ;;  %453 = vst [vmem:[#allocation2 + $0x18] sm:$0x1] %v440_v10  ;;  %v678_v17 = vcombine.high %v670_v11, %v670_v11  ;;  %v686_v18 = vrot.slane %v670_v11, %v10254_v27  ;;  %v475_v21 = vrot.slane %v461_v14, %v10254_v27  ;;  %v10339_v56 = vld [vmem:[%s12027_s3 + $0x18] sm:$0xff]  ;;  %v10344_v58 = vld [vmem:[%s12027_s3 + $0x20] sm:$0xff] }
  0xaf   : > { %456 = vst [vmem:[#allocation2 + $0x30] sm:$0x1] %v439_v9  ;;  %7158 = vst.sshfl [vmem:[#allocation2 + $0x4] sm:$0x1 pattern:$0x73625140] %v670_v11  ;;  %v679_v19 = vcombine.high %v677_v13, %v677_v13  ;;  %v693_v20 = vrot.slane %v677_v13, %v10254_v27  ;;  %v476_v22 = vcombine.high %v468_v15, %v468_v15 }
  0xb0   : > { %659 = vst [vmem:[#allocation2 + $0x3b] sm:$0x1] %v643_v12  ;;  %7160 = vst.sshfl [vmem:[#allocation2 + $0x24] sm:$0x1 pattern:$0x73625140] %v677_v13  ;;  %v700_v23 = vrot.slane %v678_v17, %v10254_v27  ;;  %v708_v24 = vcombine.high %v686_v18, %v686_v18  ;;  %v484_v25 = vrot.slane %v468_v15, %v10254_v27 }
  0xb1   : > { %7146 = vst.sshfl [vmem:[#allocation2 + $0x1] sm:$0x1 pattern:$0x73625140] %v468_v15  ;;  %457 = vst [vmem:[#allocation2 + $0x38] sm:$0x1] %v441_v16  ;;  %v707_v26 = vrot.slane %v679_v19, %v10254_v27  ;;  %v709_v28 = vcombine.high %v693_v20, %v693_v20  ;;  %v477_v29 = vcombine.high %v475_v21, %v475_v21 }
  0xb2   : > { %7159 = vst.sshfl [vmem:[#allocation2 + $0xc] sm:$0x1 pattern:$0x73625140] %v678_v17  ;;  %v491_v30 = vrot.slane %v475_v21, %v10254_v27  ;;  %v710_v31 = vcombine.high %v700_v23, %v700_v23  ;;  %722 = vst [vmem:[#allocation2 + $0x14] sm:$0x1] %v708_v24  ;;  %v498_v32 = vrot.slane %v476_v22, %v10254_v27 }
  0xb3   : > { %7161 = vst.sshfl [vmem:[#allocation2 + $0x2c] sm:$0x1 pattern:$0x73625140] %v679_v19  ;;  %v506_v33 = vcombine.high %v484_v25, %v484_v25  ;;  %v711_v34 = vcombine.high %v707_v26, %v707_v26  ;;  %726 = vst [vmem:[#allocation2 + $0x34] sm:$0x1] %v709_v28  ;;  %v505_v35 = vrot.slane %v477_v29, %v10254_v27 }
  0xb4   : > { %7147 = vst.sshfl [vmem:[#allocation2 + $0x9] sm:$0x1 pattern:$0x73625140] %v476_v22  ;;  %v507_v36 = vcombine.high %v491_v30, %v491_v30  ;;  %723 = vst [vmem:[#allocation2 + $0x1c] sm:$0x1] %v710_v31  ;;  %v508_v37 = vcombine.high %v498_v32, %v498_v32  ;;  %v4621_v53 = vmul.f32 %v4620_v42, %v10318_v45 }
  0xb5   : > { %7148 = vst.sshfl [vmem:[#allocation2 + $0x21] sm:$0x1 pattern:$0x73625140] %v475_v21  ;;  %520 = vst [vmem:[#allocation2 + $0x11] sm:$0x1] %v506_v33  ;;  %v509_v38 = vcombine.high %v505_v35, %v505_v35  ;;  %v5397_v63 = vmul.f32 %v5396_v50, %v10318_v45  ;;  %v3069_v1 = vmul.f32 %v3068_v52, %v10318_v45 }
  0xb6   : > { %7149 = vst.sshfl [vmem:[#allocation2 + $0x29] sm:$0x1 pattern:$0x73625140] %v477_v29  ;;  %727 = vst [vmem:[#allocation2 + $0x3c] sm:$0x1] %v711_v34  ;;  %v6173_v4 = vmul.f32 %v6172_v55, %v10318_v45 }
  0xb7   : > { %524 = vst [vmem:[#allocation2 + $0x31] sm:$0x1] %v507_v36  ;;  %521 = vst [vmem:[#allocation2 + $0x19] sm:$0x1] %v508_v37  ;;  %v3844_v61 = vld [vmem:[%s10197_s21 + $0x3] sm:$0x1] }
  0xb8   : > { %v746_v40 = vld [vmem:[#allocation2] sm:$0xff]  ;;  %525 = vst [vmem:[#allocation2 + $0x39] sm:$0x1] %v509_v38  ;;  %v10365_v11 = vld [vmem:[%s12027_s3 + $0x28] sm:$0xff]  ;;  %v3845_v13 = vmul.f32 %v3844_v61, %v10318_v45  ;;  %v10372_v16 = vld [vmem:[%s12027_s3 + $0x30] sm:$0xff] }
  0xb9   : > { %8092 = vmatprep.subr.mxu0 %v746_v40  ;;  %8118 = vmatprep.subr.mxu1 %v746_v40  ;;  %v6948_v5 = vld [vmem:[%s10197_s21 + $0x7] sm:$0x1]  ;;  %v10389_v25 = vld [vmem:[%s12027_s3 + $0x38] sm:$0xff]  ;;  %v10407_v30 = vld [vmem:[%s12027_s3 + $0x48] sm:$0xff] }
  0xba   : > { %8093 = vmatpush3.msra.mxu0 %v746_v40  ;;  %8119 = vmatpush3.msra.mxu1 %v746_v40  ;;  %v6949_v19 = vmul.f32 %v6948_v5, %v10318_v45  ;;  %v10396_v28 = vld [vmem:[%s12027_s3 + $0x40] sm:$0xff]  ;;  %v10412_v31 = vld [vmem:[%s12027_s3 + $0x50] sm:$0xff]  ;;  %v10421_v32 = vld [vmem:[%s12027_s3 + $0x58] sm:$0xff] }
  0xbb   : > { %v10320_v46 = vld [vmem:[#allocation2 + $0x8] sm:$0xff]  ;;  %8095 = vmatmul.mubr.msk.f32.vlgmr.msra.gmra.mxu0 %vm763_vm1, %v10310_v41  ;;  %8160 = vmatprep.subr.mxu0 %v746_v40  ;;  %v10426_v33 = vld [vmem:[%s12027_s3 + $0x60] sm:$0xff]  ;;  %v10440_v35 = vld [vmem:[%s12027_s3 + $0x70] sm:$0xff] }
  0xbc   : > { %v3855_v49 = vld [vmem:[#allocation2 + $0x20] sm:$0xff]  ;;  %v2294_v51 = vmul.f32 %v10320_v46, %v10322_v47  ;;  %8161 = vmatpush3.msra.mxu0 %v746_v40  ;;  %8097 = vmatprep.mubr.msk.f32.mxu0 %vm763_vm1, %v10316_v43  ;;  %v2303_v59 = vld [vmem:[#allocation2 + $0x10] sm:$0xff]  ;;  %v10435_v34 = vld [vmem:[%s12027_s3 + $0x68] sm:$0xff] }
  0xbd   : > { %v4622_v54 = vmul.f32 %v3855_v49, %v10322_v47  ;;  %v4631_v57 = vld [vmem:[#allocation2 + $0x28] sm:$0xff]  ;;  %v3070_v2 = vmul.f32 %v2303_v59, %v10322_v47  ;;  %v10449_v36 = vld [vmem:[%s12027_s3 + $0x78] sm:$0xff]  ;;  %v736_v37 = vld [vmem:[#allocation8 + $0x38] sm:$0xff] }
  0xbe   : > { %v2296_v60 = vrot.slane %v2294_v51, 2  ;;  %v5398_v0 = vmul.f32 %v4631_v57, %v10322_v47  ;;  %v5407_v3 = vld [vmem:[#allocation2 + $0x30] sm:$0xff]  ;;  %v3079_v6 = vld [vmem:[#allocation2 + $0x18] sm:$0xff]  ;;  %8120 = vmatprep.subr.mxu1 %v736_v37  ;;  %v733_v40 = vld [vmem:[#allocation8 + $0x20] sm:$0xff] }
  0xbf   : > { %v4624_v62 = vrot.slane %v4622_v54, 2  ;;  %8098 = vmatmul.mubr.msk.f32.gmra.mxu0 %vm763_vm1, %v10339_v56  ;;  %v6174_v10 = vmul.f32 %v5407_v3, %v10322_v47  ;;  %v3072_v12 = vrot.slane %v3070_v2, 2  ;;  %v3846_v14 = vmul.f32 %v3079_v6, %v10322_v47  ;;  %v6183_v15 = vld [vmem:[#allocation2 + $0x38] sm:$0xff]  ;;  %8121 = vmatpush3.msra.mxu1 %v736_v37  ;;  %v10456_v42 = vld [vmem:[%s12028_s4] sm:$0xff] }
  0xc0   : > { %v10355_v7 = vadd.f32 %v2296_v60, %v2293_v48  ;;  %v5400_v9 = vrot.slane %v5398_v0, 2  ;;  %8100 = vmatprep.mubr.msk.f32.mxu0 %vm763_vm1, %v10344_v58  ;;  %v6950_v20 = vmul.f32 %v6183_v15, %v10322_v47  ;;  %v735_v38 = vld [vmem:[#allocation8 + $0x30] sm:$0xff]  ;;  %8136 = vmatprep.mubr.msk.f32.mxu1 %vm1069_vm2, %v10456_v42 }
  0xc1   : > { %v10357_v8 = vadd.f32 %v4624_v62, %v4621_v53  ;;  %v6176_v18 = vrot.slane %v6174_v10, 2  ;;  %v10378_v21 = vadd.f32 %v3072_v12, %v3069_v1  ;;  %v3848_v22 = vrot.slane %v3846_v14, 2  ;;  %8122 = vmatprep.subr.mxu1 %v735_v38 }
  0xc2   : > { %v10374_v17 = vadd.f32 %v5400_v9, %v5397_v63  ;;  %v6952_v24 = vrot.slane %v6950_v20, 2  ;;  %8123 = vmatpush3.msra.mxu1 %v735_v38 }
  0xc3   : > { %12049 = vst [vmem:[#allocation15_spill] sm:$0xff] %v10357_v8  ;;  %12051 = vst [vmem:[#allocation17_spill] sm:$0xff] %v10378_v21  ;;  %8101 = vmatmul.mubr.msk.f32.gmra.mxu0 %vm763_vm1, %v10365_v11  ;;  %v10382_v23 = vadd.f32 %v6176_v18, %v6173_v4  ;;  %v10391_v26 = vadd.f32 %v3848_v22, %v3845_v13  ;;  %8124 = vmatprep.subr.mxu1 %v734_v39 }
  0xc4   : > { %12050 = vst [vmem:[#allocation16_spill] sm:$0xff] %v10374_v17  ;;  %8103 = vmatprep.mubr.msk.f32.mxu0 %vm763_vm1, %v10372_v16  ;;  %v10398_v29 = vadd.f32 %v6952_v24, %v6949_v19  ;;  %8125 = vmatpush3.msra.mxu1 %v734_v39 }
  0xc5   : > { %12052 = vst [vmem:[#allocation18_spill] sm:$0xff] %v10382_v23  ;;  %12053 = vst [vmem:[#allocation19_spill] sm:$0xff] %v10391_v26  ;;  %8126 = vmatprep.subr.mxu1 %v733_v40 }
  0xc6   : > { %12054 = vst [vmem:[#allocation20_spill] sm:$0xff] %v10398_v29  ;;  %8127 = vmatpush3.msra.mxu1 %v733_v40 }
  0xc7   : > { %8104 = vmatmul.mubr.msk.f32.gmra.mxu0 %vm763_vm1, %v10389_v25 }
  0xc8   : > { %8106 = vmatprep.mubr.msk.f32.mxu0 %vm763_vm1, %v10396_v28 }
  0xcb   : > { %8107 = vmatmul.mubr.msk.f32.gmra.mxu0 %vm763_vm1, %v10407_v30 }
  0xcc   : > { %8109 = vmatprep.mubr.msk.f32.mxu0 %vm763_vm1, %v10412_v31 }
  0xcf   : > { %8110 = vmatmul.mubr.msk.f32.gmra.mxu0 %vm763_vm1, %v10421_v32 }
  0xd0   : > { %8112 = vmatprep.mubr.msk.f32.mxu0 %vm763_vm1, %v10426_v33 }
  0xd3   : > { %8113 = vmatmul.mubr.msk.f32.gmra.mxu0 %vm763_vm1, %v10435_v34 }
  0xd4   : > { %8115 = vmatprep.mubr.msk.f32.mxu0 %vm763_vm1, %v10440_v35 }
  0xd7   : > { %8116 = vmatmul.mubr.msk.f32.gmra.mxu0 %vm763_vm1, %v10449_v36 }
 0x17b   : > { %v8096_v48 = vpop.f32.mrf.mxu0 }
 0x17c   : > { %v7179_v49 = vmul.f32 -1.442695, %v8096_v48 }
 0x17d   : > { %v878_v50 = vpop.f32.mrf.mxu0 }
 0x17e   : > { %8888 = vpow2.f32 %v7179_v49  ;;  %v7178_v51 = vmul.f32 -1.442695, %v878_v50 }
 0x17f   : > { %v8099_v52 = vpop.f32.mrf.mxu0 }
 0x180   : > { %8890 = vpow2.f32 %v7178_v51  ;;  %v7181_v53 = vmul.f32 -1.442695, %v8099_v52 }
 0x181   : > { %v888_v54 = vpop.f32.mrf.mxu0 }
 0x182   : > { %8892 = vpow2.f32 %v7181_v53  ;;  %v7180_v55 = vmul.f32 -1.442695, %v888_v54 }
 0x183   : > { %v8102_v57 = vpop.f32.mrf.mxu0 }
 0x184   : > { %v7183_v59 = vmul.f32 -1.442695, %v8102_v57  ;;  %8894 = vpow2.f32 %v7180_v55 }
 0x185   : > { %v898_v60 = vpop.f32.mrf.mxu0 }
 0x186   : > { %8896 = vpow2.f32 %v7183_v59  ;;  %v7182_v61 = vmul.f32 -1.442695, %v898_v60 }
 0x187   : > { %v8105_v62 = vpop.f32.mrf.mxu0 }
 0x188   : > { %8898 = vpow2.f32 %v7182_v61  ;;  %v7185_v63 = vmul.f32 -1.442695, %v8105_v62 }
 0x189   : > { %v908_v0 = vpop.f32.mrf.mxu0 }
 0x18a   : > { %8900 = vpow2.f32 %v7185_v63  ;;  %v7184_v1 = vmul.f32 -1.442695, %v908_v0  ;;  %v738_v0 = vld [vmem:[#allocation9 + $0x8] sm:$0xff] }
 0x18b   : > { %v8889_v2 = vpop.eup %8888  ;;  %v8108_v3 = vpop.f32.mrf.mxu0 }
 0x18c   : > { %v970_v4 = vadd.f32 1.0, %v8889_v2  ;;  %8902 = vpow2.f32 %v7184_v1 }
 0x18d   : > { %v8891_v5 = vpop.eup %8890  ;;  %v918_v6 = vpop.f32.mrf.mxu0  ;;  %8904 = vtanh.f32 %v8108_v3 }
 0x18e   : > { %v969_v9 = vadd.f32 1.0, %v8891_v5  ;;  %8906 = vrcp.f32 %v970_v4 }
 0x18f   : > { %v8893_v10 = vpop.eup %8892  ;;  %v8111_v12 = vpop.f32.mrf.mxu0  ;;  %8908 = vtanh.f32 %v918_v6 }
 0x190   : > { %v972_v13 = vadd.f32 1.0, %v8893_v10  ;;  %8910 = vrcp.f32 %v969_v9  ;;  %v737_v9 = vld [vmem:[#allocation9] sm:$0xff]  ;;  %v740_v10 = vld [vmem:[#allocation9 + $0x18] sm:$0xff] }
 0x191   : > { %v928_v14 = vpop.f32.mrf.mxu0  ;;  %v8895_v15 = vpop.eup %8894  ;;  %8912 = vtanh.f32 %v8111_v12 }
 0x192   : > { %8914 = vrcp.f32 %v972_v13  ;;  %v971_v37 = vadd.f32 1.0, %v8895_v15 }
 0x193   : > { %v8897_v18 = vpop.eup %8896  ;;  %v8114_v19 = vpop.f32.mrf.mxu0  ;;  %8916 = vtanh.f32 %v928_v14 }
 0x194   : > { %v994_v20 = vadd.f32 1.0, %v8897_v18  ;;  %v7187_v22 = vmul.f32 -1.442695, %v8114_v19  ;;  %v739_v18 = vld [vmem:[#allocation9 + $0x10] sm:$0xff] }
 0x195   : > { %v8899_v24 = vpop.eup %8898  ;;  %v938_v38 = vpop.f32.mrf.mxu0 }
 0x196   : > { %8918 = vrcp.f32 %v994_v20  ;;  %v993_v39 = vadd.f32 1.0, %v8899_v24  ;;  %v7186_v54 = vmul.f32 -1.442695, %v938_v38 }
 0x197   : > { %v8901_v40 = vpop.eup %8900  ;;  %8920 = vpow2.f32 %v7187_v22  ;;  %v8117_v48 = vpop.f32.mrf.mxu0 }
 0x198   : > { %8922 = vrcp.f32 %v993_v39  ;;  %v996_v49 = vadd.f32 1.0, %v8901_v40  ;;  %v7189_v50 = vmul.f32 -1.442695, %v8117_v48 }
 0x199   : > { %v8903_v51 = vpop.eup %8902  ;;  %8924 = vrcp.f32 %v971_v37  ;;  %v948_v52 = vpop.f32.mrf.mxu0 }
 0x19a   : > { %8926 = vrcp.f32 %v996_v49  ;;  %v995_v53 = vadd.f32 1.0, %v8903_v51  ;;  %v7188_v55 = vmul.f32 -1.442695, %v948_v52  ;;  %v8905_v57 = vpop.eup %8904 }
 0x19b   : > { %8928 = vpow2.f32 %v7189_v50  ;;  %v8907_v59 = vpop.eup %8906 }
 0x19c   : > { %8930 = vrcp.f32 %v995_v53  ;;  %v8909_v60 = vpop.eup %8908  ;;  %v1038_v5 = vmul.f32 %v8907_v59, %v8905_v57 }
 0x19d   : > { %8932 = vpow2.f32 %v7188_v55  ;;  %v8911_v61 = vpop.eup %8910 }
 0x19e   : > { %8934 = vpow2.f32 %v7186_v54  ;;  %v8913_v62 = vpop.eup %8912  ;;  %v1037_v38 = vmul.f32 %v8911_v61, %v8909_v60 }
 0x19f   : > { %v8915_v63 = vpop.eup %8914 }
 0x1a0   : > { %v8917_v1 = vpop.eup %8916  ;;  %v1040_v24 = vmul.f32 %v8915_v63, %v8913_v62 }
 0x1a3   : > { %v8919_v2 = vpop.eup %8918 }
 0x1a4   : > { %v8921_v3 = vpop.eup %8920  ;;  %v1034_v4 = vmul.f32 %v8919_v2, %v738_v0 }
 0x1a5   : > { %v8923_v6 = vpop.eup %8922  ;;  %v1022_v12 = vadd.f32 1.0, %v8921_v3 }
 0x1a6   : > { %v8925_v13 = vpop.eup %8924  ;;  %v10460_v14 = vadd.f32 %v1038_v5, %v1034_v4  ;;  %v1033_v20 = vmul.f32 %v8923_v6, %v737_v9  ;;  %v10475_v6 = vld [vmem:[%s12028_s4 + $0x8] sm:$0xff]  ;;  %v10480_v9 = vld [vmem:[%s12028_s4 + $0x10] sm:$0xff] }
 0x1a7   : > { %v8927_v15 = vpop.eup %8926  ;;  %8936 = vrcp.f32 %v1022_v12  ;;  %v1039_v50 = vmul.f32 %v8925_v13, %v8917_v1  ;;  %v10494_v12 = vld [vmem:[%s12028_s4 + $0x20] sm:$0xff]  ;;  %v10503_v13 = vld [vmem:[%s12028_s4 + $0x28] sm:$0xff] }
 0x1a8   : > { %v8929_v19 = vpop.eup %8928  ;;  %v1036_v22 = vmul.f32 %v8927_v15, %v740_v10  ;;  %8938 = vtanh.f32 %v10460_v14  ;;  %v10465_v53 = vadd.f32 %v1037_v38, %v1033_v20  ;;  %v10489_v10 = vld [vmem:[%s12028_s4 + $0x18] sm:$0xff]  ;;  %v10508_v15 = vld [vmem:[%s12028_s4 + $0x30] sm:$0xff]  ;;  %v10534_v20 = vld [vmem:[%s12028_s4 + $0x48] sm:$0xff] }
 0x1a9   : > { %v8931_v37 = vpop.eup %8930  ;;  %v1024_v39 = vadd.f32 1.0, %v8929_v19  ;;  %v10525_v19 = vld [vmem:[%s12028_s4 + $0x40] sm:$0xff]  ;;  %v10562_v38 = vld [vmem:[%s12028_s4 + $0x68] sm:$0xff] }
 0x1aa   : > { %v8933_v40 = vpop.eup %8932  ;;  %v10463_v48 = vadd.f32 %v1040_v24, %v1036_v22  ;;  %v1035_v49 = vmul.f32 %v8931_v37, %v739_v18  ;;  %v10519_v18 = vld [vmem:[%s12028_s4 + $0x38] sm:$0xff]  ;;  %v10539_v22 = vld [vmem:[%s12028_s4 + $0x50] sm:$0xff]  ;;  %v10553_v37 = vld [vmem:[%s12028_s4 + $0x60] sm:$0xff] }
 0x1ab   : > { %v8935_v51 = vpop.eup %8934  ;;  %8940 = vrcp.f32 %v1024_v39  ;;  %v1023_v52 = vadd.f32 1.0, %v8933_v40  ;;  %v10548_v24 = vld [vmem:[%s12028_s4 + $0x58] sm:$0xff]  ;;  %v10567_v39 = vld [vmem:[%s12028_s4 + $0x70] sm:$0xff] }
 0x1ac   : > { %8942 = vtanh.f32 %v10463_v48  ;;  %v10468_v54 = vadd.f32 %v1039_v50, %v1035_v49  ;;  %v1021_v55 = vadd.f32 1.0, %v8935_v51  ;;  %v10576_v40 = vld [vmem:[%s12028_s4 + $0x78] sm:$0xff] }
 0x1ad   : > { %8944 = vrcp.f32 %v1023_v52 }
 0x1ae   : > { %8946 = vtanh.f32 %v10468_v54 }
 0x1af   : > { %8948 = vtanh.f32 %v10465_v53 }
 0x1b0   : > { %8950 = vrcp.f32 %v1021_v55 }
 0x1b4   : > { %v8937_v57 = vpop.eup %8936 }
 0x1b5   : > { %v8939_v59 = vpop.eup %8938 }
 0x1b6   : > { %v1050_v3 = vmul.f32 %v8939_v59, %v8937_v57 }
 0x1b8   : > { %v8941_v60 = vpop.eup %8940 }
 0x1b9   : > { %v8943_v61 = vpop.eup %8942 }
 0x1ba   : > { %v8945_v62 = vpop.eup %8944  ;;  %v1052_v63 = vmul.f32 %v8943_v61, %v8941_v60 }
 0x1bb   : > { %v8947_v0 = vpop.eup %8946 }
 0x1bc   : > { %8128 = vmatprep.subr.mxu1 %v1052_v63  ;;  %v1051_v1 = vmul.f32 %v8947_v0, %v8945_v62  ;;  %v8949_v2 = vpop.eup %8948 }
 0x1bd   : > { %8129 = vmatpush3.msra.mxu1 %v1052_v63  ;;  %v8951_v4 = vpop.eup %8950 }
 0x1be   : > { %8130 = vmatprep.subr.mxu1 %v1051_v1  ;;  %v1049_v5 = vmul.f32 %v8951_v4, %v8949_v2 }
 0x1bf   : > { %8131 = vmatpush3.msra.mxu1 %v1051_v1 }
 0x1c0   : > { %8132 = vmatprep.subr.mxu1 %v1050_v3 }
 0x1c1   : > { %8133 = vmatpush3.msra.mxu1 %v1050_v3 }
 0x1c2   : > { %8134 = vmatprep.subr.mxu1 %v1049_v5 }
 0x1c3   : > { %8135 = vmatpush3.msra.mxu1 %v1049_v5 }
 0x1c4   : > { %8137 = vmatmul.mubr.msk.f32.vlgmr.msra.gmra.mxu1 %vm1069_vm2, %v10475_v6  ;;  %8173 = vmatprep.subr.mxu1 %v1052_v63 }
 0x1c5   : > { %8174 = vmatpush3.msra.mxu1 %v1052_v63  ;;  %8139 = vmatprep.mubr.msk.f32.mxu1 %vm1069_vm2, %v10480_v9 }
 0x1c6   : > { %8175 = vmatprep.subr.mxu1 %v1051_v1 }
 0x1c7   : > { %8176 = vmatpush3.msra.mxu1 %v1051_v1 }
 0x1c8   : > { %8140 = vmatmul.mubr.msk.f32.gmra.mxu1 %vm1069_vm2, %v10489_v10  ;;  %8177 = vmatprep.subr.mxu1 %v1050_v3 }
 0x1c9   : > { %8178 = vmatpush3.msra.mxu1 %v1050_v3  ;;  %8142 = vmatprep.mubr.msk.f32.mxu1 %vm1069_vm2, %v10494_v12 }
 0x1ca   : > { %8179 = vmatprep.subr.mxu1 %v1049_v5 }
 0x1cb   : > { %8180 = vmatpush3.msra.mxu1 %v1049_v5 }
 0x1cc   : > { %8143 = vmatmul.mubr.msk.f32.gmra.mxu1 %vm1069_vm2, %v10503_v13  ;;  %8181 = vmatprep.subr.mxu1 %v10320_v46 }
 0x1cd   : > { %8182 = vmatpush3.msra.mxu1 %v10320_v46  ;;  %8145 = vmatprep.mubr.msk.f32.mxu1 %vm1069_vm2, %v10508_v15 }
 0x1ce   : > { %8249 = vmatprep.subr.mxu1 %v10320_v46 }
 0x1d0   : > { %8146 = vmatmul.mubr.msk.f32.gmra.mxu1 %vm1069_vm2, %v10519_v18 }
 0x1d1   : > { %8148 = vmatprep.mubr.msk.f32.mxu1 %vm1069_vm2, %v10525_v19 }
 0x1d4   : > { %8149 = vmatmul.mubr.msk.f32.gmra.mxu1 %vm1069_vm2, %v10534_v20 }
 0x1d5   : > { %8151 = vmatprep.mubr.msk.f32.mxu1 %vm1069_vm2, %v10539_v22 }
 0x1d8   : > { %8152 = vmatmul.mubr.msk.f32.gmra.mxu1 %vm1069_vm2, %v10548_v24 }
 0x1d9   : > { %8154 = vmatprep.mubr.msk.f32.mxu1 %vm1069_vm2, %v10553_v37 }
 0x1dc   : > { %8155 = vmatmul.mubr.msk.f32.gmra.mxu1 %vm1069_vm2, %v10562_v38 }
 0x1dd   : > { %8157 = vmatprep.mubr.msk.f32.mxu1 %vm1069_vm2, %v10567_v39 }
 0x1e0   : > { %8158 = vmatmul.mubr.msk.f32.gmra.mxu1 %vm1069_vm2, %v10576_v40 }
 0x1e1   : > { %8183 = vmatprep.mubr.msk.f32.mxu1 %vm763_vm1, %v10266_v44  ;;  %v1359_v44 = vld [vmem:[%s12029_s5] sm:$0xff] }
 0x1e2   : > { %8170 = vmatprep.mubr.msk.f32.mxu0 %vm763_vm1, %v1359_v44 }
 0x1e4   : > { %8184 = vmatmul.mubr.msk.f32.vlgmr.msra.gmra.mxu1 %vm763_vm1, %v10310_v41 }
 0x1e5   : > { %8250 = vmatpush3.msra.mxu1 %v10320_v46  ;;  %8186 = vmatprep.mubr.msk.f32.mxu1 %vm763_vm1, %v10316_v43 }
 0x1e8   : > { %8187 = vmatmul.mubr.msk.f32.gmra.mxu1 %vm763_vm1, %v10339_v56 }
 0x1e9   : > { %8189 = vmatprep.mubr.msk.f32.mxu1 %vm763_vm1, %v10344_v58 }
 0x1ec   : > { %8190 = vmatmul.mubr.msk.f32.gmra.mxu1 %vm763_vm1, %v10365_v11 }
 0x1ed   : > { %8192 = vmatprep.mubr.msk.f32.mxu1 %vm763_vm1, %v10372_v16 }
 0x1f0   : > { %8193 = vmatmul.mubr.msk.f32.gmra.mxu1 %vm763_vm1, %v10389_v25 }
 0x1f1   : > { %8195 = vmatprep.mubr.msk.f32.mxu1 %vm763_vm1, %v10396_v28 }
 0x1f4   : > { %8196 = vmatmul.mubr.msk.f32.gmra.mxu1 %vm763_vm1, %v10407_v30 }
 0x1f5   : > { %8198 = vmatprep.mubr.msk.f32.mxu1 %vm763_vm1, %v10412_v31 }
 0x1f8   : > { %8199 = vmatmul.mubr.msk.f32.gmra.mxu1 %vm763_vm1, %v10421_v32 }
 0x1f9   : > { %8201 = vmatprep.mubr.msk.f32.mxu1 %vm763_vm1, %v10426_v33 }
 0x1fc   : > { %8202 = vmatmul.mubr.msk.f32.gmra.mxu1 %vm763_vm1, %v10435_v34 }
 0x1fd   : > { %8204 = vmatprep.mubr.msk.f32.mxu1 %vm763_vm1, %v10440_v35 }
 0x200   : > { %8205 = vmatmul.mubr.msk.f32.gmra.mxu1 %vm763_vm1, %v10449_v36 }
 0x201   : > { %8259 = vmatprep.mubr.msk.f32.mxu1 %vm763_vm1, %v1359_v44 }
 0x284   : > { %v8138_v41 = vpop.f32.mrf.mxu1 }
 0x285   : > { %v7207_v43 = vmul.f32 -1.442695, %v8138_v41 }
 0x286   : > { %v1184_v56 = vpop.f32.mrf.mxu1 }
 0x287   : > { %8952 = vpow2.f32 %v7207_v43  ;;  %v7206_v58 = vmul.f32 -1.442695, %v1184_v56 }
 0x288   : > { %v8141_v11 = vpop.f32.mrf.mxu1 }
 0x289   : > { %8954 = vpow2.f32 %v7206_v58  ;;  %v7209_v16 = vmul.f32 -1.442695, %v8141_v11 }
 0x28a   : > { %v1194_v25 = vpop.f32.mrf.mxu1 }
 0x28b   : > { %8956 = vpow2.f32 %v7209_v16  ;;  %v7208_v28 = vmul.f32 -1.442695, %v1194_v25 }
 0x28c   : > { %v8144_v30 = vpop.f32.mrf.mxu1 }
 0x28d   : > { %8958 = vpow2.f32 %v7208_v28  ;;  %v7211_v31 = vmul.f32 -1.442695, %v8144_v30 }
 0x28e   : > { %v1204_v32 = vpop.f32.mrf.mxu1 }
 0x28f   : > { %8960 = vpow2.f32 %v7211_v31  ;;  %v7210_v33 = vmul.f32 -1.442695, %v1204_v32 }
 0x290   : > { %v8147_v34 = vpop.f32.mrf.mxu1 }
 0x291   : > { %8962 = vpow2.f32 %v7210_v33  ;;  %v7213_v35 = vmul.f32 -1.442695, %v8147_v34 }
 0x292   : > { %v1214_v36 = vpop.f32.mrf.mxu1 }
 0x293   : > { %8964 = vpow2.f32 %v7213_v35  ;;  %v7212_v49 = vmul.f32 -1.442695, %v1214_v36 }
 0x294   : > { %v8953_v50 = vpop.eup %8952  ;;  %v8150_v51 = vpop.f32.mrf.mxu1 }
 0x295   : > { %v1276_v52 = vadd.f32 1.0, %v8953_v50  ;;  %8966 = vpow2.f32 %v7212_v49 }
 0x296   : > { %v8955_v55 = vpop.eup %8954  ;;  %v1224_v57 = vpop.f32.mrf.mxu1  ;;  %8968 = vtanh.f32 %v8150_v51 }
 0x297   : > { %v1275_v59 = vadd.f32 1.0, %v8955_v55  ;;  %8970 = vrcp.f32 %v1276_v52 }
 0x298   : > { %v8957_v60 = vpop.eup %8956  ;;  %v8153_v61 = vpop.f32.mrf.mxu1  ;;  %8972 = vtanh.f32 %v1224_v57 }
 0x299   : > { %v1278_v62 = vadd.f32 1.0, %v8957_v60  ;;  %8974 = vrcp.f32 %v1275_v59  ;;  %v743_v60 = vld [vmem:[#allocation9 + $0x28] sm:$0xff] }
 0x29a   : > { %v8959_v63 = vpop.eup %8958  ;;  %v1234_v0 = vpop.f32.mrf.mxu1  ;;  %8976 = vtanh.f32 %v8153_v61 }
 0x29b   : > { %v1277_v2 = vadd.f32 1.0, %v8959_v63  ;;  %8978 = vrcp.f32 %v1278_v62 }
 0x29c   : > { %v8961_v1 = vpop.eup %8960  ;;  %v8156_v3 = vpop.f32.mrf.mxu1  ;;  %8980 = vtanh.f32 %v1234_v0 }
 0x29d   : > { %v1300_v4 = vadd.f32 1.0, %v8961_v1  ;;  %v7215_v44 = vmul.f32 -1.442695, %v8156_v3 }
 0x29e   : > { %v8963_v5 = vpop.eup %8962  ;;  %v1244_v41 = vpop.f32.mrf.mxu1 }
 0x29f   : > { %8982 = vrcp.f32 %v1300_v4  ;;  %v1299_v43 = vadd.f32 1.0, %v8963_v5  ;;  %v7214_v31 = vmul.f32 -1.442695, %v1244_v41 }
 0x2a0   : > { %v8965_v56 = vpop.eup %8964  ;;  %8984 = vrcp.f32 %v1277_v2  ;;  %v8159_v58 = vpop.f32.mrf.mxu1 }
 0x2a1   : > { %8986 = vrcp.f32 %v1299_v43  ;;  %v1302_v11 = vadd.f32 1.0, %v8965_v56  ;;  %v7217_v16 = vmul.f32 -1.442695, %v8159_v58  ;;  %v742_v43 = vld [vmem:[#allocation9 + $0x20] sm:$0xff]  ;;  %v745_v56 = vld [vmem:[#allocation9 + $0x38] sm:$0xff] }
 0x2a2   : > { %v8967_v25 = vpop.eup %8966  ;;  %8988 = vpow2.f32 %v7215_v44  ;;  %v1254_v28 = vpop.f32.mrf.mxu1 }
 0x2a3   : > { %8990 = vrcp.f32 %v1302_v11  ;;  %v1301_v30 = vadd.f32 1.0, %v8967_v25  ;;  %v7216_v32 = vmul.f32 -1.442695, %v1254_v28  ;;  %v8969_v34 = vpop.eup %8968  ;;  %v744_v28 = vld [vmem:[#allocation9 + $0x30] sm:$0xff] }
 0x2a4   : > { %8992 = vpow2.f32 %v7217_v16  ;;  %v8185_v33 = vpop.f32.mrf.mxu1  ;;  %v8971_v35 = vpop.eup %8970 }
 0x2a5   : > { %8994 = vrcp.f32 %v1301_v30  ;;  %v8973_v49 = vpop.eup %8972  ;;  %v7240_v51 = vmul.f32 -1.442695, %v8185_v33  ;;  %v1344_v5 = vmul.f32 %v8971_v35, %v8969_v34 }
 0x2a6   : > { %8996 = vpow2.f32 %v7216_v32  ;;  %v1658_v36 = vpop.f32.mrf.mxu1  ;;  %v8975_v50 = vpop.eup %8974 }
 0x2a7   : > { %8998 = vpow2.f32 %v7214_v31  ;;  %v8977_v55 = vpop.eup %8976  ;;  %v7239_v57 = vmul.f32 -1.442695, %v1658_v36  ;;  %v1343_v35 = vmul.f32 %v8975_v50, %v8973_v49 }
 0x2a8   : > { %v8188_v52 = vpop.f32.mrf.mxu1  ;;  %v8979_v59 = vpop.eup %8978  ;;  %9000 = vpow2.f32 %v7240_v51 }
 0x2a9   : > { %v7242_v61 = vmul.f32 -1.442695, %v8188_v52  ;;  %v8981_v63 = vpop.eup %8980  ;;  %9002 = vpow2.f32 %v7239_v57  ;;  %v1346_v36 = vmul.f32 %v8979_v59, %v8977_v55 }
 0x2aa   : > { %v1668_v62 = vpop.f32.mrf.mxu1 }
 0x2ab   : > { %v7241_v1 = vmul.f32 -1.442695, %v1668_v62  ;;  %9004 = vpow2.f32 %v7242_v61 }
 0x2ac   : > { %v8983_v0 = vpop.eup %8982  ;;  %v8191_v2 = vpop.f32.mrf.mxu1 }
 0x2ad   : > { %v8985_v3 = vpop.eup %8984  ;;  %v1340_v4 = vmul.f32 %v8983_v0, %v743_v60  ;;  %v7244_v44 = vmul.f32 -1.442695, %v8191_v2 }
 0x2ae   : > { %v8987_v41 = vpop.eup %8986  ;;  %v1678_v58 = vpop.f32.mrf.mxu1  ;;  %v1345_v62 = vmul.f32 %v8985_v3, %v8981_v63 }
 0x2af   : > { %v8989_v11 = vpop.eup %8988  ;;  %v10618_v16 = vadd.f32 %v1344_v5, %v1340_v4  ;;  %9006 = vpow2.f32 %v7244_v44  ;;  %v1339_v32 = vmul.f32 %v8987_v41, %v742_v43  ;;  %v7243_v49 = vmul.f32 -1.442695, %v1678_v58 }
 0x2b0   : > { %v8991_v25 = vpop.eup %8990  ;;  %9008 = vpow2.f32 %v7241_v1  ;;  %v8194_v30 = vpop.f32.mrf.mxu1  ;;  %v1328_v2 = vadd.f32 1.0, %v8989_v11 }
 0x2b1   : > { %v8993_v31 = vpop.eup %8992  ;;  %v1342_v33 = vmul.f32 %v8991_v25, %v745_v56  ;;  %9010 = vtanh.f32 %v10618_v16  ;;  %v10623_v5 = vadd.f32 %v1343_v35, %v1339_v32  ;;  %v7246_v44 = vmul.f32 -1.442695, %v8194_v30 }
 0x2b2   : > { %v8995_v34 = vpop.eup %8994  ;;  %v1330_v51 = vadd.f32 1.0, %v8993_v31  ;;  %v1688_v52 = vpop.f32.mrf.mxu1 }
 0x2b3   : > { %v8997_v57 = vpop.eup %8996  ;;  %v10621_v60 = vadd.f32 %v1346_v36, %v1342_v33  ;;  %v1341_v61 = vmul.f32 %v8995_v34, %v744_v28  ;;  %v7245_v43 = vmul.f32 -1.442695, %v1688_v52 }
 0x2b4   : > { %v8999_v0 = vpop.eup %8998  ;;  %9012 = vrcp.f32 %v1330_v51  ;;  %v1329_v1 = vadd.f32 1.0, %v8997_v57  ;;  %v8197_v4 = vpop.f32.mrf.mxu1 }
 0x2b5   : > { %9014 = vtanh.f32 %v10621_v60  ;;  %v10626_v55 = vadd.f32 %v1345_v62, %v1341_v61  ;;  %v1327_v59 = vadd.f32 1.0, %v8999_v0  ;;  %v9001_v3 = vpop.eup %9000 }
 0x2b6   : > { %9016 = vrcp.f32 %v1329_v1  ;;  %v1698_v50 = vpop.f32.mrf.mxu1  ;;  %v9003_v41 = vpop.eup %9002  ;;  %v1750_v28 = vadd.f32 1.0, %v9001_v3 }
 0x2b7   : > { %9018 = vtanh.f32 %v10626_v55  ;;  %v1749_v32 = vadd.f32 1.0, %v9003_v41 }
 0x2b8   : > { %9020 = vrcp.f32 %v1328_v2  ;;  %v8200_v63 = vpop.f32.mrf.mxu1  ;;  %v9005_v11 = vpop.eup %9004 }
 0x2b9   : > { %9022 = vtanh.f32 %v10623_v5  ;;  %v1752_v33 = vadd.f32 1.0, %v9005_v11 }
 0x2ba   : > { %9024 = vpow2.f32 %v7243_v49  ;;  %v1708_v56 = vpop.f32.mrf.mxu1 }
 0x2bb   : > { %9026 = vrcp.f32 %v1327_v59 }
 0x2bc   : > { %v9007_v25 = vpop.eup %9006  ;;  %9028 = vpow2.f32 %v7246_v44  ;;  %v8203_v58 = vpop.f32.mrf.mxu1 }
 0x2bd   : > { %v9009_v31 = vpop.eup %9008  ;;  %9030 = vpow2.f32 %v7245_v43  ;;  %v1774_v30 = vadd.f32 1.0, %v9007_v25  ;;  %v7248_v59 = vmul.f32 -1.442695, %v8203_v58 }
 0x2be   : > { %v1718_v36 = vpop.f32.mrf.mxu1  ;;  %v9011_v34 = vpop.eup %9010  ;;  %9032 = vrcp.f32 %v1750_v28  ;;  %v1751_v35 = vadd.f32 1.0, %v9009_v31 }
 0x2bf   : > { %9034 = vrcp.f32 %v1749_v32 }
 0x2c0   : > { %v8206_v51 = vpop.f32.mrf.mxu1  ;;  %9036 = vrcp.f32 %v1752_v33  ;;  %v7247_v33 = vmul.f32 -1.442695, %v1718_v36 }
 0x2c1   : > { %v9013_v57 = vpop.eup %9012  ;;  %9038 = vrcp.f32 %v1774_v30  ;;  %v7250_v2 = vmul.f32 -1.442695, %v8206_v51 }
 0x2c2   : > { %v9015_v52 = vpop.eup %9014  ;;  %9040 = vrcp.f32 %v1751_v35  ;;  %v1728_v1 = vpop.f32.mrf.mxu1 }
 0x2c3   : > { %v9017_v61 = vpop.eup %9016  ;;  %v1358_v62 = vmul.f32 %v9015_v52, %v9013_v57  ;;  %9042 = vtanh.f32 %v8197_v4  ;;  %v7249_v43 = vmul.f32 -1.442695, %v1728_v1 }
 0x2c4   : > { %v9019_v0 = vpop.eup %9018  ;;  %9044 = vtanh.f32 %v1698_v50  ;;  %v10633_v50 = vld [vmem:[%s12029_s5 + $0x8] sm:$0xff] }
 0x2c5   : > { %v9021_v49 = vpop.eup %9020  ;;  %8162 = vmatprep.subr.mxu0 %v1358_v62  ;;  %v1357_v44 = vmul.f32 %v9019_v0, %v9017_v61  ;;  %9046 = vtanh.f32 %v8200_v63 }
 0x2c6   : > { %v9023_v3 = vpop.eup %9022  ;;  %8163 = vmatpush3.msra.mxu0 %v1358_v62  ;;  %v1356_v11 = vmul.f32 %v9021_v49, %v9011_v34  ;;  %9048 = vpow2.f32 %v7250_v2 }
 0x2c7   : > { %v9025_v41 = vpop.eup %9024  ;;  %8164 = vmatprep.subr.mxu0 %v1357_v44  ;;  %9050 = vpow2.f32 %v7248_v59 }
 0x2c8   : > { %v9027_v25 = vpop.eup %9026  ;;  %v1773_v28 = vadd.f32 1.0, %v9025_v41  ;;  %8165 = vmatpush3.msra.mxu0 %v1357_v44 }
 0x2c9   : > { %v9029_v31 = vpop.eup %9028  ;;  %8166 = vmatprep.subr.mxu0 %v1356_v11  ;;  %v1355_v32 = vmul.f32 %v9027_v25, %v9023_v3 }
 0x2ca   : > { %9052 = vrcp.f32 %v1773_v28  ;;  %v1776_v4 = vadd.f32 1.0, %v9029_v31  ;;  %8167 = vmatpush3.msra.mxu0 %v1356_v11  ;;  %v9031_v63 = vpop.eup %9030 }
 0x2cb   : > { %9054 = vpow2.f32 %v7249_v43  ;;  %8168 = vmatprep.subr.mxu0 %v1355_v32  ;;  %v1775_v58 = vadd.f32 1.0, %v9031_v63  ;;  %v9033_v30 = vpop.eup %9032 }
 0x2cc   : > { %9056 = vrcp.f32 %v1776_v4  ;;  %8169 = vmatpush3.msra.mxu0 %v1355_v32  ;;  %v9035_v34 = vpop.eup %9034 }
 0x2cd   : > { %9058 = vtanh.f32 %v1708_v56  ;;  %8171 = vmatmul.mubr.msk.f32.vlgmr.msra.gmra.mxu0 %vm763_vm1, %v10633_v50  ;;  %8207 = vmatprep.subr.mxu0 %v10320_v46  ;;  %v9037_v35 = vpop.eup %9036 }
 0x2ce   : > { %9060 = vrcp.f32 %v1775_v58  ;;  %8208 = vmatpush3.msra.mxu0 %v10320_v46  ;;  %8225 = vmatprep.mubr.msk.f32.mxu0 %vm1069_vm2, %v10456_v42  ;;  %v9039_v51 = vpop.eup %9038 }
 0x2cf   : > { %8209 = vmatprep.subr.mxu0 %v1358_v62  ;;  %9062 = vpow2.f32 %v7247_v33  ;;  %v9041_v36 = vpop.eup %9040  ;;  %v1814_v52 = vmul.f32 %v9039_v51, %v10460_v14 }
 0x2d0   : > { %8210 = vmatpush3.msra.mxu0 %v1358_v62  ;;  %v9043_v56 = vpop.eup %9042 }
 0x2d1   : > { %8211 = vmatprep.subr.mxu0 %v1357_v44  ;;  %v9045_v57 = vpop.eup %9044  ;;  %v1818_v46 = vmul.f32 %v9043_v56, %v9033_v30 }
 0x2d2   : > { %8212 = vmatpush3.msra.mxu0 %v1357_v44  ;;  %v9047_v61 = vpop.eup %9046 }
 0x2d3   : > { %8213 = vmatprep.subr.mxu0 %v1356_v11  ;;  %v9049_v0 = vpop.eup %9048  ;;  %v10642_v1 = vadd.f32 %v1818_v46, %v1814_v52  ;;  %v1820_v43 = vmul.f32 %v9047_v61, %v9037_v35  ;;  %v9927_v46 = vld [vmem:[%s12027_s3 + $0x70] sm:$0xff] }
 0x2d4   : > { %8214 = vmatpush3.msra.mxu0 %v1356_v11  ;;  %v9051_v2 = vpop.eup %9050  ;;  %v1804_v62 = vadd.f32 1.0, %v9049_v0  ;;  %v1817_v11 = vmul.f32 %v9045_v57, %v9035_v34 }
 0x2d5   : > { %8215 = vmatprep.subr.mxu0 %v1355_v32  ;;  %v1802_v3 = vadd.f32 1.0, %v9051_v2  ;;  %9064 = vtanh.f32 %v10642_v1  ;;  %v9928_v2 = vld [vmem:[%s12027_s3 + $0x78] sm:$0xff] }
 0x2d6   : > { %8216 = vmatpush3.msra.mxu0 %v1355_v32  ;;  %9066 = vrcp.f32 %v1804_v62 }
 0x2d7   : > { %v9053_v42 = vpop.eup %9052  ;;  %9068 = vrcp.f32 %v1802_v3 }
 0x2d8   : > { %v9055_v49 = vpop.eup %9054  ;;  %v1813_v44 = vmul.f32 %v9053_v42, %v10465_v53 }
 0x2d9   : > { %v9057_v59 = vpop.eup %9056  ;;  %v1803_v28 = vadd.f32 1.0, %v9055_v49  ;;  %v10757_v49 = vld [vmem:[#allocation2] sm:$0xff] }
 0x2da   : > { %v9059_v41 = vpop.eup %9058  ;;  %v1816_v14 = vmul.f32 %v9057_v59, %v10463_v48  ;;  %v10650_v58 = vadd.f32 %v1817_v11, %v1813_v44 }
 0x2db   : > { %v9061_v25 = vpop.eup %9060  ;;  %v1819_v4 = vmul.f32 %v9059_v41, %v9041_v36 }
 0x2dc   : > { %v10647_v31 = vadd.f32 %v1820_v43, %v1816_v14  ;;  %v1815_v32 = vmul.f32 %v9061_v25, %v10468_v54  ;;  %v9063_v63 = vpop.eup %9062 }
 0x2dd   : > { %v1801_v48 = vadd.f32 1.0, %v9063_v63 }
 0x2de   : > { %9070 = vtanh.f32 %v10647_v31  ;;  %v10653_v53 = vadd.f32 %v1819_v4, %v1815_v32 }
 0x2df   : > { %9072 = vrcp.f32 %v1803_v28 }
 0x2e0   : > { %9074 = vtanh.f32 %v10653_v53 }
 0x2e1   : > { %9076 = vtanh.f32 %v10650_v58 }
 0x2e2   : > { %9078 = vrcp.f32 %v1801_v48  ;;  %v9065_v33 = vpop.eup %9064 }
 0x2e3   : > { %v9067_v30 = vpop.eup %9066 }
 0x2e4   : > { %v9069_v54 = vpop.eup %9068 }
 0x2e5   : > { %v1830_v52 = vmul.f32 %v9069_v54, %v9065_v33 }
 0x2eb   : > { %v9071_v34 = vpop.eup %9070 }
 0x2ec   : > { %v9073_v35 = vpop.eup %9072  ;;  %v1832_v51 = vmul.f32 %v9071_v34, %v9067_v30 }
 0x2ed   : > { %v9075_v36 = vpop.eup %9074 }
 0x2ee   : > { %8217 = vmatprep.subr.mxu0 %v1832_v51  ;;  %v1831_v56 = vmul.f32 %v9075_v36, %v9073_v35  ;;  %v9077_v57 = vpop.eup %9076 }
 0x2ef   : > { %8218 = vmatpush3.msra.mxu0 %v1832_v51  ;;  %v9079_v61 = vpop.eup %9078 }
 0x2f0   : > { %8219 = vmatprep.subr.mxu0 %v1831_v56  ;;  %v1829_v0 = vmul.f32 %v9079_v61, %v9077_v57 }
 0x2f1   : > { %8220 = vmatpush3.msra.mxu0 %v1831_v56 }
 0x2f2   : > { %8221 = vmatprep.subr.mxu0 %v1830_v52 }
 0x2f3   : > { %8222 = vmatpush3.msra.mxu0 %v1830_v52 }
 0x2f4   : > { %8223 = vmatprep.subr.mxu0 %v1829_v0 }
 0x2f5   : > { %8224 = vmatpush3.msra.mxu0 %v1829_v0 }
 0x2f6   : > { %8226 = vmatmul.mubr.msk.f32.vlgmr.msra.gmra.mxu0 %vm1069_vm2, %v10475_v6  ;;  %8262 = vmatprep.subr.mxu0 %v1832_v51  ;;  %v10667_v6 = vld [vmem:[#allocation2 + $0x10] sm:$0xff] }
 0x2f7   : > { %8263 = vmatpush3.msra.mxu0 %v1832_v51  ;;  %8228 = vmatprep.mubr.msk.f32.mxu0 %vm1069_vm2, %v10480_v9  ;;  %v9913_v9 = vld [vmem:[%s12027_s3] sm:$0xff] }
 0x2f8   : > { %8264 = vmatprep.subr.mxu0 %v1831_v56 }
 0x2f9   : > { %8265 = vmatpush3.msra.mxu0 %v1831_v56 }
 0x2fa   : > { %8229 = vmatmul.mubr.msk.f32.gmra.mxu0 %vm1069_vm2, %v10489_v10  ;;  %8266 = vmatprep.subr.mxu0 %v1830_v52  ;;  %v9914_v10 = vld [vmem:[%s12027_s3 + $0x8] sm:$0xff] }
 0x2fb   : > { %8267 = vmatpush3.msra.mxu0 %v1830_v52  ;;  %8231 = vmatprep.mubr.msk.f32.mxu0 %vm1069_vm2, %v10494_v12  ;;  %v9915_v12 = vld [vmem:[%s12027_s3 + $0x10] sm:$0xff] }
 0x2fc   : > { %8268 = vmatprep.subr.mxu0 %v1829_v0 }
 0x2fd   : > { %8269 = vmatpush3.msra.mxu0 %v1829_v0 }
 0x2fe   : > { %8232 = vmatmul.mubr.msk.f32.gmra.mxu0 %vm1069_vm2, %v10503_v13  ;;  %8270 = vmatprep.subr.mxu0 %v10667_v6  ;;  %v9916_v13 = vld [vmem:[%s12027_s3 + $0x18] sm:$0xff] }
 0x2ff   : > { %8271 = vmatpush3.msra.mxu0 %v10667_v6  ;;  %8234 = vmatprep.mubr.msk.f32.mxu0 %vm1069_vm2, %v10508_v15  ;;  %v9917_v15 = vld [vmem:[%s12027_s3 + $0x20] sm:$0xff] }
 0x300   : > { %8338 = vmatprep.subr.mxu0 %v10667_v6 }
 0x302   : > { %8235 = vmatmul.mubr.msk.f32.gmra.mxu0 %vm1069_vm2, %v10519_v18  ;;  %v9918_v18 = vld [vmem:[%s12027_s3 + $0x28] sm:$0xff] }
 0x303   : > { %8237 = vmatprep.mubr.msk.f32.mxu0 %vm1069_vm2, %v10525_v19  ;;  %v9919_v19 = vld [vmem:[%s12027_s3 + $0x30] sm:$0xff] }
 0x306   : > { %8238 = vmatmul.mubr.msk.f32.gmra.mxu0 %vm1069_vm2, %v10534_v20  ;;  %v9920_v20 = vld [vmem:[%s12027_s3 + $0x38] sm:$0xff] }
 0x307   : > { %8240 = vmatprep.mubr.msk.f32.mxu0 %vm1069_vm2, %v10539_v22  ;;  %v9921_v22 = vld [vmem:[%s12027_s3 + $0x40] sm:$0xff] }
 0x30a   : > { %8241 = vmatmul.mubr.msk.f32.gmra.mxu0 %vm1069_vm2, %v10548_v24  ;;  %v9922_v24 = vld [vmem:[%s12027_s3 + $0x48] sm:$0xff] }
 0x30b   : > { %8243 = vmatprep.mubr.msk.f32.mxu0 %vm1069_vm2, %v10553_v37  ;;  %v9923_v37 = vld [vmem:[%s12027_s3 + $0x50] sm:$0xff] }
 0x30e   : > { %8244 = vmatmul.mubr.msk.f32.gmra.mxu0 %vm1069_vm2, %v10562_v38  ;;  %v9924_v38 = vld [vmem:[%s12027_s3 + $0x58] sm:$0xff] }
 0x30f   : > { %8246 = vmatprep.mubr.msk.f32.mxu0 %vm1069_vm2, %v10567_v39  ;;  %v9925_v39 = vld [vmem:[%s12027_s3 + $0x60] sm:$0xff] }
 0x312   : > { %8247 = vmatmul.mubr.msk.f32.gmra.mxu0 %vm1069_vm2, %v10576_v40  ;;  %v9926_v40 = vld [vmem:[%s12027_s3 + $0x68] sm:$0xff] }
 0x313   : > { %8272 = vmatprep.mubr.msk.f32.mxu0 %vm763_vm1, %v9913_v9 }
 0x316   : > { %8273 = vmatmul.mubr.msk.f32.vlgmr.msra.gmra.mxu0 %vm763_vm1, %v9914_v10 }
 0x317   : > { %8339 = vmatpush3.msra.mxu0 %v10667_v6  ;;  %8275 = vmatprep.mubr.msk.f32.mxu0 %vm763_vm1, %v9915_v12 }
 0x31a   : > { %8276 = vmatmul.mubr.msk.f32.gmra.mxu0 %vm763_vm1, %v9916_v13 }
 0x31b   : > { %8278 = vmatprep.mubr.msk.f32.mxu0 %vm763_vm1, %v9917_v15 }
 0x31e   : > { %8279 = vmatmul.mubr.msk.f32.gmra.mxu0 %vm763_vm1, %v9918_v18 }
 0x31f   : > { %8281 = vmatprep.mubr.msk.f32.mxu0 %vm763_vm1, %v9919_v19 }
 0x322   : > { %8282 = vmatmul.mubr.msk.f32.gmra.mxu0 %vm763_vm1, %v9920_v20 }
 0x323   : > { %8284 = vmatprep.mubr.msk.f32.mxu0 %vm763_vm1, %v9921_v22 }
 0x326   : > { %8285 = vmatmul.mubr.msk.f32.gmra.mxu0 %vm763_vm1, %v9922_v24 }
 0x327   : > { %8287 = vmatprep.mubr.msk.f32.mxu0 %vm763_vm1, %v9923_v37 }
 0x32a   : > { %8288 = vmatmul.mubr.msk.f32.gmra.mxu0 %vm763_vm1, %v9924_v38 }
 0x32b   : > { %8290 = vmatprep.mubr.msk.f32.mxu0 %vm763_vm1, %v9925_v39 }
 0x32e   : > { %8291 = vmatmul.mubr.msk.f32.gmra.mxu0 %vm763_vm1, %v9926_v40 }
 0x32f   : > { %8293 = vmatprep.mubr.msk.f32.mxu0 %vm763_vm1, %v9927_v46 }
 0x332   : > { %8294 = vmatmul.mubr.msk.f32.gmra.mxu0 %vm763_vm1, %v9928_v2 }
 0x38d   : > { %v8172_v42 = vpop.f32.mrf.mxu0 }
 0x38e   : > { %v1493_v62 = vmul.f32 %v10757_v49, %v8172_v42 }
 0x38f   : > { %v1433_v59 = vpop.f32.mrf.mxu0 }
 0x390   : > { %v1495_v3 = vrot.slane %v1493_v62, 1  ;;  %v1442_v41 = vmul.f32 %v1433_v59, %v1433_v59  ;;  %v1498_v14 = vrot.slane %v1493_v62, 2  ;;  %v1501_v28 = vrot.slane %v1493_v62, 3 }
 0x391   : > { %v1504_v33 = vrot.slane %v1493_v62, 4 }
 0x392   : > { %v1497_v44 = vadd.f32 %v1495_v3, %v1493_v62  ;;  %v1444_v43 = vcombine.high %v1442_v41, %v1442_v41  ;;  %v1451_v25 = vrot.slane %v1442_v41, %v10254_v27 }
 0x394   : > { %v1500_v11 = vadd.f32 %v1498_v14, %v1497_v44  ;;  %v1458_v32 = vrot.slane %v1444_v43, %v10254_v27  ;;  %v1459_v4 = vcombine.high %v1451_v25, %v1451_v25  ;;  %v1466_v63 = vrot.slane %v1451_v25, %v10254_v27  ;;  %7220 = vst.sshfl [vmem:[#allocation3] sm:$0x1 pattern:$0x73625140] %v1451_v25 }
 0x396   : > { %v1503_v48 = vadd.f32 %v1501_v28, %v1500_v11  ;;  %v1480_v30 = vrot.slane %v1459_v4, %v10254_v27  ;;  %v1481_v54 = vcombine.high %v1466_v63, %v1466_v63  ;;  %7221 = vst.sshfl [vmem:[#allocation3 + $0x8] sm:$0x1 pattern:$0x73625140] %v1459_v4 }
 0x397   : > { %7222 = vst.sshfl [vmem:[#allocation3 + $0x20] sm:$0x1 pattern:$0x73625140] %v1458_v32 }
 0x398   : > { %v10764_v34 = vadd.f32 %v1504_v33, %v1503_v48  ;;  %v1482_v35 = vcombine.high %v1480_v30, %v1480_v30  ;;  %1490 = vst [vmem:[#allocation3 + $0x10] sm:$0x1] %v1481_v54 }
 0x39a   : > { %1507 = vrot.lane.b32.xlu0 %v10764_v34, %s10096_s24  ;;  %1491 = vst [vmem:[#allocation3 + $0x18] sm:$0x1] %v1482_v35 }
 0x3b6   : > { %v8227_v51 = vpop.f32.mrf.mxu0 }
 0x3b7   : > { %v7268_v36 = vmul.f32 -1.442695, %v8227_v51 }
 0x3b8   : > { %v1963_v56 = vpop.f32.mrf.mxu0 }
 0x3b9   : > { %9080 = vpow2.f32 %v7268_v36  ;;  %v7267_v57 = vmul.f32 -1.442695, %v1963_v56 }
 0x3ba   : > { %v8230_v52 = vpop.f32.mrf.mxu0 }
 0x3bb   : > { %9082 = vpow2.f32 %v7267_v57  ;;  %v7270_v61 = vmul.f32 -1.442695, %v8230_v52 }
 0x3bc   : > { %v1973_v0 = vpop.f32.mrf.mxu0 }
 0x3bd   : > { %9084 = vpow2.f32 %v7270_v61  ;;  %v7269_v9 = vmul.f32 -1.442695, %v1973_v0 }
 0x3be   : > { %v8233_v10 = vpop.f32.mrf.mxu0 }
 0x3bf   : > { %9086 = vpow2.f32 %v7269_v9  ;;  %v7272_v12 = vmul.f32 -1.442695, %v8233_v10 }
 0x3c0   : > { %v1983_v13 = vpop.f32.mrf.mxu0 }
 0x3c1   : > { %9088 = vpow2.f32 %v7272_v12  ;;  %v7271_v15 = vmul.f32 -1.442695, %v1983_v13 }
 0x3c2   : > { %v8236_v18 = vpop.f32.mrf.mxu0 }
 0x3c3   : > { %9090 = vpow2.f32 %v7271_v15  ;;  %v7274_v19 = vmul.f32 -1.442695, %v8236_v18 }
 0x3c4   : > { %v1993_v20 = vpop.f32.mrf.mxu0 }
 0x3c5   : > { %9092 = vpow2.f32 %v7274_v19  ;;  %v7273_v22 = vmul.f32 -1.442695, %v1993_v20 }
 0x3c6   : > { %v9081_v24 = vpop.eup %9080  ;;  %v8239_v37 = vpop.f32.mrf.mxu0 }
 0x3c7   : > { %v2055_v38 = vadd.f32 1.0, %v9081_v24  ;;  %9094 = vpow2.f32 %v7273_v22 }
 0x3c8   : > { %v9083_v39 = vpop.eup %9082  ;;  %v2003_v40 = vpop.f32.mrf.mxu0  ;;  %9096 = vtanh.f32 %v8239_v37 }
 0x3c9   : > { %v2054_v46 = vadd.f32 1.0, %v9083_v39  ;;  %9098 = vrcp.f32 %v2055_v38 }
 0x3ca   : > { %v9085_v2 = vpop.eup %9084  ;;  %v8242_v42 = vpop.f32.mrf.mxu0  ;;  %9100 = vtanh.f32 %v2003_v40 }
 0x3cb   : > { %v2057_v62 = vadd.f32 1.0, %v9085_v2  ;;  %9102 = vrcp.f32 %v2054_v46 }
 0x3cc   : > { %v9087_v59 = vpop.eup %9086  ;;  %v2013_v3 = vpop.f32.mrf.mxu0  ;;  %9104 = vtanh.f32 %v8242_v42 }
 0x3cd   : > { %v2056_v44 = vadd.f32 1.0, %v9087_v59  ;;  %9106 = vrcp.f32 %v2057_v62 }
 0x3ce   : > { %v9089_v41 = vpop.eup %9088  ;;  %v8245_v14 = vpop.f32.mrf.mxu0  ;;  %9108 = vtanh.f32 %v2013_v3 }
 0x3cf   : > { %v2079_v43 = vadd.f32 1.0, %v9089_v41  ;;  %v7276_v11 = vmul.f32 -1.442695, %v8245_v14 }
 0x3d0   : > { %v9091_v25 = vpop.eup %9090  ;;  %v2023_v28 = vpop.f32.mrf.mxu0 }
 0x3d1   : > { %9110 = vrcp.f32 %v2079_v43  ;;  %v2078_v32 = vadd.f32 1.0, %v9091_v25  ;;  %v7275_v51 = vmul.f32 -1.442695, %v2023_v28 }
 0x3d2   : > { %v9093_v4 = vpop.eup %9092  ;;  %9112 = vrcp.f32 %v2056_v44  ;;  %v8248_v63 = vpop.f32.mrf.mxu0 }
 0x3d3   : > { %9114 = vrcp.f32 %v2078_v32  ;;  %v2081_v48 = vadd.f32 1.0, %v9093_v4  ;;  %v7278_v33 = vmul.f32 -1.442695, %v8248_v63 }
 0x3d4   : > { %v9095_v30 = vpop.eup %9094  ;;  %9116 = vpow2.f32 %v7276_v11  ;;  %v2033_v54 = vpop.f32.mrf.mxu0 }
 0x3d5   : > { %9118 = vrcp.f32 %v2081_v48  ;;  %v2080_v35 = vadd.f32 1.0, %v9095_v30  ;;  %v7277_v36 = vmul.f32 -1.442695, %v2033_v54  ;;  %v9097_v57 = vpop.eup %9096 }
 0x3d6   : > { %9120 = vpow2.f32 %v7278_v33  ;;  %v8274_v56 = vpop.f32.mrf.mxu0  ;;  %v9099_v52 = vpop.eup %9098 }
 0x3d7   : > { %9122 = vrcp.f32 %v2080_v35  ;;  %v9101_v0 = vpop.eup %9100  ;;  %v7301_v10 = vmul.f32 -1.442695, %v8274_v56  ;;  %v2123_v46 = vmul.f32 %v9099_v52, %v9097_v57 }
 0x3d8   : > { %9124 = vpow2.f32 %v7277_v36  ;;  %v2434_v61 = vpop.f32.mrf.mxu0  ;;  %v9103_v9 = vpop.eup %9102 }
 0x3d9   : > { %9126 = vpow2.f32 %v7275_v51  ;;  %v9105_v13 = vpop.eup %9104  ;;  %v7300_v15 = vmul.f32 -1.442695, %v2434_v61  ;;  %v2122_v28 = vmul.f32 %v9103_v9, %v9101_v0 }
 0x3da   : > { %v8277_v12 = vpop.f32.mrf.mxu0  ;;  %v9107_v18 = vpop.eup %9106  ;;  %9128 = vpow2.f32 %v7301_v10 }
 0x3db   : > { %v7303_v19 = vmul.f32 -1.442695, %v8277_v12  ;;  %v9109_v22 = vpop.eup %9108  ;;  %9130 = vpow2.f32 %v7300_v15  ;;  %v2125_v11 = vmul.f32 %v9107_v18, %v9105_v13 }
 0x3dc   : > { %v2444_v20 = vpop.f32.mrf.mxu0 }
 0x3dd   : > { %v7302_v37 = vmul.f32 -1.442695, %v2444_v20  ;;  %9132 = vpow2.f32 %v7303_v19 }
 0x3de   : > { %v9111_v24 = vpop.eup %9110  ;;  %v8280_v38 = vpop.f32.mrf.mxu0 }
 0x3df   : > { %v9113_v39 = vpop.eup %9112  ;;  %v2119_v40 = vmul.f32 %v9111_v24, %v10618_v16  ;;  %v7305_v2 = vmul.f32 -1.442695, %v8280_v38 }
 0x3e0   : > { %v9115_v42 = vpop.eup %9114  ;;  %v2454_v62 = vpop.f32.mrf.mxu0  ;;  %v2124_v30 = vmul.f32 %v9113_v39, %v9109_v22 }
 0x3e1   : > { %v9117_v59 = vpop.eup %9116  ;;  %v10769_v3 = vadd.f32 %v2123_v46, %v2119_v40  ;;  %9134 = vpow2.f32 %v7305_v2  ;;  %v2118_v43 = vmul.f32 %v9115_v42, %v10623_v5  ;;  %v7304_v56 = vmul.f32 -1.442695, %v2454_v62 }
 0x3e2   : > { %v9119_v41 = vpop.eup %9118  ;;  %9136 = vpow2.f32 %v7302_v37  ;;  %v8283_v44 = vpop.f32.mrf.mxu0  ;;  %v2107_v35 = vadd.f32 1.0, %v9117_v59 }
 0x3e3   : > { %v9121_v14 = vpop.eup %9120  ;;  %v2121_v25 = vmul.f32 %v9119_v41, %v10621_v60  ;;  %9138 = vtanh.f32 %v10769_v3  ;;  %v10777_v36 = vadd.f32 %v2122_v28, %v2118_v43 }
 0x3e4   : > { %v9123_v16 = vpop.eup %9122  ;;  %v2109_v32 = vadd.f32 1.0, %v9121_v14  ;;  %v2464_v4 = vpop.f32.mrf.mxu0 }
 0x3e5   : > { %v9125_v63 = vpop.eup %9124  ;;  %v10774_v48 = vadd.f32 %v2125_v11, %v2121_v25  ;;  %v2120_v33 = vmul.f32 %v9123_v16, %v10626_v55  ;;  %v7307_v55 = vmul.f32 -1.442695, %v8283_v44  ;;  %v7306_v10 = vmul.f32 -1.442695, %v2464_v4 }
 0x3e6   : > { %v9127_v54 = vpop.eup %9126  ;;  %9140 = vrcp.f32 %v2109_v32  ;;  %v2108_v51 = vadd.f32 1.0, %v9125_v63  ;;  %v8286_v5 = vpop.f32.mrf.mxu0 }
 0x3e7   : > { %9142 = vtanh.f32 %v10774_v48  ;;  %v10780_v60 = vadd.f32 %v2124_v30, %v2120_v33  ;;  %v2106_v52 = vadd.f32 1.0, %v9127_v54  ;;  %v9129_v0 = vpop.eup %9128 }
 0x3e8   : > { %9144 = vrcp.f32 %v2108_v51  ;;  %v2474_v57 = vpop.f32.mrf.mxu0  ;;  %v9131_v9 = vpop.eup %9130  ;;  %v2526_v18 = vadd.f32 1.0, %v9129_v0 }
 0x3e9   : > { %9146 = vtanh.f32 %v10780_v60  ;;  %v2525_v22 = vadd.f32 1.0, %v9131_v9 }
 0x3ea   : > { %9148 = vrcp.f32 %v2107_v35  ;;  %v8289_v61 = vpop.f32.mrf.mxu0  ;;  %v9133_v13 = vpop.eup %9132 }
 0x3eb   : > { %9150 = vtanh.f32 %v10777_v36  ;;  %v2528_v24 = vadd.f32 1.0, %v9133_v13 }
 0x3ec   : > { %9152 = vpow2.f32 %v7304_v56  ;;  %v2484_v12 = vpop.f32.mrf.mxu0 }
 0x3ed   : > { %9154 = vrcp.f32 %v2106_v52 }
 0x3ee   : > { %v9135_v15 = vpop.eup %9134  ;;  %9156 = vpow2.f32 %v7307_v55  ;;  %v8292_v19 = vpop.f32.mrf.mxu0 }
 0x3ef   : > { %v9137_v20 = vpop.eup %9136  ;;  %9158 = vpow2.f32 %v7306_v10  ;;  %v2550_v38 = vadd.f32 1.0, %v9135_v15  ;;  %v7309_v25 = vmul.f32 -1.442695, %v8292_v19 }
 0x3f0   : > { %v2494_v37 = vpop.f32.mrf.mxu0  ;;  %v9139_v39 = vpop.eup %9138  ;;  %9160 = vrcp.f32 %v2526_v18  ;;  %v2527_v40 = vadd.f32 1.0, %v9137_v20 }
 0x3f1   : > { %9162 = vrcp.f32 %v2525_v22 }
 0x3f2   : > { %v8295_v46 = vpop.f32.mrf.mxu0  ;;  %9164 = vrcp.f32 %v2528_v24 }
 0x3f3   : > { %v9141_v2 = vpop.eup %9140  ;;  %9166 = vrcp.f32 %v2550_v38  ;;  %v7311_v44 = vmul.f32 -1.442695, %v8295_v46 }
 0x3f4   : > { %v9143_v42 = vpop.eup %9142  ;;  %9168 = vrcp.f32 %v2527_v40  ;;  %v2504_v14 = vpop.f32.mrf.mxu0 }
 0x3f5   : > { %v9145_v62 = vpop.eup %9144  ;;  %v2137_v59 = vmul.f32 %v9143_v42, %v9141_v2  ;;  %9170 = vtanh.f32 %v8286_v5  ;;  %v7310_v32 = vmul.f32 -1.442695, %v2504_v14  ;;  %v10787_v5 = vld [vmem:[%s12028_s4] sm:$0xff] }
 0x3f6   : > { %v9147_v41 = vpop.eup %9146  ;;  %9172 = vtanh.f32 %v2474_v57  ;;  %v7308_v57 = vmul.f32 -1.442695, %v2494_v37  ;;  %v1513_v42 = vld [vmem:[%s10197_s21] sm:$0x1] }
 0x3f7   : > { %v9149_v43 = vpop.eup %9148  ;;  %8251 = vmatprep.subr.mxu1 %v2137_v59  ;;  %v2136_v11 = vmul.f32 %v9147_v41, %v9145_v62  ;;  %9174 = vtanh.f32 %v8289_v61 }
 0x3f8   : > { %v9151_v16 = vpop.eup %9150  ;;  %8252 = vmatpush3.msra.mxu1 %v2137_v59  ;;  %v2135_v4 = vmul.f32 %v9149_v43, %v9139_v39  ;;  %9176 = vpow2.f32 %v7311_v44 }
 0x3f9   : > { %v9153_v28 = vpop.eup %9152  ;;  %8253 = vmatprep.subr.mxu1 %v2136_v11  ;;  %9178 = vpow2.f32 %v7309_v25 }
 0x3fa   : > { %v9155_v63 = vpop.eup %9154  ;;  %v2549_v33 = vadd.f32 1.0, %v9153_v28  ;;  %8254 = vmatpush3.msra.mxu1 %v2136_v11 }
 0x3fb   : > { %v9157_v30 = vpop.eup %9156  ;;  %8255 = vmatprep.subr.mxu1 %v2135_v4  ;;  %v2134_v54 = vmul.f32 %v9155_v63, %v9151_v16 }
 0x3fc   : > { %9180 = vrcp.f32 %v2549_v33  ;;  %v2552_v35 = vadd.f32 1.0, %v9157_v30  ;;  %8256 = vmatpush3.msra.mxu1 %v2135_v4  ;;  %v9159_v51 = vpop.eup %9158 }
 0x3fd   : > { %9182 = vpow2.f32 %v7310_v32  ;;  %8257 = vmatprep.subr.mxu1 %v2134_v54  ;;  %v2551_v56 = vadd.f32 1.0, %v9159_v51  ;;  %v9161_v52 = vpop.eup %9160  ;;  %v10818_v32 = vstv %s12099_s28 }
 0x3fe   : > { %9184 = vrcp.f32 %v2552_v35  ;;  %8258 = vmatpush3.msra.mxu1 %v2134_v54  ;;  %v9163_v55 = vpop.eup %9162 }
 0x3ff   : > { %9186 = vtanh.f32 %v2484_v12  ;;  %8260 = vmatmul.mubr.msk.f32.vlgmr.msra.gmra.mxu1 %vm763_vm1, %v10633_v50  ;;  %8296 = vmatprep.subr.mxu1 %v10667_v6  ;;  %v9165_v61 = vpop.eup %9164 }
 0x400   : > { %9188 = vrcp.f32 %v2551_v56  ;;  %8297 = vmatpush3.msra.mxu1 %v10667_v6  ;;  %8314 = vmatprep.mubr.msk.f32.mxu1 %vm1069_vm2, %v10787_v5  ;;  %v9167_v0 = vpop.eup %9166 }
 0x401   : > { %8298 = vmatprep.subr.mxu1 %v2137_v59  ;;  %9190 = vpow2.f32 %v7308_v57  ;;  %v9169_v9 = vpop.eup %9168  ;;  %v2590_v50 = vmul.f32 %v9167_v0, %v10642_v1  ;;  %v1517_v1 = vmul.f32 %v10757_v49, %v10322_v47 }
 0x402   : > { %8299 = vmatpush3.msra.mxu1 %v2137_v59  ;;  %v9171_v10 = vpop.eup %9170  ;;  %v1509_v59 = vmul.f32 %v10764_v34, %v10764_v34 }
 0x403   : > { %8300 = vmatprep.subr.mxu1 %v2136_v11  ;;  %v9173_v12 = vpop.eup %9172  ;;  %v2594_v6 = vmul.f32 %v9171_v10, %v9161_v52  ;;  %v1519_v16 = vrot.slane %v1517_v1, 2  ;;  %v10902_v1 = vld [vmem:[%s12028_s4 + $0x58] sm:$0xff] }
 0x404   : > { %8301 = vmatpush3.msra.mxu1 %v2136_v11  ;;  %v9175_v13 = vpop.eup %9174  ;;  %v2593_v44 = vmul.f32 %v9173_v12, %v9163_v55  ;;  %v1515_v11 = vmul.f32 %v10318_v45, %v1513_v42  ;;  %v10827_v12 = vld [vmem:[%s12028_s4 + $0x8] sm:$0xff]  ;;  %v10935_v42 = vld [vmem:[%s12027_s3] sm:$0xff] }
 0x405   : > { %8302 = vmatprep.subr.mxu1 %v2135_v4  ;;  %v9177_v15 = vpop.eup %9176  ;;  %v10796_v20 = vadd.f32 %v2594_v6, %v2590_v50  ;;  %v2596_v2 = vmul.f32 %v9175_v13, %v9165_v61  ;;  %v10832_v50 = vld [vmem:[%s12028_s4 + $0x10] sm:$0xff]  ;;  %v10841_v13 = vld [vmem:[%s12028_s4 + $0x18] sm:$0xff]  ;;  %v10855_v6 = vld [vmem:[%s12028_s4 + $0x28] sm:$0xff] }
 0x406   : > { %8303 = vmatpush3.msra.mxu1 %v2135_v4  ;;  %v9179_v18 = vpop.eup %9178  ;;  %v2580_v24 = vadd.f32 1.0, %v9177_v15  ;;  %v1521_v63 = vadd.f32 %v1519_v16, %v1515_v11  ;;  %v10846_v15 = vld [vmem:[%s12028_s4 + $0x20] sm:$0xff]  ;;  %v11015_v11 = vld [vmem:[%s12027_s3 + $0x58] sm:$0xff] }
 0x407   : > { %8304 = vmatprep.subr.mxu1 %v2134_v54  ;;  %v2578_v38 = vadd.f32 1.0, %v9179_v18  ;;  %9192 = vtanh.f32 %v10796_v20  ;;  %v10860_v18 = vld [vmem:[%s12028_s4 + $0x30] sm:$0xff]  ;;  %12056 = vst [vmem:[#allocation22_spill] sm:$0xff] %v11015_v11  ;;  %v11020_v16 = vld [vmem:[%s12027_s3 + $0x60] sm:$0xff] }
 0x408   : > { %8305 = vmatpush3.msra.mxu1 %v2134_v54  ;;  %9194 = vrcp.f32 %v2580_v24  ;;  %v10879_v24 = vld [vmem:[%s12028_s4 + $0x40] sm:$0xff]  ;;  %12057 = vst [vmem:[#allocation23_spill] sm:$0xff] %v11020_v16 }
 0x409   : > { %v9181_v19 = vpop.eup %9180  ;;  %9196 = vrcp.f32 %v2578_v38  ;;  %v10893_v38 = vld [vmem:[%s12028_s4 + $0x50] sm:$0xff] }
 0x40a   : > { %v9183_v22 = vpop.eup %9182  ;;  %v2589_v40 = vmul.f32 %v9181_v19, %v10650_v58  ;;  %v10864_v19 = vld [vmem:[#allocation2 + $0x18] sm:$0xff] }
 0x40b   : > { %v9185_v37 = vpop.eup %9184  ;;  %v2579_v14 = vadd.f32 1.0, %v9183_v22  ;;  %v10873_v22 = vld [vmem:[%s12028_s4 + $0x38] sm:$0xff] }
 0x40c   : > { %v9187_v39 = vpop.eup %9186  ;;  %v2592_v46 = vmul.f32 %v9185_v37, %v10647_v31  ;;  %v1508_v62 = vpop.permute.xlu0 %1507  ;;  %v10813_v34 = vadd.f32 %v2593_v44, %v2589_v40  ;;  %v10888_v37 = vld [vmem:[%s12028_s4 + $0x48] sm:$0xff]  ;;  %v10964_v44 = vld [vmem:[%s12027_s3 + $0x20] sm:$0xff] }
 0x40d   : > { %v9189_v41 = vpop.eup %9188  ;;  %v1510_v43 = vmul.f32 %v1508_v62, %v1508_v62  ;;  %v2595_v49 = vmul.f32 %v9187_v39, %v9169_v9  ;;  %v10907_v39 = vld [vmem:[%s12028_s4 + $0x60] sm:$0xff]  ;;  %v10916_v40 = vld [vmem:[%s12028_s4 + $0x68] sm:$0xff] }
 0x40e   : > { %v10809_v47 = vadd.f32 %v2596_v2, %v2592_v46  ;;  %v2591_v58 = vmul.f32 %v9189_v41, %v10653_v53  ;;  %v9191_v31 = vpop.eup %9190  ;;  %v10921_v46 = vld [vmem:[%s12028_s4 + $0x70] sm:$0xff]  ;;  %v10930_v2 = vld [vmem:[%s12028_s4 + $0x78] sm:$0xff]  ;;  %v10944_v62 = vld [vmem:[%s12027_s3 + $0x8] sm:$0xff] }
 0x40f   : > { %v1511_v25 = vsub.f32 %v1509_v59, %v1510_v43  ;;  %v2577_v53 = vadd.f32 1.0, %v9191_v31  ;;  %v10949_v59 = vld [vmem:[%s12027_s3 + $0x10] sm:$0xff]  ;;  %v10959_v41 = vld [vmem:[%s12027_s3 + $0x18] sm:$0xff]  ;;  %v11001_v31 = vld [vmem:[%s12027_s3 + $0x48] sm:$0xff] }
 0x410   : > { %9198 = vtanh.f32 %v10809_v47  ;;  %v10816_v28 = vadd.f32 %v2595_v49, %v2591_v58  ;;  %v10978_v43 = vld [vmem:[%s12027_s3 + $0x30] sm:$0xff]  ;;  %v10987_v58 = vld [vmem:[%s12027_s3 + $0x38] sm:$0xff]  ;;  %v10992_v49 = vld [vmem:[%s12027_s3 + $0x40] sm:$0xff] }
 0x411   : > { %9200 = vrcp.f32 %v2579_v14  ;;  %v1512_v4 = vmul.f32 0.125, %v1511_v25  ;;  %v10973_v14 = vld [vmem:[%s12027_s3 + $0x28] sm:$0xff]  ;;  %v11006_v25 = vld [vmem:[%s12027_s3 + $0x50] sm:$0xff] }
 0x412   : > { %9202 = vtanh.f32 %v10816_v28  ;;  %12055 = vst [vmem:[#allocation21_spill] sm:$0xff] %v11006_v25 }
 0x413   : > { %v1523_v33 = vmul.f32 %v10818_v32, %v1512_v4  ;;  %9204 = vtanh.f32 %v10813_v34  ;;  %v11029_v4 = vld [vmem:[%s12027_s3 + $0x68] sm:$0xff] }
 0x414   : > { %9206 = vrcp.f32 %v2577_v53  ;;  %v9193_v30 = vpop.eup %9192  ;;  %12058 = vst [vmem:[#allocation24_spill] sm:$0xff] %v11029_v4  ;;  %v11034_v53 = vld [vmem:[%s12027_s3 + $0x70] sm:$0xff] }
 0x415   : > { %v1524_v45 = vsub.f32 %v1521_v63, %v1523_v33  ;;  %v9195_v54 = vpop.eup %9194  ;;  %12059 = vst [vmem:[#allocation25_spill] sm:$0xff] %v11034_v53  ;;  %v11043_v63 = vld [vmem:[%s12027_s3 + $0x78] sm:$0xff]  ;;  %v2914_v33 = vld [vmem:[%s12029_s5] sm:$0xff] }
 0x416   : > { %v9197_v35 = vpop.eup %9196  ;;  %12060 = vst [vmem:[#allocation26_spill] sm:$0xff] %v11043_v63  ;;  %8348 = vmatprep.mubr.msk.f32.mxu0 %vm763_vm1, %v2914_v33 }
 0x417   : > { %1525 = vst [vmem:[%s10251_s19] sm:$0x1] %v1524_v45  ;;  %v2606_v0 = vmul.f32 %v9197_v35, %v9193_v30  ;;  %v9931_v30 = vld [vmem:[#allocation2 + $0x8] sm:$0xff] }
 0x41d   : > { %v9199_v51 = vpop.eup %9198 }
 0x41e   : > { %v9201_v56 = vpop.eup %9200  ;;  %v2608_v57 = vmul.f32 %v9199_v51, %v9195_v54 }
 0x41f   : > { %v9203_v52 = vpop.eup %9202 }
 0x420   : > { %8306 = vmatprep.subr.mxu1 %v2608_v57  ;;  %v2607_v55 = vmul.f32 %v9203_v52, %v9201_v56  ;;  %v9205_v61 = vpop.eup %9204 }
 0x421   : > { %8307 = vmatpush3.msra.mxu1 %v2608_v57  ;;  %v9207_v9 = vpop.eup %9206 }
 0x422   : > { %8308 = vmatprep.subr.mxu1 %v2607_v55  ;;  %v2605_v10 = vmul.f32 %v9207_v9, %v9205_v61 }
 0x423   : > { %8309 = vmatpush3.msra.mxu1 %v2607_v55 }
 0x424   : > { %8310 = vmatprep.subr.mxu1 %v2606_v0 }
 0x425   : > { %8311 = vmatpush3.msra.mxu1 %v2606_v0 }
 0x426   : > { %8312 = vmatprep.subr.mxu1 %v2605_v10 }
 0x427   : > { %8313 = vmatpush3.msra.mxu1 %v2605_v10 }
 0x428   : > { %8315 = vmatmul.mubr.msk.f32.vlgmr.msra.gmra.mxu1 %vm1069_vm2, %v10827_v12  ;;  %8351 = vmatprep.subr.mxu1 %v2608_v57 }
 0x429   : > { %8352 = vmatpush3.msra.mxu1 %v2608_v57  ;;  %8317 = vmatprep.mubr.msk.f32.mxu1 %vm1069_vm2, %v10832_v50 }
 0x42a   : > { %8353 = vmatprep.subr.mxu1 %v2607_v55 }
 0x42b   : > { %8354 = vmatpush3.msra.mxu1 %v2607_v55 }
 0x42c   : > { %8318 = vmatmul.mubr.msk.f32.gmra.mxu1 %vm1069_vm2, %v10841_v13  ;;  %8355 = vmatprep.subr.mxu1 %v2606_v0 }
 0x42d   : > { %8356 = vmatpush3.msra.mxu1 %v2606_v0  ;;  %8320 = vmatprep.mubr.msk.f32.mxu1 %vm1069_vm2, %v10846_v15 }
 0x42e   : > { %8357 = vmatprep.subr.mxu1 %v2605_v10 }
 0x42f   : > { %8358 = vmatpush3.msra.mxu1 %v2605_v10 }
 0x430   : > { %8321 = vmatmul.mubr.msk.f32.gmra.mxu1 %vm1069_vm2, %v10855_v6  ;;  %8359 = vmatprep.subr.mxu1 %v10864_v19 }
 0x431   : > { %8360 = vmatpush3.msra.mxu1 %v10864_v19  ;;  %8323 = vmatprep.mubr.msk.f32.mxu1 %vm1069_vm2, %v10860_v18 }
 0x432   : > { %8427 = vmatprep.subr.mxu1 %v10864_v19 }
 0x434   : > { %8324 = vmatmul.mubr.msk.f32.gmra.mxu1 %vm1069_vm2, %v10873_v22 }
 0x435   : > { %8326 = vmatprep.mubr.msk.f32.mxu1 %vm1069_vm2, %v10879_v24 }
 0x438   : > { %8327 = vmatmul.mubr.msk.f32.gmra.mxu1 %vm1069_vm2, %v10888_v37 }
 0x439   : > { %8329 = vmatprep.mubr.msk.f32.mxu1 %vm1069_vm2, %v10893_v38 }
 0x43c   : > { %8330 = vmatmul.mubr.msk.f32.gmra.mxu1 %vm1069_vm2, %v10902_v1 }
 0x43d   : > { %8332 = vmatprep.mubr.msk.f32.mxu1 %vm1069_vm2, %v10907_v39 }
 0x440   : > { %8333 = vmatmul.mubr.msk.f32.gmra.mxu1 %vm1069_vm2, %v10916_v40 }
 0x441   : > { %8335 = vmatprep.mubr.msk.f32.mxu1 %vm1069_vm2, %v10921_v46 }
 0x444   : > { %8336 = vmatmul.mubr.msk.f32.gmra.mxu1 %vm1069_vm2, %v10930_v2 }
 0x445   : > { %8361 = vmatprep.mubr.msk.f32.mxu1 %vm763_vm1, %v10935_v42 }
 0x448   : > { %8362 = vmatmul.mubr.msk.f32.vlgmr.msra.gmra.mxu1 %vm763_vm1, %v10944_v62 }
 0x449   : > { %8428 = vmatpush3.msra.mxu1 %v10864_v19  ;;  %8364 = vmatprep.mubr.msk.f32.mxu1 %vm763_vm1, %v10949_v59 }
 0x44c   : > { %8365 = vmatmul.mubr.msk.f32.gmra.mxu1 %vm763_vm1, %v10959_v41 }
 0x44d   : > { %8367 = vmatprep.mubr.msk.f32.mxu1 %vm763_vm1, %v10964_v44 }
 0x450   : > { %8368 = vmatmul.mubr.msk.f32.gmra.mxu1 %vm763_vm1, %v10973_v14 }
 0x451   : > { %8370 = vmatprep.mubr.msk.f32.mxu1 %vm763_vm1, %v10978_v43 }
 0x454   : > { %8371 = vmatmul.mubr.msk.f32.gmra.mxu1 %vm763_vm1, %v10987_v58 }
 0x455   : > { %8373 = vmatprep.mubr.msk.f32.mxu1 %vm763_vm1, %v10992_v49 }
 0x458   : > { %8374 = vmatmul.mubr.msk.f32.gmra.mxu1 %vm763_vm1, %v11001_v31 }
 0x459   : > { %8376 = vmatprep.mubr.msk.f32.mxu1 %vm763_vm1, %v11006_v25 }
 0x45c   : > { %8377 = vmatmul.mubr.msk.f32.gmra.mxu1 %vm763_vm1, %v11015_v11 }
 0x45d   : > { %8379 = vmatprep.mubr.msk.f32.mxu1 %vm763_vm1, %v11020_v16 }
 0x460   : > { %8380 = vmatmul.mubr.msk.f32.gmra.mxu1 %vm763_vm1, %v11029_v4 }
 0x461   : > { %8382 = vmatprep.mubr.msk.f32.mxu1 %vm763_vm1, %v11034_v53 }
 0x464   : > { %8383 = vmatmul.mubr.msk.f32.gmra.mxu1 %vm763_vm1, %v11043_v63 }
 0x465   : > { %8437 = vmatprep.mubr.msk.f32.mxu1 %vm763_vm1, %v2914_v33 }
 0x4bf   : > { %v8261_v45 = vpop.f32.mrf.mxu1 }
 0x4c0   : > { %v2272_v54 = vmul.f32 %v9931_v30, %v8261_v45 }
 0x4c1   : > { %v2212_v35 = vpop.f32.mrf.mxu1 }
 0x4c2   : > { %v2274_v51 = vrot.slane %v2272_v54, 1  ;;  %v2221_v56 = vmul.f32 %v2212_v35, %v2212_v35  ;;  %v2277_v52 = vrot.slane %v2272_v54, 2  ;;  %v2280_v9 = vrot.slane %v2272_v54, 3 }
 0x4c3   : > { %v2283_v17 = vrot.slane %v2272_v54, 4 }
 0x4c4   : > { %v2276_v57 = vadd.f32 %v2274_v51, %v2272_v54  ;;  %v2223_v55 = vcombine.high %v2221_v56, %v2221_v56  ;;  %v2230_v61 = vrot.slane %v2221_v56, %v10254_v27 }
 0x4c6   : > { %v2279_v0 = vadd.f32 %v2277_v52, %v2276_v57  ;;  %v2237_v10 = vrot.slane %v2223_v55, %v10254_v27  ;;  %v2238_v29 = vcombine.high %v2230_v61, %v2230_v61  ;;  %v2245_v23 = vrot.slane %v2230_v61, %v10254_v27  ;;  %7281 = vst.sshfl [vmem:[#allocation3 + $0x1] sm:$0x1 pattern:$0x73625140] %v2230_v61 }
 0x4c8   : > { %v2282_v33 = vadd.f32 %v2280_v9, %v2279_v0  ;;  %v2259_v45 = vrot.slane %v2238_v29, %v10254_v27  ;;  %v2260_v30 = vcombine.high %v2245_v23, %v2245_v23  ;;  %7282 = vst.sshfl [vmem:[#allocation3 + $0x9] sm:$0x1 pattern:$0x73625140] %v2238_v29 }
 0x4c9   : > { %7283 = vst.sshfl [vmem:[#allocation3 + $0x21] sm:$0x1 pattern:$0x73625140] %v2237_v10 }
 0x4ca   : > { %v11056_v35 = vadd.f32 %v2283_v17, %v2282_v33  ;;  %v2261_v51 = vcombine.high %v2259_v45, %v2259_v45  ;;  %2269 = vst [vmem:[#allocation3 + $0x11] sm:$0x1] %v2260_v30 }
 0x4cc   : > { %2286 = vrot.lane.b32.xlu1 %v11056_v35, %s10096_s24  ;;  %2270 = vst [vmem:[#allocation3 + $0x19] sm:$0x1] %v2261_v51 }
 0x4e8   : > { %v8316_v56 = vpop.f32.mrf.mxu1 }
 0x4e9   : > { %v7329_v57 = vmul.f32 -1.442695, %v8316_v56 }
 0x4ea   : > { %v2739_v52 = vpop.f32.mrf.mxu1 }
 0x4eb   : > { %9208 = vpow2.f32 %v7329_v57  ;;  %v7328_v55 = vmul.f32 -1.442695, %v2739_v52 }
 0x4ec   : > { %v8319_v61 = vpop.f32.mrf.mxu1 }
 0x4ed   : > { %9210 = vpow2.f32 %v7328_v55  ;;  %v7331_v54 = vmul.f32 -1.442695, %v8319_v61 }
 0x4ee   : > { %v2749_v0 = vpop.f32.mrf.mxu1 }
 0x4ef   : > { %9212 = vpow2.f32 %v7331_v54  ;;  %v7330_v23 = vmul.f32 -1.442695, %v2749_v0 }
 0x4f0   : > { %v8322_v29 = vpop.f32.mrf.mxu1 }
 0x4f1   : > { %9214 = vpow2.f32 %v7330_v23  ;;  %v7333_v17 = vmul.f32 -1.442695, %v8322_v29 }
 0x4f2   : > { %v2759_v9 = vpop.f32.mrf.mxu1 }
 0x4f3   : > { %9216 = vpow2.f32 %v7333_v17  ;;  %v7332_v10 = vmul.f32 -1.442695, %v2759_v9 }
 0x4f4   : > { %v8325_v33 = vpop.f32.mrf.mxu1 }
 0x4f5   : > { %9218 = vpow2.f32 %v7332_v10  ;;  %v7335_v45 = vmul.f32 -1.442695, %v8325_v33 }
 0x4f6   : > { %v2769_v30 = vpop.f32.mrf.mxu1 }
 0x4f7   : > { %9220 = vpow2.f32 %v7335_v45  ;;  %v7334_v51 = vmul.f32 -1.442695, %v2769_v30 }
 0x4f8   : > { %v9209_v56 = vpop.eup %9208  ;;  %v8328_v57 = vpop.f32.mrf.mxu1 }
 0x4f9   : > { %v2831_v52 = vadd.f32 1.0, %v9209_v56  ;;  %9222 = vpow2.f32 %v7334_v51 }
 0x4fa   : > { %v9211_v55 = vpop.eup %9210  ;;  %v2779_v61 = vpop.f32.mrf.mxu1  ;;  %9224 = vtanh.f32 %v8328_v57 }
 0x4fb   : > { %v2830_v54 = vadd.f32 1.0, %v9211_v55  ;;  %9226 = vrcp.f32 %v2831_v52 }
 0x4fc   : > { %v9213_v0 = vpop.eup %9212  ;;  %v8331_v23 = vpop.f32.mrf.mxu1  ;;  %9228 = vtanh.f32 %v2779_v61 }
 0x4fd   : > { %v2833_v29 = vadd.f32 1.0, %v9213_v0  ;;  %9230 = vrcp.f32 %v2830_v54 }
 0x4fe   : > { %v9215_v17 = vpop.eup %9214  ;;  %v2789_v9 = vpop.f32.mrf.mxu1  ;;  %9232 = vtanh.f32 %v8331_v23 }
 0x4ff   : > { %v2832_v33 = vadd.f32 1.0, %v9215_v17  ;;  %9234 = vrcp.f32 %v2833_v29 }
 0x500   : > { %v9217_v10 = vpop.eup %9216  ;;  %v8334_v45 = vpop.f32.mrf.mxu1  ;;  %9236 = vtanh.f32 %v2789_v9 }
 0x501   : > { %v2855_v30 = vadd.f32 1.0, %v9217_v10  ;;  %v7337_v51 = vmul.f32 -1.442695, %v8334_v45 }
 0x502   : > { %v9219_v56 = vpop.eup %9218  ;;  %v2799_v8 = vpop.f32.mrf.mxu1 }
 0x503   : > { %9238 = vrcp.f32 %v2855_v30  ;;  %v2854_v55 = vadd.f32 1.0, %v9219_v56  ;;  %v7336_v17 = vmul.f32 -1.442695, %v2799_v8 }
 0x504   : > { %v9221_v57 = vpop.eup %9220  ;;  %9240 = vrcp.f32 %v2832_v33  ;;  %v8337_v52 = vpop.f32.mrf.mxu1 }
 0x505   : > { %9242 = vrcp.f32 %v2854_v55  ;;  %v2857_v0 = vadd.f32 1.0, %v9221_v57  ;;  %v7339_v61 = vmul.f32 -1.442695, %v8337_v52 }
 0x506   : > { %v9223_v26 = vpop.eup %9222  ;;  %9244 = vpow2.f32 %v7337_v51  ;;  %v2809_v54 = vpop.f32.mrf.mxu1 }
 0x507   : > { %9246 = vrcp.f32 %v2857_v0  ;;  %v2856_v23 = vadd.f32 1.0, %v9223_v26  ;;  %v7338_v29 = vmul.f32 -1.442695, %v2809_v54  ;;  %v9225_v9 = vpop.eup %9224 }
 0x508   : > { %9248 = vpow2.f32 %v7339_v61  ;;  %v8363_v10 = vpop.f32.mrf.mxu1  ;;  %v9227_v45 = vpop.eup %9226 }
 0x509   : > { %9250 = vrcp.f32 %v2856_v23  ;;  %v9229_v56 = vpop.eup %9228  ;;  %v7362_v55 = vmul.f32 -1.442695, %v8363_v10 }
 0x50a   : > { %9252 = vpow2.f32 %v7338_v29  ;;  %v3210_v30 = vpop.f32.mrf.mxu1  ;;  %v9231_v33 = vpop.eup %9230  ;;  %v2899_v29 = vmul.f32 %v9227_v45, %v9225_v9 }
 0x50b   : > { %9254 = vpow2.f32 %v7336_v17  ;;  %v9233_v52 = vpop.eup %9232  ;;  %v7361_v21 = vmul.f32 -1.442695, %v3210_v30  ;;  %v2898_v9 = vmul.f32 %v9231_v33, %v9229_v56 }
 0x50c   : > { %v8366_v57 = vpop.f32.mrf.mxu1  ;;  %v9235_v51 = vpop.eup %9234  ;;  %9256 = vpow2.f32 %v7362_v55 }
 0x50d   : > { %v7364_v27 = vmul.f32 -1.442695, %v8366_v57  ;;  %v9237_v26 = vpop.eup %9236  ;;  %9258 = vpow2.f32 %v7361_v21  ;;  %v2901_v25 = vmul.f32 %v9235_v51, %v9233_v52 }
 0x50e   : > { %v3220_v0 = vpop.f32.mrf.mxu1 }
 0x50f   : > { %v7363_v61 = vmul.f32 -1.442695, %v3220_v0  ;;  %9260 = vpow2.f32 %v7364_v27 }
 0x510   : > { %v9239_v8 = vpop.eup %9238  ;;  %v8369_v54 = vpop.f32.mrf.mxu1 }
 0x511   : > { %v9241_v63 = vpop.eup %9240  ;;  %v2895_v23 = vmul.f32 %v9239_v8, %v10769_v3  ;;  %v7366_v53 = vmul.f32 -1.442695, %v8369_v54 }
 0x512   : > { %v9243_v17 = vpop.eup %9242  ;;  %v3230_v10 = vpop.f32.mrf.mxu1  ;;  %v2900_v54 = vmul.f32 %v9241_v63, %v9237_v26 }
 0x513   : > { %v9245_v4 = vpop.eup %9244  ;;  %v11061_v16 = vadd.f32 %v2899_v29, %v2895_v23  ;;  %9262 = vpow2.f32 %v7366_v53  ;;  %v2894_v55 = vmul.f32 %v9243_v17, %v10777_v36 }
 0x514   : > { %v9247_v30 = vpop.eup %9246  ;;  %9264 = vpow2.f32 %v7363_v61  ;;  %v8372_v57 = vpop.f32.mrf.mxu1  ;;  %v2883_v23 = vadd.f32 1.0, %v9245_v4 }
 0x515   : > { %v9249_v11 = vpop.eup %9248  ;;  %v2897_v0 = vmul.f32 %v9247_v30, %v10774_v48  ;;  %9266 = vtanh.f32 %v11061_v16  ;;  %v11069_v17 = vadd.f32 %v2898_v9, %v2894_v55 }
 0x516   : > { %v9251_v3 = vpop.eup %9250  ;;  %v2885_v21 = vadd.f32 1.0, %v9249_v11  ;;  %v3240_v45 = vpop.f32.mrf.mxu1  ;;  %v7365_v11 = vmul.f32 -1.442695, %v3230_v10 }
 0x517   : > { %v9253_v8 = vpop.eup %9252  ;;  %v11066_v27 = vadd.f32 %v2901_v25, %v2897_v0  ;;  %v2896_v53 = vmul.f32 %v9251_v3, %v10780_v60  ;;  %v7368_v60 = vmul.f32 -1.442695, %v8372_v57  ;;  %v7367_v52 = vmul.f32 -1.442695, %v3240_v45 }
 0x518   : > { %v9255_v61 = vpop.eup %9254  ;;  %9268 = vrcp.f32 %v2885_v21  ;;  %v2884_v29 = vadd.f32 1.0, %v9253_v8  ;;  %v8375_v36 = vpop.f32.mrf.mxu1 }
 0x519   : > { %9270 = vtanh.f32 %v11066_v27  ;;  %v11072_v48 = vadd.f32 %v2900_v54, %v2896_v53  ;;  %v2882_v25 = vadd.f32 1.0, %v9255_v61  ;;  %v9257_v33 = vpop.eup %9256 }
 0x51a   : > { %9272 = vrcp.f32 %v2884_v29  ;;  %v3250_v56 = vpop.f32.mrf.mxu1  ;;  %v9259_v4 = vpop.eup %9258  ;;  %v3302_v55 = vadd.f32 1.0, %v9257_v33 }
 0x51b   : > { %9274 = vtanh.f32 %v11072_v48  ;;  %v3301_v3 = vadd.f32 1.0, %v9259_v4 }
 0x51c   : > { %9276 = vrcp.f32 %v2883_v23  ;;  %v8378_v63 = vpop.f32.mrf.mxu1  ;;  %v9261_v26 = vpop.eup %9260 }
 0x51d   : > { %9278 = vtanh.f32 %v11069_v17  ;;  %v3304_v9 = vadd.f32 1.0, %v9261_v26 }
 0x51e   : > { %9280 = vpow2.f32 %v7365_v11  ;;  %v3260_v51 = vpop.f32.mrf.mxu1 }
 0x51f   : > { %9282 = vrcp.f32 %v2882_v25 }
 0x520   : > { %v9263_v30 = vpop.eup %9262  ;;  %9284 = vpow2.f32 %v7368_v60  ;;  %v8381_v10 = vpop.f32.mrf.mxu1 }
 0x521   : > { %v9265_v0 = vpop.eup %9264  ;;  %9286 = vpow2.f32 %v7367_v52  ;;  %v3326_v57 = vadd.f32 1.0, %v9263_v30  ;;  %v7370_v4 = vmul.f32 -1.442695, %v8381_v10 }
 0x522   : > { %v3270_v21 = vpop.f32.mrf.mxu1  ;;  %v9267_v8 = vpop.eup %9266  ;;  %9288 = vrcp.f32 %v3302_v55  ;;  %v3303_v53 = vadd.f32 1.0, %v9265_v0 }
 0x523   : > { %9290 = vrcp.f32 %v3301_v3 }
 0x524   : > { %v8384_v54 = vpop.f32.mrf.mxu1  ;;  %9292 = vrcp.f32 %v3304_v9 }
 0x525   : > { %v9269_v61 = vpop.eup %9268  ;;  %9294 = vrcp.f32 %v3326_v57  ;;  %v7372_v25 = vmul.f32 -1.442695, %v8384_v54 }
 0x526   : > { %v9271_v45 = vpop.eup %9270  ;;  %9296 = vrcp.f32 %v3303_v53  ;;  %v3280_v60 = vpop.f32.mrf.mxu1 }
 0x527   : > { %v9273_v23 = vpop.eup %9272  ;;  %v2913_v29 = vmul.f32 %v9271_v45, %v9269_v61  ;;  %9298 = vtanh.f32 %v8375_v36  ;;  %v7371_v55 = vmul.f32 -1.442695, %v3280_v60 }
 0x528   : > { %v9275_v11 = vpop.eup %9274  ;;  %9300 = vtanh.f32 %v3250_v56  ;;  %v11079_v56 = vld [vmem:[%s12029_s5 + $0x8] sm:$0xff] }
 0x529   : > { %v9277_v33 = vpop.eup %9276  ;;  %8340 = vmatprep.subr.mxu0 %v2913_v29  ;;  %v2912_v52 = vmul.f32 %v9275_v11, %v9273_v23  ;;  %9302 = vtanh.f32 %v8378_v63 }
 0x52a   : > { %v9279_v26 = vpop.eup %9278  ;;  %8341 = vmatpush3.msra.mxu0 %v2913_v29  ;;  %v2911_v0 = vmul.f32 %v9277_v33, %v9267_v8  ;;  %9304 = vpow2.f32 %v7372_v25  ;;  %v7369_v8 = vmul.f32 -1.442695, %v3270_v21 }
 0x52b   : > { %v9281_v30 = vpop.eup %9280  ;;  %8342 = vmatprep.subr.mxu0 %v2912_v52  ;;  %9306 = vpow2.f32 %v7370_v4 }
 0x52c   : > { %v9283_v3 = vpop.eup %9282  ;;  %v3325_v9 = vadd.f32 1.0, %v9281_v30  ;;  %8343 = vmatpush3.msra.mxu0 %v2912_v52 }
 0x52d   : > { %v9285_v57 = vpop.eup %9284  ;;  %8344 = vmatprep.subr.mxu0 %v2911_v0  ;;  %v2910_v53 = vmul.f32 %v9283_v3, %v9279_v26 }
 0x52e   : > { %9308 = vrcp.f32 %v3325_v9  ;;  %v3328_v36 = vadd.f32 1.0, %v9285_v57  ;;  %8345 = vmatpush3.msra.mxu0 %v2911_v0  ;;  %v9287_v63 = vpop.eup %9286 }
 0x52f   : > { %9310 = vpow2.f32 %v7371_v55  ;;  %8346 = vmatprep.subr.mxu0 %v2910_v53  ;;  %v3327_v10 = vadd.f32 1.0, %v9287_v63  ;;  %v9289_v54 = vpop.eup %9288 }
 0x530   : > { %9312 = vrcp.f32 %v3328_v36  ;;  %8347 = vmatpush3.msra.mxu0 %v2910_v53  ;;  %v9291_v61 = vpop.eup %9290 }
 0x531   : > { %9314 = vtanh.f32 %v3260_v51  ;;  %8349 = vmatmul.mubr.msk.f32.vlgmr.msra.gmra.mxu0 %vm763_vm1, %v11079_v56  ;;  %8385 = vmatprep.subr.mxu0 %v10864_v19  ;;  %v9293_v45 = vpop.eup %9292 }
 0x532   : > { %9316 = vrcp.f32 %v3327_v10  ;;  %8386 = vmatpush3.msra.mxu0 %v10864_v19  ;;  %8403 = vmatprep.mubr.msk.f32.mxu0 %vm1069_vm2, %v10787_v5  ;;  %v9295_v23 = vpop.eup %9294 }
 0x533   : > { %8387 = vmatprep.subr.mxu0 %v2913_v29  ;;  %9318 = vpow2.f32 %v7369_v8  ;;  %v9297_v21 = vpop.eup %9296  ;;  %v3366_v25 = vmul.f32 %v9295_v23, %v10796_v20 }
 0x534   : > { %8388 = vmatpush3.msra.mxu0 %v2913_v29  ;;  %v9299_v51 = vpop.eup %9298 }
 0x535   : > { %8389 = vmatprep.subr.mxu0 %v2912_v52  ;;  %v9301_v11 = vpop.eup %9300  ;;  %v3370_v19 = vmul.f32 %v9299_v51, %v9289_v54 }
 0x536   : > { %8390 = vmatpush3.msra.mxu0 %v2912_v52  ;;  %v9303_v60 = vpop.eup %9302 }
 0x537   : > { %8391 = vmatprep.subr.mxu0 %v2911_v0  ;;  %v9305_v33 = vpop.eup %9304  ;;  %v11088_v26 = vadd.f32 %v3370_v19, %v3366_v25  ;;  %v3372_v57 = vmul.f32 %v9303_v60, %v9293_v45 }
 0x538   : > { %8392 = vmatpush3.msra.mxu0 %v2911_v0  ;;  %v9307_v4 = vpop.eup %9306  ;;  %v3356_v29 = vadd.f32 1.0, %v9305_v33  ;;  %v2288_v0 = vmul.f32 %v11056_v35, %v11056_v35 }
 0x539   : > { %8393 = vmatprep.subr.mxu0 %v2910_v53  ;;  %v3354_v3 = vadd.f32 1.0, %v9307_v4  ;;  %9320 = vtanh.f32 %v11088_v26 }
 0x53a   : > { %8394 = vmatpush3.msra.mxu0 %v2910_v53  ;;  %v3369_v53 = vmul.f32 %v9301_v11, %v9291_v61  ;;  %9322 = vrcp.f32 %v3356_v29 }
 0x53b   : > { %v9309_v5 = vpop.eup %9308  ;;  %9324 = vrcp.f32 %v3354_v3 }
 0x53c   : > { %v9311_v30 = vpop.eup %9310  ;;  %v3365_v52 = vmul.f32 %v9309_v5, %v10813_v34 }
 0x53d   : > { %v9313_v55 = vpop.eup %9312  ;;  %v3355_v10 = vadd.f32 1.0, %v9311_v30 }
 0x53e   : > { %v9315_v9 = vpop.eup %9314  ;;  %v3368_v20 = vmul.f32 %v9313_v55, %v10809_v47  ;;  %v2287_v36 = vpop.permute.xlu1 %2286  ;;  %v11098_v45 = vadd.f32 %v3369_v53, %v3365_v52 }
 0x53f   : > { %v9317_v63 = vpop.eup %9316  ;;  %v2289_v8 = vmul.f32 %v2287_v36, %v2287_v36  ;;  %v3371_v51 = vmul.f32 %v9315_v9, %v9297_v21 }
 0x540   : > { %v11095_v54 = vadd.f32 %v3372_v57, %v3368_v20  ;;  %v3367_v23 = vmul.f32 %v9317_v63, %v10816_v28  ;;  %v9319_v34 = vpop.eup %9318 }
 0x541   : > { %v2290_v47 = vsub.f32 %v2288_v0, %v2289_v8  ;;  %v3353_v11 = vadd.f32 1.0, %v9319_v34 }
 0x542   : > { %9326 = vtanh.f32 %v11095_v54  ;;  %v11101_v35 = vadd.f32 %v3371_v51, %v3367_v23 }
 0x543   : > { %9328 = vrcp.f32 %v3355_v10  ;;  %v2291_v61 = vmul.f32 0.125, %v2290_v47 }
 0x544   : > { %9330 = vtanh.f32 %v11101_v35 }
 0x545   : > { %v2299_v25 = vmul.f32 %v2291_v61, %v10818_v32  ;;  %9332 = vtanh.f32 %v11098_v45 }
 0x546   : > { %9334 = vrcp.f32 %v3353_v11  ;;  %v9321_v21 = vpop.eup %9320 }
 0x547   : > { %v2300_v28 = vsub.f32 %v10355_v7, %v2299_v25  ;;  %v9323_v60 = vpop.eup %9322  ;;  %v11118_v7 = vld [vmem:[#allocation2 + $0x20] sm:$0xff] }
 0x548   : > { %v9325_v33 = vpop.eup %9324 }
 0x549   : > { %2301 = vst [vmem:[%s10251_s19 + $0x1] sm:$0x1] %v2300_v28  ;;  %v3382_v3 = vmul.f32 %v9325_v33, %v9321_v21 }
 0x54f   : > { %v9327_v19 = vpop.eup %9326 }
 0x550   : > { %v9329_v4 = vpop.eup %9328  ;;  %v3384_v5 = vmul.f32 %v9327_v19, %v9323_v60 }
 0x551   : > { %v9331_v30 = vpop.eup %9330 }
 0x552   : > { %8395 = vmatprep.subr.mxu0 %v3384_v5  ;;  %v3383_v29 = vmul.f32 %v9331_v30, %v9329_v4  ;;  %v9333_v55 = vpop.eup %9332 }
 0x553   : > { %8396 = vmatpush3.msra.mxu0 %v3384_v5  ;;  %v9335_v9 = vpop.eup %9334 }
 0x554   : > { %8397 = vmatprep.subr.mxu0 %v3383_v29  ;;  %v3381_v52 = vmul.f32 %v9335_v9, %v9333_v55 }
 0x555   : > { %8398 = vmatpush3.msra.mxu0 %v3383_v29 }
 0x556   : > { %8399 = vmatprep.subr.mxu0 %v3382_v3 }
 0x557   : > { %8400 = vmatpush3.msra.mxu0 %v3382_v3 }
 0x558   : > { %8401 = vmatprep.subr.mxu0 %v3381_v52 }
 0x559   : > { %8402 = vmatpush3.msra.mxu0 %v3381_v52 }
 0x55a   : > { %8404 = vmatmul.mubr.msk.f32.vlgmr.msra.gmra.mxu0 %vm1069_vm2, %v10827_v12  ;;  %8440 = vmatprep.subr.mxu0 %v3384_v5  ;;  %v12061_v12 = vld [vmem:[#allocation21_spill] sm:$0xff] }
 0x55b   : > { %8441 = vmatpush3.msra.mxu0 %v3384_v5  ;;  %8406 = vmatprep.mubr.msk.f32.mxu0 %vm1069_vm2, %v10832_v50  ;;  %v12062_v50 = vld [vmem:[#allocation22_spill] sm:$0xff] }
 0x55c   : > { %8442 = vmatprep.subr.mxu0 %v3383_v29 }
 0x55d   : > { %8443 = vmatpush3.msra.mxu0 %v3383_v29 }
 0x55e   : > { %8407 = vmatmul.mubr.msk.f32.gmra.mxu0 %vm1069_vm2, %v10841_v13  ;;  %8444 = vmatprep.subr.mxu0 %v3382_v3  ;;  %v12063_v13 = vld [vmem:[#allocation23_spill] sm:$0xff] }
 0x55f   : > { %8445 = vmatpush3.msra.mxu0 %v3382_v3  ;;  %8409 = vmatprep.mubr.msk.f32.mxu0 %vm1069_vm2, %v10846_v15  ;;  %v12064_v15 = vld [vmem:[#allocation24_spill] sm:$0xff] }
 0x560   : > { %8446 = vmatprep.subr.mxu0 %v3381_v52 }
 0x561   : > { %8447 = vmatpush3.msra.mxu0 %v3381_v52 }
 0x562   : > { %8410 = vmatmul.mubr.msk.f32.gmra.mxu0 %vm1069_vm2, %v10855_v6  ;;  %8448 = vmatprep.subr.mxu0 %v11118_v7  ;;  %v12065_v6 = vld [vmem:[#allocation25_spill] sm:$0xff] }
 0x563   : > { %8449 = vmatpush3.msra.mxu0 %v11118_v7  ;;  %8412 = vmatprep.mubr.msk.f32.mxu0 %vm1069_vm2, %v10860_v18  ;;  %v12066_v18 = vld [vmem:[#allocation26_spill] sm:$0xff] }
 0x564   : > { %8516 = vmatprep.subr.mxu0 %v11118_v7 }
 0x566   : > { %8413 = vmatmul.mubr.msk.f32.gmra.mxu0 %vm1069_vm2, %v10873_v22 }
 0x567   : > { %8415 = vmatprep.mubr.msk.f32.mxu0 %vm1069_vm2, %v10879_v24  ;;  %v9933_v24 = vld [vmem:[#allocation2 + $0x10] sm:$0xff] }
 0x56a   : > { %8416 = vmatmul.mubr.msk.f32.gmra.mxu0 %vm1069_vm2, %v10888_v37 }
 0x56b   : > { %8418 = vmatprep.mubr.msk.f32.mxu0 %vm1069_vm2, %v10893_v38 }
 0x56e   : > { %8419 = vmatmul.mubr.msk.f32.gmra.mxu0 %vm1069_vm2, %v10902_v1 }
 0x56f   : > { %8421 = vmatprep.mubr.msk.f32.mxu0 %vm1069_vm2, %v10907_v39 }
 0x572   : > { %8422 = vmatmul.mubr.msk.f32.gmra.mxu0 %vm1069_vm2, %v10916_v40 }
 0x573   : > { %8424 = vmatprep.mubr.msk.f32.mxu0 %vm1069_vm2, %v10921_v46 }
 0x576   : > { %8425 = vmatmul.mubr.msk.f32.gmra.mxu0 %vm1069_vm2, %v10930_v2 }
 0x577   : > { %8450 = vmatprep.mubr.msk.f32.mxu0 %vm763_vm1, %v10935_v42  ;;  %v12067_v42 = vld [vmem:[#allocation14_spill] sm:$0xff] }
 0x57a   : > { %8451 = vmatmul.mubr.msk.f32.vlgmr.msra.gmra.mxu0 %vm763_vm1, %v10944_v62 }
 0x57b   : > { %8517 = vmatpush3.msra.mxu0 %v11118_v7  ;;  %8453 = vmatprep.mubr.msk.f32.mxu0 %vm763_vm1, %v10949_v59 }
 0x57e   : > { %8454 = vmatmul.mubr.msk.f32.gmra.mxu0 %vm763_vm1, %v10959_v41 }
 0x57f   : > { %8456 = vmatprep.mubr.msk.f32.mxu0 %vm763_vm1, %v10964_v44 }
 0x582   : > { %8457 = vmatmul.mubr.msk.f32.gmra.mxu0 %vm763_vm1, %v10973_v14 }
 0x583   : > { %8459 = vmatprep.mubr.msk.f32.mxu0 %vm763_vm1, %v10978_v43 }
 0x586   : > { %8460 = vmatmul.mubr.msk.f32.gmra.mxu0 %vm763_vm1, %v10987_v58 }
 0x587   : > { %8462 = vmatprep.mubr.msk.f32.mxu0 %vm763_vm1, %v10992_v49 }
 0x58a   : > { %8463 = vmatmul.mubr.msk.f32.gmra.mxu0 %vm763_vm1, %v11001_v31 }
 0x58b   : > { %8465 = vmatprep.mubr.msk.f32.mxu0 %vm763_vm1, %v12061_v12 }
 0x58e   : > { %8466 = vmatmul.mubr.msk.f32.gmra.mxu0 %vm763_vm1, %v12062_v50 }
 0x58f   : > { %8468 = vmatprep.mubr.msk.f32.mxu0 %vm763_vm1, %v12063_v13 }
 0x592   : > { %8469 = vmatmul.mubr.msk.f32.gmra.mxu0 %vm763_vm1, %v12064_v15 }
 0x593   : > { %8471 = vmatprep.mubr.msk.f32.mxu0 %vm763_vm1, %v12065_v6 }
 0x596   : > { %8472 = vmatmul.mubr.msk.f32.gmra.mxu0 %vm763_vm1, %v12066_v18 }
 0x5f1   : > { %v8350_v22 = vpop.f32.mrf.mxu0 }
 0x5f2   : > { %v3048_v37 = vmul.f32 %v9933_v24, %v8350_v22 }
 0x5f3   : > { %v2988_v38 = vpop.f32.mrf.mxu0 }
 0x5f4   : > { %v3050_v1 = vrot.slane %v3048_v37, 1  ;;  %v2997_v39 = vmul.f32 %v2988_v38, %v2988_v38  ;;  %v3053_v46 = vrot.slane %v3048_v37, 2  ;;  %v3056_v41 = vrot.slane %v3048_v37, 3 }
 0x5f5   : > { %v3059_v49 = vrot.slane %v3048_v37, 4 }
 0x5f6   : > { %v3052_v40 = vadd.f32 %v3050_v1, %v3048_v37  ;;  %v2999_v2 = vcombine.high %v2997_v39, %v2997_v39  ;;  %v3006_v62 = vrot.slane %v2997_v39, %v12067_v42 }
 0x5f8   : > { %v3055_v59 = vadd.f32 %v3053_v46, %v3052_v40  ;;  %v3013_v44 = vrot.slane %v2999_v2, %v12067_v42  ;;  %v3014_v14 = vcombine.high %v3006_v62, %v3006_v62  ;;  %v3021_v43 = vrot.slane %v3006_v62, %v12067_v42  ;;  %7342 = vst.sshfl [vmem:[#allocation3 + $0x2] sm:$0x1 pattern:$0x73625140] %v3006_v62 }
 0x5fa   : > { %v3058_v58 = vadd.f32 %v3056_v41, %v3055_v59  ;;  %v3035_v31 = vrot.slane %v3014_v14, %v12067_v42  ;;  %v3036_v20 = vcombine.high %v3021_v43, %v3021_v43  ;;  %7343 = vst.sshfl [vmem:[#allocation3 + $0xa] sm:$0x1 pattern:$0x73625140] %v3014_v14 }
 0x5fb   : > { %7344 = vst.sshfl [vmem:[#allocation3 + $0x22] sm:$0x1 pattern:$0x73625140] %v3013_v44 }
 0x5fc   : > { %v11180_v57 = vadd.f32 %v3059_v49, %v3058_v58  ;;  %v3037_v36 = vcombine.high %v3035_v31, %v3035_v31  ;;  %3045 = vst [vmem:[#allocation3 + $0x12] sm:$0x1] %v3036_v20 }
 0x5fe   : > { %3062 = vrot.lane.b32.xlu0 %v11180_v57, %s10096_s24  ;;  %3046 = vst [vmem:[#allocation3 + $0x1a] sm:$0x1] %v3037_v36 }
 0x61a   : > { %v8405_v0 = vpop.f32.mrf.mxu0 }
 0x61b   : > { %v7390_v63 = vmul.f32 -1.442695, %v8405_v0 }
 0x61c   : > { %v3515_v53 = vpop.f32.mrf.mxu0 }
 0x61d   : > { %9336 = vpow2.f32 %v7390_v63  ;;  %v7389_v10 = vmul.f32 -1.442695, %v3515_v53 }
 0x61e   : > { %v8408_v8 = vpop.f32.mrf.mxu0 }
 0x61f   : > { %9338 = vpow2.f32 %v7389_v10  ;;  %v7392_v23 = vmul.f32 -1.442695, %v8408_v8 }
 0x620   : > { %v3525_v51 = vpop.f32.mrf.mxu0 }
 0x621   : > { %9340 = vpow2.f32 %v7392_v23  ;;  %v7391_v34 = vmul.f32 -1.442695, %v3525_v51 }
 0x622   : > { %v8411_v47 = vpop.f32.mrf.mxu0 }
 0x623   : > { %9342 = vpow2.f32 %v7391_v34  ;;  %v7394_v61 = vmul.f32 -1.442695, %v8411_v47 }
 0x624   : > { %v3535_v11 = vpop.f32.mrf.mxu0 }
 0x625   : > { %9344 = vpow2.f32 %v7394_v61  ;;  %v7393_v25 = vmul.f32 -1.442695, %v3535_v11 }
 0x626   : > { %v8414_v28 = vpop.f32.mrf.mxu0 }
 0x627   : > { %9346 = vpow2.f32 %v7393_v25  ;;  %v7396_v21 = vmul.f32 -1.442695, %v8414_v28 }
 0x628   : > { %v3545_v60 = vpop.f32.mrf.mxu0 }
 0x629   : > { %9348 = vpow2.f32 %v7396_v21  ;;  %v7395_v33 = vmul.f32 -1.442695, %v3545_v60 }
 0x62a   : > { %v9337_v19 = vpop.eup %9336  ;;  %v8417_v4 = vpop.f32.mrf.mxu0 }
 0x62b   : > { %v3607_v5 = vadd.f32 1.0, %v9337_v19  ;;  %9350 = vpow2.f32 %v7395_v33 }
 0x62c   : > { %v9339_v30 = vpop.eup %9338  ;;  %v3555_v29 = vpop.f32.mrf.mxu0  ;;  %9352 = vtanh.f32 %v8417_v4 }
 0x62d   : > { %v3606_v55 = vadd.f32 1.0, %v9339_v30  ;;  %9354 = vrcp.f32 %v3607_v5 }
 0x62e   : > { %v9341_v3 = vpop.eup %9340  ;;  %v8420_v9 = vpop.f32.mrf.mxu0  ;;  %9356 = vtanh.f32 %v3555_v29 }
 0x62f   : > { %v3609_v52 = vadd.f32 1.0, %v9341_v3  ;;  %9358 = vrcp.f32 %v3606_v55 }
 0x630   : > { %v9343_v12 = vpop.eup %9342  ;;  %v3565_v50 = vpop.f32.mrf.mxu0  ;;  %9360 = vtanh.f32 %v8420_v9 }
 0x631   : > { %v3608_v15 = vadd.f32 1.0, %v9343_v12  ;;  %9362 = vrcp.f32 %v3609_v52 }
 0x632   : > { %v9345_v13 = vpop.eup %9344  ;;  %v8423_v6 = vpop.f32.mrf.mxu0  ;;  %9364 = vtanh.f32 %v3565_v50 }
 0x633   : > { %v3631_v18 = vadd.f32 1.0, %v9345_v13  ;;  %v7398_v24 = vmul.f32 -1.442695, %v8423_v6 }
 0x634   : > { %v9347_v22 = vpop.eup %9346  ;;  %v3575_v37 = vpop.f32.mrf.mxu0 }
 0x635   : > { %9366 = vrcp.f32 %v3631_v18  ;;  %v3630_v38 = vadd.f32 1.0, %v9347_v22  ;;  %v7397_v41 = vmul.f32 -1.442695, %v3575_v37 }
 0x636   : > { %v9349_v1 = vpop.eup %9348  ;;  %9368 = vrcp.f32 %v3608_v15  ;;  %v8426_v39 = vpop.f32.mrf.mxu0 }
 0x637   : > { %9370 = vrcp.f32 %v3630_v38  ;;  %v3633_v40 = vadd.f32 1.0, %v9349_v1  ;;  %v7400_v46 = vmul.f32 -1.442695, %v8426_v39 }
 0x638   : > { %v9351_v2 = vpop.eup %9350  ;;  %9372 = vpow2.f32 %v7398_v24  ;;  %v3585_v62 = vpop.f32.mrf.mxu0 }
 0x639   : > { %9374 = vrcp.f32 %v3633_v40  ;;  %v3632_v59 = vadd.f32 1.0, %v9351_v2  ;;  %v7399_v44 = vmul.f32 -1.442695, %v3585_v62  ;;  %v9353_v43 = vpop.eup %9352 }
 0x63a   : > { %9376 = vpow2.f32 %v7400_v46  ;;  %v8452_v14 = vpop.f32.mrf.mxu0  ;;  %v9355_v58 = vpop.eup %9354 }
 0x63b   : > { %9378 = vrcp.f32 %v3632_v59  ;;  %v9357_v31 = vpop.eup %9356  ;;  %v7423_v36 = vmul.f32 -1.442695, %v8452_v14  ;;  %v3675_v28 = vmul.f32 %v9355_v58, %v9353_v43 }
 0x63c   : > { %9380 = vpow2.f32 %v7399_v44  ;;  %v3986_v49 = vpop.f32.mrf.mxu0  ;;  %v9359_v20 = vpop.eup %9358 }
 0x63d   : > { %9382 = vpow2.f32 %v7397_v41  ;;  %v9361_v63 = vpop.eup %9360  ;;  %v7422_v53 = vmul.f32 -1.442695, %v3986_v49  ;;  %v3674_v52 = vmul.f32 %v9359_v20, %v9357_v31 }
 0x63e   : > { %v8455_v0 = vpop.f32.mrf.mxu0  ;;  %v9363_v10 = vpop.eup %9362  ;;  %9384 = vpow2.f32 %v7423_v36 }
 0x63f   : > { %v7425_v8 = vmul.f32 -1.442695, %v8455_v0  ;;  %v9365_v51 = vpop.eup %9364  ;;  %9386 = vpow2.f32 %v7422_v53  ;;  %v3677_v9 = vmul.f32 %v9363_v10, %v9361_v63 }
 0x640   : > { %v3996_v23 = vpop.f32.mrf.mxu0 }
 0x641   : > { %v7424_v47 = vmul.f32 -1.442695, %v3996_v23  ;;  %9388 = vpow2.f32 %v7425_v8 }
 0x642   : > { %v9367_v34 = vpop.eup %9366  ;;  %v8458_v61 = vpop.f32.mrf.mxu0 }
 0x643   : > { %v9369_v11 = vpop.eup %9368  ;;  %v3671_v25 = vmul.f32 %v9367_v34, %v11061_v16  ;;  %v7427_v21 = vmul.f32 -1.442695, %v8458_v61 }
 0x644   : > { %v9371_v60 = vpop.eup %9370  ;;  %v4006_v33 = vpop.f32.mrf.mxu0  ;;  %v3676_v18 = vmul.f32 %v9369_v11, %v9365_v51 }
 0x645   : > { %v9373_v19 = vpop.eup %9372  ;;  %v11185_v4 = vadd.f32 %v3675_v28, %v3671_v25  ;;  %9390 = vpow2.f32 %v7427_v21  ;;  %v3670_v55 = vmul.f32 %v9371_v60, %v11069_v17  ;;  %v7426_v1 = vmul.f32 -1.442695, %v4006_v33 }
 0x646   : > { %v9375_v5 = vpop.eup %9374  ;;  %9392 = vpow2.f32 %v7424_v47  ;;  %v8461_v30 = vpop.f32.mrf.mxu0  ;;  %v3659_v24 = vadd.f32 1.0, %v9373_v19 }
 0x647   : > { %v9377_v29 = vpop.eup %9376  ;;  %v3673_v3 = vmul.f32 %v9375_v5, %v11066_v27  ;;  %9394 = vtanh.f32 %v11185_v4  ;;  %v11193_v38 = vadd.f32 %v3674_v52, %v3670_v55  ;;  %v11203_v52 = vld [vmem:[%s12028_s4] sm:$0xff] }
 0x648   : > { %v9379_v16 = vpop.eup %9378  ;;  %v3661_v12 = vadd.f32 1.0, %v9377_v29  ;;  %v4016_v50 = vpop.f32.mrf.mxu0 }
 0x649   : > { %v9381_v13 = vpop.eup %9380  ;;  %v11190_v15 = vadd.f32 %v3677_v9, %v3673_v3  ;;  %v3672_v6 = vmul.f32 %v9379_v16, %v11072_v48  ;;  %v7429_v48 = vmul.f32 -1.442695, %v8461_v30  ;;  %v7428_v59 = vmul.f32 -1.442695, %v4016_v50 }
 0x64a   : > { %v9383_v22 = vpop.eup %9382  ;;  %9396 = vrcp.f32 %v3661_v12  ;;  %v3660_v37 = vadd.f32 1.0, %v9381_v13  ;;  %v8464_v17 = vpop.f32.mrf.mxu0 }
 0x64b   : > { %9398 = vtanh.f32 %v11190_v15  ;;  %v11196_v27 = vadd.f32 %v3676_v18, %v3672_v6  ;;  %v3658_v40 = vadd.f32 1.0, %v9383_v22  ;;  %v9385_v2 = vpop.eup %9384 }
 0x64c   : > { %9400 = vrcp.f32 %v3660_v37  ;;  %v4026_v39 = vpop.f32.mrf.mxu0  ;;  %v9387_v62 = vpop.eup %9386  ;;  %v4078_v43 = vadd.f32 1.0, %v9385_v2 }
 0x64d   : > { %9402 = vtanh.f32 %v11196_v27  ;;  %v4077_v31 = vadd.f32 1.0, %v9387_v62 }
 0x64e   : > { %9404 = vrcp.f32 %v3659_v24  ;;  %v8467_v46 = vpop.f32.mrf.mxu0  ;;  %v9389_v44 = vpop.eup %9388 }
 0x64f   : > { %9406 = vtanh.f32 %v11193_v38  ;;  %v4080_v20 = vadd.f32 1.0, %v9389_v44 }
 0x650   : > { %9408 = vpow2.f32 %v7426_v1  ;;  %v4036_v41 = vpop.f32.mrf.mxu0 }
 0x651   : > { %9410 = vrcp.f32 %v3658_v40 }
 0x652   : > { %v9391_v14 = vpop.eup %9390  ;;  %9412 = vpow2.f32 %v7429_v48  ;;  %v8470_v58 = vpop.f32.mrf.mxu0 }
 0x653   : > { %v9393_v49 = vpop.eup %9392  ;;  %9414 = vpow2.f32 %v7428_v59  ;;  %v4102_v0 = vadd.f32 1.0, %v9391_v14  ;;  %v7431_v28 = vmul.f32 -1.442695, %v8470_v58 }
 0x654   : > { %v4046_v36 = vpop.f32.mrf.mxu0  ;;  %v9395_v63 = vpop.eup %9394  ;;  %9416 = vrcp.f32 %v4078_v43  ;;  %v4079_v53 = vadd.f32 1.0, %v9393_v49  ;;  %v3064_v49 = vmul.f32 %v11180_v57, %v11180_v57 }
 0x655   : > { %9418 = vrcp.f32 %v4077_v31  ;;  %v7430_v50 = vmul.f32 -1.442695, %v4046_v36 }
 0x656   : > { %v8473_v10 = vpop.f32.mrf.mxu0  ;;  %9420 = vrcp.f32 %v4080_v20 }
 0x657   : > { %v9397_v8 = vpop.eup %9396  ;;  %9422 = vrcp.f32 %v4102_v0  ;;  %v7433_v61 = vmul.f32 -1.442695, %v8473_v10 }
 0x658   : > { %v9399_v23 = vpop.eup %9398  ;;  %9424 = vrcp.f32 %v4079_v53  ;;  %v4056_v11 = vpop.f32.mrf.mxu0 }
 0x659   : > { %v9401_v51 = vpop.eup %9400  ;;  %v3689_v34 = vmul.f32 %v9399_v23, %v9397_v8  ;;  %9426 = vtanh.f32 %v8464_v17  ;;  %v7432_v19 = vmul.f32 -1.442695, %v4056_v11 }
 0x65a   : > { %v9403_v47 = vpop.eup %9402  ;;  %9428 = vtanh.f32 %v4026_v39 }
 0x65b   : > { %v9405_v25 = vpop.eup %9404  ;;  %8429 = vmatprep.subr.mxu1 %v3689_v34  ;;  %v3688_v21 = vmul.f32 %v9403_v47, %v9401_v51  ;;  %9430 = vtanh.f32 %v8467_v46 }
 0x65c   : > { %v9407_v60 = vpop.eup %9406  ;;  %8430 = vmatpush3.msra.mxu1 %v3689_v34  ;;  %v3687_v5 = vmul.f32 %v9405_v25, %v9395_v63  ;;  %9432 = vpow2.f32 %v7433_v61 }
 0x65d   : > { %v9409_v33 = vpop.eup %9408  ;;  %8431 = vmatprep.subr.mxu1 %v3688_v21  ;;  %9434 = vpow2.f32 %v7431_v28 }
 0x65e   : > { %v9411_v30 = vpop.eup %9410  ;;  %v4101_v29 = vadd.f32 1.0, %v9409_v33  ;;  %8432 = vmatpush3.msra.mxu1 %v3688_v21 }
 0x65f   : > { %v9413_v55 = vpop.eup %9412  ;;  %8433 = vmatprep.subr.mxu1 %v3687_v5  ;;  %v3686_v3 = vmul.f32 %v9411_v30, %v9407_v60 }
 0x660   : > { %9436 = vrcp.f32 %v4101_v29  ;;  %v4104_v9 = vadd.f32 1.0, %v9413_v55  ;;  %8434 = vmatpush3.msra.mxu1 %v3687_v5  ;;  %v9415_v16 = vpop.eup %9414 }
 0x661   : > { %9438 = vpow2.f32 %v7432_v19  ;;  %8435 = vmatprep.subr.mxu1 %v3686_v3  ;;  %v4103_v12 = vadd.f32 1.0, %v9415_v16  ;;  %v9417_v13 = vpop.eup %9416  ;;  %v11249_v16 = vld [vmem:[%s12028_s4 + $0x18] sm:$0xff] }
 0x662   : > { %9440 = vrcp.f32 %v4104_v9  ;;  %8436 = vmatpush3.msra.mxu1 %v3686_v3  ;;  %v9419_v6 = vpop.eup %9418  ;;  %v11240_v9 = vld [vmem:[%s12028_s4 + $0x10] sm:$0xff] }
 0x663   : > { %9442 = vtanh.f32 %v4036_v41  ;;  %8438 = vmatmul.mubr.msk.f32.vlgmr.msra.gmra.mxu1 %vm763_vm1, %v11079_v56  ;;  %8474 = vmatprep.subr.mxu1 %v11118_v7  ;;  %v9421_v18 = vpop.eup %9420 }
 0x664   : > { %9444 = vrcp.f32 %v4103_v12  ;;  %8475 = vmatpush3.msra.mxu1 %v11118_v7  ;;  %8492 = vmatprep.mubr.msk.f32.mxu1 %vm1069_vm2, %v11203_v52  ;;  %v9423_v22 = vpop.eup %9422  ;;  %v11254_v12 = vld [vmem:[%s12028_s4 + $0x20] sm:$0xff] }
 0x665   : > { %8476 = vmatprep.subr.mxu1 %v3689_v34  ;;  %9446 = vpow2.f32 %v7430_v50  ;;  %v9425_v24 = vpop.eup %9424  ;;  %v4142_v56 = vmul.f32 %v9423_v22, %v11088_v26  ;;  %v11263_v50 = vld [vmem:[%s12028_s4 + $0x28] sm:$0xff]  ;;  %v11287_v22 = vld [vmem:[%s12028_s4 + $0x40] sm:$0xff] }
 0x666   : > { %8477 = vmatpush3.msra.mxu1 %v3689_v34  ;;  %v9427_v37 = vpop.eup %9426 }
 0x667   : > { %8478 = vmatprep.subr.mxu1 %v3688_v21  ;;  %v9429_v17 = vpop.eup %9428  ;;  %v4146_v7 = vmul.f32 %v9427_v37, %v9417_v13  ;;  %v11268_v13 = vld [vmem:[%s12028_s4 + $0x30] sm:$0xff] }
 0x668   : > { %8479 = vmatpush3.msra.mxu1 %v3688_v21  ;;  %v9431_v1 = vpop.eup %9430  ;;  %v4145_v20 = vmul.f32 %v9429_v17, %v9419_v6  ;;  %v11272_v6 = vld [vmem:[#allocation2 + $0x28] sm:$0xff]  ;;  %v11301_v37 = vld [vmem:[%s12028_s4 + $0x50] sm:$0xff]  ;;  %v11310_v17 = vld [vmem:[%s12028_s4 + $0x58] sm:$0xff] }
 0x669   : > { %8480 = vmatprep.subr.mxu1 %v3687_v5  ;;  %v9433_v39 = vpop.eup %9432  ;;  %v11212_v46 = vadd.f32 %v4146_v7, %v4142_v56  ;;  %v4148_v43 = vmul.f32 %v9431_v1, %v9421_v18  ;;  %v11281_v18 = vld [vmem:[%s12028_s4 + $0x38] sm:$0xff]  ;;  %v11315_v56 = vld [vmem:[%s12028_s4 + $0x60] sm:$0xff]  ;;  %v11324_v1 = vld [vmem:[%s12028_s4 + $0x68] sm:$0xff] }
 0x66a   : > { %8481 = vmatpush3.msra.mxu1 %v3687_v5  ;;  %v9435_v40 = vpop.eup %9434  ;;  %v4132_v62 = vadd.f32 1.0, %v9433_v39  ;;  %v11329_v39 = vld [vmem:[%s12028_s4 + $0x70] sm:$0xff]  ;;  %v11338_v7 = vld [vmem:[%s12028_s4 + $0x78] sm:$0xff] }
 0x66b   : > { %8482 = vmatprep.subr.mxu1 %v3686_v3  ;;  %v4130_v41 = vadd.f32 1.0, %v9435_v40  ;;  %9448 = vtanh.f32 %v11212_v46  ;;  %v11343_v40 = vld [vmem:[%s12027_s3] sm:$0xff] }
 0x66c   : > { %8483 = vmatpush3.msra.mxu1 %v3686_v3  ;;  %9450 = vrcp.f32 %v4132_v62  ;;  %v11235_v3 = vld [vmem:[%s12028_s4 + $0x8] sm:$0xff]  ;;  %v11367_v62 = vld [vmem:[%s12027_s3 + $0x18] sm:$0xff] }
 0x66d   : > { %v9437_v48 = vpop.eup %9436  ;;  %9452 = vrcp.f32 %v4130_v41  ;;  %v11381_v41 = vld [vmem:[%s12027_s3 + $0x28] sm:$0xff] }
 0x66e   : > { %v9439_v2 = vpop.eup %9438  ;;  %v4141_v14 = vmul.f32 %v9437_v48, %v11098_v45  ;;  %v11352_v48 = vld [vmem:[%s12027_s3 + $0x8] sm:$0xff] }
 0x66f   : > { %v9441_v59 = vpop.eup %9440  ;;  %v4131_v36 = vadd.f32 1.0, %v9439_v2  ;;  %v11357_v2 = vld [vmem:[%s12027_s3 + $0x10] sm:$0xff] }
 0x670   : > { %v9443_v44 = vpop.eup %9442  ;;  %v4144_v26 = vmul.f32 %v9441_v59, %v11095_v54  ;;  %v3063_v58 = vpop.permute.xlu0 %3062  ;;  %v11222_v8 = vadd.f32 %v4145_v20, %v4141_v14  ;;  %v11372_v59 = vld [vmem:[%s12027_s3 + $0x20] sm:$0xff]  ;;  %v11395_v14 = vld [vmem:[%s12027_s3 + $0x38] sm:$0xff]  ;;  %v11437_v20 = vld [vmem:[%s12027_s3 + $0x68] sm:$0xff] }
 0x671   : > { %v9445_v31 = vpop.eup %9444  ;;  %v3065_v0 = vmul.f32 %v3063_v58, %v3063_v58  ;;  %v4147_v10 = vmul.f32 %v9443_v44, %v9425_v24  ;;  %v11296_v24 = vld [vmem:[%s12028_s4 + $0x48] sm:$0xff]  ;;  %v11386_v44 = vld [vmem:[%s12027_s3 + $0x30] sm:$0xff]  ;;  %12071 = vst [vmem:[#allocation23_spill] sm:$0xff] %v11437_v20 }
 0x672   : > { %v11219_v63 = vadd.f32 %v4148_v43, %v4144_v26  ;;  %v4143_v53 = vmul.f32 %v9445_v31, %v11101_v35  ;;  %v9447_v45 = vpop.eup %9446  ;;  %v12068_v35 = vld [vmem:[#allocation17_spill] sm:$0xff]  ;;  %v11409_v43 = vld [vmem:[%s12027_s3 + $0x48] sm:$0xff]  ;;  %v11414_v58 = vld [vmem:[%s12027_s3 + $0x50] sm:$0xff] }
 0x673   : > { %v3066_v54 = vsub.f32 %v3064_v49, %v3065_v0  ;;  %v4129_v51 = vadd.f32 1.0, %v9447_v45  ;;  %v11400_v26 = vld [vmem:[%s12027_s3 + $0x40] sm:$0xff]  ;;  %v11423_v49 = vld [vmem:[%s12027_s3 + $0x58] sm:$0xff] }
 0x674   : > { %9454 = vtanh.f32 %v11219_v63  ;;  %v11225_v57 = vadd.f32 %v4147_v10, %v4143_v53  ;;  %12069 = vst [vmem:[#allocation21_spill] sm:$0xff] %v11423_v49  ;;  %v11428_v31 = vld [vmem:[%s12027_s3 + $0x60] sm:$0xff]  ;;  %v11451_v0 = vld [vmem:[%s12027_s3 + $0x78] sm:$0xff] }
 0x675   : > { %9456 = vrcp.f32 %v4131_v36  ;;  %v3067_v23 = vmul.f32 0.125, %v3066_v54  ;;  %12070 = vst [vmem:[#allocation22_spill] sm:$0xff] %v11428_v31  ;;  %v11442_v36 = vld [vmem:[%s12027_s3 + $0x70] sm:$0xff]  ;;  %12073 = vst [vmem:[#allocation25_spill] sm:$0xff] %v11451_v0  ;;  %v4466_v53 = vld [vmem:[%s12029_s5] sm:$0xff] }
 0x676   : > { %9458 = vtanh.f32 %v11225_v57  ;;  %12072 = vst [vmem:[#allocation24_spill] sm:$0xff] %v11442_v36  ;;  %8526 = vmatprep.mubr.msk.f32.mxu0 %vm763_vm1, %v4466_v53  ;;  %v9935_v45 = vld [vmem:[#allocation2 + $0x18] sm:$0xff] }
 0x677   : > { %v3075_v34 = vmul.f32 %v3067_v23, %v10818_v32  ;;  %9460 = vtanh.f32 %v11222_v8 }
 0x678   : > { %9462 = vrcp.f32 %v4129_v51  ;;  %v9449_v61 = vpop.eup %9448 }
 0x679   : > { %v3076_v47 = vsub.f32 %v12068_v35, %v3075_v34  ;;  %v9451_v11 = vpop.eup %9450 }
 0x67a   : > { %v9453_v25 = vpop.eup %9452 }
 0x67b   : > { %3077 = vst [vmem:[%s10251_s19 + $0x2] sm:$0x1] %v3076_v47  ;;  %v4158_v30 = vmul.f32 %v9453_v25, %v9449_v61 }
 0x681   : > { %v9455_v28 = vpop.eup %9454 }
 0x682   : > { %v9457_v21 = vpop.eup %9456  ;;  %v4160_v60 = vmul.f32 %v9455_v28, %v9451_v11 }
 0x683   : > { %v9459_v33 = vpop.eup %9458 }
 0x684   : > { %8484 = vmatprep.subr.mxu1 %v4160_v60  ;;  %v4159_v19 = vmul.f32 %v9459_v33, %v9457_v21  ;;  %v9461_v5 = vpop.eup %9460 }
 0x685   : > { %8485 = vmatpush3.msra.mxu1 %v4160_v60  ;;  %v9463_v29 = vpop.eup %9462 }
 0x686   : > { %8486 = vmatprep.subr.mxu1 %v4159_v19  ;;  %v4157_v55 = vmul.f32 %v9463_v29, %v9461_v5 }
 0x687   : > { %8487 = vmatpush3.msra.mxu1 %v4159_v19 }
 0x688   : > { %8488 = vmatprep.subr.mxu1 %v4158_v30 }
 0x689   : > { %8489 = vmatpush3.msra.mxu1 %v4158_v30 }
 0x68a   : > { %8490 = vmatprep.subr.mxu1 %v4157_v55 }
 0x68b   : > { %8491 = vmatpush3.msra.mxu1 %v4157_v55 }
 0x68c   : > { %8493 = vmatmul.mubr.msk.f32.vlgmr.msra.gmra.mxu1 %vm1069_vm2, %v11235_v3  ;;  %8529 = vmatprep.subr.mxu1 %v4160_v60 }
 0x68d   : > { %8530 = vmatpush3.msra.mxu1 %v4160_v60  ;;  %8495 = vmatprep.mubr.msk.f32.mxu1 %vm1069_vm2, %v11240_v9 }
 0x68e   : > { %8531 = vmatprep.subr.mxu1 %v4159_v19 }
 0x68f   : > { %8532 = vmatpush3.msra.mxu1 %v4159_v19 }
 0x690   : > { %8496 = vmatmul.mubr.msk.f32.gmra.mxu1 %vm1069_vm2, %v11249_v16  ;;  %8533 = vmatprep.subr.mxu1 %v4158_v30 }
 0x691   : > { %8534 = vmatpush3.msra.mxu1 %v4158_v30  ;;  %8498 = vmatprep.mubr.msk.f32.mxu1 %vm1069_vm2, %v11254_v12 }
 0x692   : > { %8535 = vmatprep.subr.mxu1 %v4157_v55 }
 0x693   : > { %8536 = vmatpush3.msra.mxu1 %v4157_v55 }
 0x694   : > { %8499 = vmatmul.mubr.msk.f32.gmra.mxu1 %vm1069_vm2, %v11263_v50  ;;  %8537 = vmatprep.subr.mxu1 %v11272_v6 }
 0x695   : > { %8538 = vmatpush3.msra.mxu1 %v11272_v6  ;;  %8501 = vmatprep.mubr.msk.f32.mxu1 %vm1069_vm2, %v11268_v13 }
 0x696   : > { %8605 = vmatprep.subr.mxu1 %v11272_v6 }
 0x698   : > { %8502 = vmatmul.mubr.msk.f32.gmra.mxu1 %vm1069_vm2, %v11281_v18 }
 0x699   : > { %8504 = vmatprep.mubr.msk.f32.mxu1 %vm1069_vm2, %v11287_v22 }
 0x69c   : > { %8505 = vmatmul.mubr.msk.f32.gmra.mxu1 %vm1069_vm2, %v11296_v24 }
 0x69d   : > { %8507 = vmatprep.mubr.msk.f32.mxu1 %vm1069_vm2, %v11301_v37 }
 0x6a0   : > { %8508 = vmatmul.mubr.msk.f32.gmra.mxu1 %vm1069_vm2, %v11310_v17 }
 0x6a1   : > { %8510 = vmatprep.mubr.msk.f32.mxu1 %vm1069_vm2, %v11315_v56 }
 0x6a4   : > { %8511 = vmatmul.mubr.msk.f32.gmra.mxu1 %vm1069_vm2, %v11324_v1 }
 0x6a5   : > { %8513 = vmatprep.mubr.msk.f32.mxu1 %vm1069_vm2, %v11329_v39 }
 0x6a8   : > { %8514 = vmatmul.mubr.msk.f32.gmra.mxu1 %vm1069_vm2, %v11338_v7 }
 0x6a9   : > { %8539 = vmatprep.mubr.msk.f32.mxu1 %vm763_vm1, %v11343_v40 }
 0x6ac   : > { %8540 = vmatmul.mubr.msk.f32.vlgmr.msra.gmra.mxu1 %vm763_vm1, %v11352_v48 }
 0x6ad   : > { %8606 = vmatpush3.msra.mxu1 %v11272_v6  ;;  %8542 = vmatprep.mubr.msk.f32.mxu1 %vm763_vm1, %v11357_v2 }
 0x6b0   : > { %8543 = vmatmul.mubr.msk.f32.gmra.mxu1 %vm763_vm1, %v11367_v62 }
 0x6b1   : > { %8545 = vmatprep.mubr.msk.f32.mxu1 %vm763_vm1, %v11372_v59 }
 0x6b4   : > { %8546 = vmatmul.mubr.msk.f32.gmra.mxu1 %vm763_vm1, %v11381_v41 }
 0x6b5   : > { %8548 = vmatprep.mubr.msk.f32.mxu1 %vm763_vm1, %v11386_v44 }
 0x6b8   : > { %8549 = vmatmul.mubr.msk.f32.gmra.mxu1 %vm763_vm1, %v11395_v14 }
 0x6b9   : > { %8551 = vmatprep.mubr.msk.f32.mxu1 %vm763_vm1, %v11400_v26 }
 0x6bc   : > { %8552 = vmatmul.mubr.msk.f32.gmra.mxu1 %vm763_vm1, %v11409_v43 }
 0x6bd   : > { %8554 = vmatprep.mubr.msk.f32.mxu1 %vm763_vm1, %v11414_v58 }
 0x6c0   : > { %8555 = vmatmul.mubr.msk.f32.gmra.mxu1 %vm763_vm1, %v11423_v49 }
 0x6c1   : > { %8557 = vmatprep.mubr.msk.f32.mxu1 %vm763_vm1, %v11428_v31 }
 0x6c4   : > { %8558 = vmatmul.mubr.msk.f32.gmra.mxu1 %vm763_vm1, %v11437_v20 }
 0x6c5   : > { %8560 = vmatprep.mubr.msk.f32.mxu1 %vm763_vm1, %v11442_v36 }
 0x6c8   : > { %8561 = vmatmul.mubr.msk.f32.gmra.mxu1 %vm763_vm1, %v11451_v0 }
 0x6c9   : > { %8615 = vmatprep.mubr.msk.f32.mxu1 %vm763_vm1, %v4466_v53 }
 0x723   : > { %v8439_v10 = vpop.f32.mrf.mxu1 }
 0x724   : > { %v3824_v54 = vmul.f32 %v9935_v45, %v8439_v10 }
 0x725   : > { %v3764_v23 = vpop.f32.mrf.mxu1 }
 0x726   : > { %v3826_v51 = vrot.slane %v3824_v54, 1  ;;  %v3773_v34 = vmul.f32 %v3764_v23, %v3764_v23  ;;  %v3829_v47 = vrot.slane %v3824_v54, 2  ;;  %v3832_v28 = vrot.slane %v3824_v54, 3 }
 0x727   : > { %v3835_v5 = vrot.slane %v3824_v54, 4 }
 0x728   : > { %v3828_v35 = vadd.f32 %v3826_v51, %v3824_v54  ;;  %v3775_v61 = vcombine.high %v3773_v34, %v3773_v34  ;;  %v3782_v11 = vrot.slane %v3773_v34, %v12067_v42 }
 0x72a   : > { %v3831_v25 = vadd.f32 %v3829_v47, %v3828_v35  ;;  %v3789_v21 = vrot.slane %v3775_v61, %v12067_v42  ;;  %v3790_v60 = vcombine.high %v3782_v11, %v3782_v11  ;;  %v3797_v33 = vrot.slane %v3782_v11, %v12067_v42  ;;  %7403 = vst.sshfl [vmem:[#allocation3 + $0x3] sm:$0x1 pattern:$0x73625140] %v3782_v11 }
 0x72c   : > { %v3834_v19 = vadd.f32 %v3832_v28, %v3831_v25  ;;  %v3811_v30 = vrot.slane %v3790_v60, %v12067_v42  ;;  %v3812_v29 = vcombine.high %v3797_v33, %v3797_v33  ;;  %7404 = vst.sshfl [vmem:[#allocation3 + $0xb] sm:$0x1 pattern:$0x73625140] %v3790_v60 }
 0x72d   : > { %7405 = vst.sshfl [vmem:[#allocation3 + $0x23] sm:$0x1 pattern:$0x73625140] %v3789_v21 }
 0x72e   : > { %v11464_v55 = vadd.f32 %v3835_v5, %v3834_v19  ;;  %v3813_v53 = vcombine.high %v3811_v30, %v3811_v30  ;;  %3821 = vst [vmem:[#allocation3 + $0x13] sm:$0x1] %v3812_v29 }
 0x730   : > { %3838 = vrot.lane.b32.xlu1 %v11464_v55, %s10096_s24  ;;  %3822 = vst [vmem:[#allocation3 + $0x1b] sm:$0x1] %v3813_v53 }
 0x74c   : > { %v8494_v10 = vpop.f32.mrf.mxu1 }
 0x74d   : > { %v7451_v45 = vmul.f32 -1.442695, %v8494_v10 }
 0x74e   : > { %v4291_v23 = vpop.f32.mrf.mxu1 }
 0x74f   : > { %9464 = vpow2.f32 %v7451_v45  ;;  %v7450_v51 = vmul.f32 -1.442695, %v4291_v23 }
 0x750   : > { %v8497_v34 = vpop.f32.mrf.mxu1 }
 0x751   : > { %9466 = vpow2.f32 %v7450_v51  ;;  %v7453_v54 = vmul.f32 -1.442695, %v8497_v34 }
 0x752   : > { %v4301_v35 = vpop.f32.mrf.mxu1 }
 0x753   : > { %9468 = vpow2.f32 %v7453_v54  ;;  %v7452_v47 = vmul.f32 -1.442695, %v4301_v35 }
 0x754   : > { %v8500_v61 = vpop.f32.mrf.mxu1 }
 0x755   : > { %9470 = vpow2.f32 %v7452_v47  ;;  %v7455_v11 = vmul.f32 -1.442695, %v8500_v61 }
 0x756   : > { %v4311_v25 = vpop.f32.mrf.mxu1 }
 0x757   : > { %9472 = vpow2.f32 %v7455_v11  ;;  %v7454_v28 = vmul.f32 -1.442695, %v4311_v25 }
 0x758   : > { %v8503_v21 = vpop.f32.mrf.mxu1 }
 0x759   : > { %9474 = vpow2.f32 %v7454_v28  ;;  %v7457_v60 = vmul.f32 -1.442695, %v8503_v21 }
 0x75a   : > { %v4321_v33 = vpop.f32.mrf.mxu1 }
 0x75b   : > { %9476 = vpow2.f32 %v7457_v60  ;;  %v7456_v19 = vmul.f32 -1.442695, %v4321_v33 }
 0x75c   : > { %v9465_v5 = vpop.eup %9464  ;;  %v8506_v30 = vpop.f32.mrf.mxu1 }
 0x75d   : > { %v4383_v29 = vadd.f32 1.0, %v9465_v5  ;;  %9478 = vpow2.f32 %v7456_v19 }
 0x75e   : > { %v9467_v53 = vpop.eup %9466  ;;  %v4331_v10 = vpop.f32.mrf.mxu1  ;;  %9480 = vtanh.f32 %v8506_v30 }
 0x75f   : > { %v4382_v45 = vadd.f32 1.0, %v9467_v53  ;;  %9482 = vrcp.f32 %v4383_v29 }
 0x760   : > { %v9469_v23 = vpop.eup %9468  ;;  %v8509_v51 = vpop.f32.mrf.mxu1  ;;  %9484 = vtanh.f32 %v4331_v10 }
 0x761   : > { %v4385_v34 = vadd.f32 1.0, %v9469_v23  ;;  %9486 = vrcp.f32 %v4382_v45 }
 0x762   : > { %v9471_v54 = vpop.eup %9470  ;;  %v4341_v35 = vpop.f32.mrf.mxu1  ;;  %9488 = vtanh.f32 %v8509_v51 }
 0x763   : > { %v4384_v61 = vadd.f32 1.0, %v9471_v54  ;;  %9490 = vrcp.f32 %v4385_v34 }
 0x764   : > { %v9473_v47 = vpop.eup %9472  ;;  %v8512_v11 = vpop.f32.mrf.mxu1  ;;  %9492 = vtanh.f32 %v4341_v35 }
 0x765   : > { %v4407_v25 = vadd.f32 1.0, %v9473_v47  ;;  %v7459_v21 = vmul.f32 -1.442695, %v8512_v11 }
 0x766   : > { %v9475_v28 = vpop.eup %9474  ;;  %v4351_v60 = vpop.f32.mrf.mxu1 }
 0x767   : > { %9494 = vrcp.f32 %v4407_v25  ;;  %v4406_v33 = vadd.f32 1.0, %v9475_v28  ;;  %v7458_v23 = vmul.f32 -1.442695, %v4351_v60 }
 0x768   : > { %v9477_v19 = vpop.eup %9476  ;;  %9496 = vrcp.f32 %v4384_v61  ;;  %v8515_v5 = vpop.f32.mrf.mxu1 }
 0x769   : > { %9498 = vrcp.f32 %v4406_v33  ;;  %v4409_v30 = vadd.f32 1.0, %v9477_v19  ;;  %v7461_v29 = vmul.f32 -1.442695, %v8515_v5 }
 0x76a   : > { %v9479_v53 = vpop.eup %9478  ;;  %9500 = vpow2.f32 %v7459_v21  ;;  %v4361_v10 = vpop.f32.mrf.mxu1 }
 0x76b   : > { %9502 = vrcp.f32 %v4409_v30  ;;  %v4408_v45 = vadd.f32 1.0, %v9479_v53  ;;  %v7460_v51 = vmul.f32 -1.442695, %v4361_v10  ;;  %v9481_v54 = vpop.eup %9480 }
 0x76c   : > { %9504 = vpow2.f32 %v7461_v29  ;;  %v8541_v34 = vpop.f32.mrf.mxu1  ;;  %v9483_v35 = vpop.eup %9482 }
 0x76d   : > { %9506 = vrcp.f32 %v4408_v45  ;;  %v9485_v11 = vpop.eup %9484  ;;  %v7484_v25 = vmul.f32 -1.442695, %v8541_v34 }
 0x76e   : > { %9508 = vpow2.f32 %v7460_v51  ;;  %v4762_v47 = vpop.f32.mrf.mxu1  ;;  %v9487_v61 = vpop.eup %9486  ;;  %v4451_v51 = vmul.f32 %v9483_v35, %v9481_v54 }
 0x76f   : > { %9510 = vpow2.f32 %v7458_v23  ;;  %v9489_v33 = vpop.eup %9488  ;;  %v7483_v19 = vmul.f32 -1.442695, %v4762_v47  ;;  %v4450_v54 = vmul.f32 %v9487_v61, %v9485_v11 }
 0x770   : > { %v8544_v28 = vpop.f32.mrf.mxu1  ;;  %v9491_v21 = vpop.eup %9490  ;;  %9512 = vpow2.f32 %v7484_v25 }
 0x771   : > { %v7486_v5 = vmul.f32 -1.442695, %v8544_v28  ;;  %v9493_v53 = vpop.eup %9492  ;;  %9514 = vpow2.f32 %v7483_v19  ;;  %v4453_v49 = vmul.f32 %v9491_v21, %v9489_v33 }
 0x772   : > { %v4772_v30 = vpop.f32.mrf.mxu1 }
 0x773   : > { %v7485_v29 = vmul.f32 -1.442695, %v4772_v30  ;;  %9516 = vpow2.f32 %v7486_v5 }
 0x774   : > { %v9495_v60 = vpop.eup %9494  ;;  %v8547_v10 = vpop.f32.mrf.mxu1 }
 0x775   : > { %v9497_v42 = vpop.eup %9496  ;;  %v4447_v45 = vmul.f32 %v9495_v60, %v11185_v4  ;;  %v7488_v0 = vmul.f32 -1.442695, %v8547_v10 }
 0x776   : > { %v9499_v23 = vpop.eup %9498  ;;  %v4782_v34 = vpop.f32.mrf.mxu1  ;;  %v4452_v10 = vmul.f32 %v9497_v42, %v9493_v53 }
 0x777   : > { %v9501_v36 = vpop.eup %9500  ;;  %v11469_v20 = vadd.f32 %v4451_v51, %v4447_v45  ;;  %9518 = vpow2.f32 %v7488_v0  ;;  %v4446_v25 = vmul.f32 %v9499_v23, %v11193_v38 }
 0x778   : > { %v9503_v47 = vpop.eup %9502  ;;  %9520 = vpow2.f32 %v7485_v29  ;;  %v8550_v28 = vpop.f32.mrf.mxu1  ;;  %v4435_v45 = vadd.f32 1.0, %v9501_v36 }
 0x779   : > { %v9505_v31 = vpop.eup %9504  ;;  %v4449_v30 = vmul.f32 %v9503_v47, %v11190_v15  ;;  %9522 = vtanh.f32 %v11469_v20  ;;  %v11477_v23 = vadd.f32 %v4450_v54, %v4446_v25 }
 0x77a   : > { %v9507_v4 = vpop.eup %9506  ;;  %v4437_v35 = vadd.f32 1.0, %v9505_v31  ;;  %v4792_v19 = vpop.f32.mrf.mxu1  ;;  %v7487_v31 = vmul.f32 -1.442695, %v4782_v34 }
 0x77b   : > { %v9509_v60 = vpop.eup %9508  ;;  %v11474_v5 = vadd.f32 %v4453_v49, %v4449_v30  ;;  %v4448_v0 = vmul.f32 %v9507_v4, %v11196_v27  ;;  %v7490_v27 = vmul.f32 -1.442695, %v8550_v28  ;;  %v7489_v33 = vmul.f32 -1.442695, %v4792_v19 }
 0x77c   : > { %v9511_v29 = vpop.eup %9510  ;;  %9524 = vrcp.f32 %v4437_v35  ;;  %v4436_v51 = vadd.f32 1.0, %v9509_v60  ;;  %v8553_v38 = vpop.f32.mrf.mxu1 }
 0x77d   : > { %9526 = vtanh.f32 %v11474_v5  ;;  %v11480_v15 = vadd.f32 %v4452_v10, %v4448_v0  ;;  %v4434_v49 = vadd.f32 1.0, %v9511_v29  ;;  %v9513_v61 = vpop.eup %9512 }
 0x77e   : > { %9528 = vrcp.f32 %v4436_v51  ;;  %v4802_v11 = vpop.f32.mrf.mxu1  ;;  %v9515_v36 = vpop.eup %9514  ;;  %v4854_v25 = vadd.f32 1.0, %v9513_v61 }
 0x77f   : > { %9530 = vtanh.f32 %v11480_v15  ;;  %v4853_v4 = vadd.f32 1.0, %v9515_v36 }
 0x780   : > { %9532 = vrcp.f32 %v4435_v45  ;;  %v8556_v42 = vpop.f32.mrf.mxu1  ;;  %v9517_v53 = vpop.eup %9516 }
 0x781   : > { %9534 = vtanh.f32 %v11477_v23  ;;  %v4856_v54 = vadd.f32 1.0, %v9517_v53 }
 0x782   : > { %9536 = vpow2.f32 %v7487_v31  ;;  %v4812_v21 = vpop.f32.mrf.mxu1 }
 0x783   : > { %9538 = vrcp.f32 %v4434_v49 }
 0x784   : > { %v9519_v47 = vpop.eup %9518  ;;  %9540 = vpow2.f32 %v7490_v27  ;;  %v8559_v34 = vpop.f32.mrf.mxu1 }
 0x785   : > { %v9521_v30 = vpop.eup %9520  ;;  %9542 = vpow2.f32 %v7489_v33  ;;  %v4878_v28 = vadd.f32 1.0, %v9519_v47  ;;  %v7492_v36 = vmul.f32 -1.442695, %v8559_v34 }
 0x786   : > { %v4822_v35 = vpop.f32.mrf.mxu1  ;;  %v9523_v60 = vpop.eup %9522  ;;  %9544 = vrcp.f32 %v4854_v25  ;;  %v4855_v0 = vadd.f32 1.0, %v9521_v30 }
 0x787   : > { %9546 = vrcp.f32 %v4853_v4 }
 0x788   : > { %v8562_v10 = vpop.f32.mrf.mxu1  ;;  %9548 = vrcp.f32 %v4856_v54 }
 0x789   : > { %v9525_v29 = vpop.eup %9524  ;;  %9550 = vrcp.f32 %v4878_v28  ;;  %v7494_v49 = vmul.f32 -1.442695, %v8562_v10 }
 0x78a   : > { %v9527_v19 = vpop.eup %9526  ;;  %9552 = vrcp.f32 %v4855_v0  ;;  %v4832_v27 = vpop.f32.mrf.mxu1 }
 0x78b   : > { %v9529_v45 = vpop.eup %9528  ;;  %v4465_v51 = vmul.f32 %v9527_v19, %v9525_v29  ;;  %9554 = vtanh.f32 %v8553_v38  ;;  %v7493_v25 = vmul.f32 -1.442695, %v4832_v27 }
 0x78c   : > { %v9531_v31 = vpop.eup %9530  ;;  %9556 = vtanh.f32 %v4802_v11  ;;  %v11487_v11 = vld [vmem:[%s12029_s5 + $0x8] sm:$0xff] }
 0x78d   : > { %v9533_v61 = vpop.eup %9532  ;;  %8518 = vmatprep.subr.mxu0 %v4465_v51  ;;  %v4464_v33 = vmul.f32 %v9531_v31, %v9529_v45  ;;  %9558 = vtanh.f32 %v8556_v42 }
 0x78e   : > { %v9535_v53 = vpop.eup %9534  ;;  %8519 = vmatpush3.msra.mxu0 %v4465_v51  ;;  %v4463_v30 = vmul.f32 %v9533_v61, %v9523_v60  ;;  %9560 = vpow2.f32 %v7494_v49  ;;  %v7491_v60 = vmul.f32 -1.442695, %v4822_v35 }
 0x78f   : > { %v9537_v47 = vpop.eup %9536  ;;  %8520 = vmatprep.subr.mxu0 %v4464_v33  ;;  %9562 = vpow2.f32 %v7492_v36 }
 0x790   : > { %v9539_v4 = vpop.eup %9538  ;;  %v4877_v54 = vadd.f32 1.0, %v9537_v47  ;;  %8521 = vmatpush3.msra.mxu0 %v4464_v33 }
 0x791   : > { %v9541_v28 = vpop.eup %9540  ;;  %8522 = vmatprep.subr.mxu0 %v4463_v30  ;;  %v4462_v0 = vmul.f32 %v9539_v4, %v9535_v53 }
 0x792   : > { %9564 = vrcp.f32 %v4877_v54  ;;  %v4880_v38 = vadd.f32 1.0, %v9541_v28  ;;  %8523 = vmatpush3.msra.mxu0 %v4463_v30  ;;  %v9543_v42 = vpop.eup %9542 }
 0x793   : > { %9566 = vpow2.f32 %v7493_v25  ;;  %8524 = vmatprep.subr.mxu0 %v4462_v0  ;;  %v4879_v34 = vadd.f32 1.0, %v9543_v42  ;;  %v9545_v10 = vpop.eup %9544 }
 0x794   : > { %9568 = vrcp.f32 %v4880_v38  ;;  %8525 = vmatpush3.msra.mxu0 %v4462_v0  ;;  %v9547_v29 = vpop.eup %9546 }
 0x795   : > { %9570 = vtanh.f32 %v4812_v21  ;;  %8527 = vmatmul.mubr.msk.f32.vlgmr.msra.gmra.mxu0 %vm763_vm1, %v11487_v11  ;;  %8563 = vmatprep.subr.mxu0 %v11272_v6  ;;  %v9549_v19 = vpop.eup %9548 }
 0x796   : > { %9572 = vrcp.f32 %v4879_v34  ;;  %8564 = vmatpush3.msra.mxu0 %v11272_v6  ;;  %8581 = vmatprep.mubr.msk.f32.mxu0 %vm1069_vm2, %v11203_v52  ;;  %v9551_v45 = vpop.eup %9550 }
 0x797   : > { %8565 = vmatprep.subr.mxu0 %v4465_v51  ;;  %9574 = vpow2.f32 %v7491_v60  ;;  %v9553_v35 = vpop.eup %9552  ;;  %v4918_v49 = vmul.f32 %v9551_v45, %v11212_v46 }
 0x798   : > { %8566 = vmatpush3.msra.mxu0 %v4465_v51  ;;  %v9555_v21 = vpop.eup %9554 }
 0x799   : > { %8567 = vmatprep.subr.mxu0 %v4464_v33  ;;  %v9557_v31 = vpop.eup %9556  ;;  %v4922_v6 = vmul.f32 %v9555_v21, %v9545_v10 }
 0x79a   : > { %8568 = vmatpush3.msra.mxu0 %v4464_v33  ;;  %v9559_v27 = vpop.eup %9558 }
 0x79b   : > { %8569 = vmatprep.subr.mxu0 %v4463_v30  ;;  %v9561_v61 = vpop.eup %9560  ;;  %v11496_v53 = vadd.f32 %v4922_v6, %v4918_v49  ;;  %v4924_v28 = vmul.f32 %v9559_v27, %v9549_v19 }
 0x79c   : > { %8570 = vmatpush3.msra.mxu0 %v4463_v30  ;;  %v9563_v36 = vpop.eup %9562  ;;  %v4908_v51 = vadd.f32 1.0, %v9561_v61  ;;  %v3840_v30 = vmul.f32 %v11464_v55, %v11464_v55 }
 0x79d   : > { %8571 = vmatprep.subr.mxu0 %v4462_v0  ;;  %v4906_v4 = vadd.f32 1.0, %v9563_v36  ;;  %9576 = vtanh.f32 %v11496_v53 }
 0x79e   : > { %8572 = vmatpush3.msra.mxu0 %v4462_v0  ;;  %v4921_v0 = vmul.f32 %v9557_v31, %v9547_v29  ;;  %9578 = vrcp.f32 %v4908_v51 }
 0x79f   : > { %v9565_v52 = vpop.eup %9564  ;;  %9580 = vrcp.f32 %v4906_v4 }
 0x7a0   : > { %v9567_v47 = vpop.eup %9566  ;;  %v4917_v33 = vmul.f32 %v9565_v52, %v11222_v8 }
 0x7a1   : > { %v9569_v25 = vpop.eup %9568  ;;  %v4907_v34 = vadd.f32 1.0, %v9567_v47 }
 0x7a2   : > { %v9571_v54 = vpop.eup %9570  ;;  %v4920_v46 = vmul.f32 %v9569_v25, %v11219_v63  ;;  %v3839_v38 = vpop.permute.xlu1 %3838  ;;  %v11506_v19 = vadd.f32 %v4921_v0, %v4917_v33 }
 0x7a3   : > { %v9573_v42 = vpop.eup %9572  ;;  %v3841_v60 = vmul.f32 %v3839_v38, %v3839_v38  ;;  %v4923_v21 = vmul.f32 %v9571_v54, %v9553_v35 }
 0x7a4   : > { %v11503_v10 = vadd.f32 %v4924_v28, %v4920_v46  ;;  %v4919_v45 = vmul.f32 %v9573_v42, %v11225_v57  ;;  %v9575_v8 = vpop.eup %9574  ;;  %v12074_v57 = vld [vmem:[#allocation19_spill] sm:$0xff] }
 0x7a5   : > { %v3842_v63 = vsub.f32 %v3840_v30, %v3841_v60  ;;  %v4905_v31 = vadd.f32 1.0, %v9575_v8 }
 0x7a6   : > { %9582 = vtanh.f32 %v11503_v10  ;;  %v11509_v55 = vadd.f32 %v4923_v21, %v4919_v45 }
 0x7a7   : > { %9584 = vrcp.f32 %v4907_v34  ;;  %v3843_v29 = vmul.f32 0.125, %v3842_v63 }
 0x7a8   : > { %9586 = vtanh.f32 %v11509_v55 }
 0x7a9   : > { %v3851_v49 = vmul.f32 %v3843_v29, %v10818_v32  ;;  %9588 = vtanh.f32 %v11506_v19 }
 0x7aa   : > { %9590 = vrcp.f32 %v4905_v31  ;;  %v9577_v27 = vpop.eup %9576 }
 0x7ab   : > { %v3852_v35 = vsub.f32 %v12074_v57, %v3851_v49  ;;  %v9579_v61 = vpop.eup %9578 }
 0x7ac   : > { %v9581_v6 = vpop.eup %9580 }
 0x7ad   : > { %3853 = vst [vmem:[%s10251_s19 + $0x3] sm:$0x1] %v3852_v35  ;;  %v4934_v54 = vmul.f32 %v9581_v6, %v9577_v27 }
 0x7b3   : > { %v9583_v36 = vpop.eup %9582 }
 0x7b4   : > { %v9585_v52 = vpop.eup %9584  ;;  %v4936_v47 = vmul.f32 %v9583_v36, %v9579_v61 }
 0x7b5   : > { %v9587_v51 = vpop.eup %9586 }
 0x7b6   : > { %8573 = vmatprep.subr.mxu0 %v4936_v47  ;;  %v4935_v25 = vmul.f32 %v9587_v51, %v9585_v52  ;;  %v9589_v4 = vpop.eup %9588 }
 0x7b7   : > { %8574 = vmatpush3.msra.mxu0 %v4936_v47  ;;  %v9591_v33 = vpop.eup %9590 }
 0x7b8   : > { %8575 = vmatprep.subr.mxu0 %v4935_v25  ;;  %v4933_v46 = vmul.f32 %v9591_v33, %v9589_v4 }
 0x7b9   : > { %8576 = vmatpush3.msra.mxu0 %v4935_v25 }
 0x7ba   : > { %8577 = vmatprep.subr.mxu0 %v4934_v54 }
 0x7bb   : > { %8578 = vmatpush3.msra.mxu0 %v4934_v54 }
 0x7bc   : > { %8579 = vmatprep.subr.mxu0 %v4933_v46 }
 0x7bd   : > { %8580 = vmatpush3.msra.mxu0 %v4933_v46 }
 0x7be   : > { %8582 = vmatmul.mubr.msk.f32.vlgmr.msra.gmra.mxu0 %vm1069_vm2, %v11235_v3  ;;  %8618 = vmatprep.subr.mxu0 %v4936_v47  ;;  %v11526_v3 = vld [vmem:[#allocation2 + $0x30] sm:$0xff] }
 0x7bf   : > { %8619 = vmatpush3.msra.mxu0 %v4936_v47  ;;  %8584 = vmatprep.mubr.msk.f32.mxu0 %vm1069_vm2, %v11240_v9  ;;  %v12075_v9 = vld [vmem:[#allocation21_spill] sm:$0xff] }
 0x7c0   : > { %8620 = vmatprep.subr.mxu0 %v4935_v25 }
 0x7c1   : > { %8621 = vmatpush3.msra.mxu0 %v4935_v25 }
 0x7c2   : > { %8585 = vmatmul.mubr.msk.f32.gmra.mxu0 %vm1069_vm2, %v11249_v16  ;;  %8622 = vmatprep.subr.mxu0 %v4934_v54  ;;  %v12076_v16 = vld [vmem:[#allocation22_spill] sm:$0xff] }
 0x7c3   : > { %8623 = vmatpush3.msra.mxu0 %v4934_v54  ;;  %8587 = vmatprep.mubr.msk.f32.mxu0 %vm1069_vm2, %v11254_v12  ;;  %v12077_v12 = vld [vmem:[#allocation23_spill] sm:$0xff] }
 0x7c4   : > { %8624 = vmatprep.subr.mxu0 %v4933_v46 }
 0x7c5   : > { %8625 = vmatpush3.msra.mxu0 %v4933_v46 }
 0x7c6   : > { %8588 = vmatmul.mubr.msk.f32.gmra.mxu0 %vm1069_vm2, %v11263_v50  ;;  %8626 = vmatprep.subr.mxu0 %v11526_v3  ;;  %v12078_v50 = vld [vmem:[#allocation24_spill] sm:$0xff] }
 0x7c7   : > { %8627 = vmatpush3.msra.mxu0 %v11526_v3  ;;  %8590 = vmatprep.mubr.msk.f32.mxu0 %vm1069_vm2, %v11268_v13  ;;  %v12079_v13 = vld [vmem:[#allocation25_spill] sm:$0xff] }
 0x7c8   : > { %8694 = vmatprep.subr.mxu0 %v11526_v3 }
 0x7ca   : > { %8591 = vmatmul.mubr.msk.f32.gmra.mxu0 %vm1069_vm2, %v11281_v18 }
 0x7cb   : > { %8593 = vmatprep.mubr.msk.f32.mxu0 %vm1069_vm2, %v11287_v22  ;;  %v9937_v22 = vld [vmem:[#allocation2 + $0x20] sm:$0xff] }
 0x7ce   : > { %8594 = vmatmul.mubr.msk.f32.gmra.mxu0 %vm1069_vm2, %v11296_v24 }
 0x7cf   : > { %8596 = vmatprep.mubr.msk.f32.mxu0 %vm1069_vm2, %v11301_v37 }
 0x7d2   : > { %8597 = vmatmul.mubr.msk.f32.gmra.mxu0 %vm1069_vm2, %v11310_v17 }
 0x7d3   : > { %8599 = vmatprep.mubr.msk.f32.mxu0 %vm1069_vm2, %v11315_v56 }
 0x7d6   : > { %8600 = vmatmul.mubr.msk.f32.gmra.mxu0 %vm1069_vm2, %v11324_v1 }
 0x7d7   : > { %8602 = vmatprep.mubr.msk.f32.mxu0 %vm1069_vm2, %v11329_v39 }
 0x7da   : > { %8603 = vmatmul.mubr.msk.f32.gmra.mxu0 %vm1069_vm2, %v11338_v7 }
 0x7db   : > { %8628 = vmatprep.mubr.msk.f32.mxu0 %vm763_vm1, %v11343_v40  ;;  %v12080_v40 = vld [vmem:[#allocation14_spill] sm:$0xff] }
 0x7de   : > { %8629 = vmatmul.mubr.msk.f32.vlgmr.msra.gmra.mxu0 %vm763_vm1, %v11352_v48 }
 0x7df   : > { %8695 = vmatpush3.msra.mxu0 %v11526_v3  ;;  %8631 = vmatprep.mubr.msk.f32.mxu0 %vm763_vm1, %v11357_v2 }
 0x7e2   : > { %8632 = vmatmul.mubr.msk.f32.gmra.mxu0 %vm763_vm1, %v11367_v62 }
 0x7e3   : > { %8634 = vmatprep.mubr.msk.f32.mxu0 %vm763_vm1, %v11372_v59 }
 0x7e6   : > { %8635 = vmatmul.mubr.msk.f32.gmra.mxu0 %vm763_vm1, %v11381_v41 }
 0x7e7   : > { %8637 = vmatprep.mubr.msk.f32.mxu0 %vm763_vm1, %v11386_v44 }
 0x7ea   : > { %8638 = vmatmul.mubr.msk.f32.gmra.mxu0 %vm763_vm1, %v11395_v14 }
 0x7eb   : > { %8640 = vmatprep.mubr.msk.f32.mxu0 %vm763_vm1, %v11400_v26 }
 0x7ee   : > { %8641 = vmatmul.mubr.msk.f32.gmra.mxu0 %vm763_vm1, %v11409_v43 }
 0x7ef   : > { %8643 = vmatprep.mubr.msk.f32.mxu0 %vm763_vm1, %v11414_v58 }
 0x7f2   : > { %8644 = vmatmul.mubr.msk.f32.gmra.mxu0 %vm763_vm1, %v12075_v9 }
 0x7f3   : > { %8646 = vmatprep.mubr.msk.f32.mxu0 %vm763_vm1, %v12076_v16 }
 0x7f6   : > { %8647 = vmatmul.mubr.msk.f32.gmra.mxu0 %vm763_vm1, %v12077_v12 }
 0x7f7   : > { %8649 = vmatprep.mubr.msk.f32.mxu0 %vm763_vm1, %v12078_v50 }
 0x7fa   : > { %8650 = vmatmul.mubr.msk.f32.gmra.mxu0 %vm763_vm1, %v12079_v13 }
 0x855   : > { %v8528_v18 = vpop.f32.mrf.mxu0 }
 0x856   : > { %v4600_v24 = vmul.f32 %v9937_v22, %v8528_v18 }
 0x857   : > { %v4540_v37 = vpop.f32.mrf.mxu0 }
 0x858   : > { %v4602_v17 = vrot.slane %v4600_v24, 1  ;;  %v4549_v56 = vmul.f32 %v4540_v37, %v4540_v37  ;;  %v4605_v39 = vrot.slane %v4600_v24, 2  ;;  %v4608_v62 = vrot.slane %v4600_v24, 3 }
 0x859   : > { %v4611_v26 = vrot.slane %v4600_v24, 4 }
 0x85a   : > { %v4604_v1 = vadd.f32 %v4602_v17, %v4600_v24  ;;  %v4551_v7 = vcombine.high %v4549_v56, %v4549_v56  ;;  %v4558_v48 = vrot.slane %v4549_v56, %v12080_v40 }
 0x85c   : > { %v4607_v2 = vadd.f32 %v4605_v39, %v4604_v1  ;;  %v4565_v59 = vrot.slane %v4551_v7, %v12080_v40  ;;  %v4566_v41 = vcombine.high %v4558_v48, %v4558_v48  ;;  %v4573_v44 = vrot.slane %v4558_v48, %v12080_v40  ;;  %7464 = vst.sshfl [vmem:[#allocation3 + $0x4] sm:$0x1 pattern:$0x73625140] %v4558_v48 }
 0x85e   : > { %v4610_v14 = vadd.f32 %v4608_v62, %v4607_v2  ;;  %v4587_v43 = vrot.slane %v4566_v41, %v12080_v40  ;;  %v4588_v58 = vcombine.high %v4573_v44, %v4573_v44  ;;  %7465 = vst.sshfl [vmem:[#allocation3 + $0xc] sm:$0x1 pattern:$0x73625140] %v4566_v41 }
 0x85f   : > { %7466 = vst.sshfl [vmem:[#allocation3 + $0x24] sm:$0x1 pattern:$0x73625140] %v4565_v59 }
 0x860   : > { %v11588_v28 = vadd.f32 %v4611_v26, %v4610_v14  ;;  %v4589_v38 = vcombine.high %v4587_v43, %v4587_v43  ;;  %4597 = vst [vmem:[#allocation3 + $0x14] sm:$0x1] %v4588_v58 }
 0x862   : > { %4614 = vrot.lane.b32.xlu0 %v11588_v28, %s10096_s24  ;;  %4598 = vst [vmem:[#allocation3 + $0x1c] sm:$0x1] %v4589_v38 }
 0x87e   : > { %v8583_v30 = vpop.f32.mrf.mxu0 }
 0x87f   : > { %v7512_v42 = vmul.f32 -1.442695, %v8583_v30 }
 0x880   : > { %v5067_v0 = vpop.f32.mrf.mxu0 }
 0x881   : > { %9592 = vpow2.f32 %v7512_v42  ;;  %v7511_v34 = vmul.f32 -1.442695, %v5067_v0 }
 0x882   : > { %v8586_v60 = vpop.f32.mrf.mxu0 }
 0x883   : > { %9594 = vpow2.f32 %v7511_v34  ;;  %v7514_v45 = vmul.f32 -1.442695, %v8586_v60 }
 0x884   : > { %v5077_v21 = vpop.f32.mrf.mxu0 }
 0x885   : > { %9596 = vpow2.f32 %v7514_v45  ;;  %v7513_v8 = vmul.f32 -1.442695, %v5077_v21 }
 0x886   : > { %v8589_v63 = vpop.f32.mrf.mxu0 }
 0x887   : > { %9598 = vpow2.f32 %v7513_v8  ;;  %v7516_v29 = vmul.f32 -1.442695, %v8589_v63 }
 0x888   : > { %v5087_v31 = vpop.f32.mrf.mxu0 }
 0x889   : > { %9600 = vpow2.f32 %v7516_v29  ;;  %v7515_v49 = vmul.f32 -1.442695, %v5087_v31 }
 0x88a   : > { %v8592_v57 = vpop.f32.mrf.mxu0 }
 0x88b   : > { %9602 = vpow2.f32 %v7515_v49  ;;  %v7518_v35 = vmul.f32 -1.442695, %v8592_v57 }
 0x88c   : > { %v5097_v27 = vpop.f32.mrf.mxu0 }
 0x88d   : > { %9604 = vpow2.f32 %v7518_v35  ;;  %v7517_v61 = vmul.f32 -1.442695, %v5097_v27 }
 0x88e   : > { %v9593_v6 = vpop.eup %9592  ;;  %v8595_v36 = vpop.f32.mrf.mxu0 }
 0x88f   : > { %v5159_v52 = vadd.f32 1.0, %v9593_v6  ;;  %9606 = vpow2.f32 %v7517_v61 }
 0x890   : > { %v9595_v47 = vpop.eup %9594  ;;  %v5107_v51 = vpop.f32.mrf.mxu0  ;;  %9608 = vtanh.f32 %v8595_v36 }
 0x891   : > { %v5158_v25 = vadd.f32 1.0, %v9595_v47  ;;  %9610 = vrcp.f32 %v5159_v52 }
 0x892   : > { %v9597_v4 = vpop.eup %9596  ;;  %v8598_v54 = vpop.f32.mrf.mxu0  ;;  %9612 = vtanh.f32 %v5107_v51 }
 0x893   : > { %v5161_v33 = vadd.f32 1.0, %v9597_v4  ;;  %9614 = vrcp.f32 %v5158_v25 }
 0x894   : > { %v9599_v46 = vpop.eup %9598  ;;  %v5117_v9 = vpop.f32.mrf.mxu0  ;;  %9616 = vtanh.f32 %v8598_v54 }
 0x895   : > { %v5160_v12 = vadd.f32 1.0, %v9599_v46  ;;  %9618 = vrcp.f32 %v5161_v33 }
 0x896   : > { %v9601_v16 = vpop.eup %9600  ;;  %v8601_v50 = vpop.f32.mrf.mxu0  ;;  %9620 = vtanh.f32 %v5117_v9 }
 0x897   : > { %v5183_v13 = vadd.f32 1.0, %v9601_v16  ;;  %v7520_v22 = vmul.f32 -1.442695, %v8601_v50 }
 0x898   : > { %v9603_v18 = vpop.eup %9602  ;;  %v5127_v24 = vpop.f32.mrf.mxu0 }
 0x899   : > { %9622 = vrcp.f32 %v5183_v13  ;;  %v5182_v37 = vadd.f32 1.0, %v9603_v18  ;;  %v7519_v62 = vmul.f32 -1.442695, %v5127_v24 }
 0x89a   : > { %v9605_v17 = vpop.eup %9604  ;;  %9624 = vrcp.f32 %v5160_v12  ;;  %v8604_v56 = vpop.f32.mrf.mxu0 }
 0x89b   : > { %9626 = vrcp.f32 %v5182_v37  ;;  %v5185_v1 = vadd.f32 1.0, %v9605_v17  ;;  %v7522_v39 = vmul.f32 -1.442695, %v8604_v56 }
 0x89c   : > { %v9607_v7 = vpop.eup %9606  ;;  %9628 = vpow2.f32 %v7520_v22  ;;  %v5137_v48 = vpop.f32.mrf.mxu0 }
 0x89d   : > { %9630 = vrcp.f32 %v5185_v1  ;;  %v5184_v2 = vadd.f32 1.0, %v9607_v7  ;;  %v7521_v59 = vmul.f32 -1.442695, %v5137_v48  ;;  %v9609_v44 = vpop.eup %9608 }
 0x89e   : > { %9632 = vpow2.f32 %v7522_v39  ;;  %v8630_v41 = vpop.f32.mrf.mxu0  ;;  %v9611_v14 = vpop.eup %9610 }
 0x89f   : > { %9634 = vrcp.f32 %v5184_v2  ;;  %v9613_v43 = vpop.eup %9612  ;;  %v7545_v38 = vmul.f32 -1.442695, %v8630_v41  ;;  %v5227_v57 = vmul.f32 %v9611_v14, %v9609_v44 }
 0x8a0   : > { %9636 = vpow2.f32 %v7521_v59  ;;  %v5538_v26 = vpop.f32.mrf.mxu0  ;;  %v9615_v58 = vpop.eup %9614 }
 0x8a1   : > { %9638 = vpow2.f32 %v7519_v62  ;;  %v9617_v42 = vpop.eup %9616  ;;  %v7544_v0 = vmul.f32 -1.442695, %v5538_v26  ;;  %v5226_v33 = vmul.f32 %v9615_v58, %v9613_v43 }
 0x8a2   : > { %v8633_v30 = vpop.f32.mrf.mxu0  ;;  %v9619_v34 = vpop.eup %9618  ;;  %9640 = vpow2.f32 %v7545_v38 }
 0x8a3   : > { %v7547_v60 = vmul.f32 -1.442695, %v8633_v30  ;;  %v9621_v21 = vpop.eup %9620  ;;  %9642 = vpow2.f32 %v7544_v0  ;;  %v5229_v54 = vmul.f32 %v9619_v34, %v9617_v42 }
 0x8a4   : > { %v5548_v45 = vpop.f32.mrf.mxu0 }
 0x8a5   : > { %v7546_v63 = vmul.f32 -1.442695, %v5548_v45  ;;  %9644 = vpow2.f32 %v7547_v60 }
 0x8a6   : > { %v9623_v8 = vpop.eup %9622  ;;  %v8636_v29 = vpop.f32.mrf.mxu0 }
 0x8a7   : > { %v9625_v31 = vpop.eup %9624  ;;  %v5223_v49 = vmul.f32 %v9623_v8, %v11469_v20  ;;  %v7549_v35 = vmul.f32 -1.442695, %v8636_v29 }
 0x8a8   : > { %v9627_v27 = vpop.eup %9626  ;;  %v5558_v61 = vpop.f32.mrf.mxu0  ;;  %v5228_v13 = vmul.f32 %v9625_v31, %v9621_v21 }
 0x8a9   : > { %v9629_v6 = vpop.eup %9628  ;;  %v11593_v36 = vadd.f32 %v5227_v57, %v5223_v49  ;;  %9646 = vpow2.f32 %v7549_v35  ;;  %v5222_v25 = vmul.f32 %v9627_v27, %v11477_v23  ;;  %v7548_v17 = vmul.f32 -1.442695, %v5558_v61 }
 0x8aa   : > { %v9631_v52 = vpop.eup %9630  ;;  %9648 = vpow2.f32 %v7546_v63  ;;  %v8639_v47 = vpop.f32.mrf.mxu0  ;;  %v5211_v22 = vadd.f32 1.0, %v9629_v6 }
 0x8ab   : > { %v9633_v51 = vpop.eup %9632  ;;  %v5225_v4 = vmul.f32 %v9631_v52, %v11474_v5  ;;  %9650 = vtanh.f32 %v11593_v36  ;;  %v11601_v37 = vadd.f32 %v5226_v33, %v5222_v25  ;;  %v11611_v33 = vld [vmem:[%s12028_s4] sm:$0xff] }
 0x8ac   : > { %v9635_v20 = vpop.eup %9634  ;;  %v5213_v46 = vadd.f32 1.0, %v9633_v51  ;;  %v5568_v9 = vpop.f32.mrf.mxu0 }
 0x8ad   : > { %v9637_v16 = vpop.eup %9636  ;;  %v11598_v12 = vadd.f32 %v5229_v54, %v5225_v4  ;;  %v5224_v50 = vmul.f32 %v9635_v20, %v11480_v15  ;;  %v7551_v15 = vmul.f32 -1.442695, %v8639_v47  ;;  %v7550_v2 = vmul.f32 -1.442695, %v5568_v9 }
 0x8ae   : > { %v9639_v18 = vpop.eup %9638  ;;  %9652 = vrcp.f32 %v5213_v46  ;;  %v5212_v24 = vadd.f32 1.0, %v9637_v16  ;;  %v8642_v23 = vpop.f32.mrf.mxu0 }
 0x8af   : > { %9654 = vtanh.f32 %v11598_v12  ;;  %v11604_v5 = vadd.f32 %v5228_v13, %v5224_v50  ;;  %v5210_v1 = vadd.f32 1.0, %v9639_v18  ;;  %v9641_v7 = vpop.eup %9640 }
 0x8b0   : > { %9656 = vrcp.f32 %v5212_v24  ;;  %v5578_v56 = vpop.f32.mrf.mxu0  ;;  %v9643_v48 = vpop.eup %9642  ;;  %v5630_v44 = vadd.f32 1.0, %v9641_v7 }
 0x8b1   : > { %9658 = vtanh.f32 %v11604_v5  ;;  %v5629_v43 = vadd.f32 1.0, %v9643_v48 }
 0x8b2   : > { %9660 = vrcp.f32 %v5211_v22  ;;  %v8645_v39 = vpop.f32.mrf.mxu0  ;;  %v9645_v59 = vpop.eup %9644 }
 0x8b3   : > { %9662 = vtanh.f32 %v11601_v37  ;;  %v5632_v58 = vadd.f32 1.0, %v9645_v59 }
 0x8b4   : > { %9664 = vpow2.f32 %v7548_v17  ;;  %v5588_v62 = vpop.f32.mrf.mxu0 }
 0x8b5   : > { %9666 = vrcp.f32 %v5210_v1 }
 0x8b6   : > { %v9647_v41 = vpop.eup %9646  ;;  %9668 = vpow2.f32 %v7551_v15  ;;  %v8648_v14 = vpop.f32.mrf.mxu0 }
 0x8b7   : > { %v9649_v26 = vpop.eup %9648  ;;  %9670 = vpow2.f32 %v7550_v2  ;;  %v5654_v30 = vadd.f32 1.0, %v9647_v41  ;;  %v7553_v57 = vmul.f32 -1.442695, %v8648_v14 }
 0x8b8   : > { %v5598_v38 = vpop.f32.mrf.mxu0  ;;  %v9651_v42 = vpop.eup %9650  ;;  %9672 = vrcp.f32 %v5630_v44  ;;  %v5631_v0 = vadd.f32 1.0, %v9649_v26  ;;  %v4616_v26 = vmul.f32 %v11588_v28, %v11588_v28 }
 0x8b9   : > { %9674 = vrcp.f32 %v5629_v43  ;;  %v7552_v9 = vmul.f32 -1.442695, %v5598_v38 }
 0x8ba   : > { %v8651_v34 = vpop.f32.mrf.mxu0  ;;  %9676 = vrcp.f32 %v5632_v58 }
 0x8bb   : > { %v9653_v60 = vpop.eup %9652  ;;  %9678 = vrcp.f32 %v5654_v30  ;;  %v7555_v29 = vmul.f32 -1.442695, %v8651_v34 }
 0x8bc   : > { %v9655_v45 = vpop.eup %9654  ;;  %9680 = vrcp.f32 %v5631_v0  ;;  %v5608_v31 = vpop.f32.mrf.mxu0 }
 0x8bd   : > { %v9657_v21 = vpop.eup %9656  ;;  %v5241_v8 = vmul.f32 %v9655_v45, %v9653_v60  ;;  %9682 = vtanh.f32 %v8642_v23  ;;  %v7554_v6 = vmul.f32 -1.442695, %v5608_v31 }
 0x8be   : > { %v9659_v63 = vpop.eup %9658  ;;  %9684 = vtanh.f32 %v5578_v56 }
 0x8bf   : > { %v9661_v49 = vpop.eup %9660  ;;  %8607 = vmatprep.subr.mxu1 %v5241_v8  ;;  %v5240_v35 = vmul.f32 %v9659_v63, %v9657_v21  ;;  %9686 = vtanh.f32 %v8645_v39 }
 0x8c0   : > { %v9663_v27 = vpop.eup %9662  ;;  %8608 = vmatpush3.msra.mxu1 %v5241_v8  ;;  %v5239_v52 = vmul.f32 %v9661_v49, %v9651_v42  ;;  %9688 = vpow2.f32 %v7555_v29 }
 0x8c1   : > { %v9665_v61 = vpop.eup %9664  ;;  %8609 = vmatprep.subr.mxu1 %v5240_v35  ;;  %9690 = vpow2.f32 %v7553_v57 }
 0x8c2   : > { %v9667_v47 = vpop.eup %9666  ;;  %v5653_v51 = vadd.f32 1.0, %v9665_v61  ;;  %8610 = vmatpush3.msra.mxu1 %v5240_v35 }
 0x8c3   : > { %v9669_v25 = vpop.eup %9668  ;;  %8611 = vmatprep.subr.mxu1 %v5239_v52  ;;  %v5238_v4 = vmul.f32 %v9667_v47, %v9663_v27 }
 0x8c4   : > { %9692 = vrcp.f32 %v5653_v51  ;;  %v5656_v54 = vadd.f32 1.0, %v9669_v25  ;;  %8612 = vmatpush3.msra.mxu1 %v5239_v52  ;;  %v9671_v20 = vpop.eup %9670 }
 0x8c5   : > { %9694 = vpow2.f32 %v7554_v6  ;;  %8613 = vmatprep.subr.mxu1 %v5238_v4  ;;  %v5655_v46 = vadd.f32 1.0, %v9671_v20  ;;  %v9673_v16 = vpop.eup %9672  ;;  %v11657_v20 = vld [vmem:[%s12028_s4 + $0x18] sm:$0xff] }
 0x8c6   : > { %9696 = vrcp.f32 %v5656_v54  ;;  %8614 = vmatpush3.msra.mxu1 %v5238_v4  ;;  %v9675_v50 = vpop.eup %9674  ;;  %v11648_v54 = vld [vmem:[%s12028_s4 + $0x10] sm:$0xff] }
 0x8c7   : > { %9698 = vtanh.f32 %v5588_v62  ;;  %8616 = vmatmul.mubr.msk.f32.vlgmr.msra.gmra.mxu1 %vm763_vm1, %v11487_v11  ;;  %8652 = vmatprep.subr.mxu1 %v11526_v3  ;;  %v9677_v13 = vpop.eup %9676 }
 0x8c8   : > { %9700 = vrcp.f32 %v5655_v46  ;;  %8653 = vmatpush3.msra.mxu1 %v11526_v3  ;;  %8670 = vmatprep.mubr.msk.f32.mxu1 %vm1069_vm2, %v11611_v33  ;;  %v9679_v18 = vpop.eup %9678  ;;  %v11662_v46 = vld [vmem:[%s12028_s4 + $0x20] sm:$0xff] }
 0x8c9   : > { %8654 = vmatprep.subr.mxu1 %v5241_v8  ;;  %9702 = vpow2.f32 %v7552_v9  ;;  %v9681_v22 = vpop.eup %9680  ;;  %v5694_v11 = vmul.f32 %v9679_v18, %v11496_v53  ;;  %v11671_v9 = vld [vmem:[%s12028_s4 + $0x28] sm:$0xff]  ;;  %v11695_v18 = vld [vmem:[%s12028_s4 + $0x40] sm:$0xff] }
 0x8ca   : > { %8655 = vmatpush3.msra.mxu1 %v5241_v8  ;;  %v9683_v24 = vpop.eup %9682 }
 0x8cb   : > { %8656 = vmatprep.subr.mxu1 %v5240_v35  ;;  %v9685_v23 = vpop.eup %9684  ;;  %v5698_v3 = vmul.f32 %v9683_v24, %v9673_v16  ;;  %v11676_v16 = vld [vmem:[%s12028_s4 + $0x30] sm:$0xff] }
 0x8cc   : > { %8657 = vmatpush3.msra.mxu1 %v5240_v35  ;;  %v9687_v17 = vpop.eup %9686  ;;  %v5697_v58 = vmul.f32 %v9685_v23, %v9675_v50  ;;  %v11680_v50 = vld [vmem:[#allocation2 + $0x38] sm:$0xff]  ;;  %v11709_v24 = vld [vmem:[%s12028_s4 + $0x50] sm:$0xff] }
 0x8cd   : > { %8658 = vmatprep.subr.mxu1 %v5239_v52  ;;  %v9689_v56 = vpop.eup %9688  ;;  %v11620_v39 = vadd.f32 %v5698_v3, %v5694_v11  ;;  %v5700_v44 = vmul.f32 %v9687_v17, %v9677_v13  ;;  %v11689_v13 = vld [vmem:[%s12028_s4 + $0x38] sm:$0xff]  ;;  %v11723_v11 = vld [vmem:[%s12028_s4 + $0x60] sm:$0xff]  ;;  %v11732_v17 = vld [vmem:[%s12028_s4 + $0x68] sm:$0xff] }
 0x8ce   : > { %8659 = vmatpush3.msra.mxu1 %v5239_v52  ;;  %v9691_v1 = vpop.eup %9690  ;;  %v5684_v48 = vadd.f32 1.0, %v9689_v56  ;;  %v11718_v23 = vld [vmem:[%s12028_s4 + $0x58] sm:$0xff]  ;;  %v11737_v56 = vld [vmem:[%s12028_s4 + $0x70] sm:$0xff] }
 0x8cf   : > { %8660 = vmatprep.subr.mxu1 %v5238_v4  ;;  %v5682_v62 = vadd.f32 1.0, %v9691_v1  ;;  %9704 = vtanh.f32 %v11620_v39  ;;  %v11746_v3 = vld [vmem:[%s12028_s4 + $0x78] sm:$0xff]  ;;  %v6184_v1 = vld [vmem:[%s12027_s3] sm:$0xff] }
 0x8d0   : > { %8661 = vmatpush3.msra.mxu1 %v5238_v4  ;;  %9706 = vrcp.f32 %v5684_v48  ;;  %v11643_v4 = vld [vmem:[%s12028_s4 + $0x8] sm:$0xff]  ;;  %v6187_v48 = vld [vmem:[%s12027_s3 + $0x18] sm:$0xff] }
 0x8d1   : > { %v9693_v15 = vpop.eup %9692  ;;  %9708 = vrcp.f32 %v5682_v62  ;;  %v6189_v62 = vld [vmem:[%s12027_s3 + $0x28] sm:$0xff] }
 0x8d2   : > { %v9695_v7 = vpop.eup %9694  ;;  %v5693_v41 = vmul.f32 %v9693_v15, %v11506_v19  ;;  %v6185_v15 = vld [vmem:[%s12027_s3 + $0x8] sm:$0xff] }
 0x8d3   : > { %v9697_v2 = vpop.eup %9696  ;;  %v5683_v38 = vadd.f32 1.0, %v9695_v7  ;;  %v6186_v7 = vld [vmem:[%s12027_s3 + $0x10] sm:$0xff] }
 0x8d4   : > { %v9699_v59 = vpop.eup %9698  ;;  %v5696_v53 = vmul.f32 %v9697_v2, %v11503_v10  ;;  %v4615_v14 = vpop.permute.xlu0 %4614  ;;  %v11630_v60 = vadd.f32 %v5697_v58, %v5693_v41  ;;  %v6188_v2 = vld [vmem:[%s12027_s3 + $0x20] sm:$0xff]  ;;  %v6191_v41 = vld [vmem:[%s12027_s3 + $0x38] sm:$0xff]  ;;  %v6197_v58 = vld [vmem:[%s12027_s3 + $0x68] sm:$0xff] }
 0x8d5   : > { %v9701_v43 = vpop.eup %9700  ;;  %v4617_v30 = vmul.f32 %v4615_v14, %v4615_v14  ;;  %v5699_v34 = vmul.f32 %v9699_v59, %v9681_v22  ;;  %v11704_v22 = vld [vmem:[%s12028_s4 + $0x48] sm:$0xff]  ;;  %v6190_v59 = vld [vmem:[%s12027_s3 + $0x30] sm:$0xff] }
 0x8d6   : > { %v11627_v42 = vadd.f32 %v5700_v44, %v5696_v53  ;;  %v5695_v0 = vmul.f32 %v9701_v43, %v11509_v55  ;;  %v9703_v19 = vpop.eup %9702  ;;  %v12081_v55 = vld [vmem:[#allocation15_spill] sm:$0xff]  ;;  %v6192_v53 = vld [vmem:[%s12027_s3 + $0x40] sm:$0xff]  ;;  %v6193_v44 = vld [vmem:[%s12027_s3 + $0x48] sm:$0xff] }
 0x8d7   : > { %v4618_v10 = vsub.f32 %v4616_v26, %v4617_v30  ;;  %v5681_v21 = vadd.f32 1.0, %v9703_v19  ;;  %v6194_v14 = vld [vmem:[%s12027_s3 + $0x50] sm:$0xff]  ;;  %v6195_v26 = vld [vmem:[%s12027_s3 + $0x58] sm:$0xff]  ;;  %v6196_v43 = vld [vmem:[%s12027_s3 + $0x60] sm:$0xff] }
 0x8d8   : > { %9710 = vtanh.f32 %v11627_v42  ;;  %v11633_v28 = vadd.f32 %v5699_v34, %v5695_v0  ;;  %v6199_v30 = vld [vmem:[%s12027_s3 + $0x78] sm:$0xff]  ;;  %v6018_v0 = vld [vmem:[%s12029_s5] sm:$0xff]  ;;  %v9939_v19 = vld [vmem:[#allocation2 + $0x28] sm:$0xff] }
 0x8d9   : > { %9712 = vrcp.f32 %v5683_v38  ;;  %v4619_v45 = vmul.f32 0.125, %v4618_v10  ;;  %v6198_v38 = vld [vmem:[%s12027_s3 + $0x70] sm:$0xff]  ;;  %8704 = vmatprep.mubr.msk.f32.mxu0 %vm763_vm1, %v6018_v0 }
 0x8da   : > { %9714 = vtanh.f32 %v11633_v28 }
 0x8db   : > { %v4627_v8 = vmul.f32 %v4619_v45, %v10818_v32  ;;  %9716 = vtanh.f32 %v11630_v60 }
 0x8dc   : > { %9718 = vrcp.f32 %v5681_v21  ;;  %v9705_v29 = vpop.eup %9704 }
 0x8dd   : > { %v4628_v63 = vsub.f32 %v12081_v55, %v4627_v8  ;;  %v9707_v31 = vpop.eup %9706 }
 0x8de   : > { %v9709_v49 = vpop.eup %9708 }
 0x8df   : > { %4629 = vst [vmem:[%s10251_s19 + $0x4] sm:$0x1] %v4628_v63  ;;  %v5710_v47 = vmul.f32 %v9709_v49, %v9705_v29 }
 0x8e5   : > { %v9711_v57 = vpop.eup %9710 }
 0x8e6   : > { %v9713_v35 = vpop.eup %9712  ;;  %v5712_v27 = vmul.f32 %v9711_v57, %v9707_v31 }
 0x8e7   : > { %v9715_v61 = vpop.eup %9714 }
 0x8e8   : > { %8662 = vmatprep.subr.mxu1 %v5712_v27  ;;  %v5711_v6 = vmul.f32 %v9715_v61, %v9713_v35  ;;  %v9717_v52 = vpop.eup %9716 }
 0x8e9   : > { %8663 = vmatpush3.msra.mxu1 %v5712_v27  ;;  %v9719_v51 = vpop.eup %9718 }
 0x8ea   : > { %8664 = vmatprep.subr.mxu1 %v5711_v6  ;;  %v5709_v25 = vmul.f32 %v9719_v51, %v9717_v52 }
 0x8eb   : > { %8665 = vmatpush3.msra.mxu1 %v5711_v6 }
 0x8ec   : > { %8666 = vmatprep.subr.mxu1 %v5710_v47 }
 0x8ed   : > { %8667 = vmatpush3.msra.mxu1 %v5710_v47 }
 0x8ee   : > { %8668 = vmatprep.subr.mxu1 %v5709_v25 }
 0x8ef   : > { %8669 = vmatpush3.msra.mxu1 %v5709_v25 }
 0x8f0   : > { %8671 = vmatmul.mubr.msk.f32.vlgmr.msra.gmra.mxu1 %vm1069_vm2, %v11643_v4  ;;  %8707 = vmatprep.subr.mxu1 %v5712_v27 }
 0x8f1   : > { %8708 = vmatpush3.msra.mxu1 %v5712_v27  ;;  %8673 = vmatprep.mubr.msk.f32.mxu1 %vm1069_vm2, %v11648_v54 }
 0x8f2   : > { %8709 = vmatprep.subr.mxu1 %v5711_v6 }
 0x8f3   : > { %8710 = vmatpush3.msra.mxu1 %v5711_v6 }
 0x8f4   : > { %8674 = vmatmul.mubr.msk.f32.gmra.mxu1 %vm1069_vm2, %v11657_v20  ;;  %8711 = vmatprep.subr.mxu1 %v5710_v47 }
 0x8f5   : > { %8712 = vmatpush3.msra.mxu1 %v5710_v47  ;;  %8676 = vmatprep.mubr.msk.f32.mxu1 %vm1069_vm2, %v11662_v46 }
 0x8f6   : > { %8713 = vmatprep.subr.mxu1 %v5709_v25 }
 0x8f7   : > { %8714 = vmatpush3.msra.mxu1 %v5709_v25 }
 0x8f8   : > { %8677 = vmatmul.mubr.msk.f32.gmra.mxu1 %vm1069_vm2, %v11671_v9  ;;  %8715 = vmatprep.subr.mxu1 %v11680_v50 }
 0x8f9   : > { %8716 = vmatpush3.msra.mxu1 %v11680_v50  ;;  %8679 = vmatprep.mubr.msk.f32.mxu1 %vm1069_vm2, %v11676_v16 }
 0x8fa   : > { %8783 = vmatprep.subr.mxu1 %v11680_v50 }
 0x8fc   : > { %8680 = vmatmul.mubr.msk.f32.gmra.mxu1 %vm1069_vm2, %v11689_v13 }
 0x8fd   : > { %8682 = vmatprep.mubr.msk.f32.mxu1 %vm1069_vm2, %v11695_v18 }
 0x900   : > { %8683 = vmatmul.mubr.msk.f32.gmra.mxu1 %vm1069_vm2, %v11704_v22 }
 0x901   : > { %8685 = vmatprep.mubr.msk.f32.mxu1 %vm1069_vm2, %v11709_v24 }
 0x904   : > { %8686 = vmatmul.mubr.msk.f32.gmra.mxu1 %vm1069_vm2, %v11718_v23 }
 0x905   : > { %8688 = vmatprep.mubr.msk.f32.mxu1 %vm1069_vm2, %v11723_v11 }
 0x908   : > { %8689 = vmatmul.mubr.msk.f32.gmra.mxu1 %vm1069_vm2, %v11732_v17 }
 0x909   : > { %8691 = vmatprep.mubr.msk.f32.mxu1 %vm1069_vm2, %v11737_v56 }
 0x90c   : > { %8692 = vmatmul.mubr.msk.f32.gmra.mxu1 %vm1069_vm2, %v11746_v3 }
 0x90d   : > { %8717 = vmatprep.mubr.msk.f32.mxu1 %vm763_vm1, %v6184_v1 }
 0x910   : > { %8718 = vmatmul.mubr.msk.f32.vlgmr.msra.gmra.mxu1 %vm763_vm1, %v6185_v15 }
 0x911   : > { %8784 = vmatpush3.msra.mxu1 %v11680_v50  ;;  %8720 = vmatprep.mubr.msk.f32.mxu1 %vm763_vm1, %v6186_v7 }
 0x914   : > { %8721 = vmatmul.mubr.msk.f32.gmra.mxu1 %vm763_vm1, %v6187_v48 }
 0x915   : > { %8723 = vmatprep.mubr.msk.f32.mxu1 %vm763_vm1, %v6188_v2 }
 0x918   : > { %8724 = vmatmul.mubr.msk.f32.gmra.mxu1 %vm763_vm1, %v6189_v62 }
 0x919   : > { %8726 = vmatprep.mubr.msk.f32.mxu1 %vm763_vm1, %v6190_v59 }
 0x91c   : > { %8727 = vmatmul.mubr.msk.f32.gmra.mxu1 %vm763_vm1, %v6191_v41 }
 0x91d   : > { %8729 = vmatprep.mubr.msk.f32.mxu1 %vm763_vm1, %v6192_v53 }
 0x920   : > { %8730 = vmatmul.mubr.msk.f32.gmra.mxu1 %vm763_vm1, %v6193_v44 }
 0x921   : > { %8732 = vmatprep.mubr.msk.f32.mxu1 %vm763_vm1, %v6194_v14 }
 0x924   : > { %8733 = vmatmul.mubr.msk.f32.gmra.mxu1 %vm763_vm1, %v6195_v26 }
 0x925   : > { %8735 = vmatprep.mubr.msk.f32.mxu1 %vm763_vm1, %v6196_v43 }
 0x928   : > { %8736 = vmatmul.mubr.msk.f32.gmra.mxu1 %vm763_vm1, %v6197_v58 }
 0x929   : > { %8738 = vmatprep.mubr.msk.f32.mxu1 %vm763_vm1, %v6198_v38 }
 0x92c   : > { %8739 = vmatmul.mubr.msk.f32.gmra.mxu1 %vm763_vm1, %v6199_v30 }
 0x92d   : > { %8793 = vmatprep.mubr.msk.f32.mxu1 %vm763_vm1, %v6018_v0 }
 0x987   : > { %v8617_v34 = vpop.f32.mrf.mxu1 }
 0x988   : > { %v5376_v10 = vmul.f32 %v9939_v19, %v8617_v34 }
 0x989   : > { %v5316_v45 = vpop.f32.mrf.mxu1 }
 0x98a   : > { %v5378_v21 = vrot.slane %v5376_v10, 1  ;;  %v5325_v8 = vmul.f32 %v5316_v45, %v5316_v45  ;;  %v5381_v63 = vrot.slane %v5376_v10, 2  ;;  %v5384_v57 = vrot.slane %v5376_v10, 3 }
 0x98b   : > { %v5387_v52 = vrot.slane %v5376_v10, 4 }
 0x98c   : > { %v5380_v55 = vadd.f32 %v5378_v21, %v5376_v10  ;;  %v5327_v29 = vcombine.high %v5325_v8, %v5325_v8  ;;  %v5334_v31 = vrot.slane %v5325_v8, %v12080_v40 }
 0x98e   : > { %v5383_v49 = vadd.f32 %v5381_v63, %v5380_v55  ;;  %v5341_v35 = vrot.slane %v5327_v29, %v12080_v40  ;;  %v5342_v27 = vcombine.high %v5334_v31, %v5334_v31  ;;  %v5349_v61 = vrot.slane %v5334_v31, %v12080_v40  ;;  %7525 = vst.sshfl [vmem:[#allocation3 + $0x5] sm:$0x1 pattern:$0x73625140] %v5334_v31 }
 0x990   : > { %v5386_v6 = vadd.f32 %v5384_v57, %v5383_v49  ;;  %v5363_v47 = vrot.slane %v5342_v27, %v12080_v40  ;;  %v5364_v51 = vcombine.high %v5349_v61, %v5349_v61  ;;  %7526 = vst.sshfl [vmem:[#allocation3 + $0xd] sm:$0x1 pattern:$0x73625140] %v5342_v27 }
 0x991   : > { %7527 = vst.sshfl [vmem:[#allocation3 + $0x25] sm:$0x1 pattern:$0x73625140] %v5341_v35 }
 0x992   : > { %v11824_v25 = vadd.f32 %v5387_v52, %v5386_v6  ;;  %v5365_v1 = vcombine.high %v5363_v47, %v5363_v47  ;;  %5373 = vst [vmem:[#allocation3 + $0x15] sm:$0x1] %v5364_v51 }
 0x994   : > { %5390 = vrot.lane.b32.xlu1 %v11824_v25, %s10096_s24  ;;  %5374 = vst [vmem:[#allocation3 + $0x1d] sm:$0x1] %v5365_v1 }
 0x9b0   : > { %v8672_v15 = vpop.f32.mrf.mxu1 }
 0x9b1   : > { %v7573_v7 = vmul.f32 -1.442695, %v8672_v15 }
 0x9b2   : > { %v5843_v48 = vpop.f32.mrf.mxu1 }
 0x9b3   : > { %9720 = vpow2.f32 %v7573_v7  ;;  %v7572_v2 = vmul.f32 -1.442695, %v5843_v48 }
 0x9b4   : > { %v8675_v62 = vpop.f32.mrf.mxu1 }
 0x9b5   : > { %9722 = vpow2.f32 %v7572_v2  ;;  %v7575_v59 = vmul.f32 -1.442695, %v8675_v62 }
 0x9b6   : > { %v5853_v41 = vpop.f32.mrf.mxu1 }
 0x9b7   : > { %9724 = vpow2.f32 %v7575_v59  ;;  %v7574_v53 = vmul.f32 -1.442695, %v5853_v41 }
 0x9b8   : > { %v8678_v44 = vpop.f32.mrf.mxu1 }
 0x9b9   : > { %9726 = vpow2.f32 %v7574_v53  ;;  %v7577_v14 = vmul.f32 -1.442695, %v8678_v44 }
 0x9ba   : > { %v5863_v26 = vpop.f32.mrf.mxu1 }
 0x9bb   : > { %9728 = vpow2.f32 %v7577_v14  ;;  %v7576_v43 = vmul.f32 -1.442695, %v5863_v26 }
 0x9bc   : > { %v8681_v58 = vpop.f32.mrf.mxu1 }
 0x9bd   : > { %9730 = vpow2.f32 %v7576_v43  ;;  %v7579_v38 = vmul.f32 -1.442695, %v8681_v58 }
 0x9be   : > { %v5873_v30 = vpop.f32.mrf.mxu1 }
 0x9bf   : > { %9732 = vpow2.f32 %v7579_v38  ;;  %v7578_v0 = vmul.f32 -1.442695, %v5873_v30 }
 0x9c0   : > { %v9721_v34 = vpop.eup %9720  ;;  %v8684_v19 = vpop.f32.mrf.mxu1 }
 0x9c1   : > { %v5935_v10 = vadd.f32 1.0, %v9721_v34  ;;  %9734 = vpow2.f32 %v7578_v0 }
 0x9c2   : > { %v9723_v45 = vpop.eup %9722  ;;  %v5883_v21 = vpop.f32.mrf.mxu1  ;;  %9736 = vtanh.f32 %v8684_v19 }
 0x9c3   : > { %v5934_v8 = vadd.f32 1.0, %v9723_v45  ;;  %9738 = vrcp.f32 %v5935_v10 }
 0x9c4   : > { %v9725_v55 = vpop.eup %9724  ;;  %v8687_v63 = vpop.f32.mrf.mxu1  ;;  %9740 = vtanh.f32 %v5883_v21 }
 0x9c5   : > { %v5937_v29 = vadd.f32 1.0, %v9725_v55  ;;  %9742 = vrcp.f32 %v5934_v8 }
 0x9c6   : > { %v9727_v31 = vpop.eup %9726  ;;  %v5893_v49 = vpop.f32.mrf.mxu1  ;;  %9744 = vtanh.f32 %v8687_v63 }
 0x9c7   : > { %v5936_v35 = vadd.f32 1.0, %v9727_v31  ;;  %9746 = vrcp.f32 %v5937_v29 }
 0x9c8   : > { %v9729_v57 = vpop.eup %9728  ;;  %v8690_v27 = vpop.f32.mrf.mxu1  ;;  %9748 = vtanh.f32 %v5893_v49 }
 0x9c9   : > { %v5959_v61 = vadd.f32 1.0, %v9729_v57  ;;  %v7581_v52 = vmul.f32 -1.442695, %v8690_v27 }
 0x9ca   : > { %v9731_v6 = vpop.eup %9730  ;;  %v5903_v47 = vpop.f32.mrf.mxu1 }
 0x9cb   : > { %9750 = vrcp.f32 %v5959_v61  ;;  %v5958_v51 = vadd.f32 1.0, %v9731_v6  ;;  %v7580_v41 = vmul.f32 -1.442695, %v5903_v47 }
 0x9cc   : > { %v9733_v1 = vpop.eup %9732  ;;  %9752 = vrcp.f32 %v5936_v35  ;;  %v8693_v15 = vpop.f32.mrf.mxu1 }
 0x9cd   : > { %9754 = vrcp.f32 %v5958_v51  ;;  %v5961_v7 = vadd.f32 1.0, %v9733_v1  ;;  %v7583_v48 = vmul.f32 -1.442695, %v8693_v15 }
 0x9ce   : > { %v9735_v2 = vpop.eup %9734  ;;  %9756 = vpow2.f32 %v7581_v52  ;;  %v5913_v62 = vpop.f32.mrf.mxu1 }
 0x9cf   : > { %9758 = vrcp.f32 %v5961_v7  ;;  %v5960_v59 = vadd.f32 1.0, %v9735_v2  ;;  %v7582_v53 = vmul.f32 -1.442695, %v5913_v62  ;;  %v9737_v14 = vpop.eup %9736 }
 0x9d0   : > { %9760 = vpow2.f32 %v7583_v48  ;;  %v8719_v44 = vpop.f32.mrf.mxu1  ;;  %v9739_v43 = vpop.eup %9738 }
 0x9d1   : > { %9762 = vrcp.f32 %v5960_v59  ;;  %v7606_v26 = vmul.f32 -1.442695, %v8719_v44  ;;  %v9741_v38 = vpop.eup %9740  ;;  %v6003_v63 = vmul.f32 %v9739_v43, %v9737_v14 }
 0x9d2   : > { %9764 = vpow2.f32 %v7582_v53  ;;  %v6314_v58 = vpop.f32.mrf.mxu1  ;;  %v9743_v30 = vpop.eup %9742 }
 0x9d3   : > { %9766 = vpow2.f32 %v7580_v41  ;;  %v9745_v34 = vpop.eup %9744  ;;  %v7605_v19 = vmul.f32 -1.442695, %v6314_v58  ;;  %v6002_v2 = vmul.f32 %v9743_v30, %v9741_v38 }
 0x9d4   : > { %v8722_v0 = vpop.f32.mrf.mxu1  ;;  %9768 = vpow2.f32 %v7606_v26  ;;  %v9747_v10 = vpop.eup %9746 }
 0x9d5   : > { %v7608_v45 = vmul.f32 -1.442695, %v8722_v0  ;;  %v9749_v8 = vpop.eup %9748  ;;  %9770 = vpow2.f32 %v7605_v19  ;;  %v6005_v48 = vmul.f32 %v9747_v10, %v9745_v34 }
 0x9d6   : > { %v6324_v21 = vpop.f32.mrf.mxu1 }
 0x9d7   : > { %v7607_v57 = vmul.f32 -1.442695, %v6324_v21  ;;  %9772 = vpow2.f32 %v7608_v45 }
 0x9d8   : > { %v9751_v55 = vpop.eup %9750  ;;  %v8725_v29 = vpop.f32.mrf.mxu1 }
 0x9d9   : > { %v9753_v31 = vpop.eup %9752  ;;  %v5999_v49 = vmul.f32 %v9751_v55, %v11593_v36  ;;  %v7610_v35 = vmul.f32 -1.442695, %v8725_v29 }
 0x9da   : > { %v9755_v27 = vpop.eup %9754  ;;  %v6334_v61 = vpop.f32.mrf.mxu1  ;;  %v6004_v14 = vmul.f32 %v9753_v31, %v9749_v8 }
 0x9db   : > { %v9757_v6 = vpop.eup %9756  ;;  %v11829_v52 = vadd.f32 %v6003_v63, %v5999_v49  ;;  %9774 = vpow2.f32 %v7610_v35  ;;  %v5998_v15 = vmul.f32 %v9755_v27, %v11601_v37  ;;  %v7609_v0 = vmul.f32 -1.442695, %v6334_v61 }
 0x9dc   : > { %v9759_v47 = vpop.eup %9758  ;;  %v8728_v51 = vpop.f32.mrf.mxu1  ;;  %9776 = vpow2.f32 %v7607_v57  ;;  %v5987_v43 = vadd.f32 1.0, %v9757_v6 }
 0x9dd   : > { %v9761_v1 = vpop.eup %9760  ;;  %v6001_v7 = vmul.f32 %v9759_v47, %v11598_v12  ;;  %9778 = vtanh.f32 %v11829_v52  ;;  %v11837_v12 = vadd.f32 %v6002_v2, %v5998_v15 }
 0x9de   : > { %v9763_v36 = vpop.eup %9762  ;;  %v5989_v62 = vadd.f32 1.0, %v9761_v1  ;;  %v6344_v59 = vpop.f32.mrf.mxu1 }
 0x9df   : > { %v9765_v41 = vpop.eup %9764  ;;  %v11834_v53 = vadd.f32 %v6005_v48, %v6001_v7  ;;  %v6000_v44 = vmul.f32 %v9763_v36, %v11604_v5  ;;  %v7612_v5 = vmul.f32 -1.442695, %v8728_v51  ;;  %v7611_v8 = vmul.f32 -1.442695, %v6344_v59 }
 0x9e0   : > { %v9767_v26 = vpop.eup %9766  ;;  %9780 = vrcp.f32 %v5989_v62  ;;  %v5988_v37 = vadd.f32 1.0, %v9765_v41  ;;  %v8731_v58 = vpop.f32.mrf.mxu1 }
 0x9e1   : > { %9782 = vtanh.f32 %v11834_v53  ;;  %v11840_v38 = vadd.f32 %v6004_v14, %v6000_v44  ;;  %v9769_v30 = vpop.eup %9768  ;;  %v5986_v19 = vadd.f32 1.0, %v9767_v26 }
 0x9e2   : > { %9784 = vrcp.f32 %v5988_v37  ;;  %v6354_v34 = vpop.f32.mrf.mxu1  ;;  %v6406_v45 = vadd.f32 1.0, %v9769_v30  ;;  %v9771_v21 = vpop.eup %9770 }
 0x9e3   : > { %9786 = vtanh.f32 %v11840_v38  ;;  %v6405_v35 = vadd.f32 1.0, %v9771_v21 }
 0x9e4   : > { %9788 = vrcp.f32 %v5987_v43  ;;  %v8734_v10 = vpop.f32.mrf.mxu1  ;;  %v9773_v63 = vpop.eup %9772 }
 0x9e5   : > { %9790 = vtanh.f32 %v11837_v12  ;;  %v6408_v61 = vadd.f32 1.0, %v9773_v63 }
 0x9e6   : > { %9792 = vpow2.f32 %v7609_v0  ;;  %v11844_v55 = vpop.f32.mrf.mxu1 }
 0x9e7   : > { %9794 = vrcp.f32 %v5986_v19 }
 0x9e8   : > { %v9775_v29 = vpop.eup %9774  ;;  %9796 = vpow2.f32 %v7612_v5  ;;  %v8737_v31 = vpop.f32.mrf.mxu1 }
 0x9e9   : > { %9798 = vrcp.f32 %v6406_v45  ;;  %v6430_v49 = vadd.f32 1.0, %v9775_v29  ;;  %v9777_v57 = vpop.eup %9776  ;;  %v7614_v47 = vmul.f32 -1.442695, %v8737_v31 }
 0x9ea   : > { %9800 = vpow2.f32 %v7611_v8  ;;  %v6374_v27 = vpop.f32.mrf.mxu1  ;;  %v9779_v6 = vpop.eup %9778  ;;  %v6407_v15 = vadd.f32 1.0, %v9777_v57  ;;  %v11849_v8 = vld [vmem:[%s12029_s5 + $0x8] sm:$0xff] }
 0x9eb   : > { %9802 = vrcp.f32 %v6430_v49  ;;  %v7613_v48 = vmul.f32 -1.442695, %v6374_v27 }
 0x9ec   : > { %9804 = vtanh.f32 %v8731_v58  ;;  %v8740_v51 = vpop.f32.mrf.mxu1 }
 0x9ed   : > { %v9781_v1 = vpop.eup %9780  ;;  %9806 = vrcp.f32 %v6405_v35  ;;  %v7616_v2 = vmul.f32 -1.442695, %v8740_v51 }
 0x9ee   : > { %v9783_v7 = vpop.eup %9782  ;;  %9808 = vrcp.f32 %v6408_v61  ;;  %v6384_v41 = vpop.f32.mrf.mxu1 }
 0x9ef   : > { %v9785_v36 = vpop.eup %9784  ;;  %v6017_v62 = vmul.f32 %v9783_v7, %v9781_v1  ;;  %9810 = vpow2.f32 %v7614_v47  ;;  %v7615_v37 = vmul.f32 -1.442695, %v6384_v41 }
 0x9f0   : > { %v9787_v59 = vpop.eup %9786  ;;  %9812 = vrcp.f32 %v6407_v15 }
 0x9f1   : > { %v9789_v44 = vpop.eup %9788  ;;  %8696 = vmatprep.subr.mxu0 %v6017_v62  ;;  %v6016_v14 = vmul.f32 %v9787_v59, %v9785_v36  ;;  %9814 = vpow2.f32 %v7613_v48 }
 0x9f2   : > { %v9791_v26 = vpop.eup %9790  ;;  %8697 = vmatpush3.msra.mxu0 %v6017_v62  ;;  %9816 = vpow2.f32 %v7616_v2  ;;  %v6015_v58 = vmul.f32 %v9789_v44, %v9779_v6 }
 0x9f3   : > { %v9793_v43 = vpop.eup %9792  ;;  %8698 = vmatprep.subr.mxu0 %v6016_v14  ;;  %9818 = vtanh.f32 %v6354_v34 }
 0x9f4   : > { %v9795_v30 = vpop.eup %9794  ;;  %v6429_v0 = vadd.f32 1.0, %v9793_v43  ;;  %8699 = vmatpush3.msra.mxu0 %v6016_v14  ;;  %9820 = vtanh.f32 %v8734_v10 }
 0x9f5   : > { %v9797_v19 = vpop.eup %9796  ;;  %8700 = vmatprep.subr.mxu0 %v6015_v58  ;;  %v6014_v5 = vmul.f32 %v9795_v30, %v9791_v26 }
 0x9f6   : > { %v9799_v45 = vpop.eup %9798  ;;  %9822 = vrcp.f32 %v6429_v0  ;;  %v6432_v21 = vadd.f32 1.0, %v9797_v19  ;;  %8701 = vmatpush3.msra.mxu0 %v6015_v58 }
 0x9f7   : > { %v9801_v63 = vpop.eup %9800  ;;  %9824 = vpow2.f32 %v7615_v37  ;;  %8702 = vmatprep.subr.mxu0 %v6014_v5  ;;  %v5392_v37 = vmul.f32 %v11824_v25, %v11824_v25 }
 0x9f8   : > { %v9803_v29 = vpop.eup %9802  ;;  %9826 = vrcp.f32 %v6432_v21  ;;  %v6431_v34 = vadd.f32 1.0, %v9801_v63  ;;  %8703 = vmatpush3.msra.mxu0 %v6014_v5 }
 0x9f9   : > { %v9805_v31 = vpop.eup %9804  ;;  %v6470_v10 = vmul.f32 %v9803_v29, %v11620_v39  ;;  %9828 = vtanh.f32 %v11844_v55  ;;  %8705 = vmatmul.mubr.msk.f32.vlgmr.msra.gmra.mxu0 %vm763_vm1, %v11849_v8  ;;  %8741 = vmatprep.subr.mxu0 %v11680_v50  ;;  %v12082_v29 = vld [vmem:[#allocation16_spill] sm:$0xff] }
 0x9fa   : > { %9830 = vrcp.f32 %v6431_v34  ;;  %v6474_v49 = vmul.f32 %v9805_v31, %v9799_v45  ;;  %8742 = vmatpush3.msra.mxu0 %v11680_v50  ;;  %8759 = vmatprep.mubr.msk.f32.mxu0 %vm1069_vm2, %v11611_v33  ;;  %v9807_v57 = vpop.eup %9806 }
 0x9fb   : > { %8743 = vmatprep.subr.mxu0 %v6017_v62  ;;  %v9809_v35 = vpop.eup %9808 }
 0x9fc   : > { %v6478_v27 = vadd.f32 %v6474_v49, %v6470_v10  ;;  %8744 = vmatpush3.msra.mxu0 %v6017_v62  ;;  %v9811_v39 = vpop.eup %9810 }
 0x9fd   : > { %8745 = vmatprep.subr.mxu0 %v6016_v14  ;;  %v9813_v55 = vpop.eup %9812  ;;  %v6458_v61 = vadd.f32 1.0, %v9811_v39 }
 0x9fe   : > { %6967 = vst [vmem:[#allocation9 + $0x8] sm:$0xff] %v6478_v27  ;;  %8746 = vmatpush3.msra.mxu0 %v6016_v14  ;;  %9832 = vtanh.f32 %v6478_v27  ;;  %v9815_v6 = vpop.eup %9814 }
 0x9ff   : > { %8747 = vmatprep.subr.mxu0 %v6015_v58  ;;  %v9817_v47 = vpop.eup %9816  ;;  %9834 = vrcp.f32 %v6458_v61  ;;  %v6457_v51 = vadd.f32 1.0, %v9815_v6 }
 0xa00   : > { %8748 = vmatpush3.msra.mxu0 %v6015_v58  ;;  %v9819_v50 = vpop.eup %9818  ;;  %v6460_v15 = vadd.f32 1.0, %v9817_v47 }
 0xa01   : > { %8749 = vmatprep.subr.mxu0 %v6014_v5  ;;  %v9821_v33 = vpop.eup %9820  ;;  %v6473_v36 = vmul.f32 %v9819_v50, %v9807_v57  ;;  %9836 = vrcp.f32 %v6457_v51 }
 0xa02   : > { %8750 = vmatpush3.msra.mxu0 %v6014_v5  ;;  %v6476_v44 = vmul.f32 %v9821_v33, %v9809_v35  ;;  %9838 = vrcp.f32 %v6460_v15 }
 0xa03   : > { %v9823_v1 = vpop.eup %9822 }
 0xa04   : > { %v9825_v7 = vpop.eup %9824  ;;  %v6469_v48 = vmul.f32 %v9823_v1, %v11630_v60 }
 0xa05   : > { %v9827_v2 = vpop.eup %9826  ;;  %v6459_v43 = vadd.f32 1.0, %v9825_v7 }
 0xa06   : > { %v9829_v62 = vpop.eup %9828  ;;  %v6477_v59 = vadd.f32 %v6473_v36, %v6469_v48  ;;  %v6472_v41 = vmul.f32 %v9827_v2, %v11627_v42  ;;  %v5391_v14 = vpop.permute.xlu1 %5390 }
 0xa07   : > { %v9831_v26 = vpop.eup %9830  ;;  %v5393_v58 = vmul.f32 %v5391_v14, %v5391_v14  ;;  %v6475_v0 = vmul.f32 %v9829_v62, %v9813_v55 }
 0xa08   : > { %6966 = vst [vmem:[#allocation9] sm:$0xff] %v6477_v59  ;;  %v6480_v30 = vadd.f32 %v6476_v44, %v6472_v41  ;;  %v6471_v60 = vmul.f32 %v9831_v26, %v11633_v28  ;;  %9840 = vtanh.f32 %v6477_v59 }
 0xa09   : > { %v5394_v19 = vsub.f32 %v5392_v37, %v5393_v58 }
 0xa0a   : > { %6969 = vst [vmem:[#allocation9 + $0x18] sm:$0xff] %v6480_v30  ;;  %v6479_v42 = vadd.f32 %v6475_v0, %v6471_v60  ;;  %9842 = vtanh.f32 %v6480_v30 }
 0xa0b   : > { %v9833_v5 = vpop.eup %9832  ;;  %9844 = vrcp.f32 %v6459_v43  ;;  %v5395_v45 = vmul.f32 0.125, %v5394_v19 }
 0xa0c   : > { %6968 = vst [vmem:[#allocation9 + $0x10] sm:$0xff] %v6479_v42  ;;  %9846 = vtanh.f32 %v6479_v42  ;;  %v9835_v21 = vpop.eup %9834 }
 0xa0d   : > { %v5403_v25 = vmul.f32 %v5395_v45, %v10818_v32  ;;  %v6486_v63 = vmul.f32 %v9835_v21, %v9833_v5 }
 0xa0e   : > { %v9837_v28 = vpop.eup %9836 }
 0xa0f   : > { %v5404_v34 = vsub.f32 %v12082_v29, %v5403_v25  ;;  %6959 = vst [vmem:[#allocation8 + $0x8] sm:$0xff] %v6486_v63  ;;  %v9839_v31 = vpop.eup %9838 }
 0xa11   : > { %5405 = vst [vmem:[%s10251_s19 + $0x5] sm:$0x1] %v5404_v34 }
 0xa15   : > { %v9841_v10 = vpop.eup %9840 }
 0xa16   : > { %v6485_v49 = vmul.f32 %v9841_v10, %v9837_v28 }
 0xa17   : > { %v9843_v57 = vpop.eup %9842 }
 0xa18   : > { %v9845_v35 = vpop.eup %9844  ;;  %v6488_v27 = vmul.f32 %v9843_v57, %v9839_v31  ;;  %6958 = vst [vmem:[#allocation8] sm:$0xff] %v6485_v49 }
 0xa19   : > { %v9847_v39 = vpop.eup %9846 }
 0xa1a   : > { %8751 = vmatprep.subr.mxu0 %v6488_v27  ;;  %6961 = vst [vmem:[#allocation8 + $0x18] sm:$0xff] %v6488_v27  ;;  %v6487_v55 = vmul.f32 %v9847_v39, %v9845_v35 }
 0xa1b   : > { %8752 = vmatpush3.msra.mxu0 %v6488_v27 }
 0xa1c   : > { %8753 = vmatprep.subr.mxu0 %v6487_v55  ;;  %6960 = vst [vmem:[#allocation8 + $0x10] sm:$0xff] %v6487_v55 }
 0xa1d   : > { %8754 = vmatpush3.msra.mxu0 %v6487_v55 }
 0xa1e   : > { %8755 = vmatprep.subr.mxu0 %v6486_v63 }
 0xa1f   : > { %8756 = vmatpush3.msra.mxu0 %v6486_v63 }
 0xa20   : > { %8757 = vmatprep.subr.mxu0 %v6485_v49 }
 0xa21   : > { %8758 = vmatpush3.msra.mxu0 %v6485_v49 }
 0xa22   : > { %8760 = vmatmul.mubr.msk.f32.vlgmr.msra.gmra.mxu0 %vm1069_vm2, %v11643_v4 }
 0xa23   : > { %8762 = vmatprep.mubr.msk.f32.mxu0 %vm1069_vm2, %v11648_v54  ;;  %v9940_v54 = vld [vmem:[#allocation2 + $0x30] sm:$0xff] }
 0xa26   : > { %8763 = vmatmul.mubr.msk.f32.gmra.mxu0 %vm1069_vm2, %v11657_v20 }
 0xa27   : > { %8765 = vmatprep.mubr.msk.f32.mxu0 %vm1069_vm2, %v11662_v46 }
 0xa2a   : > { %8766 = vmatmul.mubr.msk.f32.gmra.mxu0 %vm1069_vm2, %v11671_v9 }
 0xa2b   : > { %8768 = vmatprep.mubr.msk.f32.mxu0 %vm1069_vm2, %v11676_v16 }
 0xa2e   : > { %8769 = vmatmul.mubr.msk.f32.gmra.mxu0 %vm1069_vm2, %v11689_v13 }
 0xa2f   : > { %8771 = vmatprep.mubr.msk.f32.mxu0 %vm1069_vm2, %v11695_v18 }
 0xa32   : > { %8772 = vmatmul.mubr.msk.f32.gmra.mxu0 %vm1069_vm2, %v11704_v22 }
 0xa33   : > { %8774 = vmatprep.mubr.msk.f32.mxu0 %vm1069_vm2, %v11709_v24 }
 0xa36   : > { %8775 = vmatmul.mubr.msk.f32.gmra.mxu0 %vm1069_vm2, %v11718_v23 }
 0xa37   : > { %8777 = vmatprep.mubr.msk.f32.mxu0 %vm1069_vm2, %v11723_v11 }
 0xa3a   : > { %8778 = vmatmul.mubr.msk.f32.gmra.mxu0 %vm1069_vm2, %v11732_v17 }
 0xa3b   : > { %8780 = vmatprep.mubr.msk.f32.mxu0 %vm1069_vm2, %v11737_v56 }
 0xa3e   : > { %8781 = vmatmul.mubr.msk.f32.gmra.mxu0 %vm1069_vm2, %v11746_v3 }
 0xab9   : > { %v8706_v4 = vpop.f32.mrf.mxu0 }
 0xaba   : > { %v6152_v20 = vmul.f32 %v9940_v54, %v8706_v4 }
 0xabb   : > { %v6092_v46 = vpop.f32.mrf.mxu0 }
 0xabc   : > { %v6154_v9 = vrot.slane %v6152_v20, 1  ;;  %v6101_v16 = vmul.f32 %v6092_v46, %v6092_v46  ;;  %v6157_v18 = vrot.slane %v6152_v20, 2  ;;  %v6160_v11 = vrot.slane %v6152_v20, 3 }
 0xabd   : > { %v6163_v6 = vrot.slane %v6152_v20, 4 }
 0xabe   : > { %v6156_v13 = vadd.f32 %v6154_v9, %v6152_v20  ;;  %v6103_v22 = vcombine.high %v6101_v16, %v6101_v16  ;;  %v6110_v24 = vrot.slane %v6101_v16, %v12080_v40 }
 0xac0   : > { %v6159_v23 = vadd.f32 %v6157_v18, %v6156_v13  ;;  %v6117_v17 = vrot.slane %v6103_v22, %v12080_v40  ;;  %v6118_v61 = vcombine.high %v6110_v24, %v6110_v24  ;;  %v6125_v56 = vrot.slane %v6110_v24, %v12080_v40  ;;  %7586 = vst.sshfl [vmem:[#allocation3 + $0x6] sm:$0x1 pattern:$0x73625140] %v6110_v24 }
 0xac2   : > { %v6162_v3 = vadd.f32 %v6160_v11, %v6159_v23  ;;  %v6139_v47 = vrot.slane %v6118_v61, %v12080_v40  ;;  %v6140_v50 = vcombine.high %v6125_v56, %v6125_v56  ;;  %7587 = vst.sshfl [vmem:[#allocation3 + $0xe] sm:$0x1 pattern:$0x73625140] %v6118_v61 }
 0xac3   : > { %7588 = vst.sshfl [vmem:[#allocation3 + $0x26] sm:$0x1 pattern:$0x73625140] %v6117_v17 }
 0xac4   : > { %v11901_v33 = vadd.f32 %v6163_v6, %v6162_v3  ;;  %v6141_v51 = vcombine.high %v6139_v47, %v6139_v47  ;;  %6149 = vst [vmem:[#allocation3 + $0x16] sm:$0x1] %v6140_v50 }
 0xac6   : > { %6166 = vrot.lane.b32.xlu0 %v11901_v33, %s10096_s24  ;;  %6150 = vst [vmem:[#allocation3 + $0x1e] sm:$0x1] %v6141_v51 }
 0xae2   : > { %v8761_v1 = vpop.f32.mrf.mxu0 }
 0xae3   : > { %v7634_v15 = vmul.f32 -1.442695, %v8761_v1 }
 0xae4   : > { %v6619_v7 = vpop.f32.mrf.mxu0 }
 0xae5   : > { %9848 = vpow2.f32 %v7634_v15  ;;  %v7633_v48 = vmul.f32 -1.442695, %v6619_v7 }
 0xae6   : > { %v8764_v36 = vpop.f32.mrf.mxu0 }
 0xae7   : > { %9850 = vpow2.f32 %v7633_v48  ;;  %v7636_v2 = vmul.f32 -1.442695, %v8764_v36 }
 0xae8   : > { %v6629_v62 = vpop.f32.mrf.mxu0 }
 0xae9   : > { %9852 = vpow2.f32 %v7636_v2  ;;  %v7635_v59 = vmul.f32 -1.442695, %v6629_v62 }
 0xaea   : > { %v8767_v41 = vpop.f32.mrf.mxu0 }
 0xaeb   : > { %9854 = vpow2.f32 %v7635_v59  ;;  %v7638_v44 = vmul.f32 -1.442695, %v8767_v41 }
 0xaec   : > { %v6639_v14 = vpop.f32.mrf.mxu0 }
 0xaed   : > { %9856 = vpow2.f32 %v7638_v44  ;;  %v7637_v26 = vmul.f32 -1.442695, %v6639_v14 }
 0xaee   : > { %v8770_v43 = vpop.f32.mrf.mxu0 }
 0xaef   : > { %9858 = vpow2.f32 %v7637_v26  ;;  %v7640_v37 = vmul.f32 -1.442695, %v8770_v43 }
 0xaf0   : > { %v6649_v58 = vpop.f32.mrf.mxu0 }
 0xaf1   : > { %9860 = vpow2.f32 %v7640_v37  ;;  %v7639_v30 = vmul.f32 -1.442695, %v6649_v58 }
 0xaf2   : > { %v9849_v60 = vpop.eup %9848  ;;  %v8773_v0 = vpop.f32.mrf.mxu0 }
 0xaf3   : > { %v6711_v19 = vadd.f32 1.0, %v9849_v60  ;;  %9862 = vpow2.f32 %v7639_v30 }
 0xaf4   : > { %v9851_v42 = vpop.eup %9850  ;;  %v6659_v5 = vpop.f32.mrf.mxu0  ;;  %9864 = vtanh.f32 %v8773_v0 }
 0xaf5   : > { %v6710_v45 = vadd.f32 1.0, %v9851_v42  ;;  %9866 = vrcp.f32 %v6711_v19 }
 0xaf6   : > { %v9853_v21 = vpop.eup %9852  ;;  %v8776_v25 = vpop.f32.mrf.mxu0  ;;  %9868 = vtanh.f32 %v6659_v5 }
 0xaf7   : > { %v6713_v63 = vadd.f32 1.0, %v9853_v21  ;;  %9870 = vrcp.f32 %v6710_v45 }
 0xaf8   : > { %v9855_v29 = vpop.eup %9854  ;;  %v6669_v34 = vpop.f32.mrf.mxu0  ;;  %9872 = vtanh.f32 %v8776_v25 }
 0xaf9   : > { %v6712_v28 = vadd.f32 1.0, %v9855_v29  ;;  %9874 = vrcp.f32 %v6713_v63 }
 0xafa   : > { %v9857_v31 = vpop.eup %9856  ;;  %v8779_v10 = vpop.f32.mrf.mxu0  ;;  %9876 = vtanh.f32 %v6669_v34 }
 0xafb   : > { %v6735_v49 = vadd.f32 1.0, %v9857_v31  ;;  %v7642_v57 = vmul.f32 -1.442695, %v8779_v10  ;;  %9878 = vrcp.f32 %v6712_v28  ;;  %v6168_v10 = vmul.f32 %v11901_v33, %v11901_v33 }
 0xafc   : > { %v9859_v35 = vpop.eup %9858  ;;  %v6679_v27 = vpop.f32.mrf.mxu0 }
 0xafd   : > { %9880 = vrcp.f32 %v6735_v49  ;;  %v6734_v39 = vadd.f32 1.0, %v9859_v35  ;;  %v7641_v55 = vmul.f32 -1.442695, %v6679_v27 }
 0xafe   : > { %v9861_v4 = vpop.eup %9860  ;;  %9882 = vpow2.f32 %v7642_v57  ;;  %v8782_v54 = vpop.f32.mrf.mxu0 }
 0xaff   : > { %9884 = vrcp.f32 %v6734_v39  ;;  %v6737_v20 = vadd.f32 1.0, %v9861_v4  ;;  %v7644_v46 = vmul.f32 -1.442695, %v8782_v54  ;;  %v12083_v39 = vld [vmem:[#allocation18_spill] sm:$0xff]  ;;  %v9941_v54 = vld [vmem:[#allocation2 + $0x38] sm:$0xff] }
 0xb00   : > { %v9863_v9 = vpop.eup %9862  ;;  %9886 = vpow2.f32 %v7641_v55  ;;  %v6689_v16 = vpop.f32.mrf.mxu0 }
 0xb01   : > { %9888 = vrcp.f32 %v6737_v20  ;;  %v6736_v13 = vadd.f32 1.0, %v9863_v9  ;;  %v7643_v18 = vmul.f32 -1.442695, %v6689_v16  ;;  %v9865_v22 = vpop.eup %9864 }
 0xb02   : > { %9890 = vpow2.f32 %v7644_v46  ;;  %v9867_v24 = vpop.eup %9866 }
 0xb03   : > { %9892 = vrcp.f32 %v6736_v13  ;;  %v9869_v23 = vpop.eup %9868  ;;  %v6779_v51 = vmul.f32 %v9867_v24, %v9865_v22 }
 0xb04   : > { %9894 = vpow2.f32 %v7643_v18  ;;  %v9871_v11 = vpop.eup %9870 }
 0xb05   : > { %v9873_v17 = vpop.eup %9872  ;;  %v6778_v2 = vmul.f32 %v9871_v11, %v9869_v23 }
 0xb06   : > { %v9875_v61 = vpop.eup %9874 }
 0xb07   : > { %v9877_v56 = vpop.eup %9876  ;;  %v6781_v26 = vmul.f32 %v9875_v61, %v9873_v17 }
 0xb08   : > { %v9879_v3 = vpop.eup %9878 }
 0xb0a   : > { %v9881_v6 = vpop.eup %9880 }
 0xb0b   : > { %v9883_v47 = vpop.eup %9882  ;;  %v6775_v50 = vmul.f32 %v9881_v6, %v11829_v52 }
 0xb0c   : > { %v9885_v1 = vpop.eup %9884  ;;  %v6763_v15 = vadd.f32 1.0, %v9883_v47 }
 0xb0d   : > { %v9887_v7 = vpop.eup %9886  ;;  %v6783_v48 = vadd.f32 %v6779_v51, %v6775_v50  ;;  %v6774_v36 = vmul.f32 %v9885_v1, %v11837_v12  ;;  %v6780_v12 = vmul.f32 %v9879_v3, %v9877_v56  ;;  %v8875_v51 = vld [vmem:[%s11927_s30] sm:%s11919_s23] }
 0xb0e   : > { %v9889_v62 = vpop.eup %9888  ;;  %9896 = vrcp.f32 %v6763_v15  ;;  %v6762_v59 = vadd.f32 1.0, %v9887_v7  ;;  %v8887_v1 = vld [vmem:[%s11927_s30 + $0x20] sm:%s11919_s23] }
 0xb0f   : > { %v9891_v41 = vpop.eup %9890  ;;  %6971 = vst [vmem:[#allocation9 + $0x28] sm:$0xff] %v6783_v48  ;;  %v6782_v44 = vadd.f32 %v6778_v2, %v6774_v36  ;;  %v6777_v14 = vmul.f32 %v9889_v62, %v11834_v53  ;;  %9898 = vtanh.f32 %v6783_v48  ;;  %v8881_v48 = vld [vmem:[%s11927_s30 + $0x10] sm:%s11919_s23] }
 0xb10   : > { %v9893_v43 = vpop.eup %9892  ;;  %9900 = vrcp.f32 %v6762_v59  ;;  %v6765_v52 = vadd.f32 1.0, %v9891_v41 }
 0xb11   : > { %v9895_v37 = vpop.eup %9894  ;;  %6970 = vst [vmem:[#allocation9 + $0x20] sm:$0xff] %v6782_v44  ;;  %v6785_v58 = vadd.f32 %v6781_v26, %v6777_v14  ;;  %v6776_v30 = vmul.f32 %v9893_v43, %v11840_v38  ;;  %9902 = vtanh.f32 %v6782_v44 }
 0xb12   : > { %9904 = vrcp.f32 %v6765_v52  ;;  %v6764_v60 = vadd.f32 1.0, %v9895_v37 }
 0xb13   : > { %6973 = vst [vmem:[#allocation9 + $0x38] sm:$0xff] %v6785_v58  ;;  %v6784_v0 = vadd.f32 %v6780_v12, %v6776_v30  ;;  %9906 = vtanh.f32 %v6785_v58 }
 0xb14   : > { %9908 = vrcp.f32 %v6764_v60 }
 0xb15   : > { %6972 = vst [vmem:[#allocation9 + $0x30] sm:$0xff] %v6784_v0  ;;  %9910 = vtanh.f32 %v6784_v0 }
 0xb1b   : > { %v9897_v53 = vpop.eup %9896 }
 0xb1c   : > { %v9899_v19 = vpop.eup %9898 }
 0xb1d   : > { %v9901_v42 = vpop.eup %9900  ;;  %v6791_v5 = vmul.f32 %v9899_v19, %v9897_v53 }
 0xb1e   : > { %v9903_v45 = vpop.eup %9902 }
 0xb1f   : > { %v9905_v21 = vpop.eup %9904  ;;  %6963 = vst [vmem:[#allocation8 + $0x28] sm:$0xff] %v6791_v5  ;;  %v6790_v25 = vmul.f32 %v9903_v45, %v9901_v42 }
 0xb20   : > { %v9907_v63 = vpop.eup %9906 }
 0xb21   : > { %v9909_v38 = vpop.eup %9908  ;;  %v6793_v29 = vmul.f32 %v9907_v63, %v9905_v21  ;;  %6962 = vst [vmem:[#allocation8 + $0x20] sm:$0xff] %v6790_v25 }
 0xb22   : > { %v9911_v34 = vpop.eup %9910 }
 0xb23   : > { %8785 = vmatprep.subr.mxu1 %v6793_v29  ;;  %6965 = vst [vmem:[#allocation8 + $0x38] sm:$0xff] %v6793_v29  ;;  %v6792_v28 = vmul.f32 %v9911_v34, %v9909_v38 }
 0xb24   : > { %8786 = vmatpush3.msra.mxu1 %v6793_v29 }
 0xb25   : > { %8787 = vmatprep.subr.mxu1 %v6792_v28  ;;  %6964 = vst [vmem:[#allocation8 + $0x30] sm:$0xff] %v6792_v28 }
 0xb26   : > { %8788 = vmatpush3.msra.mxu1 %v6792_v28 }
 0xb27   : > { %8789 = vmatprep.subr.mxu1 %v6791_v5 }
 0xb28   : > { %8790 = vmatpush3.msra.mxu1 %v6791_v5 }
 0xb29   : > { %8791 = vmatprep.subr.mxu1 %v6790_v25 }
 0xb2a   : > { %8792 = vmatpush3.msra.mxu1 %v6790_v25 }
 0xb2b   : > { %8794 = vmatmul.mubr.msk.f32.vlgmr.msra.gmra.mxu1 %vm763_vm1, %v11849_v8 }
 0xb38   : > { %v6167_v31 = vpop.permute.xlu0 %6166 }
 0xb39   : > { %v6169_v49 = vmul.f32 %v6167_v31, %v6167_v31 }
 0xb3b   : > { %v6170_v57 = vsub.f32 %v6168_v10, %v6169_v49 }
 0xb3d   : > { %v6171_v35 = vmul.f32 0.125, %v6170_v57 }
 0xb3f   : > { %v6179_v27 = vmul.f32 %v6171_v35, %v10818_v32 }
 0xb41   : > { %v6180_v55 = vsub.f32 %v12083_v39, %v6179_v27 }
 0xb43   : > { %6181 = vst [vmem:[%s10251_s19 + $0x6] sm:$0x1] %v6180_v55 }
 0xbeb   : > { %v8795_v4 = vpop.f32.mrf.mxu1 }
 0xbec   : > { %v6928_v20 = vmul.f32 %v9941_v54, %v8795_v4 }
 0xbed   : > { %v6868_v46 = vpop.f32.mrf.mxu1 }
 0xbee   : > { %v6877_v9 = vmul.f32 %v6868_v46, %v6868_v46  ;;  %v6930_v16 = vrot.slane %v6928_v20, 1  ;;  %v6933_v18 = vrot.slane %v6928_v20, 2  ;;  %v6936_v22 = vrot.slane %v6928_v20, 3 }
 0xbef   : > { %v6939_v6 = vrot.slane %v6928_v20, 4 }
 0xbf0   : > { %v6879_v8 = vcombine.high %v6877_v9, %v6877_v9  ;;  %v6886_v33 = vrot.slane %v6877_v9, %v12080_v40  ;;  %v6932_v13 = vadd.f32 %v6930_v16, %v6928_v20 }
 0xbf2   : > { %v6893_v24 = vrot.slane %v6879_v8, %v12080_v40  ;;  %v6894_v23 = vcombine.high %v6886_v33, %v6886_v33  ;;  %v6901_v11 = vrot.slane %v6886_v33, %v12080_v40  ;;  %7647 = vst.sshfl [vmem:[#allocation3 + $0x7] sm:$0x1 pattern:$0x73625140] %v6886_v33  ;;  %v6935_v17 = vadd.f32 %v6933_v18, %v6932_v13 }
 0xbf4   : > { %v6915_v61 = vrot.slane %v6894_v23, %v12080_v40  ;;  %v6916_v56 = vcombine.high %v6901_v11, %v6901_v11  ;;  %7648 = vst.sshfl [vmem:[#allocation3 + $0xf] sm:$0x1 pattern:$0x73625140] %v6894_v23  ;;  %v6938_v3 = vadd.f32 %v6936_v22, %v6935_v17  ;;  %v8878_v40 = vld [vmem:[%s11927_s30 + $0x8] sm:%s11919_s23] }
 0xbf5   : > { %7649 = vst.sshfl [vmem:[#allocation3 + $0x27] sm:$0x1 pattern:$0x73625140] %v6893_v24 }
 0xbf6   : > { %v6917_v47 = vcombine.high %v6915_v61, %v6915_v61  ;;  %6925 = vst [vmem:[#allocation3 + $0x17] sm:$0x1] %v6916_v56  ;;  %v11925_v50 = vadd.f32 %v6939_v6, %v6938_v3 }
 0xbf8   : > { %6926 = vst [vmem:[#allocation3 + $0x1f] sm:$0x1] %v6917_v47  ;;  %6942 = vrot.lane.b32.xlu1 %v11925_v50, %s10096_s24  ;;  %s9942_s24 = scalar_lea.vmem %s7047_s26, 1024 }
 0xbf9   : > { %v6986_v15 = vld [vmem:[#allocation3] sm:$0xff]  ;;  %p9943_p11 = scmp.ne.s32.totalorder %s7047_s26, %s9942_s24  ;;  %p9950_p1 = scmp.lt.s32.totalorder %s9942_s24, %s9942_s24 }
 0xbfa   : > { %v6991_v7 = vadd.f32 %v8875_v51, %v6986_v15 }
 0xbfb   : > { %v6987_v36 = vld [vmem:[#allocation3 + $0x8] sm:$0xff]  ;;  %p9944_p12 = pnand %p9943_p11, %p11935_p10  ;;  %p9951_p2 = por %p9950_p1, %p9949_p0 }
 0xbfc   : > { %v6990_v2 = vld [vmem:[#allocation3 + $0x20] sm:$0xff]  ;;  %v6992_v62 = vadd.f32 %v8878_v40, %v6987_v36  ;;  %6996 = vst [vmem:[%s11927_s30] sm:$0xff] %v6991_v7 }
 0xbfd   : > { %v6995_v59 = vadd.f32 %v8887_v1, %v6990_v2  ;;  %p9945_p13 = pneg %p9944_p12 }
 0xbff   : > { %p9952_p3 = pnand %p9951_p2, %p9945_p13 }
 0xc01   : > { %9955 = shalt.err (!%p9952_p3)
}
 0xc02   : > { %s10098_s14 = smov 128   ;;  %s10099_s27 = smov 8   ;;  %v8884_v41 = vld [vmem:[%s11927_s30 + $0x18] sm:%s11919_s23]  ;;  %v6988_v44 = vld [vmem:[#allocation3 + $0x10] sm:$0xff]  ;;  %6997 = vst [vmem:[%s11927_s30 + $0x8] sm:$0xff] %v6992_v62  ;;  %7000 = vst [vmem:[%s11927_s30 + $0x20] sm:$0xff] %v6995_v59 }
 0xc03   : > { %8803 = dma.vmem_to_hbm [thread:$0]  (%p11935_p10), %s7047_s26, 1024, %s12033_s9, [#allocation10], %s10098_s14, %s10098_s14, %s10099_s27   ;;  %v6993_v14 = vadd.f32 %v8881_v48, %v6988_v44  ;;  %v6989_v26 = vld [vmem:[#allocation3 + $0x18] sm:$0xff] }
 0xc04   : > { %s10100_s21 = smov [#allocation6]   ;;  %s10101_s18 = smov [#allocation8]   ;;  %v6994_v43 = vadd.f32 %v8884_v41, %v6989_v26 }
 0xc05   : > { %s7020_s28 = sshll.u32 %s10100_s21, 4  ;;  %s7033_s20 = sshll.u32 %s10101_s18, 4  ;;  %6998 = vst [vmem:[%s11927_s30 + $0x10] sm:$0xff] %v6993_v14  ;;  %s7021_s28 = int_to_ptr.vmem [resolvable:$true] %s7020_s28  ;;  %s7034_s20 = int_to_ptr.vmem [resolvable:$true] %s7033_s20 }
 0xc06   : > { %6999 = vst [vmem:[%s11927_s30 + $0x18] sm:$0xff] %v6994_v43  ;;  %s9966_s22 = scalar_lea.vmem %s7021_s28, 1280  ;;  %p9973_p7 = scmp.lt.s32.totalorder %s7021_s28, %s7021_s28 }
 0xc07   : > { %p9967_p4 = scmp.ne.s32.totalorder %s7021_s28, %s9966_s22  ;;  %p9974_p8 = scmp.lt.s32.totalorder %s9966_s22, %s9966_s22 }
 0xc09   : > { %p9968_p5 = pnand %p9967_p4, %p11935_p10  ;;  %p9975_p9 = por %p9974_p8, %p9973_p7 }
 0xc0b   : > { %p9969_p6 = pneg %p9968_p5 }
 0xc0d   : > { %p9976_p11 = pnand %p9975_p9, %p9969_p6 }
 0xc0f   : > { %9979 = shalt.err (!%p9976_p11)
}
 0xc10   : > { %8799 = dma.vmem_to_hbm [thread:$0]  (%p11935_p10), %s7021_s28, 1280, %s12031_s7, [#allocation7], %s10098_s14, %s10098_s14, %s10099_s27  }
 0xc11   : > { %s9990_s30 = scalar_lea.vmem %s7034_s20, 1024  ;;  %p9997_p1 = scmp.lt.s32.totalorder %s7034_s20, %s7034_s20 }
 0xc12   : > { %p9991_p12 = scmp.ne.s32.totalorder %s7034_s20, %s9990_s30  ;;  %p9998_p2 = scmp.lt.s32.totalorder %s9990_s30, %s9990_s30 }
 0xc14   : > { %p9992_p13 = pnand %p9991_p12, %p11935_p10  ;;  %p9999_p3 = por %p9998_p2, %p9997_p1 }
 0xc16   : > { %p9993_p0 = pneg %p9992_p13 }
 0xc18   : > { %p10000_p4 = pnand %p9999_p3, %p9993_p0 }
 0xc1a   : > { %10003 = shalt.err (!%p10000_p4)
}
 0xc1b   : > { %8801 = dma.vmem_to_hbm [thread:$0]  (%p11935_p10), %s7034_s20, 1024, %s12032_s8, [#allocation7], %s10098_s14, %s10098_s14, %s10099_s27   ;;  %v6944_v37 = vmul.f32 %v11925_v50, %v11925_v50  ;;  %v12085_v0 = vld [vmem:[#allocation20_spill] sm:$0xff] }
 0xc1c   : > { %s10102_s29 = smov [#allocation4]  }
 0xc1d   : > { %s7007_s17 = sshll.u32 %s10102_s29, 4  ;;  %s7008_s17 = int_to_ptr.vmem [resolvable:$true] %s7007_s17 }
 0xc1e   : > { %s10014_s21 = scalar_lea.vmem %s7008_s17, 256  ;;  %p10021_p8 = scmp.lt.s32.totalorder %s7008_s17, %s7008_s17 }
 0xc1f   : > { %p10015_p5 = scmp.ne.s32.totalorder %s7008_s17, %s10014_s21  ;;  %p10022_p9 = scmp.lt.s32.totalorder %s10014_s21, %s10014_s21 }
 0xc21   : > { %p10016_p6 = pnand %p10015_p5, %p11935_p10  ;;  %p10023_p11 = por %p10022_p9, %p10021_p8 }
 0xc23   : > { %p10017_p7 = pneg %p10016_p6 }
 0xc25   : > { %p10024_p12 = pnand %p10023_p11, %p10017_p7 }
 0xc6a   : > { %v6943_v52 = vpop.permute.xlu1 %6942 }
 0xc6b   : > { %v6945_v58 = vmul.f32 %v6943_v52, %v6943_v52 }
 0xc6d   : > { %v6946_v30 = vsub.f32 %v6944_v37, %v6945_v58 }
 0xc6f   : > { %v6947_v12 = vmul.f32 0.125, %v6946_v30 }
 0xc71   : > { %v6955_v60 = vmul.f32 %v6947_v12, %v10818_v32 }
 0xc73   : > { %v6956_v53 = vsub.f32 %v12085_v0, %v6955_v60 }
 0xc75   : > { %6957 = vst [vmem:[%s10251_s19 + $0x7] sm:$0x1] %v6956_v53 }
 0xc76   : > { %10027 = shalt.err (!%p10024_p12)
}
 0xc77   : > { %8797 = dma.vmem_to_hbm [thread:$0]  (%p11935_p10), %s7008_s17, 256, %s12030_s6, [#allocation5], %s10098_s14, %s10098_s14, %s10099_s27  }
 0xc78   : > { %10059 = dma.done.wait (%p11935_p10), [#allocation5], 256  }
 0xc79   : > { %10061 = vsyncadd (%p11935_p10), [#allocation5], 4294967040 }
 0xc7a   : > { %10063 = dma.done.wait (%p11935_p10), [#allocation7], 2304  }
 0xc7b   : > { %10065 = vsyncadd (%p11935_p10), [#allocation7], 4294964992 }
 0xc7c   : > { %10067 = dma.done.wait (%p11935_p10), [#allocation10], 1024  }
 0xc7d   : > { %10069 = vsyncadd (%p11935_p10), [#allocation10], 4294966272 }
 0xc7e PF: > { %s23_s13 = sadd.s32 1, %s10088_s13   ;;  %s12086_s30 = smov %s10080_s11 }
 0xc7f   : > { %p20_p13 = scmp.ge.s32.totalorder %s23_s13, 8   ;;  %s12087_s10 = smov %s10084_s12 }
 0xc80   : > { %s12088_s11 = smov %s12091_s15  ;;  %s12089_s12 = smov %s12095_s16 }
 0xc81   :  { %22 = sbr.rel (!%p20_p13) target bundleno = 5 (0x5), region = 110 }
 0xc86   :  { %7074 = vsyncpa [#allocation5], 1 }
 0xc87   :  { %7076 = vsyncpa [#allocation5 + $0x1], 1 }
 0xc88   :  { %7077 = vsyncpa [#allocation7], 1 }
 0xc89   :  { %7078 = vsyncpa [#allocation10], 1 }

</bundles_post_ra>
